<compile_context>
chip_gen: v6e
topology: v6e:2x2x1
jax: 0.10.0
libtpu: 0.0.40
codegen_flags: <defaults>
</compile_context>

<pallas_src>
import jax
import jax.numpy as jnp
from jax.experimental import pallas as pl
from jax.experimental.pallas import tpu as pltpu

EPS = 1e-5

# (in_features, out_features) for fc0..fc11
LAYER_DIMS = [
    (512, 512), (512, 512), (512, 128), (128, 128),
    (128, 64), (64, 64), (64, 32), (32, 32),
    (32, 16), (16, 16), (16, 8), (8, 1),
]
N_LAYERS = len(LAYER_DIMS)          # 12 linear layers
N_BN = N_LAYERS - 1                 # 11 batchnorm layers (all but the last fc)

# -------- packed small-vector layout: one (24, 512) f32 array ---------------
VEC_WIDTH = 512
GAMMA_ROW = 0                       # rows [0, 11)  : gamma_l
BETA_ROW = N_BN                     # rows [11, 22) : beta_l
FC11_W_ROW = 2 * N_BN               # row  22       : fc11 weight (8 values)
FC11_BIAS_ROW = 2 * N_BN + 1        # row  23       : fc11 bias (element 0)
N_VEC_ROWS = 24

# -------- packed small-weight slab: fc3..fc10 stacked along sublanes --------
SLAB_LAYERS = tuple(range(3, 11))   # fc3..fc10 (fin<=128, fout<=128)
SLAB_OFFSETS = {}
_off = 0
for _li in SLAB_LAYERS:
    SLAB_OFFSETS[_li] = _off        # every fin is a multiple of 16 -> bf16-tile aligned
    _off += LAYER_DIMS[_li][0]
SLAB_ROWS = _off                    # 480
SLAB_WIDTH = 128


def _ann_kernel(x_ref, vec_ref, w0_ref, w1_ref, w2_ref, slab_ref, o_ref):
    """One grid step = one independent group of shape (B, 512)."""
    batch = x_ref.shape[0]
    inv_b = 1.0 / batch

    def bn_relu(y, li):
        fout = y.shape[1]
        # Fused BN: two independent reductions, one scale/shift.  Clamp the
        # one-pass variance against negative rounding (review concern).
        s1 = jnp.sum(y, axis=0, keepdims=True)
        s2 = jnp.sum(y * y, axis=0, keepdims=True)
        mean = s1 * inv_b
        var = jnp.maximum(s2 * inv_b - mean * mean, 0.0)
        g = vec_ref[GAMMA_ROW + li:GAMMA_ROW + li + 1, 0:fout]     # (1, fout)
        be = vec_ref[BETA_ROW + li:BETA_ROW + li + 1, 0:fout]      # (1, fout)
        scale = g * jax.lax.rsqrt(var + EPS)                        # EUP rsqrt
        shift = be - mean * scale
        return jnp.maximum(y * scale + shift, 0.0)

    h_bf16 = x_ref[...]                                # (B, 512) bf16 from host
    h_f32 = None

    # Layers 0..2: large weights from dedicated refs (bf16 MXU, f32 accumulate).
    big_refs = (w0_ref, w1_ref, w2_ref)
    for li in range(3):
        y = jnp.dot(h_bf16, big_refs[li][...], preferred_element_type=jnp.float32)
        h_f32 = bn_relu(y, li)
        h_bf16 = h_f32.astype(jnp.bfloat16)

    # Layers 3..10: small weights sliced out of the packed slab.
    for li in SLAB_LAYERS:
        fin, fout = LAYER_DIMS[li]
        off = SLAB_OFFSETS[li]
        w = slab_ref[off:off + fin, 0:fout]            # static sublane-range slice
        y = jnp.dot(h_bf16, w, preferred_element_type=jnp.float32)
        h_f32 = bn_relu(y, li)
        h_bf16 = h_f32.astype(jnp.bfloat16)

    # Final fc11 (8 -> 1): bias kept (no BN to cancel it), no activation.
    # Tiny output dim -> do it as multiply + lane reduction, not an MXU matmul.
    w11 = vec_ref[FC11_W_ROW:FC11_W_ROW + 1, 0:8]                  # (1, 8) f32
    b11 = vec_ref[FC11_BIAS_ROW:FC11_BIAS_ROW + 1, 0:1]            # (1, 1) f32
    y = jnp.sum(h_f32 * w11, axis=1, keepdims=True) + b11          # (B, 1)
    o_ref[...] = y.astype(o_ref.dtype)


@jax.jit
def ann_forward(x_bf16, vec, w0, w1, w2, slab):
    """x_bf16: (G, B, 512) bf16; vec: (24, 512) f32; w0/w1/w2/slab: bf16 weights."""
    G, B, F = x_bf16.shape
    const2d = lambda shape: pl.BlockSpec(shape, lambda g: (0, 0))   # VMEM-resident
    return pl.pallas_call(
        _ann_kernel,
        out_shape=jax.ShapeDtypeStruct((G, B, 1), jnp.float32),
        grid=(G,),
        in_specs=[
            pl.BlockSpec((None, B, F), lambda g: (g, 0, 0)),        # x: per-group block
            const2d((N_VEC_ROWS, VEC_WIDTH)),                       # packed vectors
            const2d(LAYER_DIMS[0]),                                 # w0 (512, 512)
            const2d(LAYER_DIMS[1]),                                 # w1 (512, 512)
            const2d(LAYER_DIMS[2]),                                 # w2 (512, 128)
            const2d((SLAB_ROWS, SLAB_WIDTH)),                       # small-weight slab
        ],
        out_specs=pl.BlockSpec((None, B, 1), lambda g: (g, 0, 0)),
        compiler_params=pltpu.CompilerParams(
            dimension_semantics=("parallel",),        # groups shard across v7x TCs
            vmem_limit_bytes=16 << 20),               # footprint ~3 MiB; safe everywhere
    )(x_bf16, vec, w0, w1, w2, slab)


# ----------------------------------------------------------------------------
# Host-side parameter construction / packing.
# ----------------------------------------------------------------------------

def init_params(key):
    """Deterministic init matching the PyTorch module's shapes (weights pre-T)."""
    weights, biases, gammas, betas = [], [], [], []
    for li, (fin, fout) in enumerate(LAYER_DIMS):
        key, kw, kb, kg, kbe = jax.random.split(key, 5)
        scale = 1.0 / jnp.sqrt(jnp.float32(fin))
        weights.append(jax.random.normal(kw, (fin, fout), jnp.float32) * scale)
        biases.append(jax.random.normal(kb, (1, fout), jnp.float32) * 0.1)
        if li < N_BN:
            gammas.append(1.0 + 0.05 * jax.random.normal(kg, (1, fout), jnp.float32))
            betas.append(0.05 * jax.random.normal(kbe, (1, fout), jnp.float32))
    return weights, biases, gammas, betas


def pack_params(weights_f32, biases, gammas, betas):
    """bf16-cast weights; pack small weights into a slab and vectors into one array."""
    w_bf16 = [w.astype(jnp.bfloat16) for w in weights_f32]
    big = (w_bf16[0], w_bf16[1], w_bf16[2])

    slab = jnp.zeros((SLAB_ROWS, SLAB_WIDTH), jnp.bfloat16)
    for li in SLAB_LAYERS:
        fin, fout = LAYER_DIMS[li]
        off = SLAB_OFFSETS[li]
        slab = slab.at[off:off + fin, :fout].set(w_bf16[li])

    vec = jnp.zeros((N_VEC_ROWS, VEC_WIDTH), jnp.float32)
    for li in range(N_BN):
        fout = LAYER_DIMS[li][1]
        vec = vec.at[GAMMA_ROW + li, :fout].set(gammas[li][0])
        vec = vec.at[BETA_ROW + li, :fout].set(betas[li][0])
    vec = vec.at[FC11_W_ROW, :8].set(weights_f32[11][:, 0])        # fc11 weight (f32)
    vec = vec.at[FC11_BIAS_ROW, :1].set(biases[11][0])             # fc11 bias
    return vec, big, slab


# ----------------------------------------------------------------------------
# Pure-JAX references for correctness checks (per independent group).
# ----------------------------------------------------------------------------

def ann_reference_f32(x, weights, biases, gammas, betas):
    """Exact f32 PyTorch training-mode forward (two-pass BN variance)."""
    h = x.astype(jnp.float32)
    for li in range(N_LAYERS):
        h = h @ weights[li] + biases[li]
        if li < N_BN:
            mean = jnp.mean(h, axis=0, keepdims=True)
            var = jnp.mean((h - mean) ** 2, axis=0, keepdims=True)
            h = (h - mean) * jax.lax.rsqrt(var + EPS) * gammas[li] + betas[li]
            h = jnp.maximum(h, 0.0)
    return h


def ann_reference_bf16(x, weights, biases, gammas, betas):
    """Mirrors the kernel's bf16 matmul precision but keeps explicit biases and
    two-pass variance, so it also validates the bias-drop / one-pass rewrites."""
    h = x.astype(jnp.float32)
    for li in range(N_LAYERS):
        w = weights[li].astype(jnp.bfloat16)
        y = jnp.dot(h.astype(jnp.bfloat16), w, preferred_element_type=jnp.float32)
        if li < N_BN:
            y = y + biases[li]                       # cancelled by BN mean below
            mean = jnp.mean(y, axis=0, keepdims=True)
            var = jnp.mean((y - mean) ** 2, axis=0, keepdims=True)
            h = jnp.maximum(
                (y - mean) * jax.lax.rsqrt(var + EPS) * gammas[li] + betas[li], 0.0)
        else:
            h = y + biases[li]
    return h


if __name__ == "__main__":
    key = jax.random.PRNGKey(0)
    kx, kp = jax.random.split(key)

    G, B = 2, 128                    # 2 independent groups, 128-row batches (fills MXU M)
    x = jax.random.normal(kx, (G, B, 512), jnp.float32)

    weights_f32, biases, gammas, betas = init_params(kp)
    vec, big, slab = pack_params(weights_f32, biases, gammas, betas)

    x_bf16 = x.astype(jnp.bfloat16)  # halve the activation DMA; MXU is fed bf16 anyway
    out = ann_forward(x_bf16, vec, *big, slab)
    out = jax.block_until_ready(out)
    assert out.shape == (G, B, 1), out.shape

    # Tight check against a reference with matching bf16-weight matmul precision.
    ref16 = jnp.stack([
        ann_reference_bf16(x_bf16[g], weights_f32, biases, gammas, betas)
        for g in range(G)])
    err16 = float(jnp.max(jnp.abs(out - ref16)))
    assert jnp.allclose(out, ref16, atol=2e-2, rtol=2e-2), (
        f"max abs err vs bf16-precision reference = {err16}")

    # Loose sanity check against the full-f32 reference (difference = bf16 weight
    # and activation quantization, by design).
    ref32 = jnp.stack([
        ann_reference_f32(x_bf16[g].astype(jnp.float32),
                          weights_f32, biases, gammas, betas)
        for g in range(G)])
    err32 = float(jnp.max(jnp.abs(out - ref32)))
    assert err32 < 0.3, f"max abs err vs f32 reference = {err32}"

    print("KERNEL_OK")
</pallas_src>

<mosaic_0001>
module attributes {stable_mosaic.version = 11 : i64} {
  func.func @_ann_kernel(%arg0: i32, %arg1: memref<1x128x512xbf16, #tpu.memory_space<vmem>>, %arg2: memref<24x512xf32, #tpu.memory_space<vmem>>, %arg3: memref<512x512xbf16, #tpu.memory_space<vmem>>, %arg4: memref<512x512xbf16, #tpu.memory_space<vmem>>, %arg5: memref<512x128xbf16, #tpu.memory_space<vmem>>, %arg6: memref<480x128xbf16, #tpu.memory_space<vmem>>, %arg7: memref<1x128x1xf32, #tpu.memory_space<vmem>>) attributes {dimension_semantics = [#tpu.dimension_semantics<parallel>], iteration_bounds = array<i64: 2>, scalar_prefetch = 0 : i64, scratch_operands = 0 : i64, tpu.core_type = #tpu.core_type<tc>, window_params = [{transform_indices = @transform_0, window_bounds = array<i64: 1, 128, 512>}, {pipeline_mode = #tpu.pipeline_mode<synchronous>, transform_indices = @transform_1, window_bounds = array<i64: 24, 512>}, {pipeline_mode = #tpu.pipeline_mode<synchronous>, transform_indices = @transform_2, window_bounds = array<i64: 512, 512>}, {pipeline_mode = #tpu.pipeline_mode<synchronous>, transform_indices = @transform_3, window_bounds = array<i64: 512, 512>}, {pipeline_mode = #tpu.pipeline_mode<synchronous>, transform_indices = @transform_4, window_bounds = array<i64: 512, 128>}, {pipeline_mode = #tpu.pipeline_mode<synchronous>, transform_indices = @transform_5, window_bounds = array<i64: 480, 128>}, {transform_indices = @transform_6, window_bounds = array<i64: 1, 128, 1>}]} {
    %c0 = arith.constant 0 : index
    %c0_0 = arith.constant 0 : index
    %c0_1 = arith.constant 0 : index
    %0 = vector.load %arg1[%c0, %c0_0, %c0_1] : memref<1x128x512xbf16, #tpu.memory_space<vmem>>, vector<1x128x512xbf16>
    %1 = vector.shape_cast %0 : vector<1x128x512xbf16> to vector<128x512xbf16>
    %c0_2 = arith.constant 0 : index
    %c0_3 = arith.constant 0 : index
    %2 = vector.load %arg3[%c0_2, %c0_3] : memref<512x512xbf16, #tpu.memory_space<vmem>>, vector<512x512xbf16>
    %cst = arith.constant dense<0.000000e+00> : vector<128x512xf32>
    %3 = tpu.matmul %1, %2, %cst {dimension_numbers = #tpu.dot_dimension_numbers<[1], [0], [0], [1], [0, 0, 1, 1], [], []>} : vector<128x512xbf16>, vector<512x512xbf16>, vector<128x512xf32> -> vector<128x512xf32>
    %cst_4 = arith.constant dense<0.000000e+00> : vector<512xf32>
    %4 = vector.multi_reduction <add>, %3, %cst_4 [0] : vector<128x512xf32> to vector<512xf32>
    %5 = vector.shape_cast %4 : vector<512xf32> to vector<1x512xf32>
    %6 = arith.mulf %3, %3 : vector<128x512xf32>
    %cst_5 = arith.constant dense<0.000000e+00> : vector<512xf32>
    %7 = vector.multi_reduction <add>, %6, %cst_5 [0] : vector<128x512xf32> to vector<512xf32>
    %8 = vector.shape_cast %7 : vector<512xf32> to vector<1x512xf32>
    %cst_6 = arith.constant 7.812500e-03 : f32
    %9 = vector.broadcast %cst_6 : f32 to vector<1x512xf32>
    %10 = arith.mulf %5, %9 : vector<1x512xf32>
    %cst_7 = arith.constant 7.812500e-03 : f32
    %11 = vector.broadcast %cst_7 : f32 to vector<1x512xf32>
    %12 = arith.mulf %8, %11 : vector<1x512xf32>
    %13 = arith.mulf %10, %10 : vector<1x512xf32>
    %14 = arith.subf %12, %13 : vector<1x512xf32>
    %cst_8 = arith.constant 0.000000e+00 : f32
    %15 = vector.broadcast %cst_8 : f32 to vector<1x512xf32>
    %16 = arith.maximumf %14, %15 : vector<1x512xf32>
    %c0_9 = arith.constant 0 : index
    %c0_10 = arith.constant 0 : index
    %17 = vector.load %arg2[%c0_9, %c0_10] : memref<24x512xf32, #tpu.memory_space<vmem>>, vector<1x512xf32>
    %c11 = arith.constant 11 : index
    %c0_11 = arith.constant 0 : index
    %18 = vector.load %arg2[%c11, %c0_11] : memref<24x512xf32, #tpu.memory_space<vmem>>, vector<1x512xf32>
    %cst_12 = arith.constant 9.99999974E-6 : f32
    %19 = vector.broadcast %cst_12 : f32 to vector<1x512xf32>
    %20 = arith.addf %16, %19 : vector<1x512xf32>
    %21 = math.rsqrt %20 : vector<1x512xf32>
    %22 = arith.mulf %17, %21 : vector<1x512xf32>
    %23 = arith.mulf %10, %22 : vector<1x512xf32>
    %24 = arith.subf %18, %23 : vector<1x512xf32>
    %25 = vector.broadcast %22 : vector<1x512xf32> to vector<128x512xf32>
    %26 = arith.mulf %3, %25 : vector<128x512xf32>
    %27 = vector.broadcast %24 : vector<1x512xf32> to vector<128x512xf32>
    %28 = arith.addf %26, %27 : vector<128x512xf32>
    %cst_13 = arith.constant 0.000000e+00 : f32
    %29 = vector.broadcast %cst_13 : f32 to vector<128x512xf32>
    %30 = arith.maximumf %28, %29 : vector<128x512xf32>
    %31 = arith.truncf %30 : vector<128x512xf32> to vector<128x512xbf16>
    %c0_14 = arith.constant 0 : index
    %c0_15 = arith.constant 0 : index
    %32 = vector.load %arg4[%c0_14, %c0_15] : memref<512x512xbf16, #tpu.memory_space<vmem>>, vector<512x512xbf16>
    %cst_16 = arith.constant dense<0.000000e+00> : vector<128x512xf32>
    %33 = tpu.matmul %31, %32, %cst_16 {dimension_numbers = #tpu.dot_dimension_numbers<[1], [0], [0], [1], [0, 0, 1, 1], [], []>} : vector<128x512xbf16>, vector<512x512xbf16>, vector<128x512xf32> -> vector<128x512xf32>
    %cst_17 = arith.constant dense<0.000000e+00> : vector<512xf32>
    %34 = vector.multi_reduction <add>, %33, %cst_17 [0] : vector<128x512xf32> to vector<512xf32>
    %35 = vector.shape_cast %34 : vector<512xf32> to vector<1x512xf32>
    %36 = arith.mulf %33, %33 : vector<128x512xf32>
    %cst_18 = arith.constant dense<0.000000e+00> : vector<512xf32>
    %37 = vector.multi_reduction <add>, %36, %cst_18 [0] : vector<128x512xf32> to vector<512xf32>
    %38 = vector.shape_cast %37 : vector<512xf32> to vector<1x512xf32>
    %cst_19 = arith.constant 7.812500e-03 : f32
    %39 = vector.broadcast %cst_19 : f32 to vector<1x512xf32>
    %40 = arith.mulf %35, %39 : vector<1x512xf32>
    %cst_20 = arith.constant 7.812500e-03 : f32
    %41 = vector.broadcast %cst_20 : f32 to vector<1x512xf32>
    %42 = arith.mulf %38, %41 : vector<1x512xf32>
    %43 = arith.mulf %40, %40 : vector<1x512xf32>
    %44 = arith.subf %42, %43 : vector<1x512xf32>
    %cst_21 = arith.constant 0.000000e+00 : f32
    %45 = vector.broadcast %cst_21 : f32 to vector<1x512xf32>
    %46 = arith.maximumf %44, %45 : vector<1x512xf32>
    %c1 = arith.constant 1 : index
    %c0_22 = arith.constant 0 : index
    %47 = vector.load %arg2[%c1, %c0_22] : memref<24x512xf32, #tpu.memory_space<vmem>>, vector<1x512xf32>
    %c12 = arith.constant 12 : index
    %c0_23 = arith.constant 0 : index
    %48 = vector.load %arg2[%c12, %c0_23] : memref<24x512xf32, #tpu.memory_space<vmem>>, vector<1x512xf32>
    %cst_24 = arith.constant 9.99999974E-6 : f32
    %49 = vector.broadcast %cst_24 : f32 to vector<1x512xf32>
    %50 = arith.addf %46, %49 : vector<1x512xf32>
    %51 = math.rsqrt %50 : vector<1x512xf32>
    %52 = arith.mulf %47, %51 : vector<1x512xf32>
    %53 = arith.mulf %40, %52 : vector<1x512xf32>
    %54 = arith.subf %48, %53 : vector<1x512xf32>
    %55 = vector.broadcast %52 : vector<1x512xf32> to vector<128x512xf32>
    %56 = arith.mulf %33, %55 : vector<128x512xf32>
    %57 = vector.broadcast %54 : vector<1x512xf32> to vector<128x512xf32>
    %58 = arith.addf %56, %57 : vector<128x512xf32>
    %cst_25 = arith.constant 0.000000e+00 : f32
    %59 = vector.broadcast %cst_25 : f32 to vector<128x512xf32>
    %60 = arith.maximumf %58, %59 : vector<128x512xf32>
    %61 = arith.truncf %60 : vector<128x512xf32> to vector<128x512xbf16>
    %c0_26 = arith.constant 0 : index
    %c0_27 = arith.constant 0 : index
    %62 = vector.load %arg5[%c0_26, %c0_27] : memref<512x128xbf16, #tpu.memory_space<vmem>>, vector<512x128xbf16>
    %cst_28 = arith.constant dense<0.000000e+00> : vector<128x128xf32>
    %63 = tpu.matmul %61, %62, %cst_28 {dimension_numbers = #tpu.dot_dimension_numbers<[1], [0], [0], [1], [0, 0, 1, 1], [], []>} : vector<128x512xbf16>, vector<512x128xbf16>, vector<128x128xf32> -> vector<128x128xf32>
    %cst_29 = arith.constant dense<0.000000e+00> : vector<128xf32>
    %64 = vector.multi_reduction <add>, %63, %cst_29 [0] : vector<128x128xf32> to vector<128xf32>
    %65 = vector.shape_cast %64 : vector<128xf32> to vector<1x128xf32>
    %66 = arith.mulf %63, %63 : vector<128x128xf32>
    %cst_30 = arith.constant dense<0.000000e+00> : vector<128xf32>
    %67 = vector.multi_reduction <add>, %66, %cst_30 [0] : vector<128x128xf32> to vector<128xf32>
    %68 = vector.shape_cast %67 : vector<128xf32> to vector<1x128xf32>
    %cst_31 = arith.constant 7.812500e-03 : f32
    %69 = vector.broadcast %cst_31 : f32 to vector<1x128xf32>
    %70 = arith.mulf %65, %69 : vector<1x128xf32>
    %cst_32 = arith.constant 7.812500e-03 : f32
    %71 = vector.broadcast %cst_32 : f32 to vector<1x128xf32>
    %72 = arith.mulf %68, %71 : vector<1x128xf32>
    %73 = arith.mulf %70, %70 : vector<1x128xf32>
    %74 = arith.subf %72, %73 : vector<1x128xf32>
    %cst_33 = arith.constant 0.000000e+00 : f32
    %75 = vector.broadcast %cst_33 : f32 to vector<1x128xf32>
    %76 = arith.maximumf %74, %75 : vector<1x128xf32>
    %c2 = arith.constant 2 : index
    %c0_34 = arith.constant 0 : index
    %77 = vector.load %arg2[%c2, %c0_34] : memref<24x512xf32, #tpu.memory_space<vmem>>, vector<1x128xf32>
    %c13 = arith.constant 13 : index
    %c0_35 = arith.constant 0 : index
    %78 = vector.load %arg2[%c13, %c0_35] : memref<24x512xf32, #tpu.memory_space<vmem>>, vector<1x128xf32>
    %cst_36 = arith.constant 9.99999974E-6 : f32
    %79 = vector.broadcast %cst_36 : f32 to vector<1x128xf32>
    %80 = arith.addf %76, %79 : vector<1x128xf32>
    %81 = math.rsqrt %80 : vector<1x128xf32>
    %82 = arith.mulf %77, %81 : vector<1x128xf32>
    %83 = arith.mulf %70, %82 : vector<1x128xf32>
    %84 = arith.subf %78, %83 : vector<1x128xf32>
    %85 = vector.broadcast %82 : vector<1x128xf32> to vector<128x128xf32>
    %86 = arith.mulf %63, %85 : vector<128x128xf32>
    %87 = vector.broadcast %84 : vector<1x128xf32> to vector<128x128xf32>
    %88 = arith.addf %86, %87 : vector<128x128xf32>
    %cst_37 = arith.constant 0.000000e+00 : f32
    %89 = vector.broadcast %cst_37 : f32 to vector<128x128xf32>
    %90 = arith.maximumf %88, %89 : vector<128x128xf32>
    %91 = arith.truncf %90 : vector<128x128xf32> to vector<128x128xbf16>
    %c0_38 = arith.constant 0 : index
    %c0_39 = arith.constant 0 : index
    %92 = vector.load %arg6[%c0_38, %c0_39] : memref<480x128xbf16, #tpu.memory_space<vmem>>, vector<128x128xbf16>
    %cst_40 = arith.constant dense<0.000000e+00> : vector<128x128xf32>
    %93 = tpu.matmul %91, %92, %cst_40 {dimension_numbers = #tpu.dot_dimension_numbers<[1], [0], [0], [1], [0, 0, 1, 1], [], []>} : vector<128x128xbf16>, vector<128x128xbf16>, vector<128x128xf32> -> vector<128x128xf32>
    %cst_41 = arith.constant dense<0.000000e+00> : vector<128xf32>
    %94 = vector.multi_reduction <add>, %93, %cst_41 [0] : vector<128x128xf32> to vector<128xf32>
    %95 = vector.shape_cast %94 : vector<128xf32> to vector<1x128xf32>
    %96 = arith.mulf %93, %93 : vector<128x128xf32>
    %cst_42 = arith.constant dense<0.000000e+00> : vector<128xf32>
    %97 = vector.multi_reduction <add>, %96, %cst_42 [0] : vector<128x128xf32> to vector<128xf32>
    %98 = vector.shape_cast %97 : vector<128xf32> to vector<1x128xf32>
    %cst_43 = arith.constant 7.812500e-03 : f32
    %99 = vector.broadcast %cst_43 : f32 to vector<1x128xf32>
    %100 = arith.mulf %95, %99 : vector<1x128xf32>
    %cst_44 = arith.constant 7.812500e-03 : f32
    %101 = vector.broadcast %cst_44 : f32 to vector<1x128xf32>
    %102 = arith.mulf %98, %101 : vector<1x128xf32>
    %103 = arith.mulf %100, %100 : vector<1x128xf32>
    %104 = arith.subf %102, %103 : vector<1x128xf32>
    %cst_45 = arith.constant 0.000000e+00 : f32
    %105 = vector.broadcast %cst_45 : f32 to vector<1x128xf32>
    %106 = arith.maximumf %104, %105 : vector<1x128xf32>
    %c3 = arith.constant 3 : index
    %c0_46 = arith.constant 0 : index
    %107 = vector.load %arg2[%c3, %c0_46] : memref<24x512xf32, #tpu.memory_space<vmem>>, vector<1x128xf32>
    %c14 = arith.constant 14 : index
    %c0_47 = arith.constant 0 : index
    %108 = vector.load %arg2[%c14, %c0_47] : memref<24x512xf32, #tpu.memory_space<vmem>>, vector<1x128xf32>
    %cst_48 = arith.constant 9.99999974E-6 : f32
    %109 = vector.broadcast %cst_48 : f32 to vector<1x128xf32>
    %110 = arith.addf %106, %109 : vector<1x128xf32>
    %111 = math.rsqrt %110 : vector<1x128xf32>
    %112 = arith.mulf %107, %111 : vector<1x128xf32>
    %113 = arith.mulf %100, %112 : vector<1x128xf32>
    %114 = arith.subf %108, %113 : vector<1x128xf32>
    %115 = vector.broadcast %112 : vector<1x128xf32> to vector<128x128xf32>
    %116 = arith.mulf %93, %115 : vector<128x128xf32>
    %117 = vector.broadcast %114 : vector<1x128xf32> to vector<128x128xf32>
    %118 = arith.addf %116, %117 : vector<128x128xf32>
    %cst_49 = arith.constant 0.000000e+00 : f32
    %119 = vector.broadcast %cst_49 : f32 to vector<128x128xf32>
    %120 = arith.maximumf %118, %119 : vector<128x128xf32>
    %121 = arith.truncf %120 : vector<128x128xf32> to vector<128x128xbf16>
    %c128 = arith.constant 128 : index
    %c0_50 = arith.constant 0 : index
    %122 = vector.load %arg6[%c128, %c0_50] : memref<480x128xbf16, #tpu.memory_space<vmem>>, vector<128x64xbf16>
    %cst_51 = arith.constant dense<0.000000e+00> : vector<128x64xf32>
    %123 = tpu.matmul %121, %122, %cst_51 {dimension_numbers = #tpu.dot_dimension_numbers<[1], [0], [0], [1], [0, 0, 1, 1], [], []>} : vector<128x128xbf16>, vector<128x64xbf16>, vector<128x64xf32> -> vector<128x64xf32>
    %cst_52 = arith.constant dense<0.000000e+00> : vector<64xf32>
    %124 = vector.multi_reduction <add>, %123, %cst_52 [0] : vector<128x64xf32> to vector<64xf32>
    %125 = vector.shape_cast %124 : vector<64xf32> to vector<1x64xf32>
    %126 = arith.mulf %123, %123 : vector<128x64xf32>
    %cst_53 = arith.constant dense<0.000000e+00> : vector<64xf32>
    %127 = vector.multi_reduction <add>, %126, %cst_53 [0] : vector<128x64xf32> to vector<64xf32>
    %128 = vector.shape_cast %127 : vector<64xf32> to vector<1x64xf32>
    %cst_54 = arith.constant 7.812500e-03 : f32
    %129 = vector.broadcast %cst_54 : f32 to vector<1x64xf32>
    %130 = arith.mulf %125, %129 : vector<1x64xf32>
    %cst_55 = arith.constant 7.812500e-03 : f32
    %131 = vector.broadcast %cst_55 : f32 to vector<1x64xf32>
    %132 = arith.mulf %128, %131 : vector<1x64xf32>
    %133 = arith.mulf %130, %130 : vector<1x64xf32>
    %134 = arith.subf %132, %133 : vector<1x64xf32>
    %cst_56 = arith.constant 0.000000e+00 : f32
    %135 = vector.broadcast %cst_56 : f32 to vector<1x64xf32>
    %136 = arith.maximumf %134, %135 : vector<1x64xf32>
    %c4 = arith.constant 4 : index
    %c0_57 = arith.constant 0 : index
    %137 = vector.load %arg2[%c4, %c0_57] : memref<24x512xf32, #tpu.memory_space<vmem>>, vector<1x64xf32>
    %c15 = arith.constant 15 : index
    %c0_58 = arith.constant 0 : index
    %138 = vector.load %arg2[%c15, %c0_58] : memref<24x512xf32, #tpu.memory_space<vmem>>, vector<1x64xf32>
    %cst_59 = arith.constant 9.99999974E-6 : f32
    %139 = vector.broadcast %cst_59 : f32 to vector<1x64xf32>
    %140 = arith.addf %136, %139 : vector<1x64xf32>
    %141 = math.rsqrt %140 : vector<1x64xf32>
    %142 = arith.mulf %137, %141 : vector<1x64xf32>
    %143 = arith.mulf %130, %142 : vector<1x64xf32>
    %144 = arith.subf %138, %143 : vector<1x64xf32>
    %145 = vector.broadcast %142 : vector<1x64xf32> to vector<128x64xf32>
    %146 = arith.mulf %123, %145 : vector<128x64xf32>
    %147 = vector.broadcast %144 : vector<1x64xf32> to vector<128x64xf32>
    %148 = arith.addf %146, %147 : vector<128x64xf32>
    %cst_60 = arith.constant 0.000000e+00 : f32
    %149 = vector.broadcast %cst_60 : f32 to vector<128x64xf32>
    %150 = arith.maximumf %148, %149 : vector<128x64xf32>
    %151 = arith.truncf %150 : vector<128x64xf32> to vector<128x64xbf16>
    %c256 = arith.constant 256 : index
    %c0_61 = arith.constant 0 : index
    %152 = vector.load %arg6[%c256, %c0_61] : memref<480x128xbf16, #tpu.memory_space<vmem>>, vector<64x64xbf16>
    %cst_62 = arith.constant dense<0.000000e+00> : vector<128x64xf32>
    %153 = tpu.matmul %151, %152, %cst_62 {dimension_numbers = #tpu.dot_dimension_numbers<[1], [0], [0], [1], [0, 0, 1, 1], [], []>} : vector<128x64xbf16>, vector<64x64xbf16>, vector<128x64xf32> -> vector<128x64xf32>
    %cst_63 = arith.constant dense<0.000000e+00> : vector<64xf32>
    %154 = vector.multi_reduction <add>, %153, %cst_63 [0] : vector<128x64xf32> to vector<64xf32>
    %155 = vector.shape_cast %154 : vector<64xf32> to vector<1x64xf32>
    %156 = arith.mulf %153, %153 : vector<128x64xf32>
    %cst_64 = arith.constant dense<0.000000e+00> : vector<64xf32>
    %157 = vector.multi_reduction <add>, %156, %cst_64 [0] : vector<128x64xf32> to vector<64xf32>
    %158 = vector.shape_cast %157 : vector<64xf32> to vector<1x64xf32>
    %cst_65 = arith.constant 7.812500e-03 : f32
    %159 = vector.broadcast %cst_65 : f32 to vector<1x64xf32>
    %160 = arith.mulf %155, %159 : vector<1x64xf32>
    %cst_66 = arith.constant 7.812500e-03 : f32
    %161 = vector.broadcast %cst_66 : f32 to vector<1x64xf32>
    %162 = arith.mulf %158, %161 : vector<1x64xf32>
    %163 = arith.mulf %160, %160 : vector<1x64xf32>
    %164 = arith.subf %162, %163 : vector<1x64xf32>
    %cst_67 = arith.constant 0.000000e+00 : f32
    %165 = vector.broadcast %cst_67 : f32 to vector<1x64xf32>
    %166 = arith.maximumf %164, %165 : vector<1x64xf32>
    %c5 = arith.constant 5 : index
    %c0_68 = arith.constant 0 : index
    %167 = vector.load %arg2[%c5, %c0_68] : memref<24x512xf32, #tpu.memory_space<vmem>>, vector<1x64xf32>
    %c16 = arith.constant 16 : index
    %c0_69 = arith.constant 0 : index
    %168 = vector.load %arg2[%c16, %c0_69] : memref<24x512xf32, #tpu.memory_space<vmem>>, vector<1x64xf32>
    %cst_70 = arith.constant 9.99999974E-6 : f32
    %169 = vector.broadcast %cst_70 : f32 to vector<1x64xf32>
    %170 = arith.addf %166, %169 : vector<1x64xf32>
    %171 = math.rsqrt %170 : vector<1x64xf32>
    %172 = arith.mulf %167, %171 : vector<1x64xf32>
    %173 = arith.mulf %160, %172 : vector<1x64xf32>
    %174 = arith.subf %168, %173 : vector<1x64xf32>
    %175 = vector.broadcast %172 : vector<1x64xf32> to vector<128x64xf32>
    %176 = arith.mulf %153, %175 : vector<128x64xf32>
    %177 = vector.broadcast %174 : vector<1x64xf32> to vector<128x64xf32>
    %178 = arith.addf %176, %177 : vector<128x64xf32>
    %cst_71 = arith.constant 0.000000e+00 : f32
    %179 = vector.broadcast %cst_71 : f32 to vector<128x64xf32>
    %180 = arith.maximumf %178, %179 : vector<128x64xf32>
    %181 = arith.truncf %180 : vector<128x64xf32> to vector<128x64xbf16>
    %c320 = arith.constant 320 : index
    %c0_72 = arith.constant 0 : index
    %182 = vector.load %arg6[%c320, %c0_72] : memref<480x128xbf16, #tpu.memory_space<vmem>>, vector<64x32xbf16>
    %cst_73 = arith.constant dense<0.000000e+00> : vector<128x32xf32>
    %183 = tpu.matmul %181, %182, %cst_73 {dimension_numbers = #tpu.dot_dimension_numbers<[1], [0], [0], [1], [0, 0, 1, 1], [], []>} : vector<128x64xbf16>, vector<64x32xbf16>, vector<128x32xf32> -> vector<128x32xf32>
    %cst_74 = arith.constant dense<0.000000e+00> : vector<32xf32>
    %184 = vector.multi_reduction <add>, %183, %cst_74 [0] : vector<128x32xf32> to vector<32xf32>
    %185 = vector.shape_cast %184 : vector<32xf32> to vector<1x32xf32>
    %186 = arith.mulf %183, %183 : vector<128x32xf32>
    %cst_75 = arith.constant dense<0.000000e+00> : vector<32xf32>
    %187 = vector.multi_reduction <add>, %186, %cst_75 [0] : vector<128x32xf32> to vector<32xf32>
    %188 = vector.shape_cast %187 : vector<32xf32> to vector<1x32xf32>
    %cst_76 = arith.constant 7.812500e-03 : f32
    %189 = vector.broadcast %cst_76 : f32 to vector<1x32xf32>
    %190 = arith.mulf %185, %189 : vector<1x32xf32>
    %cst_77 = arith.constant 7.812500e-03 : f32
    %191 = vector.broadcast %cst_77 : f32 to vector<1x32xf32>
    %192 = arith.mulf %188, %191 : vector<1x32xf32>
    %193 = arith.mulf %190, %190 : vector<1x32xf32>
    %194 = arith.subf %192, %193 : vector<1x32xf32>
    %cst_78 = arith.constant 0.000000e+00 : f32
    %195 = vector.broadcast %cst_78 : f32 to vector<1x32xf32>
    %196 = arith.maximumf %194, %195 : vector<1x32xf32>
    %c6 = arith.constant 6 : index
    %c0_79 = arith.constant 0 : index
    %197 = vector.load %arg2[%c6, %c0_79] : memref<24x512xf32, #tpu.memory_space<vmem>>, vector<1x32xf32>
    %c17 = arith.constant 17 : index
    %c0_80 = arith.constant 0 : index
    %198 = vector.load %arg2[%c17, %c0_80] : memref<24x512xf32, #tpu.memory_space<vmem>>, vector<1x32xf32>
    %cst_81 = arith.constant 9.99999974E-6 : f32
    %199 = vector.broadcast %cst_81 : f32 to vector<1x32xf32>
    %200 = arith.addf %196, %199 : vector<1x32xf32>
    %201 = math.rsqrt %200 : vector<1x32xf32>
    %202 = arith.mulf %197, %201 : vector<1x32xf32>
    %203 = arith.mulf %190, %202 : vector<1x32xf32>
    %204 = arith.subf %198, %203 : vector<1x32xf32>
    %205 = vector.broadcast %202 : vector<1x32xf32> to vector<128x32xf32>
    %206 = arith.mulf %183, %205 : vector<128x32xf32>
    %207 = vector.broadcast %204 : vector<1x32xf32> to vector<128x32xf32>
    %208 = arith.addf %206, %207 : vector<128x32xf32>
    %cst_82 = arith.constant 0.000000e+00 : f32
    %209 = vector.broadcast %cst_82 : f32 to vector<128x32xf32>
    %210 = arith.maximumf %208, %209 : vector<128x32xf32>
    %211 = arith.truncf %210 : vector<128x32xf32> to vector<128x32xbf16>
    %c384 = arith.constant 384 : index
    %c0_83 = arith.constant 0 : index
    %212 = vector.load %arg6[%c384, %c0_83] : memref<480x128xbf16, #tpu.memory_space<vmem>>, vector<32x32xbf16>
    %cst_84 = arith.constant dense<0.000000e+00> : vector<128x32xf32>
    %213 = tpu.matmul %211, %212, %cst_84 {dimension_numbers = #tpu.dot_dimension_numbers<[1], [0], [0], [1], [0, 0, 1, 1], [], []>} : vector<128x32xbf16>, vector<32x32xbf16>, vector<128x32xf32> -> vector<128x32xf32>
    %cst_85 = arith.constant dense<0.000000e+00> : vector<32xf32>
    %214 = vector.multi_reduction <add>, %213, %cst_85 [0] : vector<128x32xf32> to vector<32xf32>
    %215 = vector.shape_cast %214 : vector<32xf32> to vector<1x32xf32>
    %216 = arith.mulf %213, %213 : vector<128x32xf32>
    %cst_86 = arith.constant dense<0.000000e+00> : vector<32xf32>
    %217 = vector.multi_reduction <add>, %216, %cst_86 [0] : vector<128x32xf32> to vector<32xf32>
    %218 = vector.shape_cast %217 : vector<32xf32> to vector<1x32xf32>
    %cst_87 = arith.constant 7.812500e-03 : f32
    %219 = vector.broadcast %cst_87 : f32 to vector<1x32xf32>
    %220 = arith.mulf %215, %219 : vector<1x32xf32>
    %cst_88 = arith.constant 7.812500e-03 : f32
    %221 = vector.broadcast %cst_88 : f32 to vector<1x32xf32>
    %222 = arith.mulf %218, %221 : vector<1x32xf32>
    %223 = arith.mulf %220, %220 : vector<1x32xf32>
    %224 = arith.subf %222, %223 : vector<1x32xf32>
    %cst_89 = arith.constant 0.000000e+00 : f32
    %225 = vector.broadcast %cst_89 : f32 to vector<1x32xf32>
    %226 = arith.maximumf %224, %225 : vector<1x32xf32>
    %c7 = arith.constant 7 : index
    %c0_90 = arith.constant 0 : index
    %227 = vector.load %arg2[%c7, %c0_90] : memref<24x512xf32, #tpu.memory_space<vmem>>, vector<1x32xf32>
    %c18 = arith.constant 18 : index
    %c0_91 = arith.constant 0 : index
    %228 = vector.load %arg2[%c18, %c0_91] : memref<24x512xf32, #tpu.memory_space<vmem>>, vector<1x32xf32>
    %cst_92 = arith.constant 9.99999974E-6 : f32
    %229 = vector.broadcast %cst_92 : f32 to vector<1x32xf32>
    %230 = arith.addf %226, %229 : vector<1x32xf32>
    %231 = math.rsqrt %230 : vector<1x32xf32>
    %232 = arith.mulf %227, %231 : vector<1x32xf32>
    %233 = arith.mulf %220, %232 : vector<1x32xf32>
    %234 = arith.subf %228, %233 : vector<1x32xf32>
    %235 = vector.broadcast %232 : vector<1x32xf32> to vector<128x32xf32>
    %236 = arith.mulf %213, %235 : vector<128x32xf32>
    %237 = vector.broadcast %234 : vector<1x32xf32> to vector<128x32xf32>
    %238 = arith.addf %236, %237 : vector<128x32xf32>
    %cst_93 = arith.constant 0.000000e+00 : f32
    %239 = vector.broadcast %cst_93 : f32 to vector<128x32xf32>
    %240 = arith.maximumf %238, %239 : vector<128x32xf32>
    %241 = arith.truncf %240 : vector<128x32xf32> to vector<128x32xbf16>
    %c416 = arith.constant 416 : index
    %c0_94 = arith.constant 0 : index
    %242 = vector.load %arg6[%c416, %c0_94] : memref<480x128xbf16, #tpu.memory_space<vmem>>, vector<32x16xbf16>
    %cst_95 = arith.constant dense<0.000000e+00> : vector<128x16xf32>
    %243 = tpu.matmul %241, %242, %cst_95 {dimension_numbers = #tpu.dot_dimension_numbers<[1], [0], [0], [1], [0, 0, 1, 1], [], []>} : vector<128x32xbf16>, vector<32x16xbf16>, vector<128x16xf32> -> vector<128x16xf32>
    %cst_96 = arith.constant dense<0.000000e+00> : vector<16xf32>
    %244 = vector.multi_reduction <add>, %243, %cst_96 [0] : vector<128x16xf32> to vector<16xf32>
    %245 = vector.shape_cast %244 : vector<16xf32> to vector<1x16xf32>
    %246 = arith.mulf %243, %243 : vector<128x16xf32>
    %cst_97 = arith.constant dense<0.000000e+00> : vector<16xf32>
    %247 = vector.multi_reduction <add>, %246, %cst_97 [0] : vector<128x16xf32> to vector<16xf32>
    %248 = vector.shape_cast %247 : vector<16xf32> to vector<1x16xf32>
    %cst_98 = arith.constant 7.812500e-03 : f32
    %249 = vector.broadcast %cst_98 : f32 to vector<1x16xf32>
    %250 = arith.mulf %245, %249 : vector<1x16xf32>
    %cst_99 = arith.constant 7.812500e-03 : f32
    %251 = vector.broadcast %cst_99 : f32 to vector<1x16xf32>
    %252 = arith.mulf %248, %251 : vector<1x16xf32>
    %253 = arith.mulf %250, %250 : vector<1x16xf32>
    %254 = arith.subf %252, %253 : vector<1x16xf32>
    %cst_100 = arith.constant 0.000000e+00 : f32
    %255 = vector.broadcast %cst_100 : f32 to vector<1x16xf32>
    %256 = arith.maximumf %254, %255 : vector<1x16xf32>
    %c8 = arith.constant 8 : index
    %c0_101 = arith.constant 0 : index
    %257 = vector.load %arg2[%c8, %c0_101] : memref<24x512xf32, #tpu.memory_space<vmem>>, vector<1x16xf32>
    %c19 = arith.constant 19 : index
    %c0_102 = arith.constant 0 : index
    %258 = vector.load %arg2[%c19, %c0_102] : memref<24x512xf32, #tpu.memory_space<vmem>>, vector<1x16xf32>
    %cst_103 = arith.constant 9.99999974E-6 : f32
    %259 = vector.broadcast %cst_103 : f32 to vector<1x16xf32>
    %260 = arith.addf %256, %259 : vector<1x16xf32>
    %261 = math.rsqrt %260 : vector<1x16xf32>
    %262 = arith.mulf %257, %261 : vector<1x16xf32>
    %263 = arith.mulf %250, %262 : vector<1x16xf32>
    %264 = arith.subf %258, %263 : vector<1x16xf32>
    %265 = vector.broadcast %262 : vector<1x16xf32> to vector<128x16xf32>
    %266 = arith.mulf %243, %265 : vector<128x16xf32>
    %267 = vector.broadcast %264 : vector<1x16xf32> to vector<128x16xf32>
    %268 = arith.addf %266, %267 : vector<128x16xf32>
    %cst_104 = arith.constant 0.000000e+00 : f32
    %269 = vector.broadcast %cst_104 : f32 to vector<128x16xf32>
    %270 = arith.maximumf %268, %269 : vector<128x16xf32>
    %271 = arith.truncf %270 : vector<128x16xf32> to vector<128x16xbf16>
    %c448 = arith.constant 448 : index
    %c0_105 = arith.constant 0 : index
    %272 = vector.load %arg6[%c448, %c0_105] : memref<480x128xbf16, #tpu.memory_space<vmem>>, vector<16x16xbf16>
    %cst_106 = arith.constant dense<0.000000e+00> : vector<128x16xf32>
    %273 = tpu.matmul %271, %272, %cst_106 {dimension_numbers = #tpu.dot_dimension_numbers<[1], [0], [0], [1], [0, 0, 1, 1], [], []>} : vector<128x16xbf16>, vector<16x16xbf16>, vector<128x16xf32> -> vector<128x16xf32>
    %cst_107 = arith.constant dense<0.000000e+00> : vector<16xf32>
    %274 = vector.multi_reduction <add>, %273, %cst_107 [0] : vector<128x16xf32> to vector<16xf32>
    %275 = vector.shape_cast %274 : vector<16xf32> to vector<1x16xf32>
    %276 = arith.mulf %273, %273 : vector<128x16xf32>
    %cst_108 = arith.constant dense<0.000000e+00> : vector<16xf32>
    %277 = vector.multi_reduction <add>, %276, %cst_108 [0] : vector<128x16xf32> to vector<16xf32>
    %278 = vector.shape_cast %277 : vector<16xf32> to vector<1x16xf32>
    %cst_109 = arith.constant 7.812500e-03 : f32
    %279 = vector.broadcast %cst_109 : f32 to vector<1x16xf32>
    %280 = arith.mulf %275, %279 : vector<1x16xf32>
    %cst_110 = arith.constant 7.812500e-03 : f32
    %281 = vector.broadcast %cst_110 : f32 to vector<1x16xf32>
    %282 = arith.mulf %278, %281 : vector<1x16xf32>
    %283 = arith.mulf %280, %280 : vector<1x16xf32>
    %284 = arith.subf %282, %283 : vector<1x16xf32>
    %cst_111 = arith.constant 0.000000e+00 : f32
    %285 = vector.broadcast %cst_111 : f32 to vector<1x16xf32>
    %286 = arith.maximumf %284, %285 : vector<1x16xf32>
    %c9 = arith.constant 9 : index
    %c0_112 = arith.constant 0 : index
    %287 = vector.load %arg2[%c9, %c0_112] : memref<24x512xf32, #tpu.memory_space<vmem>>, vector<1x16xf32>
    %c20 = arith.constant 20 : index
    %c0_113 = arith.constant 0 : index
    %288 = vector.load %arg2[%c20, %c0_113] : memref<24x512xf32, #tpu.memory_space<vmem>>, vector<1x16xf32>
    %cst_114 = arith.constant 9.99999974E-6 : f32
    %289 = vector.broadcast %cst_114 : f32 to vector<1x16xf32>
    %290 = arith.addf %286, %289 : vector<1x16xf32>
    %291 = math.rsqrt %290 : vector<1x16xf32>
    %292 = arith.mulf %287, %291 : vector<1x16xf32>
    %293 = arith.mulf %280, %292 : vector<1x16xf32>
    %294 = arith.subf %288, %293 : vector<1x16xf32>
    %295 = vector.broadcast %292 : vector<1x16xf32> to vector<128x16xf32>
    %296 = arith.mulf %273, %295 : vector<128x16xf32>
    %297 = vector.broadcast %294 : vector<1x16xf32> to vector<128x16xf32>
    %298 = arith.addf %296, %297 : vector<128x16xf32>
    %cst_115 = arith.constant 0.000000e+00 : f32
    %299 = vector.broadcast %cst_115 : f32 to vector<128x16xf32>
    %300 = arith.maximumf %298, %299 : vector<128x16xf32>
    %301 = arith.truncf %300 : vector<128x16xf32> to vector<128x16xbf16>
    %c464 = arith.constant 464 : index
    %c0_116 = arith.constant 0 : index
    %302 = vector.load %arg6[%c464, %c0_116] : memref<480x128xbf16, #tpu.memory_space<vmem>>, vector<16x8xbf16>
    %cst_117 = arith.constant dense<0.000000e+00> : vector<128x8xf32>
    %303 = tpu.matmul %301, %302, %cst_117 {dimension_numbers = #tpu.dot_dimension_numbers<[1], [0], [0], [1], [0, 0, 1, 1], [], []>} : vector<128x16xbf16>, vector<16x8xbf16>, vector<128x8xf32> -> vector<128x8xf32>
    %cst_118 = arith.constant dense<0.000000e+00> : vector<8xf32>
    %304 = vector.multi_reduction <add>, %303, %cst_118 [0] : vector<128x8xf32> to vector<8xf32>
    %305 = vector.shape_cast %304 : vector<8xf32> to vector<1x8xf32>
    %306 = arith.mulf %303, %303 : vector<128x8xf32>
    %cst_119 = arith.constant dense<0.000000e+00> : vector<8xf32>
    %307 = vector.multi_reduction <add>, %306, %cst_119 [0] : vector<128x8xf32> to vector<8xf32>
    %308 = vector.shape_cast %307 : vector<8xf32> to vector<1x8xf32>
    %cst_120 = arith.constant 7.812500e-03 : f32
    %309 = vector.broadcast %cst_120 : f32 to vector<1x8xf32>
    %310 = arith.mulf %305, %309 : vector<1x8xf32>
    %cst_121 = arith.constant 7.812500e-03 : f32
    %311 = vector.broadcast %cst_121 : f32 to vector<1x8xf32>
    %312 = arith.mulf %308, %311 : vector<1x8xf32>
    %313 = arith.mulf %310, %310 : vector<1x8xf32>
    %314 = arith.subf %312, %313 : vector<1x8xf32>
    %cst_122 = arith.constant 0.000000e+00 : f32
    %315 = vector.broadcast %cst_122 : f32 to vector<1x8xf32>
    %316 = arith.maximumf %314, %315 : vector<1x8xf32>
    %c10 = arith.constant 10 : index
    %c0_123 = arith.constant 0 : index
    %317 = vector.load %arg2[%c10, %c0_123] : memref<24x512xf32, #tpu.memory_space<vmem>>, vector<1x8xf32>
    %c21 = arith.constant 21 : index
    %c0_124 = arith.constant 0 : index
    %318 = vector.load %arg2[%c21, %c0_124] : memref<24x512xf32, #tpu.memory_space<vmem>>, vector<1x8xf32>
    %cst_125 = arith.constant 9.99999974E-6 : f32
    %319 = vector.broadcast %cst_125 : f32 to vector<1x8xf32>
    %320 = arith.addf %316, %319 : vector<1x8xf32>
    %321 = math.rsqrt %320 : vector<1x8xf32>
    %322 = arith.mulf %317, %321 : vector<1x8xf32>
    %323 = arith.mulf %310, %322 : vector<1x8xf32>
    %324 = arith.subf %318, %323 : vector<1x8xf32>
    %325 = vector.broadcast %322 : vector<1x8xf32> to vector<128x8xf32>
    %326 = arith.mulf %303, %325 : vector<128x8xf32>
    %327 = vector.broadcast %324 : vector<1x8xf32> to vector<128x8xf32>
    %328 = arith.addf %326, %327 : vector<128x8xf32>
    %cst_126 = arith.constant 0.000000e+00 : f32
    %329 = vector.broadcast %cst_126 : f32 to vector<128x8xf32>
    %330 = arith.maximumf %328, %329 : vector<128x8xf32>
    %c22 = arith.constant 22 : index
    %c0_127 = arith.constant 0 : index
    %331 = vector.load %arg2[%c22, %c0_127] : memref<24x512xf32, #tpu.memory_space<vmem>>, vector<1x8xf32>
    %c23 = arith.constant 23 : index
    %c0_128 = arith.constant 0 : index
    %332 = vector.load %arg2[%c23, %c0_128] : memref<24x512xf32, #tpu.memory_space<vmem>>, vector<1x1xf32>
    %333 = vector.broadcast %331 : vector<1x8xf32> to vector<128x8xf32>
    %334 = arith.mulf %330, %333 : vector<128x8xf32>
    %cst_129 = arith.constant dense<0.000000e+00> : vector<128xf32>
    %335 = vector.multi_reduction <add>, %334, %cst_129 [1] : vector<128x8xf32> to vector<128xf32>
    %336 = vector.shape_cast %335 : vector<128xf32> to vector<128x1xf32>
    %337 = vector.broadcast %332 : vector<1x1xf32> to vector<128x1xf32>
    %338 = arith.addf %336, %337 : vector<128x1xf32>
    %c0_130 = arith.constant 0 : index
    %c0_131 = arith.constant 0 : index
    %c0_132 = arith.constant 0 : index
    %339 = vector.load %arg7[%c0_130, %c0_131, %c0_132] : memref<1x128x1xf32, #tpu.memory_space<vmem>>, vector<1x128x1xf32>
    %340 = vector.shape_cast %339 : vector<1x128x1xf32> to vector<128x1xf32>
    %341 = vector.shape_cast %338 : vector<128x1xf32> to vector<1x128x1xf32>
    tpu.vector_store %arg7[%c0_130, %c0_131, %c0_132], %341 {strides = array<i32>} : memref<1x128x1xf32, #tpu.memory_space<vmem>>, vector<1x128x1xf32>,
    return
  }
  func.func @transform_0(%arg0: i32) -> (i32, i32, i32) {
    %c0_i32 = arith.constant 0 : i32
    %c0_i32_0 = arith.constant 0 : i32
    %c0_i32_1 = arith.constant 0 : i32
    return %arg0, %c0_i32, %c0_i32_0 : i32, i32, i32
  }
  func.func @transform_1(%arg0: i32) -> (i32, i32) {
    %c0_i32 = arith.constant 0 : i32
    %c0_i32_0 = arith.constant 0 : i32
    %c0_i32_1 = arith.constant 0 : i32
    return %c0_i32, %c0_i32_0 : i32, i32
  }
  func.func @transform_2(%arg0: i32) -> (i32, i32) {
    %c0_i32 = arith.constant 0 : i32
    %c0_i32_0 = arith.constant 0 : i32
    %c0_i32_1 = arith.constant 0 : i32
    return %c0_i32, %c0_i32_0 : i32, i32
  }
  func.func @transform_3(%arg0: i32) -> (i32, i32) {
    %c0_i32 = arith.constant 0 : i32
    %c0_i32_0 = arith.constant 0 : i32
    %c0_i32_1 = arith.constant 0 : i32
    return %c0_i32, %c0_i32_0 : i32, i32
  }
  func.func @transform_4(%arg0: i32) -> (i32, i32) {
    %c0_i32 = arith.constant 0 : i32
    %c0_i32_0 = arith.constant 0 : i32
    %c0_i32_1 = arith.constant 0 : i32
    return %c0_i32, %c0_i32_0 : i32, i32
  }
  func.func @transform_5(%arg0: i32) -> (i32, i32) {
    %c0_i32 = arith.constant 0 : i32
    %c0_i32_0 = arith.constant 0 : i32
    %c0_i32_1 = arith.constant 0 : i32
    return %c0_i32, %c0_i32_0 : i32, i32
  }
  func.func @transform_6(%arg0: i32) -> (i32, i32, i32) {
    %c0_i32 = arith.constant 0 : i32
    %c0_i32_0 = arith.constant 0 : i32
    %c0_i32_1 = arith.constant 0 : i32
    return %arg0, %c0_i32, %c0_i32_0 : i32, i32, i32
  }
}

</mosaic_0001>

<bundles_post_ra>
// kernel: ann_forward.1
= control target key start
LH: loop header
LB: loop body
LE: loop exit
PB: predicated region body
PF: predicated region fallthrough
CT: control target
= control target key end

     0   :  { %11 = vsyncpa [#allocation3], 0  ;;  %s12171_s0 = inlined_call_operand.hbm [shape: bf16[2,128,512], index: 0, kind: input, shape index: {}]   ;;  %s12172_s1 = inlined_call_operand.hbm [shape: f32[24,512], index: 1, kind: input, shape index: {}]   ;;  %s12173_s2 = inlined_call_operand.hbm [shape: bf16[512,512], index: 2, kind: input, shape index: {}]   ;;  %s12174_s3 = inlined_call_operand.hbm [shape: bf16[512,512], index: 3, kind: input, shape index: {}]   ;;  %s12175_s4 = inlined_call_operand.hbm [shape: bf16[512,128], index: 4, kind: input, shape index: {}]   ;;  %s12176_s5 = inlined_call_operand.hbm [shape: bf16[480,128], index: 5, kind: input, shape index: {}]   ;;  %s12177_s6 = inlined_call_operand.vmem [shape: f32[2,128,1], index: 6, kind: output, shape index: {}]  }
   0x1   :  { %13 = vsyncpa [#allocation3 + $0x1], 0 }
   0x2   :  { %14 = vsyncpa [#allocation5], 0 }
   0x3   :  { %15 = vsyncpa [#allocation8], 0 }
   0x4   :  { %16 = vsyncpa [#allocation11], 0  ;;  %s9054_s21 = smov 0   ;;  %s9056_s22 = smov 0  }
   0x5   :  { %s9058_s23 = smov 0   ;;  %s9060_s24 = smov 0  }
   0x6 LB: > { %s9006_s25 = smov [#allocation4]   ;;  %s9075_s27 = sadd.s32 4294967295, %s9004_s24   ;;  %s9004_s24 = sphi %s9060_s24, %s12413_s24   ;;  %s9000_s23 = sphi %s9058_s23, %s12412_s23   ;;  %s8996_s22 = sphi %s9056_s22, %s12411_s22   ;;  %s8992_s21 = sphi %s9054_s21, %s12410_s21  }
   0x7   : > { %s196_s26 = sshll.u32 %s9006_s25, 4  ;;  %p7344_p0 = scmp.ge.s32.totalorder %s9004_s24, 1  ;;  %s197_s26 = int_to_ptr.vmem [resolvable:$true] %s196_s26 }
   0x8   : > { %p12178_p1 = scmp.eq.s32.totalorder %s9075_s27, 0  ;;  %p184_p2 = scmp.lt.s32.totalorder %s9004_s24, 3 }
   0x9   : > { %s9007_s30 = smov [#allocation7]   ;;  %s9008_s8 = smov [#allocation6]  }
   0xa   : > { %p9080_p3 = pnand %p7344_p0, %p184_p2  ;;  %s222_s7 = sshll.u32 %s9007_s30, 4  ;;  %s9092_s7 = int_to_ptr.vmem [resolvable:$true] %s222_s7 }
   0xb   : > { %s9094_s9 = sshll.u32 %s9008_s8, 4  ;;  %s8811_s11 = scalar_lea.vmem %s197_s26, 1536  ;;  %s210_s9 = int_to_ptr.vmem [resolvable:$true] %s9094_s9 }
   0xc   : > { %s12252_s28 = scalar_select %p9080_p3, 1, 0 }
   0xd   : > { %p8197_p4 = pneg %p9080_p3  ;;  %p8812_p7 = scmp.ne.s32.totalorder %s197_s26, %s8811_s11 }
   0xe   : > { %p8819_p10 = scmp.lt.s32.totalorder %s197_s26, %s197_s26  ;;  %p8820_p11 = scmp.lt.s32.totalorder %s8811_s11, %s8811_s11 }
   0xf   : > { %p9088_p5 = pnand %p8197_p4, %p12178_p1 }
  0x10   : > { %p8821_p12 = por %p8820_p11, %p8819_p10 }
  0x11   : > { %p9098_p6 = pneg %p9088_p5 }
  0x13   : > { %p8814_p8 = pnand %p8812_p7, %p9098_p6 }
  0x15   : > { %p8815_p9 = pneg %p8814_p8 }
  0x17   : > { %p8822_p13 = pnand %p8821_p12, %p8815_p9 }
  0x19   : > { %8825 = shalt.err (!%p8822_p13)
}
  0x1a   : > { %s9009_s12 = smov 512   ;;  %s9010_s13 = smov 32  }
  0x1b   : > { %8200 = dma.hbm_to_vmem [thread:$0]  (!%p9088_p5), %s12172_s1, 1536, %s197_s26, [#allocation5], %s9009_s12, %s9009_s12, %s9010_s13  }
  0x1c   : > { %s8837_s16 = scalar_lea.vmem %s9092_s7, 16384  ;;  %p8845_p7 = scmp.lt.s32.totalorder %s9092_s7, %s9092_s7 }
  0x1d   : > { %p8838_p0 = scmp.ne.s32.totalorder %s9092_s7, %s8837_s16  ;;  %p8846_p8 = scmp.lt.s32.totalorder %s8837_s16, %s8837_s16 }
  0x1f   : > { %p8840_p2 = pnand %p8838_p0, %p9098_p6  ;;  %p8847_p9 = por %p8846_p8, %p8845_p7 }
  0x21   : > { %p8841_p4 = pneg %p8840_p2 }
  0x23   : > { %p8848_p10 = pnand %p8847_p9, %p8841_p4 }
  0x25   : > { %8851 = shalt.err (!%p8848_p10)
}
  0x26   : > { %s9011_s17 = smov 256   ;;  %s9012_s18 = smov 16  }
  0x27   : > { %8206 = dma.hbm_to_vmem [thread:$0]  (!%p9088_p5), %s12174_s3, 16384, %s9092_s7, [#allocation8], %s9011_s17, %s9011_s17, %s9012_s18  }
  0x28   : > { %s8863_s25 = scalar_lea.vmem %s210_s9, 16384  ;;  %p8871_p0 = scmp.lt.s32.totalorder %s210_s9, %s210_s9 }
  0x29   : > { %p8864_p11 = scmp.ne.s32.totalorder %s210_s9, %s8863_s25  ;;  %p8872_p2 = scmp.lt.s32.totalorder %s8863_s25, %s8863_s25 }
  0x2b   : > { %p8866_p12 = pnand %p8864_p11, %p9098_p6  ;;  %p8873_p4 = por %p8872_p2, %p8871_p0 }
  0x2d   : > { %p8867_p13 = pneg %p8866_p12 }
  0x2f   : > { %p8874_p7 = pnand %p8873_p4, %p8867_p13 }
  0x31   : > { %8877 = shalt.err (!%p8874_p7)
}
  0x32   : > { %8203 = dma.hbm_to_vmem [thread:$0]  (!%p9088_p5), %s12173_s2, 16384, %s210_s9, [#allocation5], %s9011_s17, %s9011_s17, %s9012_s18  }
  0x33   : > { %s9013_s7 = smov [#allocation9]  }
  0x34   : > { %s235_s8 = sshll.u32 %s9013_s7, 4  ;;  %s236_s8 = int_to_ptr.vmem [resolvable:$true] %s235_s8 }
  0x35   : > { %s8889_s11 = scalar_lea.vmem %s236_s8, 4096  ;;  %p8897_p11 = scmp.lt.s32.totalorder %s236_s8, %s236_s8 }
  0x36   : > { %p8890_p8 = scmp.ne.s32.totalorder %s236_s8, %s8889_s11  ;;  %p8898_p12 = scmp.lt.s32.totalorder %s8889_s11, %s8889_s11 }
  0x38   : > { %p8892_p9 = pnand %p8890_p8, %p9098_p6  ;;  %p8899_p13 = por %p8898_p12, %p8897_p11 }
  0x3a   : > { %p8893_p10 = pneg %p8892_p9 }
  0x3c   : > { %p8900_p0 = pnand %p8899_p13, %p8893_p10 }
  0x3e   : > { %8903 = shalt.err (!%p8900_p0)
}
  0x3f   : > { %s9014_s12 = smov 64   ;;  %s9015_s13 = smov 4  }
  0x40   : > { %8209 = dma.hbm_to_vmem [thread:$0]  (!%p9088_p5), %s12175_s4, 4096, %s236_s8, [#allocation8], %s9014_s12, %s9014_s12, %s9015_s13  }
  0x41   : > { %s9016_s15 = smov [#allocation10]  }
  0x42   : > { %s248_s16 = sshll.u32 %s9016_s15, 4  ;;  %s249_s16 = int_to_ptr.vmem [resolvable:$true] %s248_s16 }
  0x43   : > { %s8915_s19 = scalar_lea.vmem %s249_s16, 3840  ;;  %p8923_p8 = scmp.lt.s32.totalorder %s249_s16, %s249_s16 }
  0x44   : > { %p8916_p2 = scmp.ne.s32.totalorder %s249_s16, %s8915_s19  ;;  %p8924_p9 = scmp.lt.s32.totalorder %s8915_s19, %s8915_s19 }
  0x46   : > { %p8918_p4 = pnand %p8916_p2, %p9098_p6  ;;  %p8925_p10 = por %p8924_p9, %p8923_p8 }
  0x48   : > { %p8919_p7 = pneg %p8918_p4 }
  0x4a   : > { %p8926_p11 = pnand %p8925_p10, %p8919_p7 }
  0x4c   : > { %8929 = shalt.err (!%p8926_p11)
}
  0x4d   : > { %8212 = dma.hbm_to_vmem [thread:$0]  (!%p9088_p5), %s12176_s5, 3840, %s249_s16, [#allocation11], %s9014_s12, %s9014_s12, %s9015_s13  }
  0x4e   : > { %s9150_s10 = sadd.s32 1, %s9004_s24   ;;  %s29_s26 = sadd.s32 1, %s9000_s23 }
  0x4f   : > { %s26_s29 = ssub.s32 %s9004_s24, %s9150_s10  ;;  %p36_p12 = scmp.ne.s32.totalorder %s9000_s23, %s8996_s22 }
  0x50   : > { %p27_p6 = scmp.eq.s32.totalorder %s26_s29, 0  ;;  %p37_p13 = scmp.eq.s32.totalorder %s9004_s24, 0 }
  0x51   : > { %p42_p0 = scmp.ne.s32.totalorder %s8996_s22, %s8992_s21  ;;  %p8222_p7 = scmp.lt.s32.totalorder %s9004_s24, 2 }
  0x52   : > { %s9161_s30 = scalar_select %p27_p6, %s9000_s23, %s29_s26  }
  0x53   : > { %p38_p2 = por %p37_p13, %p36_p12  ;;  %p9165_p4 = por %p12178_p1, %p42_p0 }
  0x54   : > { %s262_s8 = sand.u32 1, %s9000_s23   ;;  %s7763_s12 = sshll.u32 %s9004_s24, 12 }
  0x55   : > { %s12255_s7 = scalar_select %p9165_p4, 1, 0 }
  0x56   : > { %s7351_s11 = sshll.u32 %s262_s8, 8  ;;  %s9175_s9 = scalar_lea.hbm %s12171_s0, %s7763_s12 }
  0x57   : > { %s266_s21 = scalar_lea.vmem [#allocation2], %s7351_s11  ;;  %p9179_p5 = pnand %p8222_p7, %p38_p2 }
  0x58   : > { %s273_s15 = sshll.u32 %s266_s21, 4  ;;  %s9183_s19 = scalar_lea.sflag [#allocation3], %s262_s8  ;;  %s9177_s15 = int_to_ptr.vmem [resolvable:$true] %s273_s15 }
  0x59   : > { %s8930_s24 = scalar_lea.hbm %s9175_s9, 4096  ;;  %p8932_p9 = pneg %p9179_p5 }
  0x5a   : > { %p8931_p8 = scmp.ne.s32.totalorder %s9175_s9, %s8930_s24  ;;  %s8935_s29 = scalar_lea.hbm %s12171_s0, 8192 }
  0x5b   : > { %p8936_p6 = scmp.lt.s32.totalorder %s9175_s9, %s12171_s0  ;;  %p8937_p12 = scmp.lt.s32.totalorder %s8935_s29, %s8930_s24 }
  0x5c   : > { %p8933_p10 = pnand %p8932_p9, %p8931_p8 }
  0x5d   : > { %p8938_p13 = por %p8937_p12, %p8936_p6 }
  0x5e   : > { %p8934_p11 = pneg %p8933_p10 }
  0x60   : > { %p8939_p0 = pnand %p8938_p13, %p8934_p11 }
  0x62   : > { %8942 = shalt.err (!%p8939_p0)
}
  0x63   : > { %s8943_s8 = scalar_lea.vmem %s9177_s15, 4096  ;;  %s9017_s12 = smov [#allocation2]  }
  0x64   : > { %p8944_p2 = scmp.ne.s32.totalorder %s9177_s15, %s8943_s8  ;;  %s8948_s13 = sshll.u32 %s9017_s12, 4  ;;  %s8949_s13 = int_to_ptr.vmem [resolvable:$false] %s8948_s13 }
  0x65   : > { %s8950_s14 = scalar_lea.vmem %s8949_s13, 8192  ;;  %p8951_p10 = scmp.lt.s32.totalorder %s9177_s15, %s8949_s13 }
  0x66   : > { %p8946_p7 = pnand %p8944_p2, %p8932_p9  ;;  %p8952_p1 = scmp.lt.s32.totalorder %s8950_s14, %s8943_s8 }
  0x68   : > { %p8947_p8 = pneg %p8946_p7  ;;  %p8953_p4 = por %p8952_p1, %p8951_p10 }
  0x6a   : > { %p8954_p3 = pnand %p8953_p4, %p8947_p8 }
  0x6c   : > { %8957 = shalt.err (!%p8954_p3)
}
  0x6d   : > { %8216 = dma.hbm_to_vmem [thread:$0]  (!%p9179_p5), %s9175_s9, 4096, %s9177_s15, %s9183_s19, %s9011_s17, %s9011_s17, %s9012_s18  }
  0x6e   : > { %p12257_p9 = scmp.ne.s32.totalorder %s12252_s28, 0 }
  0x70   : > { %285 = sbr.rel (%p12257_p9) target bundleno = 3691 (0xe6b), region = 44 }
  0x75   : > { %s287_s21 = sand.u32 1, %s8996_s22   ;;  %p12258_p1 = scmp.ne.s32.totalorder %s12255_s7, 0 }
  0x76   : > { %s7355_s24 = sshll.u32 %s287_s21, 8  ;;  %s288_s20 = scalar_lea.sflag [#allocation3], %s287_s21 }
  0x77   : > { %s9210_s25 = scalar_lea.vmem [#allocation2], %s7355_s24 }
  0x78   : > { %8975 = dma.done.wait (%p12258_p1), %s288_s20, 4096  }
  0x79   : > { %8977 = vsyncadd (%p12258_p1), %s288_s20, 4294963200  ;;  %p12259_p3 = scmp.eq.s32.totalorder %s9075_s27, 0 }
  0x7b   : > { %8979 = dma.done.wait (%p12259_p3), [#allocation5], 17920   ;;  %p12260_p4 = pmov %p12259_p3 }
  0x7c   : > { %p12261_p5 = pmov %p12259_p3 }
  0x7d   : > { %8981 = vsyncadd (%p12260_p4), [#allocation5], 4294949376 }
  0x7e   : > { %8983 = dma.done.wait (%p12261_p5), [#allocation8], 20480   ;;  %p12262_p11 = pmov %p12259_p3 }
  0x7f   : > { %p12263_p6 = pmov %p12259_p3 }
  0x80   : > { %8985 = vsyncadd (%p12262_p11), [#allocation8], 4294946816 }
  0x81   : > { %8987 = dma.done.wait (%p12263_p6), [#allocation11], 3840   ;;  %p12264_p12 = pmov %p12259_p3 }
  0x82   : > { %v8272_v0 = vld [vmem:[#allocation6 + $0xe4] ss:$16 sps:$4 sm:$0xff]   ;;  %v8276_v2 = vld [vmem:[#allocation6 + $0xe0] ss:$16 sps:$4 sm:$0xff]   ;;  %v9232_v51 = vld [vmem:[%s9210_s25 + $0xc] ss:$16 sps:$4 sm:$0xff]  }
  0x83   : > { %8989 = vsyncadd (%p12264_p12), [#allocation11], 4294963456  ;;  %v8274_v1 = vld [vmem:[#allocation6 + $0x2e4] ss:$16 sps:$4 sm:$0xff]   ;;  %1306 = vmatprep.subr.bf16.mxu0 %v8272_v0  ;;  %v8277_v3 = vld [vmem:[#allocation6 + $0x2e0] ss:$16 sps:$4 sm:$0xff]   ;;  %1451 = vmatprep.mubr.bf16.mxu1 %v9232_v51 }
  0x84   : > { %1419 = vmatprep.subr.bf16.mxu1 %v8274_v1  ;;  %v8278_v4 = vld [vmem:[#allocation6 + $0xc4] ss:$16 sps:$4 sm:$0xff]   ;;  %1307 = vmatpush1.bf16.msra.mxu0 %v8276_v2  ;;  %v8282_v6 = vld [vmem:[#allocation6 + $0xc0] ss:$16 sps:$4 sm:$0xff]   ;;  %v8376_v2 = vld [vmem:[#allocation6 + $0xec] ss:$16 sps:$4 sm:$0xff]  }
  0x85   : > { %1420 = vmatpush1.bf16.msra.mxu1 %v8277_v3  ;;  %v8280_v5 = vld [vmem:[#allocation6 + $0x2c4] ss:$16 sps:$4 sm:$0xff]   ;;  %1308 = vmatprep.subr.bf16.mxu0 %v8278_v4  ;;  %v8283_v7 = vld [vmem:[#allocation6 + $0x2c0] ss:$16 sps:$4 sm:$0xff]   ;;  %v8379_v3 = vld [vmem:[#allocation6 + $0x2ec] ss:$16 sps:$4 sm:$0xff]  }
  0x86   : > { %1421 = vmatprep.subr.bf16.mxu1 %v8280_v5  ;;  %v8284_v8 = vld [vmem:[#allocation6 + $0xa4] ss:$16 sps:$4 sm:$0xff]   ;;  %v8288_v10 = vld [vmem:[#allocation6 + $0xa0] ss:$16 sps:$4 sm:$0xff]   ;;  %v9240_v5 = vld [vmem:[%s9210_s25 + $0x8] ss:$16 sps:$4 sm:$0xff]  }
  0x87   : > { %v8286_v9 = vld [vmem:[#allocation6 + $0x2a4] ss:$16 sps:$4 sm:$0xff]   ;;  %v8289_v11 = vld [vmem:[#allocation6 + $0x2a0] ss:$16 sps:$4 sm:$0xff]   ;;  %vm5189_vm0 = vcmask 523264   ;;  %vm5812_vm1 = vcmask 261120  }
  0x88   : > { %1309 = vmatpush1.bf16.msra.mxu0 %v8282_v6  ;;  %v8290_v12 = vld [vmem:[#allocation6 + $0x84] ss:$16 sps:$4 sm:$0xff]   ;;  %v8294_v14 = vld [vmem:[#allocation6 + $0x80] ss:$16 sps:$4 sm:$0xff]   ;;  %v8374_v6 = vld [vmem:[#allocation6 + $0xe8] ss:$16 sps:$4 sm:$0xff]  }
  0x89   : > { %1422 = vmatpush1.bf16.msra.mxu1 %v8283_v7  ;;  %1310 = vmatprep.subr.bf16.mxu0 %v8284_v8  ;;  %v8292_v13 = vld [vmem:[#allocation6 + $0x284] ss:$16 sps:$4 sm:$0xff]   ;;  %v8295_v15 = vld [vmem:[#allocation6 + $0x280] ss:$16 sps:$4 sm:$0xff]   ;;  %v8377_v7 = vld [vmem:[#allocation6 + $0x2e8] ss:$16 sps:$4 sm:$0xff]  }
  0x8a   : > { %1423 = vmatprep.subr.bf16.mxu1 %v8286_v9  ;;  %v8296_v16 = vld [vmem:[#allocation6 + $0x64] ss:$16 sps:$4 sm:$0xff]   ;;  %v8300_v18 = vld [vmem:[#allocation6 + $0x60] ss:$16 sps:$4 sm:$0xff]   ;;  %v8382_v8 = vld [vmem:[#allocation6 + $0xcc] ss:$16 sps:$4 sm:$0xff]  }
  0x8b   : > { %v8298_v17 = vld [vmem:[#allocation6 + $0x264] ss:$16 sps:$4 sm:$0xff]   ;;  %v8301_v19 = vld [vmem:[#allocation6 + $0x260] ss:$16 sps:$4 sm:$0xff]   ;;  %v8385_v9 = vld [vmem:[#allocation6 + $0x2cc] ss:$16 sps:$4 sm:$0xff]  }
  0x8c   : > { %1311 = vmatpush1.bf16.msra.mxu0 %v8288_v10  ;;  %v8302_v20 = vld [vmem:[#allocation6 + $0x44] ss:$16 sps:$4 sm:$0xff]   ;;  %v8306_v22 = vld [vmem:[#allocation6 + $0x40] ss:$16 sps:$4 sm:$0xff]   ;;  %vm6403_vm2 = vcmask 130048   ;;  %vm6978_vm3 = vcmask 64512  }
  0x8d   : > { %1424 = vmatpush1.bf16.msra.mxu1 %v8289_v11  ;;  %1312 = vmatprep.subr.bf16.mxu0 %v8290_v12  ;;  %v8304_v21 = vld [vmem:[#allocation6 + $0x244] ss:$16 sps:$4 sm:$0xff]   ;;  %v8307_v23 = vld [vmem:[#allocation6 + $0x240] ss:$16 sps:$4 sm:$0xff]   ;;  %v9246_v11 = vld [vmem:[%s9210_s25 + $0x2c] ss:$16 sps:$4 sm:$0xff]  }
  0x8e   : > { %1425 = vmatprep.subr.bf16.mxu1 %v8292_v13  ;;  %v8308_v24 = vld [vmem:[#allocation6 + $0x24] ss:$16 sps:$4 sm:$0xff]   ;;  %v8312_v26 = vld [vmem:[#allocation6 + $0x20] ss:$16 sps:$4 sm:$0xff]   ;;  %v8380_v12 = vld [vmem:[#allocation6 + $0xc8] ss:$16 sps:$4 sm:$0xff]  }
  0x8f   : > { %v8310_v25 = vld [vmem:[#allocation6 + $0x224] ss:$16 sps:$4 sm:$0xff]   ;;  %v8313_v27 = vld [vmem:[#allocation6 + $0x220] ss:$16 sps:$4 sm:$0xff]   ;;  %v8383_v13 = vld [vmem:[#allocation6 + $0x2c8] ss:$16 sps:$4 sm:$0xff]  }
  0x90   : > { %1313 = vmatpush1.bf16.msra.mxu0 %v8294_v14  ;;  %v8314_v28 = vld [vmem:[#allocation6 + $0x4] ss:$16 sps:$4 sm:$0xff]   ;;  %v8318_v30 = vld [vmem:[#allocation6] ss:$16 sps:$4 sm:$0xff]   ;;  %v8394_v14 = vld [vmem:[#allocation6 + $0xac] ss:$16 sps:$4 sm:$0xff]  }
  0x91   : > { %1426 = vmatpush1.bf16.msra.mxu1 %v8295_v15  ;;  %1314 = vmatprep.subr.bf16.mxu0 %v8296_v16  ;;  %v8316_v29 = vld [vmem:[#allocation6 + $0x204] ss:$16 sps:$4 sm:$0xff]   ;;  %v8319_v31 = vld [vmem:[#allocation6 + $0x200] ss:$16 sps:$4 sm:$0xff]   ;;  %v8397_v15 = vld [vmem:[#allocation6 + $0x2ac] ss:$16 sps:$4 sm:$0xff]  }
  0x92   : > { %1427 = vmatprep.subr.bf16.mxu1 %v8298_v17  ;;  %v8320_v32 = vld [vmem:[#allocation6 + $0x1e4] ss:$16 sps:$4 sm:$0xff]   ;;  %v8324_v34 = vld [vmem:[#allocation6 + $0x1e0] ss:$16 sps:$4 sm:$0xff]   ;;  %v9256_v17 = vld [vmem:[%s9210_s25 + $0x28] ss:$16 sps:$4 sm:$0xff]  }
  0x93   : > { %v8322_v33 = vld [vmem:[#allocation6 + $0x3e4] ss:$16 sps:$4 sm:$0xff]   ;;  %v8325_v35 = vld [vmem:[#allocation6 + $0x3e0] ss:$16 sps:$4 sm:$0xff]   ;;  %p340_p13 = scmp.lt.s32.totalorder %s9075_s27, 1  ;;  %vm7211_vm4 = vcmask 7168  }
  0x94   : > { %1315 = vmatpush1.bf16.msra.mxu0 %v8300_v18  ;;  %v8326_v36 = vld [vmem:[#allocation6 + $0x1c4] ss:$16 sps:$4 sm:$0xff]   ;;  %v8330_v38 = vld [vmem:[#allocation6 + $0x1c0] ss:$16 sps:$4 sm:$0xff]   ;;  %v8392_v18 = vld [vmem:[#allocation6 + $0xa8] ss:$16 sps:$4 sm:$0xff]  }
  0x95   : > { %1428 = vmatpush1.bf16.msra.mxu1 %v8301_v19  ;;  %1316 = vmatprep.subr.bf16.mxu0 %v8302_v20  ;;  %v8328_v37 = vld [vmem:[#allocation6 + $0x3c4] ss:$16 sps:$4 sm:$0xff]   ;;  %v8331_v39 = vld [vmem:[#allocation6 + $0x3c0] ss:$16 sps:$4 sm:$0xff]   ;;  %v8395_v19 = vld [vmem:[#allocation6 + $0x2a8] ss:$16 sps:$4 sm:$0xff]  }
  0x96   : > { %1429 = vmatprep.subr.bf16.mxu1 %v8304_v21  ;;  %v8332_v40 = vld [vmem:[#allocation6 + $0x1a4] ss:$16 sps:$4 sm:$0xff]   ;;  %v8336_v42 = vld [vmem:[#allocation6 + $0x1a0] ss:$16 sps:$4 sm:$0xff]   ;;  %v8400_v20 = vld [vmem:[#allocation6 + $0x8c] ss:$16 sps:$4 sm:$0xff]  }
  0x97   : > { %v8334_v41 = vld [vmem:[#allocation6 + $0x3a4] ss:$16 sps:$4 sm:$0xff]   ;;  %v8337_v43 = vld [vmem:[#allocation6 + $0x3a0] ss:$16 sps:$4 sm:$0xff]   ;;  %v8403_v21 = vld [vmem:[#allocation6 + $0x28c] ss:$16 sps:$4 sm:$0xff]  }
  0x98   : > { %1317 = vmatpush1.bf16.msra.mxu0 %v8306_v22  ;;  %v8338_v44 = vld [vmem:[#allocation6 + $0x184] ss:$16 sps:$4 sm:$0xff]   ;;  %v8342_v46 = vld [vmem:[#allocation6 + $0x180] ss:$16 sps:$4 sm:$0xff]   ;;  %s12415_s27 = smov (!%p340_p13, %s9075_s27), 1 }
  0x99   : > { %1430 = vmatpush1.bf16.msra.mxu1 %v8307_v23  ;;  %1318 = vmatprep.subr.bf16.mxu0 %v8308_v24  ;;  %v8340_v45 = vld [vmem:[#allocation6 + $0x384] ss:$16 sps:$4 sm:$0xff]   ;;  %v8343_v47 = vld [vmem:[#allocation6 + $0x380] ss:$16 sps:$4 sm:$0xff]   ;;  %v9262_v23 = vld [vmem:[%s9210_s25 + $0x4c] ss:$16 sps:$4 sm:$0xff]  }
  0x9a   : > { %1431 = vmatprep.subr.bf16.mxu1 %v8310_v25  ;;  %v8344_v48 = vld [vmem:[#allocation6 + $0x164] ss:$16 sps:$4 sm:$0xff]   ;;  %v8348_v52 = vld [vmem:[#allocation6 + $0x160] ss:$16 sps:$4 sm:$0xff]   ;;  %v8398_v24 = vld [vmem:[#allocation6 + $0x88] ss:$16 sps:$4 sm:$0xff]  }
  0x9b   : > { %v9229_v49 = vld [vmem:[%s9210_s25 + $0x4] ss:$16 sps:$4 sm:$0xff]   ;;  %v8349_v53 = vld [vmem:[#allocation6 + $0x360] ss:$16 sps:$4 sm:$0xff]   ;;  %v8401_v25 = vld [vmem:[#allocation6 + $0x288] ss:$16 sps:$4 sm:$0xff]  }
  0x9c   : > { %1319 = vmatpush1.bf16.msra.mxu0 %v8312_v26  ;;  %v8346_v50 = vld [vmem:[#allocation6 + $0x364] ss:$16 sps:$4 sm:$0xff]   ;;  %1338 = vmatprep.mubr.bf16.mxu0 %v9229_v49  ;;  %v8354_v56 = vld [vmem:[#allocation6 + $0x140] ss:$16 sps:$4 sm:$0xff]   ;;  %v8412_v26 = vld [vmem:[#allocation6 + $0x6c] ss:$16 sps:$4 sm:$0xff]  }
  0x9d   : > { %1432 = vmatpush1.bf16.msra.mxu1 %v8313_v27  ;;  %1320 = vmatprep.subr.bf16.mxu0 %v8314_v28  ;;  %v8350_v54 = vld [vmem:[#allocation6 + $0x144] ss:$16 sps:$4 sm:$0xff]   ;;  %v8355_v57 = vld [vmem:[#allocation6 + $0x340] ss:$16 sps:$4 sm:$0xff]   ;;  %v8415_v27 = vld [vmem:[#allocation6 + $0x26c] ss:$16 sps:$4 sm:$0xff]  }
  0x9e   : > { %1433 = vmatprep.subr.bf16.mxu1 %v8316_v29  ;;  %v8352_v55 = vld [vmem:[#allocation6 + $0x344] ss:$16 sps:$4 sm:$0xff]   ;;  %v8360_v60 = vld [vmem:[#allocation6 + $0x120] ss:$16 sps:$4 sm:$0xff]   ;;  %v9272_v29 = vld [vmem:[%s9210_s25 + $0x48] ss:$16 sps:$4 sm:$0xff]  }
  0x9f   : > { %v8356_v58 = vld [vmem:[#allocation6 + $0x124] ss:$16 sps:$4 sm:$0xff]   ;;  %v8361_v61 = vld [vmem:[#allocation6 + $0x320] ss:$16 sps:$4 sm:$0xff]   ;;  %s7764_s28 = sshll.u32 %s12415_s27, 7 }
  0xa0   : > { %1321 = vmatpush1.bf16.msra.mxu0 %v8318_v30  ;;  %v8358_v59 = vld [vmem:[#allocation6 + $0x324] ss:$16 sps:$4 sm:$0xff]   ;;  %v8366_v0 = vld [vmem:[#allocation6 + $0x100] ss:$16 sps:$4 sm:$0xff]   ;;  %v8410_v30 = vld [vmem:[#allocation6 + $0x68] ss:$16 sps:$4 sm:$0xff]   ;;  %s12124_s7 = scalar_lea.vmem %s12177_s6, %s7764_s28 }
  0xa1   : > { %1434 = vmatpush1.bf16.msra.mxu1 %v8319_v31  ;;  %1322 = vmatprep.subr.bf16.mxu0 %v8320_v32  ;;  %v8362_v62 = vld [vmem:[#allocation6 + $0x104] ss:$16 sps:$4 sm:$0xff]   ;;  %v8367_v1 = vld [vmem:[#allocation6 + $0x300] ss:$16 sps:$4 sm:$0xff]   ;;  %v8413_v31 = vld [vmem:[#allocation6 + $0x268] ss:$16 sps:$4 sm:$0xff]  }
  0xa2   : > { %1435 = vmatprep.subr.bf16.mxu1 %v8322_v33  ;;  %v8364_v63 = vld [vmem:[#allocation6 + $0x304] ss:$16 sps:$4 sm:$0xff]   ;;  %v9237_v4 = vld [vmem:[%s9210_s25] ss:$16 sps:$4 sm:$0xff]   ;;  %v8418_v32 = vld [vmem:[#allocation6 + $0x4c] ss:$16 sps:$4 sm:$0xff]  }
  0xa3   : > { %v9243_v10 = vld [vmem:[%s9210_s25 + $0x24] ss:$16 sps:$4 sm:$0xff]   ;;  %v9253_v16 = vld [vmem:[%s9210_s25 + $0x20] ss:$16 sps:$4 sm:$0xff]   ;;  %v8421_v33 = vld [vmem:[#allocation6 + $0x24c] ss:$16 sps:$4 sm:$0xff]  }
  0xa4   : > { %1323 = vmatpush2.bf16.msra.mxu0 %v8324_v34  ;;  %v9259_v22 = vld [vmem:[%s9210_s25 + $0x44] ss:$16 sps:$4 sm:$0xff]   ;;  %v9269_v28 = vld [vmem:[%s9210_s25 + $0x40] ss:$16 sps:$4 sm:$0xff]  }
  0xa5   : > { %1436 = vmatpush2.bf16.msra.mxu1 %v8325_v35  ;;  %1324 = vmatprep.subr.bf16.mxu0 %v8326_v36  ;;  %v9275_v34 = vld [vmem:[%s9210_s25 + $0x64] ss:$16 sps:$4 sm:$0xff]   ;;  %v9278_v35 = vld [vmem:[%s9210_s25 + $0x6c] ss:$16 sps:$4 sm:$0xff]   ;;  %v8416_v36 = vld [vmem:[#allocation6 + $0x48] ss:$16 sps:$4 sm:$0xff]  }
  0xa6   : > { %1437 = vmatprep.subr.bf16.mxu1 %v8328_v37  ;;  %v8419_v37 = vld [vmem:[#allocation6 + $0x248] ss:$16 sps:$4 sm:$0xff]  }
  0xa8   : > { %1325 = vmatpush2.bf16.msra.mxu0 %v8330_v38  ;;  %v8430_v38 = vld [vmem:[#allocation6 + $0x2c] ss:$16 sps:$4 sm:$0xff]  }
  0xa9   : > { %1438 = vmatpush2.bf16.msra.mxu1 %v8331_v39  ;;  %1326 = vmatprep.subr.bf16.mxu0 %v8332_v40  ;;  %v8433_v39 = vld [vmem:[#allocation6 + $0x22c] ss:$16 sps:$4 sm:$0xff]   ;;  %v9285_v40 = vld [vmem:[%s9210_s25 + $0x60] ss:$16 sps:$4 sm:$0xff]  }
  0xaa   : > { %1439 = vmatprep.subr.bf16.mxu1 %v8334_v41  ;;  %v9288_v41 = vld [vmem:[%s9210_s25 + $0x68] ss:$16 sps:$4 sm:$0xff]  }
  0xac   : > { %1327 = vmatpush2.bf16.msra.mxu0 %v8336_v42  ;;  %v8428_v42 = vld [vmem:[#allocation6 + $0x28] ss:$16 sps:$4 sm:$0xff]  }
  0xad   : > { %1440 = vmatpush2.bf16.msra.mxu1 %v8337_v43  ;;  %1328 = vmatprep.subr.bf16.mxu0 %v8338_v44  ;;  %v8431_v43 = vld [vmem:[#allocation6 + $0x228] ss:$16 sps:$4 sm:$0xff]   ;;  %v8436_v44 = vld [vmem:[#allocation6 + $0xc] ss:$16 sps:$4 sm:$0xff]  }
  0xae   : > { %1441 = vmatprep.subr.bf16.mxu1 %v8340_v45  ;;  %v8439_v45 = vld [vmem:[#allocation6 + $0x20c] ss:$16 sps:$4 sm:$0xff]  }
  0xb0   : > { %1329 = vmatpush2.bf16.msra.mxu0 %v8342_v46  ;;  %v9291_v46 = vld [vmem:[%s9210_s25 + $0x84] ss:$16 sps:$4 sm:$0xff]  }
  0xb1   : > { %1442 = vmatpush2.bf16.msra.mxu1 %v8343_v47  ;;  %1330 = vmatprep.subr.bf16.mxu0 %v8344_v48  ;;  %v9294_v47 = vld [vmem:[%s9210_s25 + $0x8c] ss:$16 sps:$4 sm:$0xff]   ;;  %v8434_v48 = vld [vmem:[#allocation6 + $0x8] ss:$16 sps:$4 sm:$0xff]  }
  0xb2   : > { %1443 = vmatprep.subr.bf16.mxu1 %v8346_v50  ;;  %v8437_v50 = vld [vmem:[#allocation6 + $0x208] ss:$16 sps:$4 sm:$0xff]  }
  0xb4   : > { %1331 = vmatpush2.bf16.msra.mxu0 %v8348_v52  ;;  %v8448_v52 = vld [vmem:[#allocation6 + $0x1ec] ss:$16 sps:$4 sm:$0xff]  }
  0xb5   : > { %1444 = vmatpush2.bf16.msra.mxu1 %v8349_v53  ;;  %1332 = vmatprep.subr.bf16.mxu0 %v8350_v54  ;;  %v8451_v53 = vld [vmem:[#allocation6 + $0x3ec] ss:$16 sps:$4 sm:$0xff]   ;;  %v9301_v54 = vld [vmem:[%s9210_s25 + $0x80] ss:$16 sps:$4 sm:$0xff]  }
  0xb6   : > { %1445 = vmatprep.subr.bf16.mxu1 %v8352_v55  ;;  %v9304_v55 = vld [vmem:[%s9210_s25 + $0x88] ss:$16 sps:$4 sm:$0xff]  }
  0xb8   : > { %1333 = vmatpush2.bf16.msra.mxu0 %v8354_v56  ;;  %v8446_v56 = vld [vmem:[#allocation6 + $0x1e8] ss:$16 sps:$4 sm:$0xff]  }
  0xb9   : > { %1446 = vmatpush2.bf16.msra.mxu1 %v8355_v57  ;;  %1334 = vmatprep.subr.bf16.mxu0 %v8356_v58  ;;  %v8449_v57 = vld [vmem:[#allocation6 + $0x3e8] ss:$16 sps:$4 sm:$0xff]   ;;  %v8454_v58 = vld [vmem:[#allocation6 + $0x1cc] ss:$16 sps:$4 sm:$0xff]  }
  0xba   : > { %1447 = vmatprep.subr.bf16.mxu1 %v8358_v59  ;;  %v8457_v59 = vld [vmem:[#allocation6 + $0x3cc] ss:$16 sps:$4 sm:$0xff]  }
  0xbc   : > { %1335 = vmatpush2.bf16.msra.mxu0 %v8360_v60  ;;  %v9307_v60 = vld [vmem:[%s9210_s25 + $0xa4] ss:$16 sps:$4 sm:$0xff]  }
  0xbd   : > { %1448 = vmatpush2.bf16.msra.mxu1 %v8361_v61  ;;  %1336 = vmatprep.subr.bf16.mxu0 %v8362_v62  ;;  %v9310_v61 = vld [vmem:[%s9210_s25 + $0xac] ss:$16 sps:$4 sm:$0xff]   ;;  %v8452_v62 = vld [vmem:[#allocation6 + $0x1c8] ss:$16 sps:$4 sm:$0xff]  }
  0xbe   : > { %1449 = vmatprep.subr.bf16.mxu1 %v8364_v63  ;;  %v8455_v63 = vld [vmem:[#allocation6 + $0x3c8] ss:$16 sps:$4 sm:$0xff]  }
  0xc0   : > { %1337 = vmatpush2.bf16.msra.mxu0 %v8366_v0  ;;  %v8466_v0 = vld [vmem:[#allocation6 + $0x1ac] ss:$16 sps:$4 sm:$0xff]  }
  0xc1   : > { %1450 = vmatpush2.bf16.msra.mxu1 %v8367_v1  ;;  %1532 = vmatprep.subr.bf16.mxu0 %v8376_v2  ;;  %v8469_v1 = vld [vmem:[#allocation6 + $0x3ac] ss:$16 sps:$4 sm:$0xff]   ;;  %v9317_v2 = vld [vmem:[%s9210_s25 + $0xa0] ss:$16 sps:$4 sm:$0xff]  }
  0xc2   : > { %1645 = vmatprep.subr.bf16.mxu1 %v8379_v3  ;;  %v9320_v3 = vld [vmem:[%s9210_s25 + $0xa8] ss:$16 sps:$4 sm:$0xff]  }
  0xc3   : > { %1339 = vmatmul.mubr.bf16.vlgmr.msra.gmra.mxu0 %v9237_v4 }
  0xc4   : > { %1452 = vmatmul.mubr.bf16.vlgmr.msra.gmra.mxu1 %v9240_v5  ;;  %1533 = vmatpush1.bf16.msra.mxu0 %v8374_v6  ;;  %v8464_v6 = vld [vmem:[#allocation6 + $0x1a8] ss:$16 sps:$4 sm:$0xff]  }
  0xc5   : > { %1646 = vmatpush1.bf16.msra.mxu1 %v8377_v7  ;;  %1534 = vmatprep.subr.bf16.mxu0 %v8382_v8  ;;  %v8467_v7 = vld [vmem:[#allocation6 + $0x3a8] ss:$16 sps:$4 sm:$0xff]   ;;  %v8472_v8 = vld [vmem:[#allocation6 + $0x18c] ss:$16 sps:$4 sm:$0xff]  }
  0xc6   : > { %1647 = vmatprep.subr.bf16.mxu1 %v8385_v9  ;;  %1348 = vmatprep.mubr.bf16.mxu0 %v9243_v10  ;;  %v8475_v9 = vld [vmem:[#allocation6 + $0x38c] ss:$16 sps:$4 sm:$0xff]  }
  0xc7   : > { %1461 = vmatprep.mubr.bf16.mxu1 %v9246_v11 }
  0xc8   : > { %1535 = vmatpush1.bf16.msra.mxu0 %v8380_v12  ;;  %v8470_v12 = vld [vmem:[#allocation6 + $0x188] ss:$16 sps:$4 sm:$0xff]  }
  0xc9   : > { %1648 = vmatpush1.bf16.msra.mxu1 %v8383_v13  ;;  %1536 = vmatprep.subr.bf16.mxu0 %v8394_v14  ;;  %v8473_v13 = vld [vmem:[#allocation6 + $0x388] ss:$16 sps:$4 sm:$0xff]   ;;  %v9323_v14 = vld [vmem:[%s9210_s25 + $0xc4] ss:$16 sps:$4 sm:$0xff]  }
  0xca   : > { %1649 = vmatprep.subr.bf16.mxu1 %v8397_v15  ;;  %v9326_v15 = vld [vmem:[%s9210_s25 + $0xcc] ss:$16 sps:$4 sm:$0xff]  }
  0xcb   : > { %1349 = vmatmul.mubr.bf16.gmra.mxu0 %v9253_v16 }
  0xcc   : > { %1462 = vmatmul.mubr.bf16.gmra.mxu1 %v9256_v17  ;;  %1537 = vmatpush1.bf16.msra.mxu0 %v8392_v18  ;;  %v8484_v18 = vld [vmem:[#allocation6 + $0x16c] ss:$16 sps:$4 sm:$0xff]  }
  0xcd   : > { %1650 = vmatpush1.bf16.msra.mxu1 %v8395_v19  ;;  %1538 = vmatprep.subr.bf16.mxu0 %v8400_v20  ;;  %v8487_v19 = vld [vmem:[#allocation6 + $0x36c] ss:$16 sps:$4 sm:$0xff]   ;;  %v9331_v20 = vld [vmem:[%s9210_s25 + $0xc0] ss:$16 sps:$4 sm:$0xff]  }
  0xce   : > { %1651 = vmatprep.subr.bf16.mxu1 %v8403_v21  ;;  %1358 = vmatprep.mubr.bf16.mxu0 %v9259_v22  ;;  %v9334_v21 = vld [vmem:[%s9210_s25 + $0xc8] ss:$16 sps:$4 sm:$0xff]  }
  0xcf   : > { %1471 = vmatprep.mubr.bf16.mxu1 %v9262_v23 }
  0xd0   : > { %1539 = vmatpush1.bf16.msra.mxu0 %v8398_v24  ;;  %v8482_v24 = vld [vmem:[#allocation6 + $0x168] ss:$16 sps:$4 sm:$0xff]  }
  0xd1   : > { %1652 = vmatpush1.bf16.msra.mxu1 %v8401_v25  ;;  %1540 = vmatprep.subr.bf16.mxu0 %v8412_v26  ;;  %v8485_v25 = vld [vmem:[#allocation6 + $0x368] ss:$16 sps:$4 sm:$0xff]   ;;  %v8490_v26 = vld [vmem:[#allocation6 + $0x14c] ss:$16 sps:$4 sm:$0xff]  }
  0xd2   : > { %1653 = vmatprep.subr.bf16.mxu1 %v8415_v27  ;;  %v8493_v27 = vld [vmem:[#allocation6 + $0x34c] ss:$16 sps:$4 sm:$0xff]  }
  0xd3   : > { %1359 = vmatmul.mubr.bf16.gmra.mxu0 %v9269_v28 }
  0xd4   : > { %1472 = vmatmul.mubr.bf16.gmra.mxu1 %v9272_v29  ;;  %1541 = vmatpush1.bf16.msra.mxu0 %v8410_v30  ;;  %v9339_v30 = vld [vmem:[%s9210_s25 + $0xe4] ss:$16 sps:$4 sm:$0xff]  }
  0xd5   : > { %1654 = vmatpush1.bf16.msra.mxu1 %v8413_v31  ;;  %1542 = vmatprep.subr.bf16.mxu0 %v8418_v32  ;;  %v9342_v31 = vld [vmem:[%s9210_s25 + $0xec] ss:$16 sps:$4 sm:$0xff]   ;;  %v8488_v32 = vld [vmem:[#allocation6 + $0x148] ss:$16 sps:$4 sm:$0xff]  }
  0xd6   : > { %1655 = vmatprep.subr.bf16.mxu1 %v8421_v33  ;;  %1368 = vmatprep.mubr.bf16.mxu0 %v9275_v34  ;;  %v8491_v33 = vld [vmem:[#allocation6 + $0x348] ss:$16 sps:$4 sm:$0xff]  }
  0xd7   : > { %1481 = vmatprep.mubr.bf16.mxu1 %v9278_v35 }
  0xd8   : > { %1543 = vmatpush1.bf16.msra.mxu0 %v8416_v36  ;;  %v8502_v36 = vld [vmem:[#allocation6 + $0x12c] ss:$16 sps:$4 sm:$0xff]  }
  0xd9   : > { %1656 = vmatpush1.bf16.msra.mxu1 %v8419_v37  ;;  %1544 = vmatprep.subr.bf16.mxu0 %v8430_v38  ;;  %v8505_v37 = vld [vmem:[#allocation6 + $0x32c] ss:$16 sps:$4 sm:$0xff]   ;;  %v8498_v38 = vld [vmem:[%s9210_s25 + $0xe0] ss:$16 sps:$4 sm:$0xff]  }
  0xda   : > { %1657 = vmatprep.subr.bf16.mxu1 %v8433_v39  ;;  %v8499_v39 = vld [vmem:[%s9210_s25 + $0xe8] ss:$16 sps:$4 sm:$0xff]  }
  0xdb   : > { %1369 = vmatmul.mubr.bf16.gmra.mxu0 %v9285_v40 }
  0xdc   : > { %1482 = vmatmul.mubr.bf16.gmra.mxu1 %v9288_v41  ;;  %1545 = vmatpush1.bf16.msra.mxu0 %v8428_v42  ;;  %v8500_v42 = vld [vmem:[#allocation6 + $0x128] ss:$16 sps:$4 sm:$0xff]  }
  0xdd   : > { %1658 = vmatpush1.bf16.msra.mxu1 %v8431_v43  ;;  %1546 = vmatprep.subr.bf16.mxu0 %v8436_v44  ;;  %v8503_v43 = vld [vmem:[#allocation6 + $0x328] ss:$16 sps:$4 sm:$0xff]   ;;  %v8508_v44 = vld [vmem:[#allocation6 + $0x10c] ss:$16 sps:$4 sm:$0xff]  }
  0xde   : > { %1659 = vmatprep.subr.bf16.mxu1 %v8439_v45  ;;  %1378 = vmatprep.mubr.bf16.mxu0 %v9291_v46  ;;  %v8511_v45 = vld [vmem:[#allocation6 + $0x30c] ss:$16 sps:$4 sm:$0xff]  }
  0xdf   : > { %1491 = vmatprep.mubr.bf16.mxu1 %v9294_v47 }
  0xe0   : > { %1547 = vmatpush1.bf16.msra.mxu0 %v8434_v48  ;;  %v8506_v48 = vld [vmem:[#allocation6 + $0x108] ss:$16 sps:$4 sm:$0xff]  }
  0xe1   : > { %1660 = vmatpush1.bf16.msra.mxu1 %v8437_v50  ;;  %1548 = vmatprep.subr.bf16.mxu0 %v8448_v52  ;;  %v8509_v50 = vld [vmem:[#allocation6 + $0x308] ss:$16 sps:$4 sm:$0xff]  }
  0xe2   : > { %1661 = vmatprep.subr.bf16.mxu1 %v8451_v53 }
  0xe3   : > { %1379 = vmatmul.mubr.bf16.gmra.mxu0 %v9301_v54 }
  0xe4   : > { %1492 = vmatmul.mubr.bf16.gmra.mxu1 %v9304_v55  ;;  %1549 = vmatpush2.bf16.msra.mxu0 %v8446_v56  ;;  %v8523_v56 = vld [vmem:[#allocation7 + $0x2c4] ss:$16 sps:$4 sm:$0xff]  }
  0xe5   : > { %1662 = vmatpush2.bf16.msra.mxu1 %v8449_v57  ;;  %1550 = vmatprep.subr.bf16.mxu0 %v8454_v58 }
  0xe6   : > { %1663 = vmatprep.subr.bf16.mxu1 %v8457_v59  ;;  %1388 = vmatprep.mubr.bf16.mxu0 %v9307_v60  ;;  %v8518_v59 = vld [vmem:[#allocation7 + $0xc0] ss:$16 sps:$4 sm:$0xff]  }
  0xe7   : > { %1501 = vmatprep.mubr.bf16.mxu1 %v9310_v61 }
  0xe8   : > { %1551 = vmatpush2.bf16.msra.mxu0 %v8452_v62 }
  0xe9   : > { %1664 = vmatpush2.bf16.msra.mxu1 %v8455_v63  ;;  %1552 = vmatprep.subr.bf16.mxu0 %v8466_v0  ;;  %v8526_v0 = vld [vmem:[#allocation7 + $0xa4] ss:$16 sps:$4 sm:$0xff]  }
  0xea   : > { %1665 = vmatprep.subr.bf16.mxu1 %v8469_v1  ;;  %v8529_v1 = vld [vmem:[#allocation7 + $0x2a4] ss:$16 sps:$4 sm:$0xff]  }
  0xeb   : > { %1389 = vmatmul.mubr.bf16.gmra.mxu0 %v9317_v2 }
  0xec   : > { %1502 = vmatmul.mubr.bf16.gmra.mxu1 %v9320_v3  ;;  %1553 = vmatpush2.bf16.msra.mxu0 %v8464_v6  ;;  %v8524_v6 = vld [vmem:[#allocation7 + $0xa0] ss:$16 sps:$4 sm:$0xff]  }
  0xed   : > { %1666 = vmatpush2.bf16.msra.mxu1 %v8467_v7  ;;  %1554 = vmatprep.subr.bf16.mxu0 %v8472_v8  ;;  %v8527_v7 = vld [vmem:[#allocation7 + $0x2a0] ss:$16 sps:$4 sm:$0xff]  }
  0xee   : > { %1667 = vmatprep.subr.bf16.mxu1 %v8475_v9  ;;  %1398 = vmatprep.mubr.bf16.mxu0 %v9323_v14 }
  0xef   : > { %1511 = vmatprep.mubr.bf16.mxu1 %v9326_v15 }
  0xf0   : > { %1555 = vmatpush2.bf16.msra.mxu0 %v8470_v12 }
  0xf1   : > { %1668 = vmatpush2.bf16.msra.mxu1 %v8473_v13  ;;  %1556 = vmatprep.subr.bf16.mxu0 %v8484_v18 }
  0xf2   : > { %1669 = vmatprep.subr.bf16.mxu1 %v8487_v19 }
  0xf3   : > { %1399 = vmatmul.mubr.bf16.gmra.mxu0 %v9331_v20 }
  0xf4   : > { %1512 = vmatmul.mubr.bf16.gmra.mxu1 %v9334_v21  ;;  %1557 = vmatpush2.bf16.msra.mxu0 %v8482_v24 }
  0xf5   : > { %1670 = vmatpush2.bf16.msra.mxu1 %v8485_v25  ;;  %1558 = vmatprep.subr.bf16.mxu0 %v8490_v26 }
  0xf6   : > { %1671 = vmatprep.subr.bf16.mxu1 %v8493_v27  ;;  %1408 = vmatprep.mubr.bf16.mxu0 %v9339_v30 }
  0xf7   : > { %1521 = vmatprep.mubr.bf16.mxu1 %v9342_v31 }
  0xf8   : > { %1559 = vmatpush2.bf16.msra.mxu0 %v8488_v32  ;;  %v8538_v32 = vld [vmem:[#allocation7 + $0x64] ss:$16 sps:$4 sm:$0xff]  }
  0xf9   : > { %1672 = vmatpush2.bf16.msra.mxu1 %v8491_v33  ;;  %1560 = vmatprep.subr.bf16.mxu0 %v8502_v36  ;;  %v8539_v33 = vld [vmem:[#allocation7 + $0x260] ss:$16 sps:$4 sm:$0xff]  }
  0xfa   : > { %1673 = vmatprep.subr.bf16.mxu1 %v8505_v37  ;;  %v8541_v37 = vld [vmem:[#allocation7 + $0x264] ss:$16 sps:$4 sm:$0xff]  }
  0xfb   : > { %1409 = vmatmul.mubr.bf16.gmra.mxu0 %v8498_v38 }
  0xfc   : > { %1522 = vmatmul.mubr.bf16.gmra.mxu1 %v8499_v39  ;;  %1561 = vmatpush2.bf16.msra.mxu0 %v8500_v42 }
  0xfd   : > { %1674 = vmatpush2.bf16.msra.mxu1 %v8503_v43  ;;  %1562 = vmatprep.subr.bf16.mxu0 %v8508_v44  ;;  %v8544_v43 = vld [vmem:[#allocation7 + $0x44] ss:$16 sps:$4 sm:$0xff]  }
  0xfe   : > { %1675 = vmatprep.subr.bf16.mxu1 %v8511_v45  ;;  %1564 = vmatprep.mubr.bf16.mxu0 %v9229_v49  ;;  %v8547_v44 = vld [vmem:[#allocation7 + $0x244] ss:$16 sps:$4 sm:$0xff]  }
  0xff   : > { %1677 = vmatprep.mubr.bf16.mxu1 %v9232_v51 }
 0x100   : > { %1563 = vmatpush2.bf16.msra.mxu0 %v8506_v48 }
 0x101   : > { %1676 = vmatpush2.bf16.msra.mxu1 %v8509_v50  ;;  %v8542_v50 = vld [vmem:[#allocation7 + $0x40] ss:$16 sps:$4 sm:$0xff]  }
 0x103   : > { %1565 = vmatmul.mubr.bf16.vlgmr.msra.gmra.mxu0 %v9237_v4 }
 0x104   : > { %1678 = vmatmul.mubr.bf16.vlgmr.msra.gmra.mxu1 %v9240_v5  ;;  %1574 = vmatprep.mubr.bf16.mxu0 %v9243_v10 }
 0x105   : > { %1687 = vmatprep.mubr.bf16.mxu1 %v9246_v11 }
 0x10b   : > { %1575 = vmatmul.mubr.bf16.gmra.mxu0 %v9253_v16 }
 0x10c   : > { %1688 = vmatmul.mubr.bf16.gmra.mxu1 %v9256_v17  ;;  %1584 = vmatprep.mubr.bf16.mxu0 %v9259_v22 }
 0x10d   : > { %1697 = vmatprep.mubr.bf16.mxu1 %v9262_v23 }
 0x113   : > { %1585 = vmatmul.mubr.bf16.gmra.mxu0 %v9269_v28 }
 0x114   : > { %1698 = vmatmul.mubr.bf16.gmra.mxu1 %v9272_v29  ;;  %1594 = vmatprep.mubr.bf16.mxu0 %v9275_v34  ;;  %v8514_v29 = vld [vmem:[#allocation7 + $0xe4] ss:$16 sps:$4 sm:$0xff]  }
 0x115   : > { %1707 = vmatprep.mubr.bf16.mxu1 %v9278_v35  ;;  %v8517_v34 = vld [vmem:[#allocation7 + $0x2e4] ss:$16 sps:$4 sm:$0xff]   ;;  %3119 = vmatprep.subr.bf16.mxu0 %v8514_v29 }
 0x116   : > { %3232 = vmatprep.subr.bf16.mxu1 %v8517_v34 }
 0x11b   : > { %1595 = vmatmul.mubr.bf16.gmra.mxu0 %v9285_v40 }
 0x11c   : > { %1708 = vmatmul.mubr.bf16.gmra.mxu1 %v9288_v41  ;;  %1604 = vmatprep.mubr.bf16.mxu0 %v9291_v46  ;;  %v8512_v41 = vld [vmem:[#allocation7 + $0xe0] ss:$16 sps:$4 sm:$0xff]  }
 0x11d   : > { %1717 = vmatprep.mubr.bf16.mxu1 %v9294_v47  ;;  %v8515_v46 = vld [vmem:[#allocation7 + $0x2e0] ss:$16 sps:$4 sm:$0xff]   ;;  %3120 = vmatpush1.bf16.msra.mxu0 %v8512_v41 }
 0x11e   : > { %3233 = vmatpush1.bf16.msra.mxu1 %v8515_v46 }
 0x11f   : > { %3234 = vmatprep.subr.bf16.mxu1 %v8523_v56  ;;  %v8559_v56 = vld [vmem:[#allocation7 + $0x204] ss:$16 sps:$4 sm:$0xff]  }
 0x123   : > { %1605 = vmatmul.mubr.bf16.gmra.mxu0 %v9301_v54 }
 0x124   : > { %1718 = vmatmul.mubr.bf16.gmra.mxu1 %v9304_v55  ;;  %1614 = vmatprep.mubr.bf16.mxu0 %v9307_v60  ;;  %v8520_v55 = vld [vmem:[#allocation7 + $0xc4] ss:$16 sps:$4 sm:$0xff]   ;;  %v8521_v60 = vld [vmem:[#allocation7 + $0x2c0] ss:$16 sps:$4 sm:$0xff]  }
 0x125   : > { %1727 = vmatprep.mubr.bf16.mxu1 %v9310_v61  ;;  %3121 = vmatprep.subr.bf16.mxu0 %v8520_v55  ;;  %v8556_v55 = vld [vmem:[#allocation7 + $0x4] ss:$16 sps:$4 sm:$0xff]  }
 0x126   : > { %3122 = vmatpush1.bf16.msra.mxu0 %v8518_v59  ;;  %3235 = vmatpush1.bf16.msra.mxu1 %v8521_v60  ;;  %v8554_v59 = vld [vmem:[#allocation7] ss:$16 sps:$4 sm:$0xff]  }
 0x127   : > { %3123 = vmatprep.subr.bf16.mxu0 %v8526_v0  ;;  %3236 = vmatprep.subr.bf16.mxu1 %v8529_v1  ;;  %v8557_v60 = vld [vmem:[#allocation7 + $0x200] ss:$16 sps:$4 sm:$0xff]  }
 0x12a   : > { %3124 = vmatpush1.bf16.msra.mxu0 %v8524_v6  ;;  %3237 = vmatpush1.bf16.msra.mxu1 %v8527_v7  ;;  %v8565_v6 = vld [vmem:[#allocation7 + $0x3e4] ss:$16 sps:$4 sm:$0xff]  }
 0x12b   : > { %1615 = vmatmul.mubr.bf16.gmra.mxu0 %v9317_v2 }
 0x12c   : > { %1728 = vmatmul.mubr.bf16.gmra.mxu1 %v9320_v3  ;;  %1624 = vmatprep.mubr.bf16.mxu0 %v9323_v14  ;;  %v8532_v14 = vld [vmem:[#allocation7 + $0x84] ss:$16 sps:$4 sm:$0xff]  }
 0x12d   : > { %1737 = vmatprep.mubr.bf16.mxu1 %v9326_v15  ;;  %v8535_v15 = vld [vmem:[#allocation7 + $0x284] ss:$16 sps:$4 sm:$0xff]   ;;  %3125 = vmatprep.subr.bf16.mxu0 %v8532_v14  ;;  %v8563_v14 = vld [vmem:[#allocation7 + $0x3e0] ss:$16 sps:$4 sm:$0xff]  }
 0x12e   : > { %3238 = vmatprep.subr.bf16.mxu1 %v8535_v15 }
 0x133   : > { %1625 = vmatmul.mubr.bf16.gmra.mxu0 %v9331_v20  ;;  %v8530_v20 = vld [vmem:[#allocation7 + $0x80] ss:$16 sps:$4 sm:$0xff]  }
 0x134   : > { %1738 = vmatmul.mubr.bf16.gmra.mxu1 %v9334_v21  ;;  %1634 = vmatprep.mubr.bf16.mxu0 %v9339_v30  ;;  %v8533_v21 = vld [vmem:[#allocation7 + $0x280] ss:$16 sps:$4 sm:$0xff]  }
 0x135   : > { %1747 = vmatprep.mubr.bf16.mxu1 %v9342_v31  ;;  %3126 = vmatpush1.bf16.msra.mxu0 %v8530_v20  ;;  %v8536_v31 = vld [vmem:[#allocation7 + $0x60] ss:$16 sps:$4 sm:$0xff]  }
 0x136   : > { %3239 = vmatpush1.bf16.msra.mxu1 %v8533_v21  ;;  %3127 = vmatprep.subr.bf16.mxu0 %v8538_v32  ;;  %v8568_v21 = vld [vmem:[#allocation7 + $0x1c4] ss:$16 sps:$4 sm:$0xff]   ;;  %v8566_v32 = vld [vmem:[#allocation7 + $0x1c0] ss:$16 sps:$4 sm:$0xff]  }
 0x137   : > { %3240 = vmatprep.subr.bf16.mxu1 %v8541_v37 }
 0x139   : > { %3128 = vmatpush1.bf16.msra.mxu0 %v8536_v31 }
 0x13a   : > { %3241 = vmatpush1.bf16.msra.mxu1 %v8539_v33  ;;  %3129 = vmatprep.subr.bf16.mxu0 %v8544_v43  ;;  %v8569_v33 = vld [vmem:[#allocation7 + $0x3c0] ss:$16 sps:$4 sm:$0xff]   ;;  %v8574_v43 = vld [vmem:[#allocation7 + $0x1a4] ss:$16 sps:$4 sm:$0xff]  }
 0x13b   : > { %1635 = vmatmul.mubr.bf16.gmra.mxu0 %v8498_v38  ;;  %3242 = vmatprep.subr.bf16.mxu1 %v8547_v44  ;;  %v8577_v44 = vld [vmem:[#allocation7 + $0x3a4] ss:$16 sps:$4 sm:$0xff]  }
 0x13c   : > { %1748 = vmatmul.mubr.bf16.gmra.mxu1 %v8499_v39 }
 0x13d   : > { %3130 = vmatpush1.bf16.msra.mxu0 %v8542_v50  ;;  %v8572_v50 = vld [vmem:[#allocation7 + $0x1a0] ss:$16 sps:$4 sm:$0xff]  }
 0x183   : > { %v1340_v49 = vpop.f32.mrf.mxu0 }
 0x184   : > { %v1453_v51 = vpop.f32.mrf.mxu1 }
 0x185   : > { %v9380_v4 = vadd.f32 %v1453_v51, %v1340_v49  ;;  %v1342_v5 = vpop.f32.mrf.mxu0  ;;  %v8545_v49 = vld [vmem:[#allocation7 + $0x240] ss:$16 sps:$4 sm:$0xff]  }
 0x186   : > { %v1455_v10 = vpop.f32.mrf.mxu1  ;;  %3243 = vmatpush1.bf16.msra.mxu1 %v8545_v49 }
 0x187   : > { %v9382_v11 = vadd.f32 %v1455_v10, %v1342_v5  ;;  %v1344_v16 = vpop.f32.mrf.mxu0 }
 0x188   : > { %v1457_v17 = vpop.f32.mrf.mxu1 }
 0x189   : > { %v9384_v22 = vadd.f32 %v1457_v17, %v1344_v16  ;;  %v9386_v23 = vpop.f32.mrf.mxu0  ;;  %v8550_v16 = vld [vmem:[#allocation7 + $0x24] ss:$16 sps:$4 sm:$0xff]  }
 0x18a   : > { %v9388_v28 = vpop.f32.mrf.mxu1  ;;  %v8553_v17 = vld [vmem:[#allocation7 + $0x224] ss:$16 sps:$4 sm:$0xff]   ;;  %3131 = vmatprep.subr.bf16.mxu0 %v8550_v16  ;;  %v8575_v16 = vld [vmem:[#allocation7 + $0x3a0] ss:$16 sps:$4 sm:$0xff]  }
 0x18b   : > { %v1350_v35 = vpop.f32.mrf.mxu0  ;;  %3244 = vmatprep.subr.bf16.mxu1 %v8553_v17 }
 0x18c   : > { %v1463_v40 = vpop.f32.mrf.mxu1 }
 0x18d   : > { %v9390_v47 = vadd.f32 %v1463_v40, %v1350_v35  ;;  %v1352_v52 = vpop.f32.mrf.mxu0  ;;  %v8548_v35 = vld [vmem:[#allocation7 + $0x20] ss:$16 sps:$4 sm:$0xff]  }
 0x18e   : > { %v1465_v53 = vpop.f32.mrf.mxu1  ;;  %v8551_v40 = vld [vmem:[#allocation7 + $0x220] ss:$16 sps:$4 sm:$0xff]   ;;  %3132 = vmatpush1.bf16.msra.mxu0 %v8548_v35  ;;  %v8580_v35 = vld [vmem:[#allocation7 + $0x184] ss:$16 sps:$4 sm:$0xff]  }
 0x18f   : > { %v9392_v54 = vadd.f32 %v1465_v53, %v1352_v52  ;;  %v1354_v57 = vpop.f32.mrf.mxu0  ;;  %3245 = vmatpush1.bf16.msra.mxu1 %v8551_v40  ;;  %3133 = vmatprep.subr.bf16.mxu0 %v8556_v55  ;;  %v8583_v40 = vld [vmem:[#allocation7 + $0x384] ss:$16 sps:$4 sm:$0xff]   ;;  %v8578_v55 = vld [vmem:[#allocation7 + $0x180] ss:$16 sps:$4 sm:$0xff]  }
 0x190   : > { %v1467_v58 = vpop.f32.mrf.mxu1  ;;  %3246 = vmatprep.subr.bf16.mxu1 %v8559_v56  ;;  %v8581_v56 = vld [vmem:[#allocation7 + $0x380] ss:$16 sps:$4 sm:$0xff]  }
 0x191   : > { %v9394_v61 = vadd.f32 %v1467_v58, %v1354_v57  ;;  %v9396_v62 = vpop.f32.mrf.mxu0 }
 0x192   : > { %v9398_v63 = vpop.f32.mrf.mxu1  ;;  %3134 = vmatpush1.bf16.msra.mxu0 %v8554_v59 }
 0x193   : > { %v1360_v2 = vpop.f32.mrf.mxu0  ;;  %3247 = vmatpush1.bf16.msra.mxu1 %v8557_v60  ;;  %v8586_v60 = vld [vmem:[#allocation7 + $0x164] ss:$16 sps:$4 sm:$0xff]  }
 0x194   : > { %v1473_v3 = vpop.f32.mrf.mxu1  ;;  %3248 = vmatprep.subr.bf16.mxu1 %v8565_v6 }
 0x195   : > { %v9400_v8 = vadd.f32 %v1473_v3, %v1360_v2  ;;  %v1362_v9 = vpop.f32.mrf.mxu0  ;;  %v8562_v3 = vld [vmem:[#allocation7 + $0x1e4] ss:$16 sps:$4 sm:$0xff]  }
 0x196   : > { %v1475_v12 = vpop.f32.mrf.mxu1  ;;  %3135 = vmatprep.subr.bf16.mxu0 %v8562_v3  ;;  %v8589_v3 = vld [vmem:[#allocation7 + $0x364] ss:$16 sps:$4 sm:$0xff]  }
 0x197   : > { %v9402_v13 = vadd.f32 %v1475_v12, %v1362_v9  ;;  %v1364_v18 = vpop.f32.mrf.mxu0  ;;  %v8560_v12 = vld [vmem:[#allocation7 + $0x1e0] ss:$16 sps:$4 sm:$0xff]   ;;  %3249 = vmatpush2.bf16.msra.mxu1 %v8563_v14  ;;  %v1758_v14 = vadd.f32 %v9384_v22, %v9380_v4 }
 0x198   : > { %v1477_v19 = vpop.f32.mrf.mxu1  ;;  %3136 = vmatpush2.bf16.msra.mxu0 %v8560_v12  ;;  %v8587_v12 = vld [vmem:[#allocation7 + $0x360] ss:$16 sps:$4 sm:$0xff]  }
 0x199   : > { %v9404_v24 = vadd.f32 %v1477_v19, %v1364_v18  ;;  %v9406_v25 = vpop.f32.mrf.mxu0  ;;  %3137 = vmatprep.subr.bf16.mxu0 %v8568_v21  ;;  %v9458_v21 = vadd.f32 %v9388_v28, %v9386_v23  ;;  %v8590_v23 = vld [vmem:[#allocation7 + $0x140] ss:$16 sps:$4 sm:$0xff]  }
 0x19a   : > { %v9408_v26 = vpop.f32.mrf.mxu1  ;;  %v8593_v28 = vld [vmem:[#allocation7 + $0x340] ss:$16 sps:$4 sm:$0xff]  }
 0x19b   : > { %v1370_v27 = vpop.f32.mrf.mxu0 }
 0x19c   : > { %v1483_v30 = vpop.f32.mrf.mxu1  ;;  %3138 = vmatpush2.bf16.msra.mxu0 %v8566_v32  ;;  %v1759_v32 = vadd.f32 %v1758_v14, %v9390_v47 }
 0x19d   : > { %v9410_v36 = vadd.f32 %v1483_v30, %v1370_v27  ;;  %v1372_v38 = vpop.f32.mrf.mxu0  ;;  %v8571_v27 = vld [vmem:[#allocation7 + $0x3c4] ss:$16 sps:$4 sm:$0xff]   ;;  %3139 = vmatprep.subr.bf16.mxu0 %v8574_v43 }
 0x19e   : > { %v1485_v39 = vpop.f32.mrf.mxu1  ;;  %3250 = vmatprep.subr.bf16.mxu1 %v8571_v27 }
 0x19f   : > { %12265 = vst [vmem:[#allocation16_spill] sm:$0xff] %v9410_v36  ;;  %v9412_v42 = vadd.f32 %v1485_v39, %v1372_v38  ;;  %v1374_v45 = vpop.f32.mrf.mxu0  ;;  %3251 = vmatpush2.bf16.msra.mxu1 %v8569_v33  ;;  %v1850_v33 = vmul.f32 %v9390_v47, %v9390_v47 }
 0x1a0   : > { %v1487_v48 = vpop.f32.mrf.mxu1  ;;  %3252 = vmatprep.subr.bf16.mxu1 %v8577_v44  ;;  %3140 = vmatpush2.bf16.msra.mxu0 %v8572_v50  ;;  %v8592_v44 = vld [vmem:[#allocation7 + $0x144] ss:$16 sps:$4 sm:$0xff]  }
 0x1a1   : > { %12266 = vst [vmem:[#allocation17_spill] sm:$0xff] %v9412_v42  ;;  %v9414_v51 = vadd.f32 %v1487_v48, %v1374_v45  ;;  %v9416_v5 = vpop.f32.mrf.mxu0  ;;  %3141 = vmatprep.subr.bf16.mxu0 %v8580_v35 }
 0x1a2   : > { %v9418_v10 = vpop.f32.mrf.mxu1 }
 0x1a3   : > { %12267 = vst [vmem:[#allocation18_spill] sm:$0xff] %v9414_v51  ;;  %v1380_v29 = vpop.f32.mrf.mxu0  ;;  %3253 = vmatpush2.bf16.msra.mxu1 %v8575_v16 }
 0x1a4   : > { %v1493_v34 = vpop.f32.mrf.mxu1  ;;  %3254 = vmatprep.subr.bf16.mxu1 %v8583_v40  ;;  %3142 = vmatpush2.bf16.msra.mxu0 %v8578_v55  ;;  %v1779_v40 = vadd.f32 %v9458_v21, %v9382_v11 }
 0x1a5   : > { %v9420_v41 = vadd.f32 %v1493_v34, %v1380_v29  ;;  %v1382_v46 = vpop.f32.mrf.mxu0  ;;  %3143 = vmatprep.subr.bf16.mxu0 %v8586_v60 }
 0x1a6   : > { %v1495_v52 = vpop.f32.mrf.mxu1 }
 0x1a7   : > { %12268 = vst [vmem:[#allocation19_spill] sm:$0xff] %v9420_v41  ;;  %v9422_v53 = vadd.f32 %v1495_v52, %v1382_v46  ;;  %v1384_v57 = vpop.f32.mrf.mxu0  ;;  %3255 = vmatpush2.bf16.msra.mxu1 %v8581_v56 }
 0x1a8   : > { %v1497_v58 = vpop.f32.mrf.mxu1  ;;  %3256 = vmatprep.subr.bf16.mxu1 %v8589_v3 }
 0x1a9   : > { %12269 = vst [vmem:[#allocation20_spill] sm:$0xff] %v9422_v53  ;;  %v9424_v0 = vadd.f32 %v1497_v58, %v1384_v57  ;;  %v9426_v1 = vpop.f32.mrf.mxu0 }
 0x1aa   : > { %v9428_v2 = vpop.f32.mrf.mxu1 }
 0x1ab   : > { %12270 = vst [vmem:[#allocation21_spill] sm:$0xff] %v9424_v0  ;;  %v1390_v7 = vpop.f32.mrf.mxu0  ;;  %3257 = vmatpush2.bf16.msra.mxu1 %v8587_v12  ;;  %v1780_v12 = vadd.f32 %v1779_v40, %v9392_v54 }
 0x1ac   : > { %v1503_v9 = vpop.f32.mrf.mxu1 }
 0x1ad   : > { %v9430_v15 = vadd.f32 %v1503_v9, %v1390_v7  ;;  %v1392_v18 = vpop.f32.mrf.mxu0  ;;  %v8584_v9 = vld [vmem:[#allocation7 + $0x160] ss:$16 sps:$4 sm:$0xff]  }
 0x1ae   : > { %v1505_v19 = vpop.f32.mrf.mxu1  ;;  %3144 = vmatpush2.bf16.msra.mxu0 %v8584_v9  ;;  %v1843_v9 = vmul.f32 %v9382_v11, %v9382_v11 }
 0x1af   : > { %12271 = vst [vmem:[#allocation22_spill] sm:$0xff] %v9430_v15  ;;  %v9432_v20 = vadd.f32 %v1505_v19, %v1392_v18  ;;  %v1394_v30 = vpop.f32.mrf.mxu0  ;;  %v1846_v18 = vmul.f32 %v9384_v22, %v9384_v22  ;;  %3145 = vmatprep.subr.bf16.mxu0 %v8592_v44  ;;  %v8604_v44 = vld [vmem:[#allocation7 + $0x104] ss:$16 sps:$4 sm:$0xff]  }
 0x1b0   : > { %v1507_v31 = vpop.f32.mrf.mxu1 }
 0x1b1   : > { %12272 = vst [vmem:[#allocation23_spill] sm:$0xff] %v9432_v20  ;;  %v9434_v37 = vadd.f32 %v1507_v31, %v1394_v30  ;;  %v9436_v38 = vpop.f32.mrf.mxu0  ;;  %v1842_v31 = vmul.f32 %v9380_v4, %v9380_v4 }
 0x1b2   : > { %v9438_v39 = vpop.f32.mrf.mxu1  ;;  %3146 = vmatpush2.bf16.msra.mxu0 %v8590_v23  ;;  %v9504_v23 = vadd.f32 %v9408_v26, %v9406_v25  ;;  %v8602_v26 = vld [vmem:[#allocation7 + $0x100] ss:$16 sps:$4 sm:$0xff]  }
 0x1b3   : > { %12273 = vst [vmem:[#allocation24_spill] sm:$0xff] %v9434_v37  ;;  %v1400_v45 = vpop.f32.mrf.mxu0  ;;  %v1906_v16 = vadd.f32 %v1846_v18, %v1842_v31  ;;  %v8596_v18 = vld [vmem:[#allocation7 + $0x120] ss:$16 sps:$4 sm:$0xff]  }
 0x1b4   : > { %v1513_v48 = vpop.f32.mrf.mxu1 }
 0x1b5   : > { %v9440_v49 = vadd.f32 %v1513_v48, %v1400_v45  ;;  %v1402_v17 = vpop.f32.mrf.mxu0  ;;  %v8595_v45 = vld [vmem:[#allocation7 + $0x344] ss:$16 sps:$4 sm:$0xff]   ;;  %v1907_v60 = vadd.f32 %v1906_v16, %v1850_v33  ;;  %v1862_v33 = vmul.f32 %v9404_v24, %v9404_v24 }
 0x1b6   : > { %v1515_v29 = vpop.f32.mrf.mxu1  ;;  %3258 = vmatprep.subr.bf16.mxu1 %v8595_v45  ;;  %v8607_v45 = vld [vmem:[#allocation7 + $0x304] ss:$16 sps:$4 sm:$0xff]  }
 0x1b7   : > { %12274 = vst [vmem:[#allocation25_spill] sm:$0xff] %v9440_v49  ;;  %v9442_v34 = vadd.f32 %v1515_v29, %v1402_v17  ;;  %v1404_v46 = vpop.f32.mrf.mxu0  ;;  %v1760_v17 = vadd.f32 %v1759_v32, %v9394_v61  ;;  %v1854_v29 = vmul.f32 %v9394_v61, %v9394_v61  ;;  %3259 = vmatpush2.bf16.msra.mxu1 %v8593_v28 }
 0x1b8   : > { %v1517_v52 = vpop.f32.mrf.mxu1 }
 0x1b9   : > { %12275 = vst [vmem:[#allocation26_spill] sm:$0xff] %v9442_v34  ;;  %v9444_v57 = vadd.f32 %v1517_v52, %v1404_v46  ;;  %v9446_v58 = vpop.f32.mrf.mxu0  ;;  %v1847_v46 = vmul.f32 %v9458_v21, %v9458_v21  ;;  %v9478_v52 = vadd.f32 %v9398_v63, %v9396_v62  ;;  %v1761_v3 = vadd.f32 %v1760_v17, %v9400_v8 }
 0x1ba   : > { %v9448_v59 = vpop.f32.mrf.mxu1  ;;  %v1851_v62 = vmul.f32 %v9392_v54, %v9392_v54  ;;  %v1908_v31 = vadd.f32 %v1907_v60, %v1854_v29 }
 0x1bb   : > { %12276 = vst [vmem:[#allocation27_spill] sm:$0xff] %v9444_v57  ;;  %v1410_v6 = vpop.f32.mrf.mxu0  ;;  %v1762_v32 = vadd.f32 %v1761_v3, %v9404_v24  ;;  %v1855_v16 = vmul.f32 %v9478_v52, %v9478_v52 }
 0x1bc   : > { %v1523_v7 = vpop.f32.mrf.mxu1 }
 0x1bd   : > { %v9454_v19 = vadd.f32 %v1523_v7, %v1410_v6  ;;  %v1412_v27 = vpop.f32.mrf.mxu0  ;;  %v1858_v6 = vmul.f32 %v9400_v8, %v9400_v8  ;;  %v8598_v7 = vld [vmem:[#allocation7 + $0x124] ss:$16 sps:$4 sm:$0xff]   ;;  %v1763_v40 = vadd.f32 %v1762_v32, %v9410_v36 }
 0x1be   : > { %v1525_v30 = vpop.f32.mrf.mxu1  ;;  %3147 = vmatprep.subr.bf16.mxu0 %v8598_v7  ;;  %v1859_v7 = vmul.f32 %v9402_v13, %v9402_v13 }
 0x1bf   : > { %12277 = vst [vmem:[#allocation28_spill] sm:$0xff] %v9454_v19  ;;  %v9465_v43 = vadd.f32 %v1525_v30, %v1412_v27  ;;  %v1414_v48 = vpop.f32.mrf.mxu0  ;;  %v8599_v27 = vld [vmem:[#allocation7 + $0x320] ss:$16 sps:$4 sm:$0xff]   ;;  %v8601_v30 = vld [vmem:[#allocation7 + $0x324] ss:$16 sps:$4 sm:$0xff]   ;;  %v1909_v29 = vadd.f32 %v1908_v31, %v1858_v6  ;;  %3148 = vmatpush2.bf16.msra.mxu0 %v8596_v18  ;;  %v1870_v31 = vmul.f32 %v9414_v51, %v9414_v51 }
 0x1c0   : > { %v1527_v50 = vpop.f32.mrf.mxu1  ;;  %3260 = vmatprep.subr.bf16.mxu1 %v8601_v30  ;;  %v1764_v30 = vadd.f32 %v1763_v40, %v9414_v51  ;;  %3149 = vmatprep.subr.bf16.mxu0 %v8604_v44  ;;  %v9528_v18 = vadd.f32 %v9418_v10, %v9416_v5  ;;  %v1874_v44 = vmul.f32 %v9420_v41, %v9420_v41  ;;  %v8610_v10 = vld [vmem:[#allocation7 + $0xec] ss:$16 sps:$4 sm:$0xff]  }
 0x1c1   : > { %12278 = vst [vmem:[#allocation29_spill] sm:$0xff] %v9465_v43  ;;  %v9470_v35 = vadd.f32 %v1527_v50, %v1414_v48  ;;  %v9480_v55 = vpop.f32.mrf.mxu0  ;;  %v1927_v48 = vadd.f32 %v1847_v46, %v1843_v9  ;;  %v1781_v50 = vadd.f32 %v1780_v12, %v9478_v52  ;;  %v1866_v46 = vmul.f32 %v9410_v36, %v9410_v36  ;;  %v8605_v12 = vld [vmem:[#allocation7 + $0x300] ss:$16 sps:$4 sm:$0xff]  }
 0x1c2   : > { %v9482_v56 = vpop.f32.mrf.mxu1  ;;  %3261 = vmatpush2.bf16.msra.mxu1 %v8599_v27  ;;  %v1910_v6 = vadd.f32 %v1909_v29, %v1862_v33  ;;  %12280 = vst [vmem:[#allocation31_spill] sm:$0xff] %v9528_v18  ;;  %v1765_v29 = vadd.f32 %v1764_v30, %v9420_v41  ;;  %v1867_v40 = vmul.f32 %v9412_v42, %v9412_v42  ;;  %v8613_v30 = vld [vmem:[#allocation7 + $0x2ec] ss:$16 sps:$4 sm:$0xff]  }
 0x1c3   : > { %12279 = vst [vmem:[#allocation30_spill] sm:$0xff] %v9470_v35  ;;  %v9492_v63 = vpop.f32.mrf.mxu0  ;;  %v1928_v60 = vadd.f32 %v1927_v48, %v1851_v62  ;;  %v1782_v3 = vadd.f32 %v1781_v50, %v9402_v13  ;;  %3262 = vmatprep.subr.bf16.mxu1 %v8607_v45  ;;  %v1863_v48 = vmul.f32 %v9504_v23, %v9504_v23 }
 0x1c4   : > { %v9494_v14 = vpop.f32.mrf.mxu1  ;;  %v1911_v50 = vadd.f32 %v1910_v6, %v1866_v46  ;;  %3150 = vmatpush2.bf16.msra.mxu0 %v8602_v26  ;;  %v1766_v46 = vadd.f32 %v1765_v29, %v9424_v0  ;;  %v1878_v6 = vmul.f32 %v9424_v0, %v9424_v0  ;;  %v9552_v41 = vadd.f32 %v9428_v2, %v9426_v1 }
 0x1c5   : > { %v9506_v28 = vpop.f32.mrf.mxu0  ;;  %v1929_v62 = vadd.f32 %v1928_v60, %v1855_v16  ;;  %v1783_v32 = vadd.f32 %v1782_v3, %v9504_v23  ;;  %3345 = vmatprep.subr.bf16.mxu0 %v8610_v10 }
 0x1c6   : > { %v9508_v17 = vpop.f32.mrf.mxu1  ;;  %3263 = vmatpush2.bf16.msra.mxu1 %v8605_v12  ;;  %v1912_v3 = vadd.f32 %v1911_v50, %v1870_v31  ;;  %12281 = vst [vmem:[#allocation32_spill] sm:$0xff] %v9552_v41  ;;  %v1767_v50 = vadd.f32 %v1766_v46, %v9430_v15 }
 0x1c7   : > { %v9516_v9 = vpop.f32.mrf.mxu0  ;;  %v1930_v45 = vadd.f32 %v1929_v62, %v1859_v7  ;;  %v1784_v16 = vadd.f32 %v1783_v32, %v9412_v42  ;;  %v1871_v32 = vmul.f32 %v9528_v18, %v9528_v18  ;;  %3458 = vmatprep.subr.bf16.mxu1 %v8613_v30  ;;  %v9576_v30 = vadd.f32 %v9438_v39, %v9436_v38 }
 0x1c8   : > { %v9518_v25 = vpop.f32.mrf.mxu1  ;;  %v1913_v31 = vadd.f32 %v1912_v3, %v1874_v44  ;;  %v1768_v10 = vadd.f32 %v1767_v50, %v9434_v37  ;;  %v1886_v44 = vmul.f32 %v9434_v37, %v9434_v37  ;;  %v1890_v50 = vmul.f32 %v9440_v49, %v9440_v49 }
 0x1c9   : > { %v9530_v27 = vpop.f32.mrf.mxu0  ;;  %v1931_v7 = vadd.f32 %v1930_v45, %v1863_v48  ;;  %v1785_v62 = vadd.f32 %v1784_v16, %v9528_v18  ;;  %v1882_v48 = vmul.f32 %v9430_v15, %v9430_v15  ;;  %v1875_v16 = vmul.f32 %v9422_v53, %v9422_v53  ;;  %12282 = vst [vmem:[#allocation33_spill] sm:$0xff] %v9576_v30 }
 0x1ca   : > { %v9532_v33 = vpop.f32.mrf.mxu1  ;;  %v1914_v0 = vadd.f32 %v1913_v31, %v1878_v6  ;;  %v1769_v31 = vadd.f32 %v1768_v10, %v9440_v49  ;;  %v1887_v10 = vmul.f32 %v9576_v30, %v9576_v30  ;;  %v9600_v49 = vadd.f32 %v9448_v59, %v9446_v58 }
 0x1cb   : > { %v9540_v60 = vpop.f32.mrf.mxu0  ;;  %v1932_v29 = vadd.f32 %v1931_v7, %v1867_v40  ;;  %v1786_v45 = vadd.f32 %v1785_v62, %v9422_v53  ;;  %v1879_v40 = vmul.f32 %v9552_v41, %v9552_v41  ;;  %v1902_v58 = vmul.f32 %v9470_v35, %v9470_v35 }
 0x1cc   : > { %v9542_v5 = vpop.f32.mrf.mxu1  ;;  %v1915_v6 = vadd.f32 %v1914_v0, %v1882_v48  ;;  %v1770_v39 = vadd.f32 %v1769_v31, %v9444_v57  ;;  %12283 = vst [vmem:[#allocation34_spill] sm:$0xff] %v9600_v49  ;;  %v1891_v31 = vmul.f32 %v9442_v34, %v9442_v34 }
 0x1cd   : > { %v9554_v26 = vpop.f32.mrf.mxu0  ;;  %v1933_v3 = vadd.f32 %v1932_v29, %v1871_v32  ;;  %v1787_v46 = vadd.f32 %v1786_v45, %v9552_v41  ;;  %v1883_v45 = vmul.f32 %v9432_v20, %v9432_v20  ;;  %v1894_v41 = vmul.f32 %v9444_v57, %v9444_v57 }
 0x1ce   : > { %v9556_v12 = vpop.f32.mrf.mxu1  ;;  %v1916_v38 = vadd.f32 %v1915_v6, %v1886_v44  ;;  %v1771_v44 = vadd.f32 %v1770_v39, %v9454_v19  ;;  %v1898_v6 = vmul.f32 %v9454_v19, %v9454_v19 }
 0x1cf   : > { %v9564_v1 = vpop.f32.mrf.mxu0  ;;  %v1934_v32 = vadd.f32 %v1933_v3, %v1875_v16  ;;  %v1788_v29 = vadd.f32 %v1787_v46, %v9432_v20 }
 0x1d0   : > { %v9566_v2 = vpop.f32.mrf.mxu1  ;;  %v1917_v46 = vadd.f32 %v1916_v38, %v1890_v50  ;;  %v1772_v50 = vadd.f32 %v1771_v44, %v9470_v35 }
 0x1d1   : > { %v9578_v7 = vpop.f32.mrf.mxu0  ;;  %v1935_v0 = vadd.f32 %v1934_v32, %v1879_v40  ;;  %v1789_v48 = vadd.f32 %v1788_v29, %v9576_v30 }
 0x1d2   : > { %v9580_v62 = vpop.f32.mrf.mxu1  ;;  %v1918_v30 = vadd.f32 %v1917_v46, %v1894_v41 }
 0x1d3   : > { %v1586_v37 = vpop.f32.mrf.mxu0  ;;  %v1936_v40 = vadd.f32 %v1935_v0, %v1883_v45  ;;  %v1790_v57 = vadd.f32 %v1789_v48, %v9442_v34  ;;  %v1895_v0 = vmul.f32 %v9600_v49, %v9600_v49  ;;  %v9620_v48 = vadd.f32 %v9482_v56, %v9480_v55 }
 0x1d4   : > { %v1699_v15 = vpop.f32.mrf.mxu1  ;;  %v1919_v19 = vadd.f32 %v1918_v30, %v1898_v6 }
 0x1d5   : > { %v9594_v16 = vpop.f32.mrf.mxu0  ;;  %v1937_v59 = vadd.f32 %v1936_v40, %v1887_v10  ;;  %v1791_v45 = vadd.f32 %v1790_v57, %v9600_v49  ;;  %12284 = vst [vmem:[#allocation35_spill] sm:$0xff] %v9620_v48  ;;  %v1899_v10 = vmul.f32 %v9465_v43, %v9465_v43  ;;  %v1773_v40 = vrot.slane %v1772_v50, 4 }
 0x1d6   : > { %v9596_v3 = vpop.f32.mrf.mxu1  ;;  %v1920_v34 = vadd.f32 %v1919_v19, %v1902_v58  ;;  %v9627_v57 = vadd.f32 %v9518_v25, %v9516_v9  ;;  %v1903_v56 = vmul.f32 %v9620_v48, %v9620_v48  ;;  %v9642_v19 = vadd.f32 %v9542_v5, %v9540_v60 }
 0x1d7   : > { %v1590_v32 = vpop.f32.mrf.mxu0  ;;  %v1938_v41 = vadd.f32 %v1937_v59, %v1891_v31  ;;  %v1792_v35 = vadd.f32 %v1791_v45, %v9465_v43  ;;  %v9634_v31 = vadd.f32 %v9532_v33, %v9530_v27  ;;  %v9638_v59 = vadd.f32 %v9494_v14, %v9492_v63 }
 0x1d8   : > { %v1703_v29 = vpop.f32.mrf.mxu1  ;;  %v1774_v45 = vadd.f32 %v1773_v40, %v1772_v50  ;;  %v1848_v27 = vmul.f32 %v9627_v57, %v9627_v57  ;;  %v9652_v63 = vadd.f32 %v9556_v12, %v9554_v26  ;;  %v9656_v14 = vadd.f32 %v9566_v2, %v9564_v1 }
 0x1d9   : > { %v9611_v38 = vpop.f32.mrf.mxu0  ;;  %v1939_v6 = vadd.f32 %v1938_v41, %v1895_v0  ;;  %v1793_v55 = vadd.f32 %v1792_v35, %v9620_v48  ;;  %v1921_v35 = vrot.slane %v1920_v34, 4  ;;  %v9646_v0 = vadd.f32 %v9508_v17, %v9506_v28 }
 0x1da   : > { %v9613_v39 = vpop.f32.mrf.mxu1  ;;  %v1849_v28 = vmul.f32 %v9634_v31, %v9634_v31  ;;  %v1844_v17 = vmul.f32 %v9638_v59, %v9638_v59  ;;  %v1852_v41 = vmul.f32 %v9642_v19, %v9642_v19  ;;  %v9668_v26 = vadd.f32 %v9580_v62, %v9578_v7 }
 0x1db   : > { %v1596_v46 = vpop.f32.mrf.mxu0  ;;  %v1940_v58 = vadd.f32 %v1939_v6, %v1899_v10  ;;  %v1794_v5 = vrot.slane %v1793_v55, 4  ;;  %v9670_v12 = vadd.f32 %v1699_v15, %v1586_v37  ;;  %v1775_v10 = vrot.slane %v1774_v45, 2 }
 0x1dc   : > { %v1709_v44 = vpop.f32.mrf.mxu1  ;;  %v9672_v40 = vadd.f32 %v1921_v35, %v1920_v34  ;;  %v1845_v6 = vmul.f32 %v9646_v0, %v9646_v0  ;;  %v1853_v48 = vmul.f32 %v9652_v63, %v9652_v63  ;;  %v1856_v7 = vmul.f32 %v9656_v14, %v9656_v14 }
 0x1dd   : > { %v1598_v49 = vpop.f32.mrf.mxu0  ;;  %v9658_v50 = vadd.f32 %v1940_v58, %v1903_v56  ;;  %v1800_v56 = vadd.f32 %v9627_v57, %v9638_v59  ;;  %v1948_v58 = vadd.f32 %v1848_v27, %v1844_v17  ;;  %v9684_v15 = vadd.f32 %v9596_v3, %v9594_v16 }
 0x1de   : > { %v1711_v30 = vpop.f32.mrf.mxu1  ;;  %v9686_v62 = vadd.f32 %v1794_v5, %v1793_v55  ;;  %v1821_v35 = vadd.f32 %v9634_v31, %v9646_v0  ;;  %v1969_v43 = vadd.f32 %v1849_v28, %v1845_v6  ;;  %v9690_v20 = vadd.f32 %v1703_v29, %v1590_v32 }
 0x1df   : > { %v1600_v9 = vpop.f32.mrf.mxu0  ;;  %v1801_v27 = vadd.f32 %v1800_v56, %v9642_v19  ;;  %v1949_v17 = vadd.f32 %v1948_v58, %v1852_v41  ;;  %v1857_v53 = vmul.f32 %v9668_v26, %v9668_v26  ;;  %v1860_v16 = vmul.f32 %v9670_v12, %v9670_v12 }
 0x1e0   : > { %v1713_v25 = vpop.f32.mrf.mxu1  ;;  %v1942_v55 = vrot.slane %v9658_v50, 4  ;;  %v1822_v5 = vadd.f32 %v1821_v35, %v9652_v63  ;;  %v9701_v28 = vadd.f32 %v9613_v39, %v9611_v38  ;;  %v9703_v32 = vadd.f32 %v1709_v44, %v1596_v46 }
 0x1e1   : > { %v1602_v33 = vpop.f32.mrf.mxu0  ;;  %v1970_v29 = vadd.f32 %v1969_v43, %v1853_v48  ;;  %v1802_v41 = vadd.f32 %v1801_v27, %v9656_v14  ;;  %v1950_v6 = vadd.f32 %v1949_v17, %v1856_v7  ;;  %v1861_v56 = vmul.f32 %v9684_v15, %v9684_v15 }
 0x1e2   : > { %v1715_v60 = vpop.f32.mrf.mxu1  ;;  %v9708_v18 = vadd.f32 %v1775_v10, %v1774_v45  ;;  %v1864_v35 = vmul.f32 %v9690_v20, %v9690_v20  ;;  %v9712_v42 = vadd.f32 %v1711_v30, %v1598_v49  ;;  %v9714_v38 = vadd.f32 %v1713_v25, %v1600_v9 }
 0x1e3   : > { %v1606_v1 = vpop.f32.mrf.mxu0  ;;  %v1823_v39 = vadd.f32 %v1822_v5, %v9668_v26  ;;  %v1971_v43 = vadd.f32 %v1970_v29, %v1857_v53  ;;  %v1803_v48 = vadd.f32 %v1802_v41, %v9670_v12  ;;  %v1951_v46 = vadd.f32 %v1950_v6, %v1860_v16 }
 0x1e4   : > { %v1719_v2 = vpop.f32.mrf.mxu1  ;;  %v1865_v27 = vmul.f32 %v9701_v28, %v9701_v28  ;;  %v1868_v45 = vmul.f32 %v9703_v32, %v9703_v32  ;;  %v9722_v10 = vadd.f32 %v1715_v60, %v1602_v33  ;;  %v1869_v29 = vmul.f32 %v9712_v42, %v9712_v42 }
 0x1e5   : > { %v1608_v37 = vpop.f32.mrf.mxu0  ;;  %v9724_v49 = vadd.f32 %v1719_v2, %v1606_v1  ;;  %v1824_v9 = vadd.f32 %v1823_v39, %v9684_v15  ;;  %v1972_v53 = vadd.f32 %v1971_v43, %v1861_v56  ;;  %v1804_v25 = vadd.f32 %v1803_v48, %v9690_v20 }
 0x1e6   : > { %v1721_v34 = vpop.f32.mrf.mxu1  ;;  %v1952_v5 = vadd.f32 %v1951_v46, %v1864_v35  ;;  %v1872_v41 = vmul.f32 %v9714_v38, %v9714_v38  ;;  %v1796_v60 = vrot.slane %v9686_v62, 2  ;;  %v1873_v48 = vmul.f32 %v9722_v10, %v9722_v10 }
 0x1e7   : > { %v1610_v3 = vpop.f32.mrf.mxu0  ;;  %12285 = vst [vmem:[#allocation36_spill] sm:$0xff] %v9724_v49  ;;  %v9733_v33 = vadd.f32 %v1721_v34, %v1608_v37  ;;  %v1825_v1 = vadd.f32 %v1824_v9, %v9701_v28  ;;  %v1805_v2 = vadd.f32 %v1804_v25, %v9703_v32  ;;  %v1973_v43 = vadd.f32 %v1972_v53, %v1865_v27 }
 0x1e8   : > { %v1723_v51 = vpop.f32.mrf.mxu1  ;;  %v1953_v35 = vadd.f32 %v1952_v5, %v1868_v45  ;;  %v1876_v46 = vmul.f32 %v9724_v49, %v9724_v49  ;;  %v1943_v37 = vadd.f32 %v1942_v55, %v9658_v50  ;;  %v1797_v5 = vadd.f32 %v1796_v60, %v9686_v62 }
 0x1e9   : > { %v1612_v58 = vpop.f32.mrf.mxu0  ;;  %v9738_v6 = vadd.f32 %v1723_v51, %v1610_v3  ;;  %v1826_v34 = vadd.f32 %v1825_v1, %v9712_v42  ;;  %v1974_v25 = vadd.f32 %v1973_v43, %v1869_v29  ;;  %v1806_v27 = vadd.f32 %v1805_v2, %v9714_v38 }
 0x1ea   : > { %v1725_v36 = vpop.f32.mrf.mxu1  ;;  %v1954_v45 = vadd.f32 %v1953_v35, %v1872_v41  ;;  %v1877_v53 = vmul.f32 %v9733_v33, %v9733_v33 }
 0x1eb   : > { %v1616_v44 = vpop.f32.mrf.mxu0  ;;  %12286 = vst [vmem:[#allocation37_spill] sm:$0xff] %v9738_v6  ;;  %v9746_v30 = vadd.f32 %v1725_v36, %v1612_v58  ;;  %v1880_v50 = vmul.f32 %v9738_v6, %v9738_v6  ;;  %v1975_v29 = vadd.f32 %v1974_v25, %v1873_v48  ;;  %v1807_v1 = vadd.f32 %v1806_v27, %v9724_v49 }
 0x1ec   : > { %v1729_v7 = vpop.f32.mrf.mxu1  ;;  %v1955_v41 = vadd.f32 %v1954_v45, %v1876_v46  ;;  %v1798_v45 = vrot.slane %v1797_v5, 1 }
 0x1ed   : > { %v1618_v17 = vpop.f32.mrf.mxu0  ;;  %v9748_v9 = vadd.f32 %v1729_v7, %v1616_v44  ;;  %v1827_v7 = vadd.f32 %v1826_v34, %v9722_v10  ;;  %v1881_v2 = vmul.f32 %v9746_v30, %v9746_v30  ;;  %v1976_v35 = vadd.f32 %v1975_v29, %v1877_v53 }
 0x1ee   : > { %v1731_v16 = vpop.f32.mrf.mxu1  ;;  %v1808_v48 = vadd.f32 %v1807_v1, %v9738_v6  ;;  %v1956_v34 = vadd.f32 %v1955_v41, %v1880_v50 }
 0x1ef   : > { %v1620_v56 = vpop.f32.mrf.mxu0  ;;  %12287 = vst [vmem:[#allocation38_spill] sm:$0xff] %v9748_v9  ;;  %v9756_v55 = vadd.f32 %v1731_v16, %v1618_v17  ;;  %v1884_v62 = vmul.f32 %v9748_v9, %v9748_v9  ;;  %v1828_v43 = vadd.f32 %v1827_v7, %v9733_v33  ;;  %v1977_v53 = vadd.f32 %v1976_v35, %v1881_v2 }
 0x1f0   : > { %v1733_v39 = vpop.f32.mrf.mxu1 }
 0x1f1   : > { %v1622_v51 = vpop.f32.mrf.mxu0  ;;  %v9758_v36 = vadd.f32 %v1733_v39, %v1620_v56  ;;  %v1944_v39 = vrot.slane %v1943_v37, 2  ;;  %v1885_v46 = vmul.f32 %v9756_v55, %v9756_v55  ;;  %v1957_v29 = vadd.f32 %v1956_v34, %v1884_v62 }
 0x1f2   : > { %v1735_v3 = vpop.f32.mrf.mxu1 }
 0x1f3   : > { %12288 = vst [vmem:[#allocation39_spill] sm:$0xff] %v9758_v36  ;;  %v1626_v58 = vpop.f32.mrf.mxu0  ;;  %v9766_v60 = vadd.f32 %v1735_v3, %v1622_v51  ;;  %v1888_v25 = vmul.f32 %v9758_v36, %v9758_v36 }
 0x1f4   : > { %v1739_v44 = vpop.f32.mrf.mxu1 }
 0x1f5   : > { %12289 = vst [vmem:[#allocation40_spill] sm:$0xff] %v9766_v60  ;;  %v9768_v17 = vadd.f32 %v1739_v44, %v1626_v58  ;;  %v1628_v16 = vpop.f32.mrf.mxu0  ;;  %v1829_v58 = vadd.f32 %v1828_v43, %v9746_v30  ;;  %v1809_v44 = vadd.f32 %v1808_v48, %v9748_v9  ;;  %v1889_v50 = vmul.f32 %v9766_v60, %v9766_v60 }
 0x1f6   : > { %v1741_v56 = vpop.f32.mrf.mxu1  ;;  %v1978_v48 = vadd.f32 %v1977_v53, %v1885_v46  ;;  %v12295_v46 = vrot.slane %v9672_v40, 2 }
 0x1f7   : > { %12290 = vst [vmem:[#allocation41_spill] sm:$0xff] %v9768_v17  ;;  %v9776_v27 = vadd.f32 %v1741_v56, %v1628_v16  ;;  %v1630_v51 = vpop.f32.mrf.mxu0  ;;  %v1892_v1 = vmul.f32 %v9768_v17, %v9768_v17  ;;  %v1945_v56 = vadd.f32 %v1944_v39, %v1943_v37  ;;  %v1830_v6 = vadd.f32 %v1829_v58, %v9756_v55 }
 0x1f8   : > { %v1743_v3 = vpop.f32.mrf.mxu1  ;;  %v1810_v49 = vadd.f32 %v1809_v44, %v9758_v36  ;;  %v1979_v44 = vadd.f32 %v1978_v48, %v1889_v50 }
 0x1f9   : > { %12291 = vst [vmem:[#allocation42_spill] sm:$0xff] %v9776_v27  ;;  %v9780_v7 = vadd.f32 %v1743_v3, %v1630_v51  ;;  %v1632_v41 = vpop.f32.mrf.mxu0  ;;  %v1958_v51 = vadd.f32 %v1957_v29, %v1888_v25  ;;  %v1893_v2 = vmul.f32 %v9776_v27, %v9776_v27  ;;  %v1777_v3 = vrot.slane %v9708_v18, 1 }
 0x1fa   : > { %v1745_v16 = vpop.f32.mrf.mxu1  ;;  %v1831_v37 = vadd.f32 %v1830_v6, %v9766_v60  ;;  %v1811_v39 = vadd.f32 %v1810_v49, %v9768_v17  ;;  %v1924_v25 = vadd.f32 %v12295_v46, %v9672_v40 }
 0x1fb   : > { %12292 = vst [vmem:[#allocation43_spill] sm:$0xff] %v9780_v7  ;;  %v9788_v43 = vadd.f32 %v1745_v16, %v1632_v41  ;;  %v1896_v62 = vmul.f32 %v9780_v7, %v9780_v7  ;;  %v1636_v35 = vpop.f32.mrf.mxu0  ;;  %v1959_v53 = vadd.f32 %v1958_v51, %v1892_v1  ;;  %v1980_v17 = vadd.f32 %v1979_v44, %v1893_v2 }
 0x1fc   : > { %v1749_v34 = vpop.f32.mrf.mxu1  ;;  %v1832_v36 = vadd.f32 %v1831_v37, %v9776_v27  ;;  %v1812_v9 = vadd.f32 %v1811_v39, %v9780_v7  ;;  %v1778_v39 = vadd.f32 %v1777_v3, %v9708_v18  ;;  %v1925_v7 = vrot.slane %v1924_v25, 1 }
 0x1fd   : > { %12293 = vst [vmem:[#allocation44_spill] sm:$0xff] %v9788_v43  ;;  %v9797_v58 = vadd.f32 %v1749_v34, %v1636_v35  ;;  %v1897_v29 = vmul.f32 %v9788_v43, %v9788_v43  ;;  %v1638_v41 = vpop.f32.mrf.mxu0  ;;  %v1799_v35 = vadd.f32 %v1798_v45, %v1797_v5  ;;  %v1946_v34 = vrot.slane %v1945_v56, 1 }
 0x1fe   : > { %v1751_v16 = vpop.f32.mrf.mxu1  ;;  %v1960_v40 = vadd.f32 %v1959_v53, %v1896_v62  ;;  %v1833_v48 = vadd.f32 %v1832_v36, %v9788_v43 }
 0x1ff   : > { %12294 = vst [vmem:[#allocation45_spill] sm:$0xff] %v9797_v58  ;;  %v1900_v49 = vmul.f32 %v9797_v58, %v9797_v58  ;;  %v9808_v6 = vadd.f32 %v1751_v16, %v1638_v41  ;;  %v1640_v50 = vpop.f32.mrf.mxu0  ;;  %v1813_v51 = vadd.f32 %v1812_v9, %v9797_v58  ;;  %v1981_v41 = vadd.f32 %v1980_v17, %v1897_v29 }
 0x200   : > { %v1753_v1 = vpop.f32.mrf.mxu1  ;;  %v1947_v44 = vadd.f32 %v1946_v34, %v1945_v56  ;;  %v9823_v53 = vmul.f32 0.0078125, %v1799_v35  ;;  %v1926_v29 = vadd.f32 %v1925_v7, %v1924_v25 }
 0x201   : > { %12296 = vst [vmem:[#allocation46_spill] sm:$0xff] %v9808_v6  ;;  %v1901_v37 = vmul.f32 %v9808_v6, %v9808_v6  ;;  %v9814_v46 = vadd.f32 %v1753_v1, %v1640_v50  ;;  %v1961_v16 = vadd.f32 %v1960_v40, %v1900_v49  ;;  %v1642_v5 = vpop.f32.mrf.mxu0  ;;  %v1834_v2 = vadd.f32 %v1833_v48, %v9808_v6 }
 0x202   : > { %v1755_v45 = vpop.f32.mrf.mxu1  ;;  %v9828_v49 = vmul.f32 0.0078125, %v1778_v39  ;;  %v1999_v56 = vmul.f32 %v9823_v53, %v9823_v53 }
 0x203   : > { %12297 = vst [vmem:[#allocation47_spill] sm:$0xff] %v9814_v46  ;;  %v1814_v62 = vadd.f32 %v1813_v51, %v9814_v46  ;;  %v1904_v36 = vmul.f32 %v9814_v46, %v9814_v46  ;;  %v9821_v9 = vadd.f32 %v1755_v45, %v1642_v5  ;;  %v1982_v50 = vadd.f32 %v1981_v41, %v1901_v37 }
 0x204   : > { %v1995_v5 = vmul.f32 0.0078125, %v1947_v44  ;;  %v1998_v45 = vmul.f32 %v9828_v49, %v9828_v49 }
 0x205   : > { %12298 = vst [vmem:[#allocation48_spill] sm:$0xff] %v9821_v9  ;;  %v1815_v1 = vrot.slane %v1814_v62, 4  ;;  %v1962_v18 = vadd.f32 %v1961_v16, %v1904_v36  ;;  %v1835_v17 = vadd.f32 %v1834_v2, %v9821_v9  ;;  %v1905_v3 = vmul.f32 %v9821_v9, %v9821_v9 }
 0x206   : > { %v1994_v16 = vmul.f32 0.0078125, %v1926_v29 }
 0x207   : > { %v1816_v40 = vadd.f32 %v1815_v1, %v1814_v62  ;;  %v1963_v48 = vrot.slane %v1962_v18, 4  ;;  %v1836_v51 = vrot.slane %v1835_v17, 4  ;;  %v1983_v46 = vadd.f32 %v1982_v50, %v1905_v3 }
 0x208   : > { %v2003_v62 = vsub.f32 %v1995_v5, %v1999_v56  ;;  %v2002_v3 = vsub.f32 %v1994_v16, %v1998_v45 }
 0x209   : > { %v1817_v35 = vrot.slane %v1816_v40, 2  ;;  %v1964_v34 = vadd.f32 %v1963_v48, %v1962_v18  ;;  %v1837_v37 = vadd.f32 %v1836_v51, %v1835_v17  ;;  %v1984_v41 = vrot.slane %v1983_v46, 4 }
 0x20a   : > { %v2007_v17 = vmax.f32 %v2003_v62, 0.0  ;;  %v2006_v27 = vmax.f32 %v2002_v3, 0.0 }
 0x20b   : > { %v1818_v2 = vadd.f32 %v1817_v35, %v1816_v40  ;;  %v1965_v7 = vrot.slane %v1964_v34, 2  ;;  %v1838_v25 = vrot.slane %v1837_v37, 2  ;;  %v1985_v39 = vadd.f32 %v1984_v41, %v1983_v46 }
 0x20c   : > { %v2014_v5 = vadd.f32 1e-05, %v2007_v17  ;;  %v2013_v41 = vadd.f32 1e-05, %v2006_v27 }
 0x20d   : > { %v1819_v36 = vrot.slane %v1818_v2, 1  ;;  %v1966_v1 = vadd.f32 %v1965_v7, %v1964_v34  ;;  %v1839_v50 = vadd.f32 %v1838_v25, %v1837_v37  ;;  %v1986_v44 = vrot.slane %v1985_v39, 2 }
 0x20e   : > { %8766 = vrsqrt.f32 %v2014_v5  ;;  %v2030_v25 = vlaneseq }
 0x20f   : > { %v1820_v58 = vadd.f32 %v1819_v36, %v1818_v2  ;;  %v1967_v6 = vrot.slane %v1966_v1, 1  ;;  %v1840_v9 = vrot.slane %v1839_v50, 1  ;;  %v1987_v18 = vadd.f32 %v1986_v44, %v1985_v39 }
 0x210   : > { %8768 = vrsqrt.f32 %v2013_v41 }
 0x211   : > { %v1968_v48 = vadd.f32 %v1967_v6, %v1966_v1  ;;  %v1992_v29 = vmul.f32 0.0078125, %v1820_v58  ;;  %v1841_v51 = vadd.f32 %v1840_v9, %v1839_v50  ;;  %v1988_v43 = vrot.slane %v1987_v18, 1 }
 0x212   : > { %v9018_v58 = vmov 1966171168  }
 0x213   : > { %v1996_v40 = vmul.f32 0.0078125, %v1968_v48  ;;  %v2000_v35 = vmul.f32 %v1992_v29, %v1992_v29  ;;  %v1989_v60 = vadd.f32 %v1988_v43, %v1987_v18  ;;  %v1993_v46 = vmul.f32 0.0078125, %v1841_v51  ;;  %v2010_v48 = vld [vmem:[#allocation4] ss:$8 sm:$0xf] }
 0x214   : > { %v2028_v9 = vunpack.c.l.s4 %v9018_v58  ;;  %v2031_v43 = vshrl.u32 %v2030_v25, 7 }
 0x215   : > { %v2004_v56 = vsub.f32 %v1996_v40, %v2000_v35  ;;  %v1997_v34 = vmul.f32 0.0078125, %v1989_v60  ;;  %v2001_v37 = vmul.f32 %v1993_v46, %v1993_v46 }
 0x216   : > { %v2029_v39 = vunpack.c.0.s8 %v2028_v9  ;;  %v9838_v51 = vsub.s32 0, %v2031_v43  ;;  %v9841_v35 = vsub.s32 1, %v2031_v43  ;;  %v9843_v5 = vsub.s32 2, %v2031_v43 }
 0x217   : > { %v2008_v16 = vmax.f32 %v2004_v56, 0.0  ;;  %v2005_v45 = vsub.f32 %v1997_v34, %v2001_v37  ;;  %v9845_v56 = vsub.s32 3, %v2031_v43 }
 0x218   : > { %v9834_v50 = vsub.s32 %v2029_v39, %v2031_v43 }
 0x219   : > { %v2015_v2 = vadd.f32 1e-05, %v2008_v16  ;;  %v2009_v7 = vmax.f32 %v2005_v45, 0.0 }
 0x21b   : > { %v2016_v6 = vadd.f32 1e-05, %v2009_v7  ;;  %8770 = vrsqrt.f32 %v2015_v2  ;;  %v8767_v62 = vpop.eup %8766 }
 0x21d   : > { %8772 = vrsqrt.f32 %v2016_v6  ;;  %v8769_v36 = vpop.eup %8768 }
 0x21e   : > { %v2025_v60 = vcombine.low %v8769_v36, %v8767_v62 }
 0x220   : > { %v2033_v3 = vrot.slane %v2025_v60, %v9834_v50 }
 0x228   : > { %v8771_v1 = vpop.eup %8770 }
 0x22a   : > { %v8773_v27 = vpop.eup %8772 }
 0x22b   : > { %v2026_v44 = vcombine.low %v8771_v1, %v8773_v27  ;;  %v2012_v1 = vld [vmem:[#allocation4 + $0x23] ss:$8 sm:$0xf] }
 0x22d   : > { %v2040_v18 = vrot.slane %v2026_v44, %v9834_v50 }
 0x22f   : > { %v2041_v17 = vcombine.low %v2033_v3, %v2040_v18  ;;  %v12300_v18 = vld [vmem:[#allocation31_spill] sm:$0xff] }
 0x231   : > { %v2048_v40 = vrot.slane %v2041_v17, %v9834_v50 }
 0x233   : > { %v2050_v34 = vmul.f32 %v2048_v40, %v2010_v48 }
 0x235   : > { %v9848_v37 = vrot.slane %v2050_v34, %v9838_v51  ;;  %v9851_v41 = vrot.slane %v2050_v34, %v9841_v35  ;;  %v9854_v16 = vrot.slane %v2050_v34, %v9843_v5  ;;  %v9857_v45 = vrot.slane %v2050_v34, %v9845_v56 }
 0x237   : > { %v2072_v2 = vmul.f32 %v9848_v37, %v9828_v49  ;;  %v2073_v7 = vmul.f32 %v9851_v41, %v9823_v53  ;;  %v2074_v6 = vmul.f32 %v9854_v16, %v1992_v29  ;;  %v2075_v58 = vmul.f32 %v9857_v45, %v1993_v46 }
 0x238   : > { %v2107_v62 = vmul.f32 %v9851_v41, %v9382_v11  ;;  %v2111_v36 = vmul.f32 %v9851_v41, %v9458_v21  ;;  %v2109_v53 = vmul.f32 %v9857_v45, %v9646_v0  ;;  %v2113_v29 = vmul.f32 %v9857_v45, %v9634_v31 }
 0x239   : > { %v2080_v9 = vcombine.low %v2072_v2, %v2073_v7  ;;  %v2081_v25 = vcombine.low %v2074_v6, %v2075_v58  ;;  %v2106_v46 = vmul.f32 %v9848_v37, %v9380_v4  ;;  %v2110_v60 = vmul.f32 %v9848_v37, %v9384_v22 }
 0x23a   : > { %v2108_v11 = vmul.f32 %v9854_v16, %v9638_v59  ;;  %v2112_v21 = vmul.f32 %v9854_v16, %v9627_v57  ;;  %v2115_v27 = vmul.f32 %v9851_v41, %v9392_v54  ;;  %v2119_v31 = vmul.f32 %v9851_v41, %v9478_v52 }
 0x23b   : > { %v2088_v39 = vrot.slane %v2080_v9, %v9834_v50  ;;  %v2095_v43 = vrot.slane %v2081_v25, %v9834_v50  ;;  %v2117_v4 = vmul.f32 %v9857_v45, %v9652_v63  ;;  %v2121_v22 = vmul.f32 %v9857_v45, %v9668_v26 }
 0x23c   : > { %v2114_v59 = vmul.f32 %v9848_v37, %v9390_v47  ;;  %v2118_v57 = vmul.f32 %v9848_v37, %v9394_v61  ;;  %v2116_v54 = vmul.f32 %v9854_v16, %v9642_v19  ;;  %v2120_v44 = vmul.f32 %v9854_v16, %v9656_v14 }
 0x23d   : > { %v2096_v49 = vcombine.low %v2088_v39, %v2095_v43  ;;  %v2123_v52 = vmul.f32 %v9851_v41, %v9402_v13  ;;  %v9904_v63 = vmul.f32 %v9851_v41, %v9504_v23  ;;  %v9908_v47 = vmul.f32 %v9857_v45, %v9684_v15 }
 0x23e   : > { %v9912_v61 = vmul.f32 %v9857_v45, %v9701_v28  ;;  %v9916_v19 = vmul.f32 %v9848_v37, %v9400_v8  ;;  %v9920_v14 = vmul.f32 %v9848_v37, %v9404_v24  ;;  %v9924_v13 = vmul.f32 %v9854_v16, %v9670_v12  ;;  %v12299_v28 = vld [vmem:[#allocation17_spill] sm:$0xff] }
 0x23f   : > { %v2103_v0 = vrot.slane %v2096_v49, %v9834_v50  ;;  %v9940_v24 = vmul.f32 %v9854_v16, %v9690_v20  ;;  %v9944_v12 = vmul.f32 %v9851_v41, %v12299_v28  ;;  %v9948_v17 = vmul.f32 %v9851_v41, %v12300_v18 }
 0x240   : > { %v9952_v48 = vmul.f32 %v9857_v45, %v9712_v42 }
 0x241   : > { %v2105_v3 = vsub.f32 %v2012_v1, %v2103_v0 }
 0x243   : > { %v9927_v23 = vrot.slane %v2105_v3, %v9838_v51  ;;  %v9930_v26 = vrot.slane %v2105_v3, %v9841_v35  ;;  %v9933_v15 = vrot.slane %v2105_v3, %v9843_v5  ;;  %v9936_v8 = vrot.slane %v2105_v3, %v9845_v56 }
 0x245   : > { %v2192_v40 = vadd.f32 %v9930_v26, %v2107_v62  ;;  %v2196_v34 = vadd.f32 %v9930_v26, %v2111_v36  ;;  %v2194_v2 = vadd.f32 %v9936_v8, %v2109_v53  ;;  %v2198_v20 = vadd.f32 %v9936_v8, %v2113_v29  ;;  %v8608_v29 = vld [vmem:[#allocation7 + $0xe8] ss:$16 sps:$4 sm:$0xff]  }
 0x246   : > { %v2191_v7 = vadd.f32 %v9927_v23, %v2106_v46  ;;  %v2195_v6 = vadd.f32 %v9927_v23, %v2110_v60  ;;  %v2193_v58 = vadd.f32 %v9933_v15, %v2108_v11  ;;  %v2197_v9 = vadd.f32 %v9933_v15, %v2112_v21  ;;  %v8611_v46 = vld [vmem:[#allocation7 + $0x2e8] ss:$16 sps:$4 sm:$0xff]  }
 0x247   : > { %v2256_v25 = vmax.f32 %v2192_v40, 0.0  ;;  %v2260_v39 = vmax.f32 %v2196_v34, 0.0  ;;  %v2258_v42 = vmax.f32 %v2194_v2, 0.0  ;;  %v2262_v43 = vmax.f32 %v2198_v20, 0.0  ;;  %v8616_v40 = vld [vmem:[#allocation7 + $0xcc] ss:$16 sps:$4 sm:$0xff]  }
 0x248   : > { %v2255_v49 = vmax.f32 %v2191_v7, 0.0  ;;  %v2259_v62 = vmax.f32 %v2195_v6, 0.0  ;;  %v2257_v1 = vmax.f32 %v2193_v58, 0.0  ;;  %v2261_v36 = vmax.f32 %v2197_v9, 0.0  ;;  %v8619_v34 = vld [vmem:[#allocation7 + $0x2cc] ss:$16 sps:$4 sm:$0xff]  }
 0x249   : > { %v9962_v0 = vpack.c.bf16 %v2260_v39, %v2256_v25  ;;  %v9964_v53 = vpack.c.bf16 %v2262_v43, %v2258_v42  ;;  %v2200_v60 = vadd.f32 %v9930_v26, %v2115_v27  ;;  %v2204_v11 = vadd.f32 %v9930_v26, %v2119_v31  ;;  %v8614_v9 = vld [vmem:[#allocation7 + $0xc8] ss:$16 sps:$4 sm:$0xff]  }
 0x24a   : > { %v9968_v3 = vpack.c.bf16 %v2259_v62, %v2255_v49  ;;  %v9970_v21 = vpack.c.bf16 %v2261_v36, %v2257_v1  ;;  %v2202_v28 = vadd.f32 %v9936_v8, %v2117_v4  ;;  %v2206_v18 = vadd.f32 %v9936_v8, %v2121_v22  ;;  %v8617_v25 = vld [vmem:[#allocation7 + $0x2c8] ss:$16 sps:$4 sm:$0xff]   ;;  %v8622_v62 = vld [vmem:[#allocation7 + $0xac] ss:$16 sps:$4 sm:$0xff]  }
 0x24b   : > { %3151 = vmatprep.mubr.bf16.mxu0 %v9962_v0  ;;  %3264 = vmatprep.mubr.bf16.mxu1 %v9964_v53  ;;  %v2264_v2 = vmax.f32 %v2200_v60, 0.0  ;;  %v2268_v20 = vmax.f32 %v2204_v11, 0.0  ;;  %v2199_v27 = vadd.f32 %v9927_v23, %v2114_v59  ;;  %v2203_v31 = vadd.f32 %v9927_v23, %v2118_v57 }
 0x24c   : > { %3152 = vmatmul.mubr.bf16.vlgmr.msra.gmra.mxu0 %v9968_v3  ;;  %3265 = vmatmul.mubr.bf16.vlgmr.msra.gmra.mxu1 %v9970_v21  ;;  %v2266_v7 = vmax.f32 %v2202_v28, 0.0  ;;  %v2270_v4 = vmax.f32 %v2206_v18, 0.0  ;;  %v2201_v22 = vadd.f32 %v9933_v15, %v2116_v54  ;;  %v2205_v6 = vadd.f32 %v9933_v15, %v2120_v44  ;;  %v8625_v54 = vld [vmem:[#allocation7 + $0x2ac] ss:$16 sps:$4 sm:$0xff]  }
 0x24d   : > { %v9982_v58 = vpack.c.bf16 %v2268_v20, %v2264_v2  ;;  %3346 = vmatpush1.bf16.msra.mxu0 %v8608_v29  ;;  %3459 = vmatpush1.bf16.msra.mxu1 %v8611_v46  ;;  %v2263_v39 = vmax.f32 %v2199_v27, 0.0  ;;  %v2267_v59 = vmax.f32 %v2203_v31, 0.0  ;;  %v2208_v57 = vadd.f32 %v9930_v26, %v2123_v52  ;;  %v8628_v20 = vld [vmem:[#allocation7 + $0x8c] ss:$16 sps:$4 sm:$0xff]  }
 0x24e   : > { %v9985_v42 = vpack.c.bf16 %v2270_v4, %v2266_v7  ;;  %3347 = vmatprep.subr.bf16.mxu0 %v8616_v40  ;;  %3460 = vmatprep.subr.bf16.mxu1 %v8619_v34  ;;  %v2265_v43 = vmax.f32 %v2201_v22, 0.0  ;;  %v2269_v49 = vmax.f32 %v2205_v6, 0.0  ;;  %v2212_v44 = vadd.f32 %v9930_v26, %v9904_v63  ;;  %v8620_v40 = vld [vmem:[#allocation7 + $0xa8] ss:$16 sps:$4 sm:$0xff]   ;;  %v8631_v27 = vld [vmem:[#allocation7 + $0x28c] ss:$16 sps:$4 sm:$0xff]  }
 0x24f   : > { %3161 = vmatprep.mubr.bf16.mxu0 %v9982_v58  ;;  %v2272_v1 = vmax.f32 %v2208_v57, 0.0  ;;  %v2210_v36 = vadd.f32 %v9936_v8, %v9908_v47  ;;  %v2214_v52 = vadd.f32 %v9936_v8, %v9912_v61  ;;  %v2137_v29 = vmul.f32 %v9857_v45, %v9722_v10  ;;  %v8623_v34 = vld [vmem:[#allocation7 + $0x2a8] ss:$16 sps:$4 sm:$0xff]   ;;  %v12301_v6 = vld [vmem:[#allocation16_spill] sm:$0xff] }
 0x250   : > { %3274 = vmatprep.mubr.bf16.mxu1 %v9985_v42  ;;  %v9997_v46 = vpack.c.bf16 %v2267_v59, %v2263_v39  ;;  %v2276_v60 = vmax.f32 %v2212_v44, 0.0  ;;  %v2207_v63 = vadd.f32 %v9927_v23, %v9916_v19  ;;  %v2211_v11 = vadd.f32 %v9927_v23, %v9920_v14  ;;  %v8626_v39 = vld [vmem:[#allocation7 + $0x88] ss:$16 sps:$4 sm:$0xff]  }
 0x251   : > { %3348 = vmatpush1.bf16.msra.mxu0 %v8614_v9  ;;  %3461 = vmatpush1.bf16.msra.mxu1 %v8617_v25  ;;  %v2274_v47 = vmax.f32 %v2210_v36, 0.0  ;;  %v2278_v28 = vmax.f32 %v2214_v52, 0.0  ;;  %v2209_v61 = vadd.f32 %v9933_v15, %v9924_v13  ;;  %v2213_v10 = vadd.f32 %v9933_v15, %v9940_v24  ;;  %v12302_v25 = vld [vmem:[#allocation18_spill] sm:$0xff]  ;;  %v8629_v59 = vld [vmem:[#allocation7 + $0x288] ss:$16 sps:$4 sm:$0xff]   ;;  %v12303_v36 = vld [vmem:[#allocation20_spill] sm:$0xff] }
 0x252   : > { %v10007_v18 = vpack.c.bf16 %v2269_v49, %v2265_v43  ;;  %3349 = vmatprep.subr.bf16.mxu0 %v8622_v62  ;;  %3462 = vmatprep.subr.bf16.mxu1 %v8625_v54  ;;  %v10009_v19 = vpack.c.bf16 %v2276_v60, %v2272_v1  ;;  %v2216_v14 = vadd.f32 %v9930_v26, %v9944_v12  ;;  %v2271_v31 = vmax.f32 %v2207_v63, 0.0  ;;  %v8634_v62 = vld [vmem:[#allocation7 + $0x6c] ss:$16 sps:$4 sm:$0xff]  }
 0x253   : > { %v10013_v2 = vpack.c.bf16 %v2278_v28, %v2274_v47  ;;  %v2275_v13 = vmax.f32 %v2211_v11, 0.0  ;;  %v2220_v24 = vadd.f32 %v9930_v26, %v9948_v17  ;;  %v2273_v7 = vmax.f32 %v2209_v61, 0.0  ;;  %v8637_v54 = vld [vmem:[#allocation7 + $0x26c] ss:$16 sps:$4 sm:$0xff]  }
 0x254   : > { %3162 = vmatmul.mubr.bf16.gmra.mxu0 %v9997_v46  ;;  %3275 = vmatmul.mubr.bf16.gmra.mxu1 %v10007_v18  ;;  %v2277_v4 = vmax.f32 %v2213_v10, 0.0  ;;  %v2218_v22 = vadd.f32 %v9936_v8, %v9952_v48  ;;  %v2222_v12 = vadd.f32 %v9936_v8, %v2137_v29  ;;  %v2130_v9 = vmul.f32 %v9848_v37, %v12301_v6  ;;  %v12304_v29 = vld [vmem:[#allocation32_spill] sm:$0xff]  ;;  %v8638_v6 = vld [vmem:[#allocation7 + $0x48] ss:$16 sps:$4 sm:$0xff]  }
 0x255   : > { %3171 = vmatprep.mubr.bf16.mxu0 %v10009_v19  ;;  %3284 = vmatprep.mubr.bf16.mxu1 %v10013_v2  ;;  %v2134_v17 = vmul.f32 %v9848_v37, %v12302_v25  ;;  %v2280_v57 = vmax.f32 %v2216_v14, 0.0  ;;  %v2284_v43 = vmax.f32 %v2220_v24, 0.0  ;;  %v2132_v48 = vmul.f32 %v9854_v16, %v9703_v32 }
 0x256   : > { %3350 = vmatpush1.bf16.msra.mxu0 %v8620_v40  ;;  %3463 = vmatpush1.bf16.msra.mxu1 %v8623_v34  ;;  %v2136_v49 = vmul.f32 %v9854_v16, %v9714_v38  ;;  %v2282_v44 = vmax.f32 %v2218_v22, 0.0  ;;  %v2286_v1 = vmax.f32 %v2222_v12, 0.0  ;;  %v2139_v52 = vmul.f32 %v9851_v41, %v12303_v36  ;;  %v8632_v40 = vld [vmem:[#allocation7 + $0x68] ss:$16 sps:$4 sm:$0xff]  }
 0x257   : > { %3351 = vmatprep.subr.bf16.mxu0 %v8628_v20  ;;  %3464 = vmatprep.subr.bf16.mxu1 %v8631_v27  ;;  %v2143_v60 = vmul.f32 %v9851_v41, %v12304_v29  ;;  %v10036_v63 = vpack.c.bf16 %v2275_v13, %v2271_v31  ;;  %v10038_v11 = vpack.c.bf16 %v2277_v4, %v2273_v7  ;;  %v8635_v34 = vld [vmem:[#allocation7 + $0x268] ss:$16 sps:$4 sm:$0xff]   ;;  %v8640_v27 = vld [vmem:[#allocation7 + $0x4c] ss:$16 sps:$4 sm:$0xff]  }
 0x258   : > { %v2141_v32 = vmul.f32 %v9857_v45, %v9733_v33  ;;  %v2145_v38 = vmul.f32 %v9857_v45, %v9746_v30  ;;  %v2215_v47 = vadd.f32 %v9927_v23, %v2130_v9  ;;  %v2219_v28 = vadd.f32 %v9927_v23, %v2134_v17  ;;  %v8643_v31 = vld [vmem:[#allocation7 + $0x24c] ss:$16 sps:$4 sm:$0xff]   ;;  %v12307_v17 = vld [vmem:[#allocation36_spill] sm:$0xff] }
 0x259   : > { %v2217_v61 = vadd.f32 %v9933_v15, %v2132_v48  ;;  %v2221_v10 = vadd.f32 %v9933_v15, %v2136_v49  ;;  %v10048_v14 = vpack.c.bf16 %v2284_v43, %v2280_v57  ;;  %v2224_v20 = vadd.f32 %v9930_v26, %v2139_v52  ;;  %v12305_v7 = vld [vmem:[#allocation19_spill] sm:$0xff]  ;;  %v12306_v22 = vld [vmem:[#allocation21_spill] sm:$0xff] }
 0x25a   : > { %3352 = vmatpush1.bf16.msra.mxu0 %v8626_v39  ;;  %3465 = vmatpush1.bf16.msra.mxu1 %v8629_v59  ;;  %v2228_v33 = vadd.f32 %v9930_v26, %v2143_v60  ;;  %v10052_v30 = vpack.c.bf16 %v2286_v1, %v2282_v44  ;;  %v2226_v13 = vadd.f32 %v9936_v8, %v2141_v32  ;;  %v2279_v9 = vmax.f32 %v2215_v47, 0.0  ;;  %v12308_v59 = vld [vmem:[#allocation37_spill] sm:$0xff]  ;;  %v12309_v60 = vld [vmem:[#allocation23_spill] sm:$0xff] }
 0x25b   : > { %3353 = vmatprep.subr.bf16.mxu0 %v8634_v62  ;;  %3466 = vmatprep.subr.bf16.mxu1 %v8637_v54  ;;  %v2230_v24 = vadd.f32 %v9936_v8, %v2145_v38  ;;  %v2138_v4 = vmul.f32 %v9848_v37, %v12305_v7  ;;  %v2142_v12 = vmul.f32 %v9848_v37, %v12306_v22  ;;  %v2283_v25 = vmax.f32 %v2219_v28, 0.0  ;;  %v8641_v43 = vld [vmem:[#allocation7 + $0x248] ss:$16 sps:$4 sm:$0xff]   ;;  %v8646_v44 = vld [vmem:[#allocation7 + $0x2c] ss:$16 sps:$4 sm:$0xff]  }
 0x25c   : > { %3172 = vmatmul.mubr.bf16.gmra.mxu0 %v10036_v63  ;;  %3285 = vmatmul.mubr.bf16.gmra.mxu1 %v10038_v11  ;;  %v2140_v39 = vmul.f32 %v9854_v16, %v12307_v17  ;;  %v2144_v57 = vmul.f32 %v9854_v16, %v12308_v59  ;;  %v2281_v48 = vmax.f32 %v2217_v61, 0.0  ;;  %v2285_v49 = vmax.f32 %v2221_v10, 0.0  ;;  %v8649_v1 = vld [vmem:[#allocation7 + $0x22c] ss:$16 sps:$4 sm:$0xff]   ;;  %v12312_v59 = vld [vmem:[#allocation22_spill] sm:$0xff] }
 0x25d   : > { %3181 = vmatprep.mubr.bf16.mxu0 %v10048_v14  ;;  %3294 = vmatprep.mubr.bf16.mxu1 %v10052_v30  ;;  %v2288_v62 = vmax.f32 %v2224_v20, 0.0  ;;  %v2292_v54 = vmax.f32 %v2228_v33, 0.0  ;;  %v2290_v36 = vmax.f32 %v2226_v13, 0.0  ;;  %v2294_v52 = vmax.f32 %v2230_v24, 0.0  ;;  %v12310_v28 = vld [vmem:[#allocation33_spill] sm:$0xff]  ;;  %v12311_v33 = vld [vmem:[#allocation40_spill] sm:$0xff] }
 0x25e   : > { %3354 = vmatpush1.bf16.msra.mxu0 %v8632_v40  ;;  %3467 = vmatpush1.bf16.msra.mxu1 %v8635_v34  ;;  %v2223_v29 = vadd.f32 %v9927_v23, %v2138_v4  ;;  %v2147_v32 = vmul.f32 %v9851_v41, %v12309_v60  ;;  %v2227_v38 = vadd.f32 %v9927_v23, %v2142_v12  ;;  %v8644_v13 = vld [vmem:[#allocation7 + $0x28] ss:$16 sps:$4 sm:$0xff]   ;;  %v8652_v12 = vld [vmem:[#allocation7 + $0xc] ss:$16 sps:$4 sm:$0xff]  }
 0x25f   : > { %3355 = vmatprep.subr.bf16.mxu0 %v8640_v27  ;;  %3468 = vmatprep.subr.bf16.mxu1 %v8643_v31  ;;  %v2225_v47 = vadd.f32 %v9933_v15, %v2140_v39  ;;  %v2151_v61 = vmul.f32 %v9851_v41, %v12310_v28  ;;  %v2149_v10 = vmul.f32 %v9857_v45, %v9756_v55  ;;  %v8647_v24 = vld [vmem:[#allocation7 + $0x228] ss:$16 sps:$4 sm:$0xff]   ;;  %v8661_v28 = vld [vmem:[#allocation7 + $0x3ec] ss:$16 sps:$4 sm:$0xff]  }
 0x260   : > { %v10077_v40 = vpack.c.bf16 %v2283_v25, %v2279_v9  ;;  %v2229_v34 = vadd.f32 %v9933_v15, %v2144_v57  ;;  %v2232_v20 = vadd.f32 %v9930_v26, %v2147_v32  ;;  %v2153_v27 = vmul.f32 %v9857_v45, %v12311_v33  ;;  %v8655_v9 = vld [vmem:[#allocation7 + $0x20c] ss:$16 sps:$4 sm:$0xff]  }
 0x261   : > { %v10083_v31 = vpack.c.bf16 %v2285_v49, %v2281_v48  ;;  %v2236_v7 = vadd.f32 %v9930_v26, %v2151_v61  ;;  %v2234_v4 = vadd.f32 %v9936_v8, %v2149_v10  ;;  %v10087_v55 = vpack.c.bf16 %v2292_v54, %v2288_v62  ;;  %v12313_v49 = vld [vmem:[#allocation24_spill] sm:$0xff]  ;;  %v12314_v54 = vld [vmem:[#allocation38_spill] sm:$0xff]  ;;  %v12315_v32 = vld [vmem:[#allocation39_spill] sm:$0xff] }
 0x262   : > { %3356 = vmatpush1.bf16.msra.mxu0 %v8638_v6  ;;  %3469 = vmatpush1.bf16.msra.mxu1 %v8641_v43  ;;  %v10089_v22 = vpack.c.bf16 %v2294_v52, %v2290_v36  ;;  %v2238_v25 = vadd.f32 %v9936_v8, %v2153_v27  ;;  %v2287_v6 = vmax.f32 %v2223_v29, 0.0  ;;  %v2291_v17 = vmax.f32 %v2227_v38, 0.0  ;;  %v8653_v36 = vld [vmem:[#allocation7 + $0x208] ss:$16 sps:$4 sm:$0xff]  }
 0x263   : > { %3357 = vmatprep.subr.bf16.mxu0 %v8646_v44  ;;  %3470 = vmatprep.subr.bf16.mxu1 %v8649_v1  ;;  %v2289_v39 = vmax.f32 %v2225_v47, 0.0  ;;  %v2146_v57 = vmul.f32 %v9848_v37, %v12312_v59  ;;  %v2293_v43 = vmax.f32 %v2229_v34, 0.0  ;;  %v2296_v48 = vmax.f32 %v2232_v20, 0.0  ;;  %v8650_v1 = vld [vmem:[#allocation7 + $0x8] ss:$16 sps:$4 sm:$0xff]   ;;  %v12316_v20 = vld [vmem:[#allocation26_spill] sm:$0xff] }
 0x264   : > { %3182 = vmatmul.mubr.bf16.gmra.mxu0 %v10077_v40  ;;  %3295 = vmatmul.mubr.bf16.gmra.mxu1 %v10083_v31  ;;  %v2150_v62 = vmul.f32 %v9848_v37, %v12313_v49  ;;  %v2148_v44 = vmul.f32 %v9854_v16, %v12314_v54  ;;  %v2300_v52 = vmax.f32 %v2236_v7, 0.0  ;;  %v2298_v29 = vmax.f32 %v2234_v4, 0.0  ;;  %v8658_v47 = vld [vmem:[#allocation7 + $0x1ec] ss:$16 sps:$4 sm:$0xff]   ;;  %v12318_v7 = vld [vmem:[#allocation42_spill] sm:$0xff] }
 0x265   : > { %3191 = vmatprep.mubr.bf16.mxu0 %v10087_v55  ;;  %3304 = vmatprep.mubr.bf16.mxu1 %v10089_v22  ;;  %v2231_v60 = vadd.f32 %v9927_v23, %v2146_v57  ;;  %v2152_v38 = vmul.f32 %v9854_v16, %v12315_v32  ;;  %v2302_v61 = vmax.f32 %v2238_v25, 0.0  ;;  %v2155_v33 = vmul.f32 %v9851_v41, %v12316_v20  ;;  %v8656_v49 = vld [vmem:[#allocation7 + $0x1e8] ss:$16 sps:$4 sm:$0xff]  }
 0x266   : > { %3358 = vmatpush1.bf16.msra.mxu0 %v8644_v13  ;;  %3471 = vmatpush1.bf16.msra.mxu1 %v8647_v24  ;;  %v2235_v10 = vadd.f32 %v9927_v23, %v2150_v62  ;;  %v2233_v34 = vadd.f32 %v9933_v15, %v2148_v44  ;;  %v12317_v13 = vld [vmem:[#allocation34_spill] sm:$0xff]  ;;  %v2157_v4 = vmul.f32 %v9857_v45, %v12318_v7  ;;  %v8659_v62 = vld [vmem:[#allocation7 + $0x3e8] ss:$16 sps:$4 sm:$0xff]   ;;  %v8670_v7 = vld [vmem:[#allocation7 + $0x1ac] ss:$16 sps:$4 sm:$0xff]  }
 0x267   : > { %3359 = vmatprep.subr.bf16.mxu0 %v8652_v12  ;;  %3472 = vmatprep.subr.bf16.mxu1 %v8655_v9  ;;  %v2237_v27 = vadd.f32 %v9933_v15, %v2152_v38  ;;  %v2159_v24 = vmul.f32 %v9851_v41, %v12317_v13  ;;  %v12319_v12 = vld [vmem:[#allocation44_spill] sm:$0xff]  ;;  %v10116_v59 = vpack.c.bf16 %v2291_v17, %v2287_v6  ;;  %v8664_v17 = vld [vmem:[#allocation7 + $0x1cc] ss:$16 sps:$4 sm:$0xff]  }
 0x268   : > { %v2161_v9 = vmul.f32 %v9857_v45, %v12319_v12  ;;  %v10118_v25 = vpack.c.bf16 %v2293_v43, %v2289_v39  ;;  %v2240_v57 = vadd.f32 %v9930_v26, %v2155_v33  ;;  %v2242_v44 = vadd.f32 %v9936_v8, %v2157_v4  ;;  %v8667_v39 = vld [vmem:[#allocation7 + $0x3cc] ss:$16 sps:$4 sm:$0xff]   ;;  %v12320_v33 = vld [vmem:[#allocation48_spill] sm:$0xff] }
 0x269   : > { %v2244_v54 = vadd.f32 %v9930_v26, %v2159_v24  ;;  %v10124_v38 = vpack.c.bf16 %v2300_v52, %v2296_v48  ;;  %v10126_v6 = vpack.c.bf16 %v2302_v61, %v2298_v29  ;;  %v2295_v43 = vmax.f32 %v2231_v60, 0.0  ;;  %v8662_v48 = vld [vmem:[#allocation7 + $0x1c8] ss:$16 sps:$4 sm:$0xff]   ;;  %v8673_v4 = vld [vmem:[#allocation7 + $0x3ac] ss:$16 sps:$4 sm:$0xff]  }
 0x26a   : > { %3360 = vmatpush1.bf16.msra.mxu0 %v8650_v1  ;;  %3473 = vmatpush1.bf16.msra.mxu1 %v8653_v36  ;;  %v2246_v32 = vadd.f32 %v9936_v8, %v2161_v9  ;;  %v2299_v20 = vmax.f32 %v2235_v10, 0.0  ;;  %v2297_v1 = vmax.f32 %v2233_v34, 0.0  ;;  %v2301_v36 = vmax.f32 %v2237_v27, 0.0  ;;  %v12321_v29 = vld [vmem:[#allocation25_spill] sm:$0xff]  ;;  %v12322_v34 = vld [vmem:[#allocation27_spill] sm:$0xff] }
 0x26b   : > { %3361 = vmatprep.subr.bf16.mxu0 %v8658_v47  ;;  %3474 = vmatprep.subr.bf16.mxu1 %v8661_v28  ;;  %v2169_v13 = vmul.f32 %v9857_v45, %v12320_v33  ;;  %v2304_v52 = vmax.f32 %v2240_v57, 0.0  ;;  %v2154_v47 = vmul.f32 %v9848_v37, %v12321_v29  ;;  %v8665_v60 = vld [vmem:[#allocation7 + $0x3c8] ss:$16 sps:$4 sm:$0xff]   ;;  %v2308_v28 = vmax.f32 %v2244_v54, 0.0  ;;  %v12327_v29 = vld [vmem:[#allocation46_spill] sm:$0xff] }
 0x26c   : > { %3192 = vmatmul.mubr.bf16.gmra.mxu0 %v10116_v59  ;;  %3305 = vmatmul.mubr.bf16.gmra.mxu1 %v10118_v25  ;;  %v2306_v61 = vmax.f32 %v2242_v44, 0.0  ;;  %v2310_v10 = vmax.f32 %v2246_v32, 0.0  ;;  %v2158_v27 = vmul.f32 %v9848_v37, %v12322_v34  ;;  %v10138_v24 = vpack.c.bf16 %v2299_v20, %v2295_v43  ;;  %v12323_v12 = vld [vmem:[#allocation41_spill] sm:$0xff]  ;;  %v12324_v57 = vld [vmem:[#allocation43_spill] sm:$0xff] }
 0x26d   : > { %3201 = vmatprep.mubr.bf16.mxu0 %v10124_v38  ;;  %3314 = vmatprep.mubr.bf16.mxu1 %v10126_v6  ;;  %v2156_v9 = vmul.f32 %v9854_v16, %v12323_v12  ;;  %v2239_v54 = vadd.f32 %v9927_v23, %v2154_v47  ;;  %v12325_v32 = vld [vmem:[#allocation29_spill] sm:$0xff]  ;;  %v12326_v20 = vld [vmem:[#allocation35_spill] sm:$0xff]  ;;  %v2165_v34 = vmul.f32 %v9857_v45, %v12327_v29 }
 0x26e   : > { %3362 = vmatpush2.bf16.msra.mxu0 %v8656_v49  ;;  %3475 = vmatpush2.bf16.msra.mxu1 %v8659_v62  ;;  %v2160_v49 = vmul.f32 %v9854_v16, %v12324_v57  ;;  %v10144_v62 = vpack.c.bf16 %v2301_v36, %v2297_v1  ;;  %v2243_v44 = vadd.f32 %v9927_v23, %v2158_v27  ;;  %v8668_v1 = vld [vmem:[#allocation7 + $0x1a8] ss:$16 sps:$4 sm:$0xff]   ;;  %v8679_v57 = vld [vmem:[#allocation7 + $0x38c] ss:$16 sps:$4 sm:$0xff]  }
 0x26f   : > { %3363 = vmatprep.subr.bf16.mxu0 %v8664_v17  ;;  %3476 = vmatprep.subr.bf16.mxu1 %v8667_v39  ;;  %v2163_v17 = vmul.f32 %v9851_v41, %v12325_v32  ;;  %v2241_v39 = vadd.f32 %v9933_v15, %v2156_v9  ;;  %v2167_v33 = vmul.f32 %v9851_v41, %v12326_v20  ;;  %v8671_v36 = vld [vmem:[#allocation7 + $0x3a8] ss:$16 sps:$4 sm:$0xff]   ;;  %v8676_v9 = vld [vmem:[#allocation7 + $0x18c] ss:$16 sps:$4 sm:$0xff]  }
 0x270   : > { %v2245_v43 = vadd.f32 %v9933_v15, %v2160_v49  ;;  %v10156_v47 = vpack.c.bf16 %v2308_v28, %v2304_v52  ;;  %v10158_v27 = vpack.c.bf16 %v2310_v10, %v2306_v61  ;;  %v2250_v41 = vadd.f32 %v9936_v8, %v2165_v34  ;;  %v8682_v10 = vld [vmem:[#allocation7 + $0x16c] ss:$16 sps:$4 sm:$0xff]  }
 0x271   : > { %v2248_v12 = vadd.f32 %v9930_v26, %v2163_v17  ;;  %v2252_v49 = vadd.f32 %v9930_v26, %v2167_v33  ;;  %v2254_v45 = vadd.f32 %v9936_v8, %v2169_v13  ;;  %v2303_v52 = vmax.f32 %v2239_v54, 0.0  ;;  %v8677_v26 = vld [vmem:[#allocation7 + $0x388] ss:$16 sps:$4 sm:$0xff]   ;;  %v8685_v8 = vld [vmem:[#allocation7 + $0x36c] ss:$16 sps:$4 sm:$0xff]   ;;  %v12328_v17 = vld [vmem:[#allocation28_spill] sm:$0xff] }
 0x272   : > { %3364 = vmatpush2.bf16.msra.mxu0 %v8662_v48  ;;  %3477 = vmatpush2.bf16.msra.mxu1 %v8665_v60  ;;  %v8674_v48 = vld [vmem:[#allocation7 + $0x188] ss:$16 sps:$4 sm:$0xff]   ;;  %v2307_v60 = vmax.f32 %v2243_v44, 0.0  ;;  %v2305_v28 = vmax.f32 %v2241_v39, 0.0  ;;  %v2309_v61 = vmax.f32 %v2245_v43, 0.0  ;;  %v2162_v20 = vmul.f32 %v9848_v37, %v12328_v17  ;;  %v12329_v33 = vld [vmem:[#allocation30_spill] sm:$0xff] }
 0x273   : > { %3365 = vmatprep.subr.bf16.mxu0 %v8670_v7  ;;  %3478 = vmatprep.subr.bf16.mxu1 %v8673_v4  ;;  %v2312_v7 = vmax.f32 %v2248_v12, 0.0  ;;  %v2316_v13 = vmax.f32 %v2252_v49, 0.0  ;;  %v2314_v4 = vmax.f32 %v2250_v41, 0.0  ;;  %v2318_v32 = vmax.f32 %v2254_v45, 0.0  ;;  %v12330_v44 = vld [vmem:[#allocation45_spill] sm:$0xff]  ;;  %v12331_v43 = vld [vmem:[#allocation47_spill] sm:$0xff] }
 0x274   : > { %3202 = vmatmul.mubr.bf16.gmra.mxu0 %v10138_v24  ;;  %3315 = vmatmul.mubr.bf16.gmra.mxu1 %v10144_v62  ;;  %v2166_v54 = vmul.f32 %v9848_v37, %v12329_v33  ;;  %v2164_v39 = vmul.f32 %v9854_v16, %v12330_v44  ;;  %v2168_v29 = vmul.f32 %v9854_v16, %v12331_v43  ;;  %v8680_v12 = vld [vmem:[#allocation7 + $0x168] ss:$16 sps:$4 sm:$0xff]   ;;  %v8688_v45 = vld [vmem:[#allocation7 + $0x14c] ss:$16 sps:$4 sm:$0xff]  }
 0x275   : > { %3211 = vmatprep.mubr.bf16.mxu0 %v10156_v47  ;;  %3324 = vmatprep.mubr.bf16.mxu1 %v10158_v27  ;;  %v10176_v34 = vpack.c.bf16 %v2307_v60, %v2303_v52  ;;  %v10184_v41 = vpack.c.bf16 %v2316_v13, %v2312_v7  ;;  %v10186_v16 = vpack.c.bf16 %v2318_v32, %v2314_v4  ;;  %v8691_v52 = vld [vmem:[#allocation7 + $0x34c] ss:$16 sps:$4 sm:$0xff]   ;;  %v8692_v13 = vld [vmem:[#allocation7 + $0x128] ss:$16 sps:$4 sm:$0xff]  }
 0x276   : > { %3366 = vmatpush2.bf16.msra.mxu0 %v8668_v1  ;;  %3479 = vmatpush2.bf16.msra.mxu1 %v8671_v36  ;;  %v10178_v1 = vpack.c.bf16 %v2309_v61, %v2305_v28  ;;  %v2247_v36 = vadd.f32 %v9927_v23, %v2162_v20  ;;  %v2249_v37 = vadd.f32 %v9933_v15, %v2164_v39  ;;  %v8695_v4 = vld [vmem:[#allocation7 + $0x328] ss:$16 sps:$4 sm:$0xff]   ;;  %v8700_v32 = vld [vmem:[#allocation7 + $0x10c] ss:$16 sps:$4 sm:$0xff]  }
 0x277   : > { %3367 = vmatprep.subr.bf16.mxu0 %v8676_v9  ;;  %3480 = vmatprep.subr.bf16.mxu1 %v8679_v57  ;;  %v8683_v9 = vld [vmem:[#allocation7 + $0x368] ss:$16 sps:$4 sm:$0xff]   ;;  %v2251_v57 = vadd.f32 %v9927_v23, %v2166_v54  ;;  %v2253_v49 = vadd.f32 %v9933_v15, %v2168_v29  ;;  %v8703_v17 = vld [vmem:[#allocation7 + $0x30c] ss:$16 sps:$4 sm:$0xff]  }
 0x278   : > { %v8686_v23 = vld [vmem:[#allocation7 + $0x148] ss:$16 sps:$4 sm:$0xff]   ;;  %v2313_v28 = vmax.f32 %v2249_v37, 0.0 }
 0x279   : > { %v8689_v15 = vld [vmem:[#allocation7 + $0x348] ss:$16 sps:$4 sm:$0xff]   ;;  %v2315_v60 = vmax.f32 %v2251_v57, 0.0  ;;  %v2317_v61 = vmax.f32 %v2253_v49, 0.0 }
 0x27a   : > { %3368 = vmatpush2.bf16.msra.mxu0 %v8674_v48  ;;  %3481 = vmatpush2.bf16.msra.mxu1 %v8677_v26  ;;  %v2311_v48 = vmax.f32 %v2247_v36, 0.0  ;;  %v8694_v26 = vld [vmem:[#allocation7 + $0x12c] ss:$16 sps:$4 sm:$0xff]   ;;  %v8698_v20 = vld [vmem:[#allocation7 + $0x108] ss:$16 sps:$4 sm:$0xff]  }
 0x27b   : > { %3369 = vmatprep.subr.bf16.mxu0 %v8682_v10  ;;  %3482 = vmatprep.subr.bf16.mxu1 %v8685_v8  ;;  %v8697_v10 = vld [vmem:[#allocation7 + $0x32c] ss:$16 sps:$4 sm:$0xff]   ;;  %v2349_v8 = vpack.c.bf16 %v2317_v61, %v2313_v28  ;;  %v8701_v33 = vld [vmem:[#allocation7 + $0x308] ss:$16 sps:$4 sm:$0xff]  }
 0x27c   : > { %3212 = vmatmul.mubr.bf16.gmra.mxu0 %v10176_v34  ;;  %3325 = vmatmul.mubr.bf16.gmra.mxu1 %v10178_v1  ;;  %v2347_v7 = vpack.c.bf16 %v2315_v60, %v2311_v48 }
 0x27d   : > { %3221 = vmatprep.mubr.bf16.mxu0 %v10184_v41  ;;  %3334 = vmatprep.mubr.bf16.mxu1 %v10186_v16 }
 0x27e   : > { %3370 = vmatpush2.bf16.msra.mxu0 %v8680_v12  ;;  %3483 = vmatpush2.bf16.msra.mxu1 %v8683_v9 }
 0x27f   : > { %3371 = vmatprep.subr.bf16.mxu0 %v8688_v45  ;;  %3484 = vmatprep.subr.bf16.mxu1 %v8691_v52 }
 0x282   : > { %3372 = vmatpush2.bf16.msra.mxu0 %v8686_v23  ;;  %3485 = vmatpush2.bf16.msra.mxu1 %v8689_v15 }
 0x283   : > { %3373 = vmatprep.subr.bf16.mxu0 %v8694_v26  ;;  %3486 = vmatprep.subr.bf16.mxu1 %v8697_v10 }
 0x284   : > { %3222 = vmatmul.mubr.bf16.gmra.mxu0 %v2347_v7  ;;  %3335 = vmatmul.mubr.bf16.gmra.mxu1 %v2349_v8 }
 0x285   : > { %3377 = vmatprep.mubr.bf16.mxu0 %v9962_v0  ;;  %3490 = vmatprep.mubr.bf16.mxu1 %v9964_v53 }
 0x286   : > { %3374 = vmatpush2.bf16.msra.mxu0 %v8692_v13  ;;  %3487 = vmatpush2.bf16.msra.mxu1 %v8695_v4 }
 0x287   : > { %3375 = vmatprep.subr.bf16.mxu0 %v8700_v32  ;;  %3488 = vmatprep.subr.bf16.mxu1 %v8703_v17 }
 0x28a   : > { %3376 = vmatpush2.bf16.msra.mxu0 %v8698_v20  ;;  %3489 = vmatpush2.bf16.msra.mxu1 %v8701_v33 }
 0x28d   : > { %3378 = vmatmul.mubr.bf16.vlgmr.msra.gmra.mxu0 %v9968_v3  ;;  %3491 = vmatmul.mubr.bf16.vlgmr.msra.gmra.mxu1 %v9970_v21 }
 0x28e   : > { %3387 = vmatprep.mubr.bf16.mxu0 %v9982_v58  ;;  %3500 = vmatprep.mubr.bf16.mxu1 %v9985_v42 }
 0x295   : > { %3388 = vmatmul.mubr.bf16.gmra.mxu0 %v9997_v46  ;;  %3501 = vmatmul.mubr.bf16.gmra.mxu1 %v10007_v18 }
 0x296   : > { %3397 = vmatprep.mubr.bf16.mxu0 %v10009_v19  ;;  %3510 = vmatprep.mubr.bf16.mxu1 %v10013_v2 }
 0x29d   : > { %3398 = vmatmul.mubr.bf16.gmra.mxu0 %v10036_v63  ;;  %3511 = vmatmul.mubr.bf16.gmra.mxu1 %v10038_v11 }
 0x29e   : > { %3407 = vmatprep.mubr.bf16.mxu0 %v10048_v14  ;;  %3520 = vmatprep.mubr.bf16.mxu1 %v10052_v30 }
 0x2a5   : > { %3408 = vmatmul.mubr.bf16.gmra.mxu0 %v10077_v40  ;;  %3521 = vmatmul.mubr.bf16.gmra.mxu1 %v10083_v31 }
 0x2a6   : > { %3417 = vmatprep.mubr.bf16.mxu0 %v10087_v55  ;;  %3530 = vmatprep.mubr.bf16.mxu1 %v10089_v22 }
 0x2ad   : > { %3418 = vmatmul.mubr.bf16.gmra.mxu0 %v10116_v59  ;;  %3531 = vmatmul.mubr.bf16.gmra.mxu1 %v10118_v25 }
 0x2ae   : > { %3427 = vmatprep.mubr.bf16.mxu0 %v10124_v38  ;;  %3540 = vmatprep.mubr.bf16.mxu1 %v10126_v6 }
 0x2b5   : > { %3428 = vmatmul.mubr.bf16.gmra.mxu0 %v10138_v24  ;;  %3541 = vmatmul.mubr.bf16.gmra.mxu1 %v10144_v62 }
 0x2b6   : > { %3437 = vmatprep.mubr.bf16.mxu0 %v10156_v47  ;;  %3550 = vmatprep.mubr.bf16.mxu1 %v10158_v27 }
 0x2bd   : > { %3438 = vmatmul.mubr.bf16.gmra.mxu0 %v10176_v34  ;;  %3551 = vmatmul.mubr.bf16.gmra.mxu1 %v10178_v1 }
 0x2be   : > { %3447 = vmatprep.mubr.bf16.mxu0 %v10184_v41  ;;  %3560 = vmatprep.mubr.bf16.mxu1 %v10186_v16 }
 0x2c5   : > { %3448 = vmatmul.mubr.bf16.gmra.mxu0 %v2347_v7  ;;  %3561 = vmatmul.mubr.bf16.gmra.mxu1 %v2349_v8 }
 0x30c   : > { %v3153_v0 = vpop.f32.mrf.mxu0  ;;  %v3266_v53 = vpop.f32.mrf.mxu1 }
 0x30d   : > { %v10222_v3 = vadd.f32 %v3266_v53, %v3153_v0 }
 0x30e   : > { %v3155_v21 = vpop.f32.mrf.mxu0  ;;  %v3268_v58 = vpop.f32.mrf.mxu1 }
 0x30f   : > { %v10224_v42 = vadd.f32 %v3268_v58, %v3155_v21 }
 0x310   : > { %v3157_v46 = vpop.f32.mrf.mxu0  ;;  %v3270_v18 = vpop.f32.mrf.mxu1 }
 0x311   : > { %v10226_v19 = vadd.f32 %v3270_v18, %v3157_v46 }
 0x312   : > { %v10228_v2 = vpop.f32.mrf.mxu0  ;;  %v10230_v63 = vpop.f32.mrf.mxu1 }
 0x314   : > { %v3163_v11 = vpop.f32.mrf.mxu0  ;;  %v3276_v14 = vpop.f32.mrf.mxu1 }
 0x315   : > { %v10232_v30 = vadd.f32 %v3276_v14, %v3163_v11 }
 0x316   : > { %v3165_v40 = vpop.f32.mrf.mxu0  ;;  %v3278_v31 = vpop.f32.mrf.mxu1 }
 0x317   : > { %12332 = vst [vmem:[#allocation17_spill] sm:$0xff] %v10232_v30  ;;  %v10234_v55 = vadd.f32 %v3278_v31, %v3165_v40 }
 0x318   : > { %v3167_v22 = vpop.f32.mrf.mxu0  ;;  %v3280_v59 = vpop.f32.mrf.mxu1 }
 0x319   : > { %v10236_v25 = vadd.f32 %v3280_v59, %v3167_v22 }
 0x31a   : > { %v10238_v38 = vpop.f32.mrf.mxu0  ;;  %v10240_v6 = vpop.f32.mrf.mxu1 }
 0x31b   : > { %12333 = vst [vmem:[#allocation31_spill] sm:$0xff] %v10236_v25 }
 0x31c   : > { %v3173_v24 = vpop.f32.mrf.mxu0  ;;  %v3286_v62 = vpop.f32.mrf.mxu1 }
 0x31d   : > { %v10242_v47 = vadd.f32 %v3286_v62, %v3173_v24 }
 0x31e   : > { %v3175_v27 = vpop.f32.mrf.mxu0  ;;  %v3288_v54 = vpop.f32.mrf.mxu1 }
 0x31f   : > { %12334 = vst [vmem:[#allocation16_spill] sm:$0xff] %v10242_v47  ;;  %v10244_v44 = vadd.f32 %v3288_v54, %v3175_v27 }
 0x320   : > { %v3177_v39 = vpop.f32.mrf.mxu0  ;;  %v3290_v43 = vpop.f32.mrf.mxu1 }
 0x321   : > { %v10246_v29 = vadd.f32 %v3290_v43, %v3177_v39 }
 0x322   : > { %v10248_v34 = vpop.f32.mrf.mxu0  ;;  %v10250_v1 = vpop.f32.mrf.mxu1 }
 0x323   : > { %12335 = vst [vmem:[#allocation18_spill] sm:$0xff] %v10246_v29 }
 0x324   : > { %v3183_v36 = vpop.f32.mrf.mxu0  ;;  %v3296_v12 = vpop.f32.mrf.mxu1 }
 0x325   : > { %v10252_v9 = vadd.f32 %v3296_v12, %v3183_v36  ;;  %v3659_v36 = vmul.f32 %v10226_v19, %v10226_v19 }
 0x326   : > { %v3185_v57 = vpop.f32.mrf.mxu0  ;;  %v3298_v37 = vpop.f32.mrf.mxu1 }
 0x327   : > { %12336 = vst [vmem:[#allocation20_spill] sm:$0xff] %v10252_v9  ;;  %v10254_v49 = vadd.f32 %v3298_v37, %v3185_v57  ;;  %v3571_v37 = vadd.f32 %v10226_v19, %v10222_v3 }
 0x328   : > { %v3187_v41 = vpop.f32.mrf.mxu0  ;;  %v3300_v16 = vpop.f32.mrf.mxu1 }
 0x329   : > { %12337 = vst [vmem:[#allocation32_spill] sm:$0xff] %v10254_v49  ;;  %v10256_v45 = vadd.f32 %v3300_v16, %v3187_v41  ;;  %v10298_v41 = vadd.f32 %v10230_v63, %v10228_v2 }
 0x32a   : > { %v10258_v52 = vpop.f32.mrf.mxu0  ;;  %v10260_v23 = vpop.f32.mrf.mxu1 }
 0x32b   : > { %12338 = vst [vmem:[#allocation19_spill] sm:$0xff] %v10256_v45  ;;  %v3660_v2 = vmul.f32 %v10298_v41, %v10298_v41 }
 0x32c   : > { %v3193_v15 = vpop.f32.mrf.mxu0  ;;  %v3306_v48 = vpop.f32.mrf.mxu1 }
 0x32d   : > { %v10262_v60 = vadd.f32 %v3306_v48, %v3193_v15  ;;  %v3655_v15 = vmul.f32 %v10222_v3, %v10222_v3 }
 0x32e   : > { %v3195_v28 = vpop.f32.mrf.mxu0  ;;  %v3308_v61 = vpop.f32.mrf.mxu1 }
 0x32f   : > { %12339 = vst [vmem:[#allocation21_spill] sm:$0xff] %v10262_v60  ;;  %v10264_v26 = vadd.f32 %v3308_v61, %v3195_v28  ;;  %v3572_v61 = vadd.f32 %v3571_v37, %v10232_v30  ;;  %v8706_v37 = vld [vmem:[#allocation9 + $0x38] sm:$0xff]  }
 0x330   : > { %v3197_v10 = vpop.f32.mrf.mxu0  ;;  %v3310_v7 = vpop.f32.mrf.mxu1 }
 0x331   : > { %12340 = vst [vmem:[#allocation36_spill] sm:$0xff] %v10264_v26  ;;  %v10266_v8 = vadd.f32 %v3310_v7, %v3197_v10  ;;  %v3663_v10 = vmul.f32 %v10232_v30, %v10232_v30  ;;  %v3573_v63 = vadd.f32 %v3572_v61, %v10236_v25  ;;  %v3675_v61 = vmul.f32 %v10246_v29, %v10246_v29 }
 0x332   : > { %v10268_v13 = vpop.f32.mrf.mxu0  ;;  %v10270_v4 = vpop.f32.mrf.mxu1 }
 0x333   : > { %12341 = vst [vmem:[#allocation37_spill] sm:$0xff] %v10266_v8 }
 0x334   : > { %v3203_v32 = vpop.f32.mrf.mxu0  ;;  %v3316_v17 = vpop.f32.mrf.mxu1 }
 0x335   : > { %v10272_v20 = vadd.f32 %v3316_v17, %v3203_v32  ;;  %v3719_v32 = vadd.f32 %v3659_v36, %v3655_v15  ;;  %v3671_v36 = vmul.f32 %v10242_v47, %v10242_v47 }
 0x336   : > { %v3205_v33 = vpop.f32.mrf.mxu0  ;;  %v3318_v0 = vpop.f32.mrf.mxu1 }
 0x337   : > { %12342 = vst [vmem:[#allocation23_spill] sm:$0xff] %v10272_v20  ;;  %v10274_v53 = vadd.f32 %v3318_v0, %v3205_v33  ;;  %v3667_v0 = vmul.f32 %v10236_v25, %v10236_v25  ;;  %v8711_v25 = vld [vmem:[#allocation9 + $0xb0] sm:$0xff]  }
 0x338   : > { %v3207_v21 = vpop.f32.mrf.mxu0  ;;  %v3320_v58 = vpop.f32.mrf.mxu1 }
 0x339   : > { %12343 = vst [vmem:[#allocation33_spill] sm:$0xff] %v10274_v53  ;;  %v10276_v46 = vadd.f32 %v3320_v58, %v3207_v21  ;;  %v3592_v58 = vadd.f32 %v10298_v41, %v10224_v42 }
 0x33a   : > { %v10278_v18 = vpop.f32.mrf.mxu0  ;;  %v10280_v11 = vpop.f32.mrf.mxu1 }
 0x33b   : > { %12344 = vst [vmem:[#allocation40_spill] sm:$0xff] %v10276_v46 }
 0x33c   : > { %v3213_v14 = vpop.f32.mrf.mxu0  ;;  %v3326_v40 = vpop.f32.mrf.mxu1 }
 0x33d   : > { %v10282_v31 = vadd.f32 %v3326_v40, %v3213_v14  ;;  %v10320_v14 = vadd.f32 %v10240_v6, %v10238_v38  ;;  %v8704_v38 = vld [vmem:[#allocation9 + $0x78] sm:$0xff]  }
 0x33e   : > { %v3215_v22 = vpop.f32.mrf.mxu0  ;;  %v3328_v59 = vpop.f32.mrf.mxu1  ;;  %v8705_v6 = vld [vmem:[#allocation9 + $0xf8] sm:$0xff]   ;;  %7765 = vmatprep.subr.bf16.mxu0 %v8704_v38  ;;  %v8713_v38 = vld [vmem:[#allocation9 + $0xe8] sm:$0xff]  }
 0x33f   : > { %12345 = vst [vmem:[#allocation22_spill] sm:$0xff] %v10282_v31  ;;  %v10284_v24 = vadd.f32 %v3328_v59, %v3215_v22  ;;  %v3656_v59 = vmul.f32 %v10224_v42, %v10224_v42  ;;  %7829 = vmatprep.subr.bf16.mxu1 %v8705_v6  ;;  %7766 = vmatpush3.bf16.msra.mxu0 %v8706_v37 }
 0x340   : > { %v3217_v62 = vpop.f32.mrf.mxu0  ;;  %v3330_v27 = vpop.f32.mrf.mxu1 }
 0x341   : > { %12346 = vst [vmem:[#allocation24_spill] sm:$0xff] %v10284_v24  ;;  %v10286_v54 = vadd.f32 %v3330_v27, %v3217_v62  ;;  %v3720_v62 = vadd.f32 %v3719_v32, %v3663_v10  ;;  %v3574_v27 = vadd.f32 %v3573_v63, %v10242_v47  ;;  %v3740_v15 = vadd.f32 %v3660_v2, %v3656_v59  ;;  %v8709_v63 = vld [vmem:[#allocation9 + $0xf0] sm:$0xff]  }
 0x342   : > { %v10288_v39 = vpop.f32.mrf.mxu0  ;;  %v10290_v43 = vpop.f32.mrf.mxu1  ;;  %v3668_v47 = vmul.f32 %v10320_v14, %v10320_v14  ;;  %v10346_v2 = vadd.f32 %v10250_v1, %v10248_v34  ;;  %v3672_v1 = vmul.f32 %v10244_v44, %v10244_v44 }
 0x343   : > { %12347 = vst [vmem:[#allocation38_spill] sm:$0xff] %v10286_v54 }
 0x344   : > { %v3223_v12 = vpop.f32.mrf.mxu0  ;;  %v3336_v57 = vpop.f32.mrf.mxu1 }
 0x345   : > { %v10300_v16 = vadd.f32 %v3336_v57, %v3223_v12  ;;  %v3593_v12 = vadd.f32 %v3592_v58, %v10234_v55  ;;  %v3664_v57 = vmul.f32 %v10234_v55, %v10234_v55 }
 0x346   : > { %v3225_v48 = vpop.f32.mrf.mxu0  ;;  %v3338_v28 = vpop.f32.mrf.mxu1 }
 0x347   : > { %12348 = vst [vmem:[#allocation39_spill] sm:$0xff] %v10300_v16  ;;  %v10307_v7 = vadd.f32 %v3338_v28, %v3225_v48  ;;  %v3721_v48 = vadd.f32 %v3720_v62, %v3667_v0  ;;  %v3575_v28 = vadd.f32 %v3574_v27, %v10246_v29  ;;  %v3594_v58 = vadd.f32 %v3593_v12, %v10320_v14  ;;  %v8710_v12 = vld [vmem:[#allocation9 + $0x30] sm:$0xff]  }
 0x348   : > { %v3227_v17 = vpop.f32.mrf.mxu0  ;;  %v3340_v33 = vpop.f32.mrf.mxu1  ;;  %v3679_v62 = vmul.f32 %v10252_v9, %v10252_v9  ;;  %v3741_v30 = vadd.f32 %v3740_v15, %v3664_v57 }
 0x349   : > { %12349 = vst [vmem:[#allocation26_spill] sm:$0xff] %v10307_v7  ;;  %v10314_v21 = vadd.f32 %v3340_v33, %v3227_v17  ;;  %v8707_v17 = vld [vmem:[#allocation9 + $0xb8] sm:$0xff]   ;;  %v8708_v33 = vld [vmem:[#allocation9 + $0x70] sm:$0xff]   ;;  %v3722_v0 = vadd.f32 %v3721_v48, %v3671_v36  ;;  %v3576_v59 = vadd.f32 %v3575_v28, %v10252_v9  ;;  %v3595_v34 = vadd.f32 %v3594_v58, %v10244_v44  ;;  %v8712_v36 = vld [vmem:[#allocation9 + $0x68] sm:$0xff]  }
 0x34a   : > { %v10322_v40 = vpop.f32.mrf.mxu0  ;;  %v10324_v22 = vpop.f32.mrf.mxu1  ;;  %7830 = vmatpush3.bf16.msra.mxu1 %v8707_v17  ;;  %7767 = vmatprep.subr.bf16.mxu0 %v8708_v33  ;;  %v3683_v28 = vmul.f32 %v10256_v45, %v10256_v45  ;;  %v3742_v57 = vadd.f32 %v3741_v30, %v3668_v47  ;;  %v3676_v58 = vmul.f32 %v10346_v2, %v10346_v2  ;;  %v8714_v30 = vld [vmem:[#allocation9 + $0x28] sm:$0xff]  }
 0x34b   : > { %12350 = vst [vmem:[#allocation34_spill] sm:$0xff] %v10314_v21  ;;  %7831 = vmatprep.subr.bf16.mxu1 %v8709_v63  ;;  %v3723_v6 = vadd.f32 %v3722_v0, %v3675_v61  ;;  %v3577_v48 = vadd.f32 %v3576_v59, %v10256_v45  ;;  %v3596_v15 = vadd.f32 %v3595_v34, %v10346_v2  ;;  %v8715_v47 = vld [vmem:[#allocation9 + $0xa8] sm:$0xff]  }
 0x34c   : > { %v10370_v33 = vadd.f32 %v10260_v23, %v10258_v52  ;;  %v3687_v0 = vmul.f32 %v10262_v60, %v10262_v60  ;;  %7768 = vmatpush3.bf16.msra.mxu0 %v8710_v12  ;;  %v3743_v34 = vadd.f32 %v3742_v57, %v3672_v1  ;;  %v3680_v52 = vmul.f32 %v10254_v49, %v10254_v49  ;;  %v8716_v23 = vld [vmem:[#allocation9 + $0x60] sm:$0xff]  }
 0x34d   : > { %v10337_v10 = vpop.f32.mrf.mxu0  ;;  %v10339_v32 = vpop.f32.mrf.mxu1  ;;  %v3724_v61 = vadd.f32 %v3723_v6, %v3679_v62  ;;  %v3578_v63 = vadd.f32 %v3577_v48, %v10262_v60  ;;  %v3597_v9 = vadd.f32 %v3596_v15, %v10254_v49  ;;  %7769 = vmatprep.subr.bf16.mxu0 %v8712_v36  ;;  %v3691_v48 = vmul.f32 %v10266_v8, %v10266_v8  ;;  %v8717_v12 = vld [vmem:[#allocation9 + $0xe0] sm:$0xff]  }
 0x34e   : > { %12351 = vst [vmem:[#allocation42_spill] sm:$0xff] %v10370_v33  ;;  %7832 = vmatpush3.bf16.msra.mxu1 %v8711_v25  ;;  %v3744_v1 = vadd.f32 %v3743_v34, %v3676_v58  ;;  %v3684_v15 = vmul.f32 %v10370_v33, %v10370_v33  ;;  %v10394_v36 = vadd.f32 %v10270_v4, %v10268_v13  ;;  %v8719_v58 = vld [vmem:[#allocation9 + $0xa0] sm:$0xff]   ;;  %v8720_v4 = vld [vmem:[#allocation9 + $0x58] sm:$0xff]  }
 0x34f   : > { %v10351_v27 = vpop.f32.mrf.mxu0  ;;  %v10353_v29 = vpop.f32.mrf.mxu1  ;;  %7833 = vmatprep.subr.bf16.mxu1 %v8713_v38  ;;  %v3725_v62 = vadd.f32 %v3724_v61, %v3683_v28  ;;  %v3579_v6 = vadd.f32 %v3578_v63, %v10266_v8  ;;  %v3598_v57 = vadd.f32 %v3597_v9, %v10370_v33  ;;  %v3695_v61 = vmul.f32 %v10272_v20, %v10272_v20  ;;  %v8718_v9 = vld [vmem:[#allocation9 + $0x20] sm:$0xff]  }
 0x350   : > { %12352 = vst [vmem:[#allocation44_spill] sm:$0xff] %v10394_v36  ;;  %7770 = vmatpush3.bf16.msra.mxu0 %v8714_v30  ;;  %v3745_v34 = vadd.f32 %v3744_v1, %v3680_v52  ;;  %v3688_v13 = vmul.f32 %v10264_v26, %v10264_v26 }
 0x351   : > { %v10361_v37 = vpop.f32.mrf.mxu0  ;;  %v10363_v17 = vpop.f32.mrf.mxu1  ;;  %v3726_v38 = vadd.f32 %v3725_v62, %v3687_v0  ;;  %v3580_v28 = vadd.f32 %v3579_v6, %v10272_v20  ;;  %v3599_v33 = vadd.f32 %v3598_v57, %v10264_v26  ;;  %7771 = vmatprep.subr.bf16.mxu0 %v8716_v23  ;;  %v3699_v6 = vmul.f32 %v10276_v46, %v10276_v46 }
 0x352   : > { %7834 = vmatpush3.bf16.msra.mxu1 %v8715_v47  ;;  %v8721_v47 = vld [vmem:[#allocation9 + $0xd8] sm:$0xff]   ;;  %v3746_v52 = vadd.f32 %v3745_v34, %v3684_v15  ;;  %v3692_v57 = vmul.f32 %v10394_v36, %v10394_v36  ;;  %v10418_v23 = vadd.f32 %v10280_v11, %v10278_v18  ;;  %v3696_v18 = vmul.f32 %v10274_v53, %v10274_v53  ;;  %v8724_v11 = vld [vmem:[#allocation9 + $0x50] sm:$0xff]  }
 0x353   : > { %v10375_v59 = vpop.f32.mrf.mxu0  ;;  %v10377_v45 = vpop.f32.mrf.mxu1  ;;  %v3727_v0 = vadd.f32 %v3726_v38, %v3691_v48  ;;  %v3581_v62 = vadd.f32 %v3580_v28, %v10276_v46  ;;  %7835 = vmatprep.subr.bf16.mxu1 %v8717_v12  ;;  %v3600_v1 = vadd.f32 %v3599_v33, %v10394_v36  ;;  %v3703_v28 = vmul.f32 %v10282_v31, %v10282_v31  ;;  %v8722_v33 = vld [vmem:[#allocation9 + $0x18] sm:$0xff]  }
 0x354   : > { %12353 = vst [vmem:[#allocation48_spill] sm:$0xff] %v10418_v23  ;;  %7772 = vmatpush3.bf16.msra.mxu0 %v8718_v9  ;;  %v8723_v15 = vld [vmem:[#allocation9 + $0x98] sm:$0xff]   ;;  %v3747_v34 = vadd.f32 %v3746_v52, %v3688_v13 }
 0x355   : > { %v10385_v60 = vpop.f32.mrf.mxu0  ;;  %v10387_v25 = vpop.f32.mrf.mxu1  ;;  %v3728_v48 = vadd.f32 %v3727_v0, %v3695_v61  ;;  %v3582_v38 = vadd.f32 %v3581_v62, %v10282_v31  ;;  %v3601_v36 = vadd.f32 %v3600_v1, %v10274_v53  ;;  %7773 = vmatprep.subr.bf16.mxu0 %v8720_v4  ;;  %v3707_v62 = vmul.f32 %v10286_v54, %v10286_v54 }
 0x356   : > { %7836 = vmatpush3.bf16.msra.mxu1 %v8719_v58  ;;  %v8725_v58 = vld [vmem:[#allocation9 + $0xd0] sm:$0xff]   ;;  %v3748_v13 = vadd.f32 %v3747_v34, %v3692_v57  ;;  %v3700_v1 = vmul.f32 %v10418_v23, %v10418_v23  ;;  %v10442_v4 = vadd.f32 %v10290_v43, %v10288_v39  ;;  %v3704_v39 = vmul.f32 %v10284_v24, %v10284_v24  ;;  %v8728_v43 = vld [vmem:[#allocation9 + $0x48] sm:$0xff]  }
 0x357   : > { %v10399_v63 = vpop.f32.mrf.mxu0  ;;  %v10401_v8 = vpop.f32.mrf.mxu1  ;;  %v3729_v61 = vadd.f32 %v3728_v48, %v3699_v6  ;;  %v3583_v0 = vadd.f32 %v3582_v38, %v10286_v54  ;;  %7837 = vmatprep.subr.bf16.mxu1 %v8721_v47  ;;  %v3602_v52 = vadd.f32 %v3601_v36, %v10418_v23  ;;  %v3711_v38 = vmul.f32 %v10300_v16, %v10300_v16  ;;  %v8726_v36 = vld [vmem:[#allocation9 + $0x10] sm:$0xff]  }
 0x358   : > { %12354 = vst [vmem:[#allocation25_spill] sm:$0xff] %v10442_v4  ;;  %7774 = vmatpush3.bf16.msra.mxu0 %v8722_v33  ;;  %v8727_v57 = vld [vmem:[#allocation9 + $0x90] sm:$0xff]   ;;  %v3749_v34 = vadd.f32 %v3748_v13, %v3696_v18 }
 0x359   : > { %v10409_v20 = vpop.f32.mrf.mxu0  ;;  %v10411_v30 = vpop.f32.mrf.mxu1  ;;  %v3730_v6 = vadd.f32 %v3729_v61, %v3703_v28  ;;  %v3584_v48 = vadd.f32 %v3583_v0, %v10300_v16  ;;  %v3603_v23 = vadd.f32 %v3602_v52, %v10284_v24  ;;  %7775 = vmatprep.subr.bf16.mxu0 %v8724_v11  ;;  %v3715_v0 = vmul.f32 %v10314_v21, %v10314_v21 }
 0x35a   : > { %7838 = vmatpush3.bf16.msra.mxu1 %v8723_v15  ;;  %v8729_v15 = vld [vmem:[#allocation9 + $0xc8] sm:$0xff]   ;;  %v3750_v18 = vadd.f32 %v3749_v34, %v3700_v1  ;;  %v3708_v52 = vmul.f32 %v10442_v4, %v10442_v4  ;;  %v10466_v11 = vadd.f32 %v10324_v22, %v10322_v40  ;;  %v8732_v34 = vld [vmem:[#allocation9 + $0x40] sm:$0xff]  }
 0x35b   : > { %v10423_v46 = vpop.f32.mrf.mxu0  ;;  %v10425_v12 = vpop.f32.mrf.mxu1  ;;  %v3731_v28 = vadd.f32 %v3730_v6, %v3707_v62  ;;  %v3585_v61 = vadd.f32 %v3584_v48, %v10314_v21  ;;  %7839 = vmatprep.subr.bf16.mxu1 %v8725_v58  ;;  %v3604_v13 = vadd.f32 %v3603_v23, %v10442_v4  ;;  %v8730_v21 = vld [vmem:[#allocation9 + $0x8] sm:$0xff]   ;;  %v3712_v23 = vmul.f32 %v10307_v7, %v10307_v7 }
 0x35c   : > { %12355 = vst [vmem:[#allocation27_spill] sm:$0xff] %v10466_v11  ;;  %7776 = vmatpush3.bf16.msra.mxu0 %v8726_v36  ;;  %v8731_v58 = vld [vmem:[#allocation9 + $0x88] sm:$0xff]   ;;  %v3751_v24 = vadd.f32 %v3750_v18, %v3704_v39  ;;  %v3716_v39 = vmul.f32 %v10466_v11, %v10466_v11 }
 0x35d   : > { %v10433_v31 = vpop.f32.mrf.mxu0  ;;  %v10435_v9 = vpop.f32.mrf.mxu1  ;;  %v3732_v62 = vadd.f32 %v3731_v28, %v3711_v38  ;;  %v3605_v1 = vadd.f32 %v3604_v13, %v10307_v7  ;;  %7777 = vmatprep.subr.bf16.mxu0 %v8728_v43  ;;  %v3586_v4 = vrot.slane %v3585_v61, 4  ;;  %v8733_v28 = vld [vmem:[#allocation9 + $0xc0] sm:$0xff]   ;;  %v10488_v7 = vadd.f32 %v10339_v32, %v10337_v10 }
 0x35e   : > { %7840 = vmatpush3.bf16.msra.mxu1 %v8727_v57  ;;  %v3752_v36 = vadd.f32 %v3751_v24, %v3708_v52  ;;  %v8734_v43 = vld [vmem:[#allocation9] sm:$0xff]   ;;  %v10492_v24 = vadd.f32 %v10363_v17, %v10361_v37  ;;  %v10502_v10 = vadd.f32 %v10387_v25, %v10385_v60  ;;  %v10506_v32 = vadd.f32 %v10353_v29, %v10351_v27 }
 0x35f   : > { %v10447_v54 = vpop.f32.mrf.mxu0  ;;  %v10449_v47 = vpop.f32.mrf.mxu1  ;;  %v3733_v40 = vadd.f32 %v3732_v62, %v3715_v0  ;;  %7841 = vmatprep.subr.bf16.mxu1 %v8729_v15  ;;  %v3606_v57 = vadd.f32 %v3605_v1, %v10466_v11  ;;  %v8735_v0 = vld [vmem:[#allocation9 + $0x80] sm:$0xff]   ;;  %v3587_v15 = vadd.f32 %v3586_v4, %v3585_v61  ;;  %v10496_v1 = vadd.f32 %v10377_v45, %v10375_v59 }
 0x360   : > { %7778 = vmatpush3.bf16.msra.mxu0 %v8730_v21  ;;  %v3753_v62 = vadd.f32 %v3752_v36, %v3712_v23  ;;  %v10510_v37 = vadd.f32 %v10401_v8, %v10399_v63  ;;  %v3657_v59 = vmul.f32 %v10488_v7, %v10488_v7  ;;  %v3661_v4 = vmul.f32 %v10492_v24, %v10492_v24 }
 0x361   : > { %v10457_v16 = vpop.f32.mrf.mxu0  ;;  %v10459_v33 = vpop.f32.mrf.mxu1  ;;  %7779 = vmatprep.subr.bf16.mxu0 %v8732_v34  ;;  %v3734_v52 = vrot.slane %v3733_v40, 4  ;;  %v3607_v11 = vrot.slane %v3606_v57, 4  ;;  %v10518_v60 = vadd.f32 %v10411_v30, %v10409_v20  ;;  %v3588_v29 = vrot.slane %v3587_v15, 2 }
 0x362   : > { %7842 = vmatpush3.bf16.msra.mxu1 %v8731_v58  ;;  %v10498_v23 = vadd.f32 %v3753_v62, %v3716_v39  ;;  %v3662_v8 = vmul.f32 %v10496_v1, %v10496_v1  ;;  %v10526_v25 = vadd.f32 %v10425_v12, %v10423_v46  ;;  %v3665_v20 = vmul.f32 %v10502_v10, %v10502_v10 }
 0x363   : > { %v10468_v6 = vpop.f32.mrf.mxu0  ;;  %v10470_v48 = vpop.f32.mrf.mxu1  ;;  %7843 = vmatprep.subr.bf16.mxu1 %v8733_v28  ;;  %v10520_v27 = vadd.f32 %v3734_v52, %v3733_v40  ;;  %v10528_v34 = vadd.f32 %v3607_v11, %v3606_v57  ;;  %v10535_v30 = vadd.f32 %v10435_v9, %v10433_v31  ;;  %v3658_v40 = vmul.f32 %v10506_v32, %v10506_v32 }
 0x364   : > { %7780 = vmatpush3.bf16.msra.mxu0 %v8734_v43  ;;  %v3613_v46 = vadd.f32 %v10492_v24, %v10488_v7  ;;  %v3666_v12 = vmul.f32 %v10510_v37, %v10510_v37  ;;  %v10545_v11 = vadd.f32 %v10449_v47, %v10447_v54  ;;  %v3761_v39 = vadd.f32 %v3661_v4, %v3657_v59 }
 0x365   : > { %v10475_v22 = vpop.f32.mrf.mxu0  ;;  %v10477_v38 = vpop.f32.mrf.mxu1  ;;  %v3634_v31 = vadd.f32 %v10496_v1, %v10506_v32  ;;  %v3669_v9 = vmul.f32 %v10518_v60, %v10518_v60  ;;  %v10553_v43 = vadd.f32 %v10459_v33, %v10457_v16  ;;  %v3670_v54 = vmul.f32 %v10526_v25, %v10526_v25 }
 0x366   : > { %7844 = vmatpush3.bf16.msra.mxu1 %v8735_v0  ;;  %v3782_v0 = vadd.f32 %v3662_v8, %v3658_v40  ;;  %v3614_v62 = vadd.f32 %v3613_v46, %v10502_v10  ;;  %v10560_v47 = vadd.f32 %v10470_v48, %v10468_v6  ;;  %v10562_v4 = vadd.f32 %v3588_v29, %v3587_v15 }
 0x367   : > { %v10482_v18 = vpop.f32.mrf.mxu0  ;;  %v10484_v13 = vpop.f32.mrf.mxu1  ;;  %v3762_v28 = vadd.f32 %v3761_v39, %v3665_v20  ;;  %v3673_v53 = vmul.f32 %v10535_v30, %v10535_v30  ;;  %v10568_v16 = vadd.f32 %v10477_v38, %v10475_v22  ;;  %v3635_v33 = vadd.f32 %v3634_v31, %v10510_v37 }
 0x368   : > { %v3783_v8 = vadd.f32 %v3782_v0, %v3666_v12  ;;  %v3615_v40 = vadd.f32 %v3614_v62, %v10518_v60  ;;  %v3674_v6 = vmul.f32 %v10545_v11, %v10545_v11  ;;  %v3677_v29 = vmul.f32 %v10553_v43, %v10553_v43 }
 0x369   : > { %v3413_v21 = vpop.f32.mrf.mxu0  ;;  %v3526_v58 = vpop.f32.mrf.mxu1  ;;  %12356 = vst [vmem:[#allocation41_spill] sm:$0xff] %v10568_v16  ;;  %v3763_v15 = vadd.f32 %v3762_v28, %v3669_v9  ;;  %v10578_v20 = vadd.f32 %v10484_v13, %v10482_v18  ;;  %v3636_v38 = vadd.f32 %v3635_v33, %v10526_v25  ;;  %v3678_v31 = vmul.f32 %v10560_v47, %v10560_v47 }
 0x36a   : > { %v10580_v22 = vadd.f32 %v3526_v58, %v3413_v21  ;;  %v3784_v12 = vadd.f32 %v3783_v8, %v3670_v54  ;;  %v3616_v39 = vadd.f32 %v3615_v40, %v10535_v30  ;;  %v3681_v9 = vmul.f32 %v10568_v16, %v10568_v16 }
 0x36b   : > { %v3415_v45 = vpop.f32.mrf.mxu0  ;;  %v3528_v17 = vpop.f32.mrf.mxu1  ;;  %v3764_v28 = vadd.f32 %v3763_v15, %v3673_v53  ;;  %v3637_v21 = vadd.f32 %v3636_v38, %v10545_v11  ;;  %v3682_v53 = vmul.f32 %v10578_v20, %v10578_v20 }
 0x36c   : > { %v10588_v26 = vadd.f32 %v3528_v17, %v3415_v45  ;;  %v3785_v58 = vadd.f32 %v3784_v12, %v3674_v6  ;;  %v3617_v54 = vadd.f32 %v3616_v39, %v10553_v43  ;;  %v3685_v15 = vmul.f32 %v10580_v22, %v10580_v22 }
 0x36d   : > { %v3419_v63 = vpop.f32.mrf.mxu0  ;;  %v3532_v61 = vpop.f32.mrf.mxu1  ;;  %v3765_v40 = vadd.f32 %v3764_v28, %v3677_v29  ;;  %v3609_v17 = vrot.slane %v10528_v34, 2 }
 0x36e   : > { %v10590_v18 = vadd.f32 %v3532_v61, %v3419_v63  ;;  %v3638_v63 = vadd.f32 %v3637_v21, %v10560_v47  ;;  %v3786_v61 = vadd.f32 %v3785_v58, %v3678_v31  ;;  %v3618_v39 = vadd.f32 %v3617_v54, %v10568_v16 }
 0x36f   : > { %v3421_v36 = vpop.f32.mrf.mxu0  ;;  %v3534_v57 = vpop.f32.mrf.mxu1  ;;  %v3766_v29 = vadd.f32 %v3765_v40, %v3681_v9  ;;  %v3686_v28 = vmul.f32 %v10588_v26, %v10588_v26  ;;  %v3610_v49 = vadd.f32 %v3609_v17, %v10528_v34 }
 0x370   : > { %12357 = vst [vmem:[#allocation43_spill] sm:$0xff] %v10590_v18  ;;  %v10599_v45 = vadd.f32 %v3534_v57, %v3421_v36  ;;  %v3689_v13 = vmul.f32 %v10590_v18, %v10590_v18  ;;  %v12359_v36 = vrot.slane %v10498_v23, 4  ;;  %v3639_v21 = vadd.f32 %v3638_v63, %v10578_v20 }
 0x371   : > { %v3423_v52 = vpop.f32.mrf.mxu0  ;;  %v3536_v59 = vpop.f32.mrf.mxu1  ;;  %v3787_v54 = vadd.f32 %v3786_v61, %v3682_v53  ;;  %v3619_v9 = vadd.f32 %v3618_v39, %v10580_v22  ;;  %v3767_v40 = vadd.f32 %v3766_v29, %v3685_v15 }
 0x372   : > { %v10603_v38 = vadd.f32 %v3536_v59, %v3423_v52  ;;  %v3756_v57 = vadd.f32 %v12359_v36, %v10498_v23  ;;  %v3690_v16 = vmul.f32 %v10599_v45, %v10599_v45 }
 0x373   : > { %v3425_v48 = vpop.f32.mrf.mxu0  ;;  %v3538_v46 = vpop.f32.mrf.mxu1  ;;  %v3788_v53 = vadd.f32 %v3787_v54, %v3686_v28  ;;  %v3620_v63 = vadd.f32 %v3619_v9, %v10590_v18  ;;  %v3768_v15 = vadd.f32 %v3767_v40, %v3689_v13  ;;  %v3611_v40 = vrot.slane %v3610_v49, 1 }
 0x374   : > { %12358 = vst [vmem:[#allocation29_spill] sm:$0xff] %v10603_v38  ;;  %v10614_v31 = vadd.f32 %v3538_v46, %v3425_v48  ;;  %v3693_v23 = vmul.f32 %v10603_v38, %v10603_v38 }
 0x375   : > { %v3429_v0 = vpop.f32.mrf.mxu0  ;;  %v3542_v62 = vpop.f32.mrf.mxu1  ;;  %v3789_v29 = vadd.f32 %v3788_v53, %v3690_v16  ;;  %v3621_v28 = vadd.f32 %v3620_v63, %v10603_v38 }
 0x376   : > { %v10616_v52 = vadd.f32 %v3542_v62, %v3429_v0  ;;  %v3640_v62 = vadd.f32 %v3639_v21, %v10588_v26  ;;  %v3694_v61 = vmul.f32 %v10614_v31, %v10614_v31  ;;  %v3769_v21 = vadd.f32 %v3768_v15, %v3693_v23 }
 0x377   : > { %v3431_v33 = vpop.f32.mrf.mxu0  ;;  %v3544_v8 = vpop.f32.mrf.mxu1 }
 0x378   : > { %12360 = vst [vmem:[#allocation35_spill] sm:$0xff] %v10616_v52  ;;  %v10624_v36 = vadd.f32 %v3544_v8, %v3431_v33  ;;  %v3697_v34 = vmul.f32 %v10616_v52, %v10616_v52  ;;  %v3641_v39 = vadd.f32 %v3640_v62, %v10599_v45  ;;  %v3790_v16 = vadd.f32 %v3789_v29, %v3694_v61 }
 0x379   : > { %v3433_v6 = vpop.f32.mrf.mxu0  ;;  %v3546_v12 = vpop.f32.mrf.mxu1 }
 0x37a   : > { %v10626_v48 = vadd.f32 %v3546_v12, %v3433_v6  ;;  %v3757_v12 = vrot.slane %v3756_v57, 2  ;;  %v3698_v13 = vmul.f32 %v10624_v36, %v10624_v36  ;;  %v3770_v53 = vadd.f32 %v3769_v21, %v3697_v34 }
 0x37b   : > { %v3435_v59 = vpop.f32.mrf.mxu0  ;;  %v3548_v58 = vpop.f32.mrf.mxu1 }
 0x37c   : > { %12361 = vst [vmem:[#allocation46_spill] sm:$0xff] %v10626_v48  ;;  %v10634_v17 = vadd.f32 %v3548_v58, %v3435_v59  ;;  %v3701_v54 = vmul.f32 %v10626_v48, %v10626_v48 }
 0x37d   : > { %v3439_v46 = vpop.f32.mrf.mxu0  ;;  %v3552_v0 = vpop.f32.mrf.mxu1 }
 0x37e   : > { %12362 = vst [vmem:[#allocation28_spill] sm:$0xff] %v10634_v17  ;;  %v10636_v33 = vadd.f32 %v3552_v0, %v3439_v46  ;;  %v3642_v46 = vadd.f32 %v3641_v39, %v10614_v31  ;;  %v3622_v0 = vadd.f32 %v3621_v28, %v10616_v52  ;;  %v3702_v23 = vmul.f32 %v10634_v17, %v10634_v17 }
 0x37f   : > { %v3441_v8 = vpop.f32.mrf.mxu0  ;;  %v3554_v6 = vpop.f32.mrf.mxu1  ;;  %v3791_v28 = vadd.f32 %v3790_v16, %v3698_v13  ;;  %v12368_v13 = vrot.slane %v10520_v27, 2 }
 0x380   : > { %12363 = vst [vmem:[#allocation30_spill] sm:$0xff] %v10636_v33  ;;  %v10644_v9 = vadd.f32 %v3554_v6, %v3441_v8  ;;  %v3705_v63 = vmul.f32 %v10636_v33, %v10636_v33  ;;  %v3758_v6 = vadd.f32 %v3757_v12, %v3756_v57  ;;  %v3643_v38 = vadd.f32 %v3642_v46, %v10624_v36 }
 0x381   : > { %v3443_v59 = vpop.f32.mrf.mxu0  ;;  %v3556_v58 = vpop.f32.mrf.mxu1  ;;  %v3623_v18 = vadd.f32 %v3622_v0, %v10626_v48  ;;  %v3792_v0 = vadd.f32 %v3791_v28, %v3702_v23 }
 0x382   : > { %12364 = vst [vmem:[#allocation45_spill] sm:$0xff] %v10644_v9  ;;  %v10648_v62 = vadd.f32 %v3556_v58, %v3443_v59  ;;  %v3771_v59 = vadd.f32 %v3770_v53, %v3701_v54  ;;  %v3706_v61 = vmul.f32 %v10644_v9, %v10644_v9  ;;  %v3590_v58 = vrot.slane %v10562_v4, 1 }
 0x383   : > { %v3445_v15 = vpop.f32.mrf.mxu0  ;;  %v3558_v8 = vpop.f32.mrf.mxu1  ;;  %v3644_v57 = vadd.f32 %v3643_v38, %v10634_v17  ;;  %v3624_v12 = vadd.f32 %v3623_v18, %v10636_v33  ;;  %v3737_v54 = vadd.f32 %v12368_v13, %v10520_v27 }
 0x384   : > { %12365 = vst [vmem:[#allocation47_spill] sm:$0xff] %v10648_v62  ;;  %v10656_v39 = vadd.f32 %v3558_v8, %v3445_v15  ;;  %v3709_v34 = vmul.f32 %v10648_v62, %v10648_v62  ;;  %v3772_v16 = vadd.f32 %v3771_v59, %v3705_v63  ;;  %v3793_v33 = vadd.f32 %v3792_v0, %v3706_v61 }
 0x385   : > { %v3449_v29 = vpop.f32.mrf.mxu0  ;;  %v3562_v21 = vpop.f32.mrf.mxu1  ;;  %v3645_v48 = vadd.f32 %v3644_v57, %v10644_v9  ;;  %v3625_v52 = vadd.f32 %v3624_v12, %v10648_v62  ;;  %v3591_v12 = vadd.f32 %v3590_v58, %v10562_v4  ;;  %v3738_v62 = vrot.slane %v3737_v54, 1 }
 0x386   : > { %12366 = vst [vmem:[#allocation49_spill] sm:$0xff] %v10656_v39  ;;  %v10665_v46 = vadd.f32 %v3562_v21, %v3449_v29  ;;  %v3710_v53 = vmul.f32 %v10656_v39, %v10656_v39  ;;  %v3612_v29 = vadd.f32 %v3611_v40, %v3610_v49  ;;  %v3759_v21 = vrot.slane %v3758_v6, 1 }
 0x387   : > { %v3451_v15 = vpop.f32.mrf.mxu0  ;;  %v3564_v8 = vpop.f32.mrf.mxu1  ;;  %v3773_v27 = vadd.f32 %v3772_v16, %v3709_v34  ;;  %v3646_v28 = vadd.f32 %v3645_v48, %v10656_v39 }
 0x388   : > { %12367 = vst [vmem:[#allocation50_spill] sm:$0xff] %v10665_v46  ;;  %v3713_v18 = vmul.f32 %v10665_v46, %v10665_v46  ;;  %v10676_v38 = vadd.f32 %v3564_v8, %v3451_v15  ;;  %v3626_v59 = vadd.f32 %v3625_v52, %v10665_v46  ;;  %v3794_v15 = vadd.f32 %v3793_v33, %v3710_v53 }
 0x389   : > { %v3453_v23 = vpop.f32.mrf.mxu0  ;;  %v3566_v63 = vpop.f32.mrf.mxu1  ;;  %v3760_v0 = vadd.f32 %v3759_v21, %v3758_v6  ;;  %v10691_v16 = vmul.f32 0.0078125, %v3612_v29  ;;  %v3739_v53 = vadd.f32 %v3738_v62, %v3737_v54 }
 0x38a   : > { %12369 = vst [vmem:[#allocation51_spill] sm:$0xff] %v10676_v38  ;;  %v3714_v57 = vmul.f32 %v10676_v38, %v10676_v38  ;;  %v10682_v13 = vadd.f32 %v3566_v63, %v3453_v23  ;;  %v3774_v8 = vadd.f32 %v3773_v27, %v3713_v18  ;;  %v3647_v61 = vadd.f32 %v3646_v28, %v10676_v38 }
 0x38b   : > { %v3455_v49 = vpop.f32.mrf.mxu0  ;;  %v3568_v40 = vpop.f32.mrf.mxu1  ;;  %v10696_v18 = vmul.f32 0.0078125, %v3591_v12  ;;  %v3812_v6 = vmul.f32 %v10691_v16, %v10691_v16 }
 0x38c   : > { %12370 = vst [vmem:[#allocation52_spill] sm:$0xff] %v10682_v13  ;;  %v3627_v34 = vadd.f32 %v3626_v59, %v10682_v13  ;;  %v3717_v48 = vmul.f32 %v10682_v13, %v10682_v13  ;;  %v10689_v52 = vadd.f32 %v3568_v40, %v3455_v49  ;;  %v3795_v23 = vadd.f32 %v3794_v15, %v3714_v57 }
 0x38d   : > { %v3808_v49 = vmul.f32 0.0078125, %v3760_v0  ;;  %v3811_v40 = vmul.f32 %v10696_v18, %v10696_v18 }
 0x38e   : > { %12371 = vst [vmem:[#allocation53_spill] sm:$0xff] %v10689_v52  ;;  %v3628_v63 = vrot.slane %v3627_v34, 4  ;;  %v3775_v4 = vadd.f32 %v3774_v8, %v3717_v48  ;;  %v3648_v33 = vadd.f32 %v3647_v61, %v10689_v52  ;;  %v3718_v58 = vmul.f32 %v10689_v52, %v10689_v52 }
 0x38f   : > { %v3807_v8 = vmul.f32 0.0078125, %v3739_v53 }
 0x390   : > { %v3629_v27 = vadd.f32 %v3628_v63, %v3627_v34  ;;  %v3776_v28 = vrot.slane %v3775_v4, 4  ;;  %v3649_v59 = vrot.slane %v3648_v33, 4  ;;  %v3796_v13 = vadd.f32 %v3795_v23, %v3718_v58 }
 0x391   : > { %v3816_v34 = vsub.f32 %v3808_v49, %v3812_v6  ;;  %v3815_v58 = vsub.f32 %v3807_v8, %v3811_v40 }
 0x392   : > { %v3630_v29 = vrot.slane %v3629_v27, 2  ;;  %v3777_v21 = vadd.f32 %v3776_v28, %v3775_v4  ;;  %v3650_v57 = vadd.f32 %v3649_v59, %v3648_v33  ;;  %v3797_v15 = vrot.slane %v3796_v13, 4 }
 0x393   : > { %v3820_v33 = vmax.f32 %v3816_v34, 0.0  ;;  %v3819_v9 = vmax.f32 %v3815_v58, 0.0 }
 0x394   : > { %v3631_v61 = vadd.f32 %v3630_v29, %v3629_v27  ;;  %v3778_v62 = vrot.slane %v3777_v21, 2  ;;  %v3651_v54 = vrot.slane %v3650_v57, 2  ;;  %v3798_v12 = vadd.f32 %v3797_v15, %v3796_v13 }
 0x395   : > { %v3828_v49 = vadd.f32 1e-05, %v3820_v33  ;;  %v3827_v15 = vadd.f32 1e-05, %v3819_v9 }
 0x396   : > { %v3632_v48 = vrot.slane %v3631_v61, 1  ;;  %v3779_v63 = vadd.f32 %v3778_v62, %v3777_v21  ;;  %v3652_v23 = vadd.f32 %v3651_v54, %v3650_v57  ;;  %v3799_v0 = vrot.slane %v3798_v12, 2 }
 0x397   : > { %8774 = vrsqrt.f32 %v3828_v49 }
 0x398   : > { %v3633_v46 = vadd.f32 %v3632_v48, %v3631_v61  ;;  %v3780_v38 = vrot.slane %v3779_v63, 1  ;;  %v3653_v52 = vrot.slane %v3652_v23, 1  ;;  %v3800_v4 = vadd.f32 %v3799_v0, %v3798_v12 }
 0x399   : > { %8776 = vrsqrt.f32 %v3827_v15 }
 0x39a   : > { %v3781_v28 = vadd.f32 %v3780_v38, %v3779_v63  ;;  %v3805_v53 = vmul.f32 0.0078125, %v3633_v46  ;;  %v3654_v59 = vadd.f32 %v3653_v52, %v3652_v23  ;;  %v3801_v39 = vrot.slane %v3800_v4, 1  ;;  %v3824_v63 = vld [vmem:[#allocation4 + $0x1] ss:$8 sm:$0xf] }
 0x39c   : > { %v3809_v27 = vmul.f32 0.0078125, %v3781_v28  ;;  %v3813_v29 = vmul.f32 %v3805_v53, %v3805_v53  ;;  %v3802_v17 = vadd.f32 %v3801_v39, %v3800_v4  ;;  %v3806_v13 = vmul.f32 0.0078125, %v3654_v59 }
 0x39e   : > { %v3817_v6 = vsub.f32 %v3809_v27, %v3813_v29  ;;  %v3810_v21 = vmul.f32 0.0078125, %v3802_v17  ;;  %v3814_v57 = vmul.f32 %v3806_v13, %v3806_v13 }
 0x3a0   : > { %v3821_v8 = vmax.f32 %v3817_v6, 0.0  ;;  %v3818_v40 = vsub.f32 %v3810_v21, %v3814_v57 }
 0x3a2   : > { %v3829_v61 = vadd.f32 1e-05, %v3821_v8  ;;  %v3822_v62 = vmax.f32 %v3818_v40, 0.0 }
 0x3a4   : > { %v3830_v38 = vadd.f32 1e-05, %v3822_v62  ;;  %8778 = vrsqrt.f32 %v3829_v61  ;;  %v8775_v46 = vpop.eup %8774  ;;  %v3826_v61 = vld [vmem:[#allocation4 + $0x24] ss:$8 sm:$0xf] }
 0x3a6   : > { %8780 = vrsqrt.f32 %v3830_v38  ;;  %v8777_v52 = vpop.eup %8776 }
 0x3a7   : > { %v3839_v12 = vcombine.low %v8777_v52, %v8775_v46  ;;  %v12372_v46 = vld [vmem:[#allocation17_spill] sm:$0xff]  ;;  %v12373_v52 = vld [vmem:[#allocation31_spill] sm:$0xff] }
 0x3a9   : > { %v3847_v48 = vrot.slane %v3839_v12, %v9834_v50 }
 0x3b1   : > { %v8779_v54 = vpop.eup %8778 }
 0x3b3   : > { %v8781_v39 = vpop.eup %8780 }
 0x3b4   : > { %v3840_v34 = vcombine.low %v8779_v54, %v8781_v39  ;;  %v12374_v39 = vld [vmem:[#allocation16_spill] sm:$0xff] }
 0x3b6   : > { %v3854_v17 = vrot.slane %v3840_v34, %v9834_v50 }
 0x3b8   : > { %v3855_v9 = vcombine.low %v3847_v48, %v3854_v17  ;;  %v12375_v48 = vld [vmem:[#allocation18_spill] sm:$0xff] }
 0x3ba   : > { %v3862_v23 = vrot.slane %v3855_v9, %v9834_v50 }
 0x3bc   : > { %v3864_v0 = vmul.f32 %v3862_v23, %v3824_v63 }
 0x3be   : > { %v10706_v58 = vrot.slane %v3864_v0, %v9838_v51  ;;  %v10709_v4 = vrot.slane %v3864_v0, %v9841_v35  ;;  %v10712_v33 = vrot.slane %v3864_v0, %v9843_v5  ;;  %v10715_v28 = vrot.slane %v3864_v0, %v9845_v56 }
 0x3c0   : > { %v3886_v59 = vmul.f32 %v10706_v58, %v10696_v18  ;;  %v3887_v27 = vmul.f32 %v10709_v4, %v10691_v16  ;;  %v3888_v29 = vmul.f32 %v10712_v33, %v3805_v53  ;;  %v3889_v49 = vmul.f32 %v10715_v28, %v3806_v13 }
 0x3c1   : > { %v3921_v40 = vmul.f32 %v10709_v4, %v10224_v42  ;;  %v3925_v18 = vmul.f32 %v10709_v4, %v10298_v41  ;;  %v3923_v16 = vmul.f32 %v10715_v28, %v10506_v32  ;;  %v3927_v53 = vmul.f32 %v10715_v28, %v10496_v1 }
 0x3c2   : > { %v3894_v6 = vcombine.low %v3886_v59, %v3887_v27  ;;  %v3895_v21 = vcombine.low %v3888_v29, %v3889_v49  ;;  %v3920_v13 = vmul.f32 %v10706_v58, %v10222_v3  ;;  %v3924_v62 = vmul.f32 %v10706_v58, %v10226_v19 }
 0x3c3   : > { %v3922_v38 = vmul.f32 %v10712_v33, %v10488_v7  ;;  %v3926_v41 = vmul.f32 %v10712_v33, %v10492_v24  ;;  %v3929_v32 = vmul.f32 %v10709_v4, %v10234_v55  ;;  %v3933_v1 = vmul.f32 %v10709_v4, %v10320_v14 }
 0x3c4   : > { %v3902_v57 = vrot.slane %v3894_v6, %v9834_v50  ;;  %v3909_v15 = vrot.slane %v3895_v21, %v9834_v50  ;;  %v3931_v3 = vmul.f32 %v10715_v28, %v10510_v37  ;;  %v3935_v19 = vmul.f32 %v10715_v28, %v10526_v25 }
 0x3c5   : > { %v3928_v7 = vmul.f32 %v10706_v58, %v12372_v46  ;;  %v3930_v24 = vmul.f32 %v10712_v33, %v10502_v10  ;;  %v3934_v55 = vmul.f32 %v10712_v33, %v10518_v60  ;;  %v3937_v14 = vmul.f32 %v10709_v4, %v10244_v44 }
 0x3c6   : > { %v3910_v8 = vcombine.low %v3902_v57, %v3909_v15  ;;  %v3941_v37 = vmul.f32 %v10709_v4, %v10346_v2  ;;  %v3939_v25 = vmul.f32 %v10715_v28, %v10545_v11  ;;  %v3943_v12 = vmul.f32 %v10715_v28, %v10560_v47 }
 0x3c7   : > { %v3936_v34 = vmul.f32 %v10706_v58, %v12374_v39  ;;  %v3940_v11 = vmul.f32 %v10706_v58, %v12375_v48  ;;  %v3938_v47 = vmul.f32 %v10712_v33, %v10535_v30  ;;  %v3942_v17 = vmul.f32 %v10712_v33, %v10553_v43 }
 0x3c8   : > { %v3917_v42 = vrot.slane %v3910_v8, %v9834_v50  ;;  %v3932_v50 = vmul.f32 %v10706_v58, %v12373_v52 }
 0x3ca   : > { %v3919_v54 = vsub.f32 %v3826_v61, %v3917_v42 }
 0x3cc   : > { %v10769_v10 = vrot.slane %v3919_v54, %v9838_v51  ;;  %v10772_v60 = vrot.slane %v3919_v54, %v9841_v35  ;;  %v10775_v44 = vrot.slane %v3919_v54, %v9843_v5  ;;  %v10778_v2 = vrot.slane %v3919_v54, %v9845_v56  ;;  %v12376_v51 = vld [vmem:[#allocation32_spill] sm:$0xff] }
 0x3cd   : > { %v3945_v9 = vmul.f32 %v10709_v4, %v12376_v51 }
 0x3ce   : > { %v4006_v35 = vadd.f32 %v10772_v60, %v3921_v40  ;;  %v4010_v5 = vadd.f32 %v10772_v60, %v3925_v18  ;;  %v4008_v63 = vadd.f32 %v10778_v2, %v3923_v16  ;;  %v4012_v56 = vadd.f32 %v10778_v2, %v3927_v53 }
 0x3cf   : > { %v4005_v23 = vadd.f32 %v10769_v10, %v3920_v13  ;;  %v4009_v0 = vadd.f32 %v10769_v10, %v3924_v62  ;;  %v4007_v30 = vadd.f32 %v10775_v44, %v3922_v38  ;;  %v4011_v59 = vadd.f32 %v10775_v44, %v3926_v41 }
 0x3d0   : > { %v4070_v43 = vmax.f32 %v4006_v35, 0.0  ;;  %v4074_v27 = vmax.f32 %v4010_v5, 0.0  ;;  %v4072_v29 = vmax.f32 %v4008_v63, 0.0  ;;  %v4076_v49 = vmax.f32 %v4012_v56, 0.0 }
 0x3d1   : > { %v4069_v6 = vmax.f32 %v4005_v23, 0.0  ;;  %v4073_v21 = vmax.f32 %v4009_v0, 0.0  ;;  %v4071_v57 = vmax.f32 %v4007_v30, 0.0  ;;  %v4075_v15 = vmax.f32 %v4011_v59, 0.0  ;;  %v12377_v23 = vld [vmem:[#allocation42_spill] sm:$0xff] }
 0x3d2   : > { %v4134_v8 = vpack.c.bf16 %v4074_v27, %v4070_v43  ;;  %v4136_v40 = vpack.c.bf16 %v4076_v49, %v4072_v29  ;;  %v4014_v18 = vadd.f32 %v10772_v60, %v3929_v32  ;;  %v4018_v16 = vadd.f32 %v10772_v60, %v3933_v1 }
 0x3d3   : > { %v4133_v61 = vpack.c.bf16 %v4073_v21, %v4069_v6  ;;  %v4135_v53 = vpack.c.bf16 %v4075_v15, %v4071_v57  ;;  %v4016_v13 = vadd.f32 %v10778_v2, %v3931_v3  ;;  %v4020_v62 = vadd.f32 %v10778_v2, %v3935_v19 }
 0x3d4   : > { %4453 = vmatprep.mubr.bf16.mxu0 %v4134_v8  ;;  %4550 = vmatprep.mubr.bf16.mxu1 %v4136_v40  ;;  %v4078_v38 = vmax.f32 %v4014_v18, 0.0  ;;  %v4082_v42 = vmax.f32 %v4018_v16, 0.0  ;;  %v4013_v41 = vadd.f32 %v10769_v10, %v3928_v7  ;;  %v4017_v46 = vadd.f32 %v10769_v10, %v3932_v50  ;;  %v12378_v40 = vld [vmem:[#allocation20_spill] sm:$0xff]  ;;  %v12379_v18 = vld [vmem:[#allocation19_spill] sm:$0xff] }
 0x3d5   : > { %4454 = vmatmul.mubr.bf16.vlgmr.msra.gmra.mxu0 %v4133_v61  ;;  %4551 = vmatmul.mubr.bf16.vlgmr.msra.gmra.mxu1 %v4135_v53  ;;  %v4080_v52 = vmax.f32 %v4016_v13, 0.0  ;;  %v4084_v32 = vmax.f32 %v4020_v62, 0.0  ;;  %v4015_v1 = vadd.f32 %v10775_v44, %v3930_v24  ;;  %v4019_v54 = vadd.f32 %v10775_v44, %v3934_v55  ;;  %v12380_v13 = vld [vmem:[#allocation41_spill] sm:$0xff] }
 0x3d6   : > { %v4138_v39 = vpack.c.bf16 %v4082_v42, %v4078_v38  ;;  %v4077_v3 = vmax.f32 %v4013_v41, 0.0  ;;  %v4081_v48 = vmax.f32 %v4017_v46, 0.0  ;;  %v4022_v19 = vadd.f32 %v10772_v60, %v3937_v14  ;;  %v12381_v42 = vld [vmem:[#allocation36_spill] sm:$0xff] }
 0x3d7   : > { %v4140_v51 = vpack.c.bf16 %v4084_v32, %v4080_v52  ;;  %v4079_v35 = vmax.f32 %v4015_v1, 0.0  ;;  %v4083_v5 = vmax.f32 %v4019_v54, 0.0  ;;  %v4026_v7 = vadd.f32 %v10772_v60, %v3941_v37  ;;  %v12382_v46 = vld [vmem:[#allocation44_spill] sm:$0xff] }
 0x3d8   : > { %4461 = vmatprep.mubr.bf16.mxu0 %v4138_v39  ;;  %v4086_v50 = vmax.f32 %v4022_v19, 0.0  ;;  %v4024_v63 = vadd.f32 %v10778_v2, %v3939_v25  ;;  %v4028_v56 = vadd.f32 %v10778_v2, %v3943_v12  ;;  %v3949_v24 = vmul.f32 %v10709_v4, %v12377_v23  ;;  %v12384_v23 = vld [vmem:[#allocation37_spill] sm:$0xff] }
 0x3d9   : > { %4558 = vmatprep.mubr.bf16.mxu1 %v4140_v51  ;;  %v4090_v55 = vmax.f32 %v4026_v7, 0.0  ;;  %v4021_v0 = vadd.f32 %v10769_v10, %v3936_v34  ;;  %v4025_v14 = vadd.f32 %v10769_v10, %v3940_v11  ;;  %v3947_v30 = vmul.f32 %v10715_v28, %v10578_v20 }
 0x3da   : > { %v4088_v59 = vmax.f32 %v4024_v63, 0.0  ;;  %v4092_v37 = vmax.f32 %v4028_v56, 0.0  ;;  %v4023_v43 = vadd.f32 %v10775_v44, %v3938_v47  ;;  %v4027_v25 = vadd.f32 %v10775_v44, %v3942_v17 }
 0x3db   : > { %v4137_v27 = vpack.c.bf16 %v4081_v48, %v4077_v3  ;;  %v4139_v12 = vpack.c.bf16 %v4083_v5, %v4079_v35  ;;  %v4030_v29 = vadd.f32 %v10772_v60, %v3945_v9  ;;  %v3951_v49 = vmul.f32 %v10715_v28, %v10588_v26 }
 0x3dc   : > { %v4142_v6 = vpack.c.bf16 %v4090_v55, %v4086_v50  ;;  %v4144_v34 = vpack.c.bf16 %v4092_v37, %v4088_v59  ;;  %v4034_v11 = vadd.f32 %v10772_v60, %v3949_v24  ;;  %v4032_v20 = vadd.f32 %v10778_v2, %v3947_v30  ;;  %v12383_v50 = vld [vmem:[#allocation21_spill] sm:$0xff]  ;;  %v12385_v55 = vld [vmem:[#allocation43_spill] sm:$0xff] }
 0x3dd   : > { %4462 = vmatmul.mubr.bf16.gmra.mxu0 %v4137_v27  ;;  %4559 = vmatmul.mubr.bf16.gmra.mxu1 %v4139_v12  ;;  %v4036_v21 = vadd.f32 %v10778_v2, %v3951_v49  ;;  %v4085_v47 = vmax.f32 %v4021_v0, 0.0  ;;  %v4089_v17 = vmax.f32 %v4025_v14, 0.0  ;;  %v4087_v57 = vmax.f32 %v4023_v43, 0.0  ;;  %v12386_v14 = vld [vmem:[#allocation29_spill] sm:$0xff] }
 0x3de   : > { %4469 = vmatprep.mubr.bf16.mxu0 %v4142_v6  ;;  %4566 = vmatprep.mubr.bf16.mxu1 %v4144_v34  ;;  %v4091_v15 = vmax.f32 %v4027_v25, 0.0  ;;  %v4094_v9 = vmax.f32 %v4030_v29, 0.0  ;;  %v4098_v8 = vmax.f32 %v4034_v11, 0.0  ;;  %v3944_v26 = vmul.f32 %v10706_v58, %v12378_v40  ;;  %v12387_v49 = vld [vmem:[#allocation33_spill] sm:$0xff] }
 0x3df   : > { %v3948_v16 = vmul.f32 %v10706_v58, %v12379_v18  ;;  %v4096_v61 = vmax.f32 %v4032_v20, 0.0  ;;  %v4100_v53 = vmax.f32 %v4036_v21, 0.0  ;;  %v3946_v62 = vmul.f32 %v10712_v33, %v12380_v13  ;;  %v12388_v21 = vld [vmem:[#allocation48_spill] sm:$0xff] }
 0x3e0   : > { %v3950_v38 = vmul.f32 %v10712_v33, %v10580_v22  ;;  %v3953_v41 = vmul.f32 %v10709_v4, %v12381_v42  ;;  %v3957_v52 = vmul.f32 %v10709_v4, %v12382_v46  ;;  %v3955_v32 = vmul.f32 %v10715_v28, %v10599_v45 }
 0x3e1   : > { %v3959_v1 = vmul.f32 %v10715_v28, %v10614_v31  ;;  %v4141_v54 = vpack.c.bf16 %v4089_v17, %v4085_v47  ;;  %v4143_v39 = vpack.c.bf16 %v4091_v15, %v4087_v57  ;;  %v4029_v3 = vadd.f32 %v10769_v10, %v3944_v26 }
 0x3e2   : > { %v4033_v48 = vadd.f32 %v10769_v10, %v3948_v16  ;;  %v4146_v19 = vpack.c.bf16 %v4098_v8, %v4094_v9  ;;  %v4031_v22 = vadd.f32 %v10775_v44, %v3946_v62  ;;  %v4035_v51 = vadd.f32 %v10775_v44, %v3950_v38  ;;  %v12389_v9 = vld [vmem:[#allocation28_spill] sm:$0xff]  ;;  %v12390_v38 = vld [vmem:[#allocation23_spill] sm:$0xff] }
 0x3e3   : > { %v4038_v35 = vadd.f32 %v10772_v60, %v3953_v41  ;;  %v4148_v5 = vpack.c.bf16 %v4100_v53, %v4096_v61  ;;  %v4042_v7 = vadd.f32 %v10772_v60, %v3957_v52  ;;  %v4040_v45 = vadd.f32 %v10778_v2, %v3955_v32 }
 0x3e4   : > { %v4044_v31 = vadd.f32 %v10778_v2, %v3959_v1  ;;  %v3952_v63 = vmul.f32 %v10706_v58, %v12383_v50  ;;  %v4093_v56 = vmax.f32 %v4029_v3, 0.0  ;;  %v3956_v24 = vmul.f32 %v10706_v58, %v12384_v23  ;;  %v12395_v50 = vld [vmem:[#allocation25_spill] sm:$0xff] }
 0x3e5   : > { %4470 = vmatmul.mubr.bf16.gmra.mxu0 %v4141_v54  ;;  %4567 = vmatmul.mubr.bf16.gmra.mxu1 %v4143_v39  ;;  %v3954_v0 = vmul.f32 %v10712_v33, %v12385_v55  ;;  %v3958_v30 = vmul.f32 %v10712_v33, %v12386_v14  ;;  %v4097_v59 = vmax.f32 %v4033_v48, 0.0  ;;  %v4095_v37 = vmax.f32 %v4031_v22, 0.0  ;;  %v12392_v48 = vld [vmem:[#allocation35_spill] sm:$0xff] }
 0x3e6   : > { %4477 = vmatprep.mubr.bf16.mxu0 %v4146_v19  ;;  %4574 = vmatprep.mubr.bf16.mxu1 %v4148_v5  ;;  %v4099_v43 = vmax.f32 %v4035_v51, 0.0  ;;  %v4102_v25 = vmax.f32 %v4038_v35, 0.0  ;;  %v4106_v27 = vmax.f32 %v4042_v7, 0.0  ;;  %v4104_v12 = vmax.f32 %v4040_v45, 0.0  ;;  %v12393_v35 = vld [vmem:[#allocation46_spill] sm:$0xff]  ;;  %v12394_v7 = vld [vmem:[#allocation24_spill] sm:$0xff] }
 0x3e7   : > { %v4108_v29 = vmax.f32 %v4044_v31, 0.0  ;;  %v3961_v6 = vmul.f32 %v10709_v4, %v12387_v49  ;;  %v4037_v34 = vadd.f32 %v10769_v10, %v3952_v63  ;;  %v4041_v11 = vadd.f32 %v10769_v10, %v3956_v24  ;;  %v12397_v24 = vld [vmem:[#allocation49_spill] sm:$0xff] }
 0x3e8   : > { %v4039_v20 = vadd.f32 %v10775_v44, %v3954_v0  ;;  %v3965_v47 = vmul.f32 %v10709_v4, %v12388_v21  ;;  %v4043_v17 = vadd.f32 %v10775_v44, %v3958_v30  ;;  %v3963_v15 = vmul.f32 %v10715_v28, %v10624_v36  ;;  %v12391_v36 = vld [vmem:[#allocation40_spill] sm:$0xff] }
 0x3e9   : > { %v4046_v57 = vadd.f32 %v10772_v60, %v3961_v6  ;;  %v3967_v8 = vmul.f32 %v10715_v28, %v12389_v9  ;;  %v4145_v40 = vpack.c.bf16 %v4097_v59, %v4093_v56  ;;  %v4147_v26 = vpack.c.bf16 %v4099_v43, %v4095_v37  ;;  %v12396_v56 = vld [vmem:[#allocation45_spill] sm:$0xff] }
 0x3ea   : > { %v4050_v18 = vadd.f32 %v10772_v60, %v3965_v47  ;;  %v4150_v16 = vpack.c.bf16 %v4106_v27, %v4102_v25  ;;  %v4152_v61 = vpack.c.bf16 %v4108_v29, %v4104_v12  ;;  %v4048_v53 = vadd.f32 %v10778_v2, %v3963_v15  ;;  %v12399_v47 = vld [vmem:[#allocation38_spill] sm:$0xff] }
 0x3eb   : > { %v4052_v13 = vadd.f32 %v10778_v2, %v3967_v8  ;;  %v4101_v62 = vmax.f32 %v4037_v34, 0.0  ;;  %v3960_v42 = vmul.f32 %v10706_v58, %v12390_v38  ;;  %v3964_v41 = vmul.f32 %v10706_v58, %v12391_v36  ;;  %v12400_v8 = vld [vmem:[#allocation30_spill] sm:$0xff] }
 0x3ec   : > { %v4105_v46 = vmax.f32 %v4041_v11, 0.0  ;;  %v4103_v52 = vmax.f32 %v4039_v20, 0.0  ;;  %v4107_v32 = vmax.f32 %v4043_v17, 0.0  ;;  %v4110_v1 = vmax.f32 %v4046_v57, 0.0  ;;  %v12398_v20 = vld [vmem:[#allocation22_spill] sm:$0xff] }
 0x3ed   : > { %4478 = vmatmul.mubr.bf16.gmra.mxu0 %v4145_v40  ;;  %4575 = vmatmul.mubr.bf16.gmra.mxu1 %v4147_v26  ;;  %v4114_v54 = vmax.f32 %v4050_v18, 0.0  ;;  %v4045_v39 = vadd.f32 %v10769_v10, %v3960_v42  ;;  %v4049_v3 = vadd.f32 %v10769_v10, %v3964_v41  ;;  %v3962_v19 = vmul.f32 %v10712_v33, %v12392_v48  ;;  %v12401_v26 = vld [vmem:[#allocation47_spill] sm:$0xff]  ;;  %v12403_v42 = vld [vmem:[#allocation26_spill] sm:$0xff] }
 0x3ee   : > { %4485 = vmatprep.mubr.bf16.mxu0 %v4150_v16  ;;  %4582 = vmatprep.mubr.bf16.mxu1 %v4152_v61  ;;  %v4112_v22 = vmax.f32 %v4048_v53, 0.0  ;;  %v4116_v51 = vmax.f32 %v4052_v13, 0.0  ;;  %v3966_v5 = vmul.f32 %v10712_v33, %v12393_v35  ;;  %v3969_v45 = vmul.f32 %v10709_v4, %v12394_v7  ;;  %v12402_v16 = vld [vmem:[#allocation53_spill] sm:$0xff]  ;;  %v12404_v41 = vld [vmem:[#allocation27_spill] sm:$0xff] }
 0x3ef   : > { %v4047_v31 = vadd.f32 %v10775_v44, %v3962_v19  ;;  %v3973_v63 = vmul.f32 %v10709_v4, %v12395_v50  ;;  %v3971_v23 = vmul.f32 %v10715_v28, %v12396_v56  ;;  %v3975_v55 = vmul.f32 %v10715_v28, %v12397_v24  ;;  %v12408_v24 = vld [vmem:[#allocation50_spill] sm:$0xff] }
 0x3f0   : > { %v4149_v0 = vpack.c.bf16 %v4105_v46, %v4101_v62  ;;  %v4051_v14 = vadd.f32 %v10775_v44, %v3966_v5  ;;  %v4054_v30 = vadd.f32 %v10772_v60, %v3969_v45  ;;  %v4151_v59 = vpack.c.bf16 %v4107_v32, %v4103_v52  ;;  %v12405_v52 = vld [vmem:[#allocation51_spill] sm:$0xff] }
 0x3f1   : > { %v4058_v37 = vadd.f32 %v10772_v60, %v3973_v63  ;;  %v4056_v43 = vadd.f32 %v10778_v2, %v3971_v23  ;;  %v4060_v25 = vadd.f32 %v10778_v2, %v3975_v55  ;;  %v4154_v27 = vpack.c.bf16 %v4114_v54, %v4110_v1  ;;  %v12406_v63 = vld [vmem:[#allocation39_spill] sm:$0xff]  ;;  %v12409_v55 = vld [vmem:[#allocation52_spill] sm:$0xff] }
 0x3f2   : > { %v4156_v12 = vpack.c.bf16 %v4116_v51, %v4112_v22  ;;  %v4109_v29 = vmax.f32 %v4045_v39, 0.0  ;;  %v4113_v49 = vmax.f32 %v4049_v3, 0.0  ;;  %v4111_v6 = vmax.f32 %v4047_v31, 0.0 }
 0x3f3   : > { %v4115_v34 = vmax.f32 %v4051_v14, 0.0  ;;  %v4118_v11 = vmax.f32 %v4054_v30, 0.0  ;;  %v3968_v21 = vmul.f32 %v10706_v58, %v12398_v20  ;;  %v3972_v17 = vmul.f32 %v10706_v58, %v12399_v47  ;;  %v8738_v20 = vld [vmem:[#allocation10 + $0x28] sm:$0xff]   ;;  %v8741_v47 = vld [vmem:[#allocation10 + $0x10] sm:$0xff]  }
 0x3f4   : > { %v4122_v57 = vmax.f32 %v4058_v37, 0.0  ;;  %v4120_v15 = vmax.f32 %v4056_v43, 0.0  ;;  %v4124_v9 = vmax.f32 %v4060_v25, 0.0  ;;  %v3970_v40 = vmul.f32 %v10712_v33, %v12400_v8 }
 0x3f5   : > { %4486 = vmatmul.mubr.bf16.gmra.mxu0 %v4149_v0  ;;  %4583 = vmatmul.mubr.bf16.gmra.mxu1 %v4151_v59  ;;  %v3974_v18 = vmul.f32 %v10712_v33, %v12401_v26  ;;  %v3983_v61 = vmul.f32 %v10715_v28, %v12402_v16  ;;  %v4053_v53 = vadd.f32 %v10769_v10, %v3968_v21  ;;  %v8740_v21 = vld [vmem:[#allocation10 + $0x18] sm:$0xff]  }
 0x3f6   : > { %4493 = vmatprep.mubr.bf16.mxu0 %v4154_v27  ;;  %4590 = vmatprep.mubr.bf16.mxu1 %v4156_v12  ;;  %v4057_v13 = vadd.f32 %v10769_v10, %v3972_v17  ;;  %v4055_v62 = vadd.f32 %v10775_v44, %v3970_v40  ;;  %v3977_v36 = vmul.f32 %v10709_v4, %v12403_v42  ;;  %v8742_v17 = vld [vmem:[#allocation10 + $0x8] sm:$0xff]   ;;  %v8743_v40 = vld [vmem:[#allocation10] sm:$0xff]  }
 0x3f7   : > { %v4059_v38 = vadd.f32 %v10775_v44, %v3974_v18  ;;  %v3981_v46 = vmul.f32 %v10709_v4, %v12404_v41  ;;  %v3979_v32 = vmul.f32 %v10715_v28, %v12405_v52  ;;  %v4153_v1 = vpack.c.bf16 %v4113_v49, %v4109_v29 }
 0x3f8   : > { %v4155_v54 = vpack.c.bf16 %v4115_v34, %v4111_v6  ;;  %v4158_v39 = vpack.c.bf16 %v4122_v57, %v4118_v11  ;;  %v4160_v3 = vpack.c.bf16 %v4124_v9, %v4120_v15  ;;  %v4062_v48 = vadd.f32 %v10772_v60, %v3977_v36  ;;  %v8736_v11 = vld [vmem:[#allocation10 + $0x38] sm:$0xff]  }
 0x3f9   : > { %v4066_v19 = vadd.f32 %v10772_v60, %v3981_v46  ;;  %v4064_v22 = vadd.f32 %v10778_v2, %v3979_v32  ;;  %v4068_v51 = vadd.f32 %v10778_v2, %v3983_v61  ;;  %v4117_v4 = vmax.f32 %v4053_v53, 0.0  ;;  %v12407_v60 = vld [vmem:[#allocation34_spill] sm:$0xff]  ;;  %7987 = vmatprep.subr.bf16.mxu0 %v8736_v11 }
 0x3fa   : > { %v4121_v35 = vmax.f32 %v4057_v13, 0.0  ;;  %v4119_v5 = vmax.f32 %v4055_v62, 0.0  ;;  %v4123_v28 = vmax.f32 %v4059_v38, 0.0  ;;  %v4126_v7 = vmax.f32 %v4062_v48, 0.0  ;;  %7988 = vmatpush3.bf16.msra.mxu0 %v8736_v11 }
 0x3fb   : > { %v4130_v45 = vmax.f32 %v4066_v19, 0.0  ;;  %v4128_v31 = vmax.f32 %v4064_v22, 0.0  ;;  %v4132_v50 = vmax.f32 %v4068_v51, 0.0  ;;  %v3976_v56 = vmul.f32 %v10706_v58, %v12406_v63 }
 0x3fc   : > { %v3980_v23 = vmul.f32 %v10706_v58, %v12407_v60  ;;  %v3978_v2 = vmul.f32 %v10712_v33, %v12408_v24  ;;  %v3982_v0 = vmul.f32 %v10712_v33, %v12409_v55  ;;  %v4157_v14 = vpack.c.bf16 %v4121_v35, %v4117_v4 }
 0x3fd   : > { %4494 = vmatmul.mubr.bf16.gmra.mxu0 %v4153_v1  ;;  %4591 = vmatmul.mubr.bf16.gmra.mxu1 %v4155_v54  ;;  %v4159_v30 = vpack.c.bf16 %v4123_v28, %v4119_v5  ;;  %v4061_v59 = vadd.f32 %v10769_v10, %v3976_v56  ;;  %v4162_v27 = vpack.c.bf16 %v4130_v45, %v4126_v7 }
 0x3fe   : > { %4501 = vmatprep.mubr.bf16.mxu0 %v4158_v39  ;;  %4598 = vmatprep.mubr.bf16.mxu1 %v4160_v3  ;;  %v4065_v37 = vadd.f32 %v10769_v10, %v3980_v23  ;;  %v4063_v43 = vadd.f32 %v10775_v44, %v3978_v2  ;;  %v4067_v25 = vadd.f32 %v10775_v44, %v3982_v0  ;;  %v8737_v10 = vld [vmem:[#allocation10 + $0x30] sm:$0xff]   ;;  %v8739_v44 = vld [vmem:[#allocation10 + $0x20] sm:$0xff]  }
 0x3ff   : > { %v4164_v12 = vpack.c.bf16 %v4132_v50, %v4128_v31  ;;  %v4125_v58 = vmax.f32 %v4061_v59, 0.0  ;;  %7989 = vmatprep.subr.bf16.mxu0 %v8737_v10 }
 0x400   : > { %v4129_v29 = vmax.f32 %v4065_v37, 0.0  ;;  %v4127_v49 = vmax.f32 %v4063_v43, 0.0  ;;  %v4131_v33 = vmax.f32 %v4067_v25, 0.0  ;;  %7990 = vmatpush3.bf16.msra.mxu0 %v8737_v10 }
 0x401   : > { %7991 = vmatprep.subr.bf16.mxu0 %v8738_v20 }
 0x402   : > { %v4161_v6 = vpack.c.bf16 %v4129_v29, %v4125_v58  ;;  %v4163_v34 = vpack.c.bf16 %v4131_v33, %v4127_v49 }
 0x404   : > { %7992 = vmatpush3.bf16.msra.mxu0 %v8738_v20 }
 0x405   : > { %4502 = vmatmul.mubr.bf16.gmra.mxu0 %v4157_v14  ;;  %4599 = vmatmul.mubr.bf16.gmra.mxu1 %v4159_v30 }
 0x406   : > { %4509 = vmatprep.mubr.bf16.mxu0 %v4162_v27  ;;  %4606 = vmatprep.mubr.bf16.mxu1 %v4164_v12 }
 0x407   : > { %7993 = vmatprep.subr.bf16.mxu0 %v8739_v44 }
 0x408   : > { %7994 = vmatpush3.bf16.msra.mxu0 %v8739_v44 }
 0x409   : > { %7995 = vmatprep.subr.bf16.mxu0 %v8740_v21 }
 0x40c   : > { %7996 = vmatpush3.bf16.msra.mxu0 %v8740_v21 }
 0x40d   : > { %4510 = vmatmul.mubr.bf16.gmra.mxu0 %v4161_v6  ;;  %4607 = vmatmul.mubr.bf16.gmra.mxu1 %v4163_v34 }
 0x40e   : > { %7997 = vmatprep.subr.bf16.mxu0 %v8741_v47 }
 0x410   : > { %7998 = vmatpush3.bf16.msra.mxu0 %v8741_v47 }
 0x411   : > { %7999 = vmatprep.subr.bf16.mxu0 %v8742_v17 }
 0x414   : > { %8000 = vmatpush3.bf16.msra.mxu0 %v8742_v17 }
 0x415   : > { %8001 = vmatprep.subr.bf16.mxu0 %v8743_v40 }
 0x418   : > { %8002 = vmatpush3.bf16.msra.mxu0 %v8743_v40 }
 0x495   : > { %v7781_v57 = vpop.f32.mrf.mxu0  ;;  %v7845_v15 = vpop.f32.mrf.mxu1 }
 0x497   : > { %v7782_v9 = vpop.f32.mrf.mxu0  ;;  %v7846_v8 = vpop.f32.mrf.mxu1 }
 0x498   : > { %v7783_v31 = vadd.f32 %v7782_v9, %v7781_v57  ;;  %v7847_v50 = vadd.f32 %v7846_v8, %v7845_v15 }
 0x499   : > { %v7784_v26 = vpop.f32.mrf.mxu0  ;;  %v7848_v18 = vpop.f32.mrf.mxu1 }
 0x49a   : > { %v10932_v30 = vadd.f32 %v7847_v50, %v7783_v31 }
 0x49b   : > { %v7785_v16 = vpop.f32.mrf.mxu0  ;;  %v7849_v61 = vpop.f32.mrf.mxu1 }
 0x49c   : > { %v7786_v5 = vadd.f32 %v7785_v16, %v7784_v26  ;;  %v7850_v28 = vadd.f32 %v7849_v61, %v7848_v18  ;;  %v4636_v34 = vmul.f32 %v10932_v30, %v10932_v30 }
 0x49d   : > { %v7787_v53 = vpop.f32.mrf.mxu0  ;;  %v7851_v13 = vpop.f32.mrf.mxu1 }
 0x49e   : > { %v10930_v24 = vadd.f32 %v7850_v28, %v7786_v5 }
 0x49f   : > { %v7788_v62 = vpop.f32.mrf.mxu0  ;;  %v7852_v38 = vpop.f32.mrf.mxu1 }
 0x4a0   : > { %v7789_v63 = vadd.f32 %v7788_v62, %v7787_v53  ;;  %v7853_v56 = vadd.f32 %v7852_v38, %v7851_v13  ;;  %v4637_v12 = vmul.f32 %v10930_v24, %v10930_v24  ;;  %v4615_v17 = vadd.f32 %v10930_v24, %v10932_v30 }
 0x4a1   : > { %v7790_v42 = vpop.f32.mrf.mxu0  ;;  %v7854_v36 = vpop.f32.mrf.mxu1 }
 0x4a2   : > { %v10934_v59 = vadd.f32 %v7853_v56, %v7789_v63  ;;  %v4652_v57 = vadd.f32 %v4637_v12, %v4636_v34 }
 0x4a3   : > { %v7791_v41 = vpop.f32.mrf.mxu0  ;;  %v7855_v46 = vpop.f32.mrf.mxu1 }
 0x4a4   : > { %v7792_v2 = vadd.f32 %v7791_v41, %v7790_v42  ;;  %v7856_v55 = vadd.f32 %v7855_v46, %v7854_v36  ;;  %v4638_v11 = vmul.f32 %v10934_v59, %v10934_v59  ;;  %v4616_v16 = vadd.f32 %v4615_v17, %v10934_v59 }
 0x4a5   : > { %v7793_v52 = vpop.f32.mrf.mxu0  ;;  %v7857_v32 = vpop.f32.mrf.mxu1 }
 0x4a6   : > { %v10938_v58 = vadd.f32 %v7856_v55, %v7792_v2  ;;  %v4653_v61 = vadd.f32 %v4652_v57, %v4638_v11 }
 0x4a7   : > { %v7794_v1 = vpop.f32.mrf.mxu0  ;;  %v7858_v54 = vpop.f32.mrf.mxu1 }
 0x4a8   : > { %v7795_v37 = vadd.f32 %v7794_v1, %v7793_v52  ;;  %v7859_v43 = vadd.f32 %v7858_v54, %v7857_v32  ;;  %v4639_v15 = vmul.f32 %v10938_v58, %v10938_v58  ;;  %v4617_v41 = vadd.f32 %v4616_v16, %v10938_v58 }
 0x4a9   : > { %v7796_v39 = vpop.f32.mrf.mxu0  ;;  %v7860_v3 = vpop.f32.mrf.mxu1 }
 0x4aa   : > { %v10944_v10 = vadd.f32 %v7859_v43, %v7795_v37  ;;  %v4654_v46 = vadd.f32 %v4653_v61, %v4639_v15 }
 0x4ab   : > { %v7797_v48 = vpop.f32.mrf.mxu0  ;;  %v7861_v19 = vpop.f32.mrf.mxu1 }
 0x4ac   : > { %v7798_v29 = vadd.f32 %v7797_v48, %v7796_v39  ;;  %v7862_v49 = vadd.f32 %v7861_v19, %v7860_v3  ;;  %v4640_v53 = vmul.f32 %v10944_v10, %v10944_v10  ;;  %v4618_v48 = vadd.f32 %v4617_v41, %v10944_v10 }
 0x4ad   : > { %v7799_v22 = vpop.f32.mrf.mxu0  ;;  %v7863_v51 = vpop.f32.mrf.mxu1 }
 0x4ae   : > { %v10950_v9 = vadd.f32 %v7862_v49, %v7798_v29  ;;  %v4655_v19 = vadd.f32 %v4654_v46, %v4640_v53 }
 0x4af   : > { %v7800_v4 = vpop.f32.mrf.mxu0  ;;  %v7864_v35 = vpop.f32.mrf.mxu1 }
 0x4b0   : > { %v7801_v20 = vadd.f32 %v7800_v4, %v7799_v22  ;;  %v7865_v44 = vadd.f32 %v7864_v35, %v7863_v51  ;;  %v4641_v52 = vmul.f32 %v10950_v9, %v10950_v9 }
 0x4b1   : > { %v7802_v7 = vpop.f32.mrf.mxu0  ;;  %v7866_v45 = vpop.f32.mrf.mxu1 }
 0x4b2   : > { %v10955_v13 = vadd.f32 %v7865_v44, %v7801_v20 }
 0x4b3   : > { %v7803_v60 = vpop.f32.mrf.mxu0  ;;  %v7867_v23 = vpop.f32.mrf.mxu1 }
 0x4b4   : > { %v7804_v8 = vadd.f32 %v7803_v60, %v7802_v7  ;;  %v7868_v40 = vadd.f32 %v7867_v23, %v7866_v45  ;;  %v4642_v22 = vmul.f32 %v10955_v13, %v10955_v13  ;;  %v4619_v7 = vadd.f32 %v4618_v48, %v10950_v9 }
 0x4b5   : > { %v7805_v0 = vpop.f32.mrf.mxu0  ;;  %v7869_v14 = vpop.f32.mrf.mxu1  ;;  %v4656_v45 = vadd.f32 %v4655_v19, %v4641_v52 }
 0x4b6   : > { %v10960_v32 = vadd.f32 %v7868_v40, %v7804_v8  ;;  %v4620_v2 = vadd.f32 %v4619_v7, %v10955_v13 }
 0x4b7   : > { %v7806_v25 = vpop.f32.mrf.mxu0  ;;  %v7870_v27 = vpop.f32.mrf.mxu1  ;;  %v4657_v55 = vadd.f32 %v4656_v45, %v4642_v22 }
 0x4b8   : > { %v7807_v62 = vadd.f32 %v7806_v25, %v7805_v0  ;;  %v7871_v38 = vadd.f32 %v7870_v27, %v7869_v14  ;;  %v4643_v31 = vmul.f32 %v10960_v32, %v10960_v32  ;;  %v4621_v25 = vadd.f32 %v4620_v2, %v10960_v32 }
 0x4b9   : > { %v7808_v33 = vpop.f32.mrf.mxu0  ;;  %v7872_v6 = vpop.f32.mrf.mxu1 }
 0x4ba   : > { %v10965_v51 = vadd.f32 %v7871_v38, %v7807_v62  ;;  %v4658_v29 = vadd.f32 %v4657_v55, %v4643_v31 }
 0x4bb   : > { %v7809_v21 = vpop.f32.mrf.mxu0  ;;  %v7873_v47 = vpop.f32.mrf.mxu1 }
 0x4bc   : > { %v7810_v1 = vadd.f32 %v7809_v21, %v7808_v33  ;;  %v7874_v54 = vadd.f32 %v7873_v47, %v7872_v6  ;;  %v4644_v0 = vmul.f32 %v10965_v51, %v10965_v51  ;;  %v4622_v11 = vadd.f32 %v4621_v25, %v10965_v51 }
 0x4bd   : > { %v7811_v26 = vpop.f32.mrf.mxu0  ;;  %v7875_v18 = vpop.f32.mrf.mxu1 }
 0x4be   : > { %v10970_v50 = vadd.f32 %v7874_v54, %v7810_v1  ;;  %v4659_v20 = vadd.f32 %v4658_v29, %v4644_v0 }
 0x4bf   : > { %v7812_v42 = vpop.f32.mrf.mxu0  ;;  %v7876_v36 = vpop.f32.mrf.mxu1 }
 0x4c0   : > { %v7813_v4 = vadd.f32 %v7812_v42, %v7811_v26  ;;  %v7877_v35 = vadd.f32 %v7876_v36, %v7875_v18  ;;  %v4645_v49 = vmul.f32 %v10970_v50, %v10970_v50  ;;  %v4623_v57 = vadd.f32 %v4622_v11, %v10970_v50 }
 0x4c1   : > { %v7814_v39 = vpop.f32.mrf.mxu0  ;;  %v7878_v3 = vpop.f32.mrf.mxu1 }
 0x4c2   : > { %v10975_v14 = vadd.f32 %v7877_v35, %v7813_v4  ;;  %v4660_v40 = vadd.f32 %v4659_v20, %v4645_v49 }
 0x4c3   : > { %v7815_v5 = vpop.f32.mrf.mxu0  ;;  %v7879_v28 = vpop.f32.mrf.mxu1 }
 0x4c4   : > { %v7816_v63 = vadd.f32 %v7815_v5, %v7814_v39  ;;  %v7880_v56 = vadd.f32 %v7879_v28, %v7878_v3  ;;  %v4646_v44 = vmul.f32 %v10975_v14, %v10975_v14  ;;  %v4624_v61 = vadd.f32 %v4623_v57, %v10975_v14 }
 0x4c5   : > { %v7817_v60 = vpop.f32.mrf.mxu0  ;;  %v7881_v23 = vpop.f32.mrf.mxu1 }
 0x4c6   : > { %v10980_v33 = vadd.f32 %v7880_v56, %v7816_v63  ;;  %v4661_v62 = vadd.f32 %v4660_v40, %v4646_v44  ;;  %v4678_v40 = vld [vmem:[#allocation4 + $0x2] ss:$0 sm:$0xff] }
 0x4c7   : > { %v7818_v37 = vpop.f32.mrf.mxu0  ;;  %v7882_v43 = vpop.f32.mrf.mxu1 }
 0x4c8   : > { %v7819_v27 = vadd.f32 %v7818_v37, %v7817_v60  ;;  %v7883_v12 = vadd.f32 %v7882_v43, %v7881_v23  ;;  %v4647_v26 = vmul.f32 %v10980_v33, %v10980_v33  ;;  %v4625_v41 = vadd.f32 %v4624_v61, %v10980_v33 }
 0x4c9   : > { %v7820_v6 = vpop.f32.mrf.mxu0  ;;  %v7884_v34 = vpop.f32.mrf.mxu1 }
 0x4ca   : > { %v10985_v21 = vadd.f32 %v7883_v12, %v7819_v27  ;;  %v4662_v1 = vadd.f32 %v4661_v62, %v4647_v26 }
 0x4cb   : > { %v7821_v47 = vpop.f32.mrf.mxu0  ;;  %v7885_v17 = vpop.f32.mrf.mxu1 }
 0x4cc   : > { %v7822_v15 = vadd.f32 %v7821_v47, %v7820_v6  ;;  %v7886_v8 = vadd.f32 %v7885_v17, %v7884_v34  ;;  %v4648_v38 = vmul.f32 %v10985_v21, %v10985_v21  ;;  %v4626_v3 = vadd.f32 %v4625_v41, %v10985_v21 }
 0x4cd   : > { %v7823_v18 = vpop.f32.mrf.mxu0  ;;  %v7887_v16 = vpop.f32.mrf.mxu1 }
 0x4ce   : > { %v10991_v53 = vadd.f32 %v7886_v8, %v7822_v15  ;;  %v4663_v22 = vadd.f32 %v4662_v1, %v4648_v38 }
 0x4cf   : > { %v7824_v42 = vpop.f32.mrf.mxu0  ;;  %v7888_v36 = vpop.f32.mrf.mxu1 }
 0x4d0   : > { %v7825_v46 = vadd.f32 %v7824_v42, %v7823_v18  ;;  %v7889_v52 = vadd.f32 %v7888_v36, %v7887_v16  ;;  %v4649_v48 = vmul.f32 %v10991_v53, %v10991_v53  ;;  %v4627_v5 = vadd.f32 %v4626_v3, %v10991_v53  ;;  %v4679_v16 = vld [vmem:[#allocation4 + $0x25] ss:$0 sm:$0xff] }
 0x4d1   : > { %v7826_v54 = vpop.f32.mrf.mxu0  ;;  %v7890_v39 = vpop.f32.mrf.mxu1 }
 0x4d2   : > { %v10999_v19 = vadd.f32 %v7889_v52, %v7825_v46  ;;  %v4664_v31 = vadd.f32 %v4663_v22, %v4649_v48 }
 0x4d3   : > { %v7827_v4 = vpop.f32.mrf.mxu0  ;;  %v7891_v35 = vpop.f32.mrf.mxu1 }
 0x4d4   : > { %v4650_v28 = vmul.f32 %v10999_v19, %v10999_v19  ;;  %v7828_v7 = vadd.f32 %v7827_v4, %v7826_v54  ;;  %v7892_v45 = vadd.f32 %v7891_v35, %v7890_v39  ;;  %v4628_v63 = vadd.f32 %v4627_v5, %v10999_v19 }
 0x4d6   : > { %v4612_v56 = vadd.f32 %v7892_v45, %v7828_v7  ;;  %v4665_v60 = vadd.f32 %v4664_v31, %v4650_v28 }
 0x4d8   : > { %v4629_v23 = vadd.f32 %v4628_v63, %v4612_v56  ;;  %v4651_v2 = vmul.f32 %v4612_v56, %v4612_v56 }
 0x4da   : > { %v4630_v55 = vrot.slane %v4629_v23, 4  ;;  %v4666_v0 = vadd.f32 %v4665_v60, %v4651_v2 }
 0x4dc   : > { %v4631_v37 = vadd.f32 %v4630_v55, %v4629_v23  ;;  %v4667_v43 = vrot.slane %v4666_v0, 4 }
 0x4de   : > { %v4632_v25 = vrot.slane %v4631_v37, 2  ;;  %v4668_v27 = vadd.f32 %v4667_v43, %v4666_v0 }
 0x4e0   : > { %v4633_v12 = vadd.f32 %v4632_v25, %v4631_v37  ;;  %v4669_v29 = vrot.slane %v4668_v27, 2 }
 0x4e2   : > { %v4634_v49 = vrot.slane %v4633_v12, 1  ;;  %v4670_v6 = vadd.f32 %v4669_v29, %v4668_v27 }
 0x4e4   : > { %v4635_v34 = vadd.f32 %v4634_v49, %v4633_v12  ;;  %v4671_v11 = vrot.slane %v4670_v6, 1 }
 0x4e6   : > { %v4672_v20 = vadd.f32 %v4671_v11, %v4670_v6  ;;  %v4673_v44 = vmul.f32 0.0078125, %v4635_v34 }
 0x4e8   : > { %v4674_v47 = vmul.f32 0.0078125, %v4672_v20  ;;  %v4675_v17 = vmul.f32 %v4673_v44, %v4673_v44 }
 0x4ea   : > { %v4676_v57 = vsub.f32 %v4674_v47, %v4675_v17 }
 0x4ec   : > { %v4677_v15 = vmax.f32 %v4676_v57, 0.0 }
 0x4ee   : > { %v4680_v8 = vadd.f32 1e-05, %v4677_v15 }
 0x4f0   : > { %8782 = vrsqrt.f32 %v4680_v8  ;;  %v8745_v8 = vld [vmem:[#allocation10 + $0x70] sm:$0xff]  }
 0x4fd   : > { %v8783_v26 = vpop.eup %8782 }
 0x4fe   : > { %v4682_v18 = vmul.f32 %v8783_v26, %v4678_v40  ;;  %v8746_v40 = vld [vmem:[#allocation10 + $0x68] sm:$0xff]   ;;  %v8747_v26 = vld [vmem:[#allocation10 + $0x60] sm:$0xff]  }
 0x500   : > { %v4683_v61 = vmul.f32 %v4682_v18, %v4673_v44  ;;  %v4700_v62 = vmul.f32 %v4682_v18, %v4612_v56  ;;  %v4685_v38 = vmul.f32 %v4682_v18, %v10932_v30  ;;  %v4686_v36 = vmul.f32 %v4682_v18, %v10930_v24 }
 0x501   : > { %v4687_v41 = vmul.f32 %v4682_v18, %v10934_v59  ;;  %v4688_v46 = vmul.f32 %v4682_v18, %v10938_v58  ;;  %v4689_v52 = vmul.f32 %v4682_v18, %v10944_v10  ;;  %v4690_v1 = vmul.f32 %v4682_v18, %v10950_v9 }
 0x502   : > { %v4684_v42 = vsub.f32 %v4679_v16, %v4683_v61  ;;  %v4691_v54 = vmul.f32 %v4682_v18, %v10955_v13  ;;  %v4692_v39 = vmul.f32 %v4682_v18, %v10960_v32  ;;  %v4693_v30 = vmul.f32 %v4682_v18, %v10965_v51  ;;  %v8749_v16 = vld [vmem:[#allocation10 + $0x50] sm:$0xff]   ;;  %v8750_v61 = vld [vmem:[#allocation10 + $0x48] sm:$0xff]  }
 0x503   : > { %v4694_v59 = vmul.f32 %v4682_v18, %v10970_v50  ;;  %v4695_v10 = vmul.f32 %v4682_v18, %v10975_v14  ;;  %v4696_v32 = vmul.f32 %v4682_v18, %v10980_v33  ;;  %v4697_v51 = vmul.f32 %v4682_v18, %v10985_v21 }
 0x504   : > { %v4701_v3 = vadd.f32 %v4685_v38, %v4684_v42  ;;  %v4702_v48 = vadd.f32 %v4686_v36, %v4684_v42  ;;  %v4703_v22 = vadd.f32 %v4687_v41, %v4684_v42  ;;  %v4704_v4 = vadd.f32 %v4688_v46, %v4684_v42 }
 0x505   : > { %v4705_v35 = vadd.f32 %v4689_v52, %v4684_v42  ;;  %v4706_v24 = vadd.f32 %v4690_v1, %v4684_v42  ;;  %v4707_v31 = vadd.f32 %v4691_v54, %v4684_v42  ;;  %v4708_v63 = vadd.f32 %v4692_v39, %v4684_v42 }
 0x506   : > { %v4717_v5 = vmax.f32 %v4701_v3, 0.0  ;;  %v4718_v58 = vmax.f32 %v4702_v48, 0.0  ;;  %v4719_v28 = vmax.f32 %v4703_v22, 0.0  ;;  %v4720_v9 = vmax.f32 %v4704_v4, 0.0 }
 0x507   : > { %v4721_v7 = vmax.f32 %v4705_v35, 0.0  ;;  %v4722_v13 = vmax.f32 %v4706_v24, 0.0  ;;  %v4716_v56 = vadd.f32 %v4700_v62, %v4684_v42  ;;  %v4711_v23 = vadd.f32 %v4695_v10, %v4684_v42  ;;  %v8751_v62 = vld [vmem:[#allocation10 + $0x40] sm:$0xff]  }
 0x508   : > { %v4733_v45 = vpack.c.bf16 %v4718_v58, %v4717_v5  ;;  %v4734_v60 = vpack.c.bf16 %v4720_v9, %v4719_v28  ;;  %v4712_v2 = vadd.f32 %v4696_v32, %v4684_v42  ;;  %v4709_v55 = vadd.f32 %v4693_v30, %v4684_v42 }
 0x509   : > { %v4735_v50 = vpack.c.bf16 %v4722_v13, %v4721_v7  ;;  %v4710_v0 = vadd.f32 %v4694_v59, %v4684_v42  ;;  %v4698_v14 = vmul.f32 %v4682_v18, %v10991_v53  ;;  %v4727_v37 = vmax.f32 %v4711_v23, 0.0 }
 0x50a   : > { %8003 = vmatprep.mubr.bf16.mxu0 %v4733_v45  ;;  %v4728_v43 = vmax.f32 %v4712_v2, 0.0  ;;  %v4713_v25 = vadd.f32 %v4697_v51, %v4684_v42  ;;  %v4699_v33 = vmul.f32 %v4682_v18, %v10999_v19  ;;  %v4723_v27 = vmax.f32 %v4707_v31, 0.0  ;;  %v8744_v19 = vld [vmem:[#allocation10 + $0x78] sm:$0xff]  }
 0x50b   : > { %8004 = vmatmul.mubr.bf16.vlgmr.msra.gmra.mxu0 %v4734_v60  ;;  %v4724_v12 = vmax.f32 %v4708_v63, 0.0  ;;  %v4714_v21 = vadd.f32 %v4698_v14, %v4684_v42  ;;  %v4732_v34 = vmax.f32 %v4716_v56, 0.0  ;;  %v4725_v11 = vmax.f32 %v4709_v55, 0.0  ;;  %8019 = vmatprep.subr.bf16.mxu1 %v8744_v19  ;;  %v8748_v18 = vld [vmem:[#allocation10 + $0x58] sm:$0xff]  }
 0x50c   : > { %8007 = vmatprep.mubr.bf16.mxu0 %v4735_v50  ;;  %v4738_v29 = vpack.c.bf16 %v4728_v43, %v4727_v37  ;;  %v4729_v49 = vmax.f32 %v4713_v25, 0.0  ;;  %v4715_v6 = vadd.f32 %v4699_v33, %v4684_v42  ;;  %v4726_v20 = vmax.f32 %v4710_v0, 0.0  ;;  %8020 = vmatpush3.bf16.msra.mxu1 %v8744_v19 }
 0x50d   : > { %v4730_v44 = vmax.f32 %v4714_v21, 0.0  ;;  %v4736_v53 = vpack.c.bf16 %v4724_v12, %v4723_v27  ;;  %8021 = vmatprep.subr.bf16.mxu1 %v8745_v8 }
 0x50e   : > { %v4731_v47 = vmax.f32 %v4715_v6, 0.0  ;;  %v4737_v15 = vpack.c.bf16 %v4726_v20, %v4725_v11 }
 0x50f   : > { %v4739_v17 = vpack.c.bf16 %v4730_v44, %v4729_v49 }
 0x510   : > { %v4740_v57 = vpack.c.bf16 %v4732_v34, %v4731_v47  ;;  %8022 = vmatpush3.bf16.msra.mxu1 %v8745_v8 }
 0x511   : > { %8023 = vmatprep.subr.bf16.mxu1 %v8746_v40 }
 0x513   : > { %8008 = vmatmul.mubr.bf16.gmra.mxu0 %v4736_v53 }
 0x514   : > { %8011 = vmatprep.mubr.bf16.mxu0 %v4737_v15  ;;  %8024 = vmatpush3.bf16.msra.mxu1 %v8746_v40 }
 0x515   : > { %8025 = vmatprep.subr.bf16.mxu1 %v8747_v26 }
 0x518   : > { %8026 = vmatpush3.bf16.msra.mxu1 %v8747_v26 }
 0x519   : > { %8027 = vmatprep.subr.bf16.mxu1 %v8748_v18 }
 0x51b   : > { %8012 = vmatmul.mubr.bf16.gmra.mxu0 %v4738_v29 }
 0x51c   : > { %8015 = vmatprep.mubr.bf16.mxu0 %v4739_v17  ;;  %8028 = vmatpush3.bf16.msra.mxu1 %v8748_v18 }
 0x51d   : > { %8029 = vmatprep.subr.bf16.mxu1 %v8749_v16 }
 0x520   : > { %8030 = vmatpush3.bf16.msra.mxu1 %v8749_v16 }
 0x521   : > { %8031 = vmatprep.subr.bf16.mxu1 %v8750_v61 }
 0x523   : > { %8016 = vmatmul.mubr.bf16.gmra.mxu0 %v4740_v57 }
 0x524   : > { %8032 = vmatpush3.bf16.msra.mxu1 %v8750_v61 }
 0x525   : > { %8033 = vmatprep.subr.bf16.mxu1 %v8751_v62 }
 0x528   : > { %8034 = vmatpush3.bf16.msra.mxu1 %v8751_v62 }
 0x5cb   : > { %v11020_v38 = vpop.f32.mrf.mxu0 }
 0x5cc   : > { %v4925_v39 = vmul.f32 %v11020_v38, %v11020_v38 }
 0x5cd   : > { %v11022_v42 = vpop.f32.mrf.mxu0 }
 0x5ce   : > { %v4923_v46 = vmul.f32 %v11022_v42, %v11022_v42 }
 0x5cf   : > { %v11024_v36 = vpop.f32.mrf.mxu0 }
 0x5d0   : > { %v4926_v30 = vmul.f32 %v11024_v36, %v11024_v36 }
 0x5d1   : > { %v11026_v41 = vpop.f32.mrf.mxu0 }
 0x5d2   : > { %v4902_v52 = vadd.f32 %v11026_v41, %v11022_v42  ;;  %v4924_v1 = vmul.f32 %v11026_v41, %v11026_v41 }
 0x5d3   : > { %v11034_v54 = vpop.f32.mrf.mxu0 }
 0x5d4   : > { %v4903_v3 = vadd.f32 %v11020_v38, %v4902_v52  ;;  %v4939_v48 = vadd.f32 %v4924_v1, %v4923_v46  ;;  %v4929_v32 = vmul.f32 %v11034_v54, %v11034_v54 }
 0x5d5   : > { %v11039_v22 = vpop.f32.mrf.mxu0 }
 0x5d6   : > { %v4940_v4 = vadd.f32 %v4939_v48, %v4925_v39  ;;  %v4904_v35 = vadd.f32 %v11024_v36, %v4903_v3  ;;  %v4927_v5 = vmul.f32 %v11039_v22, %v11039_v22 }
 0x5d7   : > { %v11044_v24 = vpop.f32.mrf.mxu0 }
 0x5d8   : > { %v4905_v59 = vadd.f32 %v4904_v35, %v11039_v22  ;;  %v4941_v58 = vadd.f32 %v4940_v4, %v4926_v30  ;;  %v4930_v51 = vmul.f32 %v11044_v24, %v11044_v24 }
 0x5d9   : > { %v11049_v28 = vpop.f32.mrf.mxu0 }
 0x5da   : > { %v4942_v10 = vadd.f32 %v4941_v58, %v4927_v5  ;;  %v4906_v9 = vadd.f32 %v4905_v59, %v11049_v28  ;;  %v4928_v7 = vmul.f32 %v11049_v28, %v11049_v28 }
 0x5db   : > { %v11054_v13 = vpop.f32.mrf.mxu0 }
 0x5dc   : > { %v4907_v45 = vadd.f32 %v11034_v54, %v4906_v9  ;;  %v4943_v31 = vadd.f32 %v4942_v10, %v4928_v7  ;;  %v4933_v33 = vmul.f32 %v11054_v13, %v11054_v13 }
 0x5dd   : > { %v11059_v63 = vpop.f32.mrf.mxu0 }
 0x5de   : > { %v4944_v56 = vadd.f32 %v4943_v31, %v4929_v32  ;;  %v4908_v60 = vadd.f32 %v11044_v24, %v4907_v45  ;;  %v4931_v50 = vmul.f32 %v11059_v63, %v11059_v63  ;;  %v4965_v45 = vld [vmem:[#allocation4 + $0x3] ss:$0 sm:$0xff] }
 0x5df   : > { %v11064_v23 = vpop.f32.mrf.mxu0 }
 0x5e0   : > { %v4909_v2 = vadd.f32 %v4908_v60, %v11059_v63  ;;  %v4945_v55 = vadd.f32 %v4944_v56, %v4930_v51  ;;  %v4934_v29 = vmul.f32 %v11064_v23, %v11064_v23  ;;  %v4966_v56 = vld [vmem:[#allocation4 + $0x26] ss:$0 sm:$0xff] }
 0x5e1   : > { %v11069_v0 = vpop.f32.mrf.mxu0 }
 0x5e2   : > { %v4946_v14 = vadd.f32 %v4945_v55, %v4931_v50  ;;  %v4910_v37 = vadd.f32 %v4909_v2, %v11069_v0  ;;  %v4932_v43 = vmul.f32 %v11069_v0, %v11069_v0 }
 0x5e3   : > { %v11074_v25 = vpop.f32.mrf.mxu0 }
 0x5e4   : > { %v4911_v27 = vadd.f32 %v11054_v13, %v4910_v37  ;;  %v4947_v12 = vadd.f32 %v4946_v14, %v4932_v43  ;;  %v4937_v15 = vmul.f32 %v11074_v25, %v11074_v25 }
 0x5e5   : > { %v11079_v21 = vpop.f32.mrf.mxu0 }
 0x5e6   : > { %v4948_v49 = vadd.f32 %v4947_v12, %v4933_v33  ;;  %v4912_v6 = vadd.f32 %v11064_v23, %v4911_v27  ;;  %v4935_v20 = vmul.f32 %v11079_v21, %v11079_v21 }
 0x5e7   : > { %v11084_v34 = vpop.f32.mrf.mxu0 }
 0x5e8   : > { %v4913_v11 = vadd.f32 %v4912_v6, %v11079_v21  ;;  %v4949_v44 = vadd.f32 %v4948_v49, %v4934_v29  ;;  %v4938_v40 = vmul.f32 %v11084_v34, %v11084_v34 }
 0x5e9   : > { %v11089_v47 = vpop.f32.mrf.mxu0 }
 0x5ea   : > { %v4950_v17 = vadd.f32 %v4949_v44, %v4935_v20  ;;  %v4914_v53 = vadd.f32 %v4913_v11, %v11089_v47  ;;  %v4936_v57 = vmul.f32 %v11089_v47, %v11089_v47 }
 0x5ec   : > { %v4915_v19 = vadd.f32 %v11074_v25, %v4914_v53  ;;  %v4951_v8 = vadd.f32 %v4950_v17, %v4936_v57 }
 0x5ee   : > { %v4916_v26 = vadd.f32 %v11084_v34, %v4915_v19  ;;  %v4952_v18 = vadd.f32 %v4951_v8, %v4937_v15 }
 0x5f0   : > { %v4917_v16 = vrot.slane %v4916_v26, 4  ;;  %v4953_v61 = vadd.f32 %v4952_v18, %v4938_v40 }
 0x5f2   : > { %v4918_v62 = vadd.f32 %v4917_v16, %v4916_v26  ;;  %v4954_v46 = vrot.slane %v4953_v61, 4 }
 0x5f4   : > { %v4919_v52 = vrot.slane %v4918_v62, 2  ;;  %v4955_v1 = vadd.f32 %v4954_v46, %v4953_v61 }
 0x5f6   : > { %v4920_v39 = vadd.f32 %v4919_v52, %v4918_v62  ;;  %v4956_v3 = vrot.slane %v4955_v1, 2 }
 0x5f8   : > { %v4921_v48 = vrot.slane %v4920_v39, 1  ;;  %v4957_v30 = vadd.f32 %v4956_v3, %v4955_v1 }
 0x5fa   : > { %v4922_v4 = vadd.f32 %v4921_v48, %v4920_v39  ;;  %v4958_v35 = vrot.slane %v4957_v30, 1 }
 0x5fc   : > { %v4959_v59 = vadd.f32 %v4958_v35, %v4957_v30  ;;  %v4960_v5 = vmul.f32 0.0078125, %v4922_v4 }
 0x5fe   : > { %v4961_v58 = vmul.f32 0.0078125, %v4959_v59  ;;  %v4962_v10 = vmul.f32 %v4960_v5, %v4960_v5 }
 0x600   : > { %v4963_v9 = vsub.f32 %v4961_v58, %v4962_v10 }
 0x602   : > { %v4964_v7 = vmax.f32 %v4963_v9, 0.0 }
 0x604   : > { %v4967_v32 = vadd.f32 1e-05, %v4964_v7 }
 0x606   : > { %8784 = vrsqrt.f32 %v4967_v32 }
 0x613   : > { %v8785_v31 = vpop.eup %8784 }
 0x614   : > { %v4969_v51 = vmul.f32 %v8785_v31, %v4965_v45  ;;  %v8752_v45 = vld [vmem:[#allocation10 + $0x98] sm:$0xff]   ;;  %v8753_v31 = vld [vmem:[#allocation10 + $0x90] sm:$0xff]  }
 0x615   : > { %8051 = vmatprep.subr.bf16.mxu0 %v8752_v45 }
 0x616   : > { %v4970_v60 = vmul.f32 %v4969_v51, %v4960_v5  ;;  %v4972_v2 = vmul.f32 %v4969_v51, %v11022_v42  ;;  %v4973_v55 = vmul.f32 %v4969_v51, %v11026_v41  ;;  %v4974_v14 = vmul.f32 %v11020_v38, %v4969_v51  ;;  %8052 = vmatpush3.bf16.msra.mxu0 %v8752_v45 }
 0x617   : > { %v4975_v37 = vmul.f32 %v11024_v36, %v4969_v51  ;;  %v4976_v43 = vmul.f32 %v4969_v51, %v11039_v22  ;;  %v4977_v33 = vmul.f32 %v4969_v51, %v11049_v28  ;;  %v4978_v27 = vmul.f32 %v11034_v54, %v4969_v51  ;;  %8053 = vmatprep.subr.bf16.mxu0 %v8753_v31 }
 0x618   : > { %v4971_v50 = vsub.f32 %v4966_v56, %v4970_v60  ;;  %v4979_v12 = vmul.f32 %v11044_v24, %v4969_v51  ;;  %v4980_v42 = vmul.f32 %v4969_v51, %v11059_v63  ;;  %v4981_v38 = vmul.f32 %v4969_v51, %v11069_v0 }
 0x619   : > { %v4982_v22 = vmul.f32 %v11054_v13, %v4969_v51  ;;  %v4983_v24 = vmul.f32 %v11064_v23, %v4969_v51  ;;  %v4986_v46 = vmul.f32 %v11074_v25, %v4969_v51  ;;  %v4987_v23 = vmul.f32 %v11084_v34, %v4969_v51 }
 0x61a   : > { %v4988_v29 = vadd.f32 %v4972_v2, %v4971_v50  ;;  %v4989_v49 = vadd.f32 %v4973_v55, %v4971_v50  ;;  %v4990_v6 = vadd.f32 %v4974_v14, %v4971_v50  ;;  %v4991_v11 = vadd.f32 %v4975_v37, %v4971_v50  ;;  %8054 = vmatpush3.bf16.msra.mxu0 %v8753_v31 }
 0x61b   : > { %v4992_v20 = vadd.f32 %v4976_v43, %v4971_v50  ;;  %v4993_v41 = vadd.f32 %v4977_v33, %v4971_v50  ;;  %v4994_v15 = vadd.f32 %v4978_v27, %v4971_v50  ;;  %v4996_v19 = vadd.f32 %v4980_v42, %v4971_v50 }
 0x61c   : > { %v5004_v44 = vmax.f32 %v4988_v29, 0.0  ;;  %v5005_v36 = vmax.f32 %v4989_v49, 0.0  ;;  %v5006_v17 = vmax.f32 %v4990_v6, 0.0  ;;  %v5007_v28 = vmax.f32 %v4991_v11, 0.0 }
 0x61d   : > { %v5008_v53 = vmax.f32 %v4992_v20, 0.0  ;;  %v5009_v54 = vmax.f32 %v4993_v41, 0.0  ;;  %v4997_v8 = vadd.f32 %v4981_v38, %v4971_v50  ;;  %v4995_v40 = vadd.f32 %v4979_v12, %v4971_v50 }
 0x61e   : > { %v5020_v57 = vpack.c.bf16 %v5005_v36, %v5004_v44  ;;  %v5021_v63 = vpack.c.bf16 %v5007_v28, %v5006_v17  ;;  %v4998_v26 = vadd.f32 %v4982_v22, %v4971_v50  ;;  %v4999_v18 = vadd.f32 %v4983_v24, %v4971_v50 }
 0x61f   : > { %v5022_v0 = vpack.c.bf16 %v5009_v54, %v5008_v53  ;;  %v5012_v16 = vmax.f32 %v4996_v19, 0.0  ;;  %v5013_v61 = vmax.f32 %v4997_v8, 0.0  ;;  %v5010_v1 = vmax.f32 %v4994_v15, 0.0 }
 0x620   : > { %8035 = vmatprep.mubr.bf16.mxu1 %v5020_v57  ;;  %v5014_v62 = vmax.f32 %v4998_v26, 0.0  ;;  %v5015_v13 = vmax.f32 %v4999_v18, 0.0  ;;  %v5011_v39 = vmax.f32 %v4995_v40, 0.0  ;;  %v5002_v48 = vadd.f32 %v4986_v46, %v4971_v50 }
 0x621   : > { %8036 = vmatmul.mubr.bf16.vlgmr.msra.gmra.mxu1 %v5021_v63  ;;  %v5024_v52 = vpack.c.bf16 %v5013_v61, %v5012_v16  ;;  %v5003_v30 = vadd.f32 %v4987_v23, %v4971_v50  ;;  %v4985_v35 = vmul.f32 %v4969_v51, %v11089_v47  ;;  %v4984_v59 = vmul.f32 %v4969_v51, %v11079_v21  ;;  %v8754_v47 = vld [vmem:[#allocation10 + $0x88] sm:$0xff]   ;;  %v8755_v21 = vld [vmem:[#allocation10 + $0x80] sm:$0xff]  }
 0x622   : > { %8039 = vmatprep.mubr.bf16.mxu1 %v5022_v0  ;;  %v5025_v3 = vpack.c.bf16 %v5015_v13, %v5014_v62  ;;  %v5018_v4 = vmax.f32 %v5002_v48, 0.0  ;;  %v5023_v58 = vpack.c.bf16 %v5011_v39, %v5010_v1  ;;  %8055 = vmatprep.subr.bf16.mxu0 %v8754_v47 }
 0x623   : > { %v5019_v5 = vmax.f32 %v5003_v30, 0.0  ;;  %v5001_v10 = vadd.f32 %v4985_v35, %v4971_v50  ;;  %v5000_v9 = vadd.f32 %v4984_v59, %v4971_v50  ;;  %8056 = vmatpush3.bf16.msra.mxu0 %v8754_v47 }
 0x624   : > { %8057 = vmatprep.subr.bf16.mxu0 %v8755_v21 }
 0x625   : > { %v5027_v7 = vpack.c.bf16 %v5019_v5, %v5018_v4  ;;  %v5016_v25 = vmax.f32 %v5000_v9, 0.0  ;;  %v5017_v32 = vmax.f32 %v5001_v10, 0.0 }
 0x627   : > { %v5026_v34 = vpack.c.bf16 %v5017_v32, %v5016_v25  ;;  %8058 = vmatpush3.bf16.msra.mxu0 %v8755_v21 }
 0x629   : > { %8040 = vmatmul.mubr.bf16.gmra.mxu1 %v5023_v58 }
 0x62a   : > { %8043 = vmatprep.mubr.bf16.mxu1 %v5024_v52 }
 0x631   : > { %8044 = vmatmul.mubr.bf16.gmra.mxu1 %v5025_v3 }
 0x632   : > { %8047 = vmatprep.mubr.bf16.mxu1 %v5026_v34 }
 0x639   : > { %8048 = vmatmul.mubr.bf16.gmra.mxu1 %v5027_v7 }
 0x6e1   : > { %v11116_v51 = vpop.f32.mrf.mxu1 }
 0x6e2   : > { %v5229_v55 = vmul.f32 %v11116_v51, %v11116_v51  ;;  %v5193_v12 = vsel %vm5189_vm0, %v11116_v51, 0.0 }
 0x6e3   : > { %v11118_v56 = vpop.f32.mrf.mxu1 }
 0x6e4   : > { %v5227_v2 = vmul.f32 %v11118_v56, %v11118_v56  ;;  %v5190_v14 = vsel %vm5189_vm0, %v11118_v56, 0.0  ;;  %v5246_v41 = vsel %vm5189_vm0, %v5229_v55, 0.0 }
 0x6e5   : > { %v11120_v60 = vpop.f32.mrf.mxu1 }
 0x6e6   : > { %v5243_v29 = vsel %vm5189_vm0, %v5227_v2, 0.0  ;;  %v5230_v49 = vmul.f32 %v11120_v60, %v11120_v60  ;;  %v5195_v38 = vsel %vm5189_vm0, %v11120_v60, 0.0 }
 0x6e7   : > { %v11124_v50 = vpop.f32.mrf.mxu1 }
 0x6e8   : > { %v5191_v37 = vsel %vm5189_vm0, %v11124_v50, 0.0  ;;  %v5228_v43 = vmul.f32 %v11124_v50, %v11124_v50  ;;  %v5248_v28 = vsel %vm5189_vm0, %v5230_v49, 0.0 }
 0x6e9   : > { %v5192_v33 = vadd.f32 %v5191_v37, %v5190_v14  ;;  %v11134_v27 = vpop.f32.mrf.mxu1 }
 0x6ea   : > { %v5244_v6 = vsel %vm5189_vm0, %v5228_v43, 0.0  ;;  %v5233_v15 = vmul.f32 %v11134_v27, %v11134_v27  ;;  %v5201_v0 = vsel %vm5189_vm0, %v11134_v27, 0.0 }
 0x6eb   : > { %v5194_v42 = vadd.f32 %v5193_v12, %v5192_v33  ;;  %v5245_v11 = vadd.f32 %v5244_v6, %v5243_v29  ;;  %v11142_v20 = vpop.f32.mrf.mxu1 }
 0x6ec   : > { %v5231_v44 = vmul.f32 %v11142_v20, %v11142_v20  ;;  %v5197_v53 = vsel %vm5189_vm0, %v11142_v20, 0.0  ;;  %v5254_v52 = vsel %vm5189_vm0, %v5233_v15, 0.0 }
 0x6ed   : > { %v5247_v36 = vadd.f32 %v5246_v41, %v5245_v11  ;;  %v5196_v17 = vadd.f32 %v5195_v38, %v5194_v42  ;;  %v11149_v22 = vpop.f32.mrf.mxu1 }
 0x6ee   : > { %v5250_v19 = vsel %vm5189_vm0, %v5231_v44, 0.0  ;;  %v5234_v16 = vmul.f32 %v11149_v22, %v11149_v22  ;;  %v5203_v23 = vsel %vm5189_vm0, %v11149_v22, 0.0 }
 0x6ef   : > { %v5198_v54 = vadd.f32 %v5197_v53, %v5196_v17  ;;  %v5249_v24 = vadd.f32 %v5248_v28, %v5247_v36  ;;  %v11154_v57 = vpop.f32.mrf.mxu1 }
 0x6f0   : > { %v5199_v8 = vsel %vm5189_vm0, %v11154_v57, 0.0  ;;  %v5232_v63 = vmul.f32 %v11154_v57, %v11154_v57  ;;  %v5256_v30 = vsel %vm5189_vm0, %v5234_v16, 0.0 }
 0x6f1   : > { %v5251_v40 = vadd.f32 %v5250_v19, %v5249_v24  ;;  %v5200_v26 = vadd.f32 %v5199_v8, %v5198_v54  ;;  %v11163_v18 = vpop.f32.mrf.mxu1 }
 0x6f2   : > { %v5252_v61 = vsel %vm5189_vm0, %v5232_v63, 0.0  ;;  %v5237_v58 = vmul.f32 %v11163_v18, %v11163_v18  ;;  %v5209_v45 = vsel %vm5189_vm0, %v11163_v18, 0.0 }
 0x6f3   : > { %v5202_v62 = vadd.f32 %v5201_v0, %v5200_v26  ;;  %v5253_v13 = vadd.f32 %v5252_v61, %v5251_v40  ;;  %v11170_v46 = vpop.f32.mrf.mxu1 }
 0x6f4   : > { %v5235_v1 = vmul.f32 %v11170_v46, %v11170_v46  ;;  %v5205_v4 = vsel %vm5189_vm0, %v11170_v46, 0.0  ;;  %v5262_v14 = vsel %vm5189_vm0, %v5237_v58, 0.0 }
 0x6f5   : > { %v5255_v39 = vadd.f32 %v5254_v52, %v5253_v13  ;;  %v5204_v3 = vadd.f32 %v5203_v23, %v5202_v62  ;;  %v11177_v48 = vpop.f32.mrf.mxu1 }
 0x6f6   : > { %v5258_v10 = vsel %vm5189_vm0, %v5235_v1, 0.0  ;;  %v5238_v31 = vmul.f32 %v11177_v48, %v11177_v48  ;;  %v5211_v37 = vsel %vm5189_vm0, %v11177_v48, 0.0 }
 0x6f7   : > { %v5206_v35 = vadd.f32 %v5205_v4, %v5204_v3  ;;  %v5257_v59 = vadd.f32 %v5256_v30, %v5255_v39  ;;  %v11182_v5 = vpop.f32.mrf.mxu1 }
 0x6f8   : > { %v5207_v9 = vsel %vm5189_vm0, %v11182_v5, 0.0  ;;  %v5236_v7 = vmul.f32 %v11182_v5, %v11182_v5  ;;  %v5264_v49 = vsel %vm5189_vm0, %v5238_v31, 0.0  ;;  %v5285_v31 = vld [vmem:[#allocation4 + $0x4] ss:$0 sm:$0xff] }
 0x6f9   : > { %v5259_v25 = vadd.f32 %v5258_v10, %v5257_v59  ;;  %v5208_v32 = vadd.f32 %v5207_v9, %v5206_v35  ;;  %v11191_v34 = vpop.f32.mrf.mxu1 }
 0x6fa   : > { %v5260_v47 = vsel %vm5189_vm0, %v5236_v7, 0.0  ;;  %v5241_v38 = vmul.f32 %v11191_v34, %v11191_v34  ;;  %v5217_v54 = vsel %vm5189_vm0, %v11191_v34, 0.0 }
 0x6fb   : > { %v5210_v21 = vadd.f32 %v5209_v45, %v5208_v32  ;;  %v5261_v2 = vadd.f32 %v5260_v47, %v5259_v25  ;;  %v11198_v55 = vpop.f32.mrf.mxu1 }
 0x6fc   : > { %v5239_v43 = vmul.f32 %v11198_v55, %v11198_v55  ;;  %v5213_v6 = vsel %vm5189_vm0, %v11198_v55, 0.0  ;;  %v5270_v63 = vsel %vm5189_vm0, %v5241_v38, 0.0 }
 0x6fd   : > { %v5263_v33 = vadd.f32 %v5262_v14, %v5261_v2  ;;  %v5212_v12 = vadd.f32 %v5211_v37, %v5210_v21  ;;  %v11205_v29 = vpop.f32.mrf.mxu1  ;;  %v5286_v2 = vld [vmem:[#allocation4 + $0x27] ss:$0 sm:$0xff] }
 0x6fe   : > { %v5266_v44 = vsel %vm5189_vm0, %v5239_v43, 0.0  ;;  %v5242_v24 = vmul.f32 %v11205_v29, %v11205_v29  ;;  %v5219_v40 = vsel %vm5189_vm0, %v11205_v29, 0.0 }
 0x6ff   : > { %v5214_v42 = vadd.f32 %v5213_v6, %v5212_v12  ;;  %v5265_v11 = vadd.f32 %v5264_v49, %v5263_v33  ;;  %v11210_v41 = vpop.f32.mrf.mxu1 }
 0x700   : > { %v5215_v36 = vsel %vm5189_vm0, %v11210_v41, 0.0  ;;  %v5240_v17 = vmul.f32 %v11210_v41, %v11210_v41  ;;  %v5272_v16 = vsel %vm5189_vm0, %v5242_v24, 0.0 }
 0x701   : > { %v5267_v28 = vadd.f32 %v5266_v44, %v5265_v11  ;;  %v5216_v53 = vadd.f32 %v5215_v36, %v5214_v42 }
 0x702   : > { %v5268_v15 = vsel %vm5189_vm0, %v5240_v17, 0.0 }
 0x703   : > { %v5218_v19 = vadd.f32 %v5217_v54, %v5216_v53  ;;  %v5269_v8 = vadd.f32 %v5268_v15, %v5267_v28 }
 0x705   : > { %v5220_v26 = vadd.f32 %v5219_v40, %v5218_v19  ;;  %v5271_v0 = vadd.f32 %v5270_v63, %v5269_v8 }
 0x707   : > { %v5221_v61 = vrot.slane %v5220_v26, 4  ;;  %v5273_v62 = vadd.f32 %v5272_v16, %v5271_v0 }
 0x709   : > { %v5222_v13 = vadd.f32 %v5221_v61, %v5220_v26  ;;  %v5274_v52 = vrot.slane %v5273_v62, 4 }
 0x70b   : > { %v5223_v23 = vrot.slane %v5222_v13, 2  ;;  %v5275_v1 = vadd.f32 %v5274_v52, %v5273_v62 }
 0x70d   : > { %v5224_v39 = vadd.f32 %v5223_v23, %v5222_v13  ;;  %v5276_v3 = vrot.slane %v5275_v1, 2 }
 0x70f   : > { %v5225_v30 = vrot.slane %v5224_v39, 1  ;;  %v5277_v4 = vadd.f32 %v5276_v3, %v5275_v1 }
 0x711   : > { %v5226_v35 = vadd.f32 %v5225_v30, %v5224_v39  ;;  %v5278_v59 = vrot.slane %v5277_v4, 1 }
 0x713   : > { %v5279_v58 = vadd.f32 %v5278_v59, %v5277_v4  ;;  %v5280_v10 = vmul.f32 0.0078125, %v5226_v35 }
 0x715   : > { %v5281_v9 = vmul.f32 0.0078125, %v5279_v58  ;;  %v5282_v7 = vmul.f32 %v5280_v10, %v5280_v10 }
 0x717   : > { %v5283_v25 = vsub.f32 %v5281_v9, %v5282_v7 }
 0x719   : > { %v5284_v32 = vmax.f32 %v5283_v25, 0.0 }
 0x71b   : > { %v5287_v45 = vadd.f32 1e-05, %v5284_v32 }
 0x71d   : > { %8786 = vrsqrt.f32 %v5287_v45 }
 0x72a   : > { %v8787_v47 = vpop.eup %8786 }
 0x72b   : > { %v5289_v21 = vmul.f32 %v8787_v47, %v5285_v31  ;;  %v8757_v31 = vld [vmem:[#allocation10 + $0xb0] sm:$0xff]   ;;  %v8759_v47 = vld [vmem:[#allocation10 + $0xa0] sm:$0xff]  }
 0x72d   : > { %v5290_v14 = vmul.f32 %v5289_v21, %v5280_v10  ;;  %v5292_v43 = vmul.f32 %v5289_v21, %v11118_v56  ;;  %v5293_v33 = vmul.f32 %v5289_v21, %v11124_v50  ;;  %v5294_v12 = vmul.f32 %v11116_v51, %v5289_v21 }
 0x72e   : > { %v5295_v49 = vmul.f32 %v11120_v60, %v5289_v21  ;;  %v5296_v6 = vmul.f32 %v5289_v21, %v11142_v20  ;;  %v5297_v42 = vmul.f32 %v5289_v21, %v11154_v57  ;;  %v5298_v11 = vmul.f32 %v11134_v27, %v5289_v21 }
 0x72f   : > { %v5291_v37 = vsub.f32 %v5286_v2, %v5290_v14  ;;  %v5299_v17 = vmul.f32 %v11149_v22, %v5289_v21  ;;  %v5300_v50 = vmul.f32 %v5289_v21, %v11170_v46  ;;  %v5301_v60 = vmul.f32 %v5289_v21, %v11182_v5 }
 0x730   : > { %v5302_v27 = vmul.f32 %v11163_v18, %v5289_v21  ;;  %v5303_v22 = vmul.f32 %v11177_v48, %v5289_v21  ;;  %v5306_v18 = vmul.f32 %v11191_v34, %v5289_v21  ;;  %v5307_v52 = vmul.f32 %v11205_v29, %v5289_v21 }
 0x731   : > { %v5308_v38 = vadd.f32 %v5292_v43, %v5291_v37  ;;  %v5309_v44 = vadd.f32 %v5293_v33, %v5291_v37  ;;  %v5310_v36 = vadd.f32 %v5294_v12, %v5291_v37  ;;  %v5311_v28 = vadd.f32 %v5295_v49, %v5291_v37 }
 0x732   : > { %v5312_v53 = vadd.f32 %v5296_v6, %v5291_v37  ;;  %v5313_v56 = vadd.f32 %v5297_v42, %v5291_v37  ;;  %v5316_v8 = vadd.f32 %v5300_v50, %v5291_v37  ;;  %v5317_v63 = vadd.f32 %v5301_v60, %v5291_v37 }
 0x733   : > { %v5324_v54 = vmax.f32 %v5308_v38, 0.0  ;;  %v5325_v51 = vmax.f32 %v5309_v44, 0.0  ;;  %v5326_v24 = vmax.f32 %v5310_v36, 0.0  ;;  %v5327_v20 = vmax.f32 %v5311_v28, 0.0 }
 0x734   : > { %v5328_v15 = vmax.f32 %v5312_v53, 0.0  ;;  %v5329_v57 = vmax.f32 %v5313_v56, 0.0  ;;  %v5314_v26 = vadd.f32 %v5298_v11, %v5291_v37  ;;  %v5315_v0 = vadd.f32 %v5299_v17, %v5291_v37 }
 0x735   : > { %v5340_v19 = vpack.c.bf16 %v5325_v51, %v5324_v54  ;;  %v5341_v40 = vpack.c.bf16 %v5327_v20, %v5326_v24  ;;  %v5318_v16 = vadd.f32 %v5302_v27, %v5291_v37  ;;  %v5332_v61 = vmax.f32 %v5316_v8, 0.0 }
 0x736   : > { %v5342_v46 = vpack.c.bf16 %v5329_v57, %v5328_v15  ;;  %v5333_v62 = vmax.f32 %v5317_v63, 0.0  ;;  %v5319_v5 = vadd.f32 %v5303_v22, %v5291_v37  ;;  %v5330_v1 = vmax.f32 %v5314_v26, 0.0 }
 0x737   : > { %8059 = vmatprep.mubr.msk.bf16.mxu0 %vm5189_vm0, %v5340_v19  ;;  %v5334_v13 = vmax.f32 %v5318_v16, 0.0  ;;  %v5331_v39 = vmax.f32 %v5315_v0, 0.0  ;;  %v5322_v3 = vadd.f32 %v5306_v18, %v5291_v37  ;;  %v5323_v30 = vadd.f32 %v5307_v52, %v5291_v37 }
 0x738   : > { %8060 = vmatmul.mubr.msk.bf16.vlgmr.msra.gmra.mxu0 %vm5189_vm0, %v5341_v40  ;;  %v5344_v48 = vpack.c.bf16 %v5333_v62, %v5332_v61  ;;  %v5335_v23 = vmax.f32 %v5319_v5, 0.0  ;;  %v5305_v58 = vmul.f32 %v5289_v21, %v11210_v41  ;;  %v5304_v10 = vmul.f32 %v5289_v21, %v11198_v55  ;;  %v8756_v41 = vld [vmem:[#allocation10 + $0xb8] sm:$0xff]   ;;  %v8758_v55 = vld [vmem:[#allocation10 + $0xa8] sm:$0xff]  }
 0x739   : > { %8063 = vmatprep.mubr.msk.bf16.mxu0 %vm5189_vm0, %v5342_v46  ;;  %v5338_v35 = vmax.f32 %v5322_v3, 0.0  ;;  %v5339_v59 = vmax.f32 %v5323_v30, 0.0  ;;  %v5343_v9 = vpack.c.bf16 %v5331_v39, %v5330_v1  ;;  %8075 = vmatprep.subr.bf16.mxu1 %v8756_v41 }
 0x73a   : > { %v5345_v4 = vpack.c.bf16 %v5335_v23, %v5334_v13  ;;  %v5321_v34 = vadd.f32 %v5305_v58, %v5291_v37  ;;  %v5320_v25 = vadd.f32 %v5304_v10, %v5291_v37  ;;  %8076 = vmatpush3.bf16.msra.mxu1 %v8756_v41 }
 0x73b   : > { %v5347_v7 = vpack.c.bf16 %v5339_v59, %v5338_v35  ;;  %8077 = vmatprep.subr.bf16.mxu1 %v8757_v31 }
 0x73c   : > { %v5337_v29 = vmax.f32 %v5321_v34, 0.0  ;;  %v5336_v32 = vmax.f32 %v5320_v25, 0.0 }
 0x73e   : > { %v5346_v45 = vpack.c.bf16 %v5337_v29, %v5336_v32  ;;  %8078 = vmatpush3.bf16.msra.mxu1 %v8757_v31 }
 0x73f   : > { %8079 = vmatprep.subr.bf16.mxu1 %v8758_v55 }
 0x740   : > { %8064 = vmatmul.mubr.msk.bf16.gmra.mxu0 %vm5189_vm0, %v5343_v9 }
 0x741   : > { %8067 = vmatprep.mubr.msk.bf16.mxu0 %vm5189_vm0, %v5344_v48 }
 0x742   : > { %8080 = vmatpush3.bf16.msra.mxu1 %v8758_v55 }
 0x743   : > { %8081 = vmatprep.subr.bf16.mxu1 %v8759_v47 }
 0x746   : > { %8082 = vmatpush3.bf16.msra.mxu1 %v8759_v47 }
 0x748   : > { %8068 = vmatmul.mubr.msk.bf16.gmra.mxu0 %vm5189_vm0, %v5345_v4 }
 0x749   : > { %8071 = vmatprep.mubr.msk.bf16.mxu0 %vm5189_vm0, %v5346_v45 }
 0x750   : > { %8072 = vmatmul.mubr.msk.bf16.gmra.mxu0 %vm5189_vm0, %v5347_v7 }
 0x7f8   : > { %v11252_v21 = vpop.f32.mrf.mxu0 }
 0x7f9   : > { %v5540_v33 = vmul.f32 %v11252_v21, %v11252_v21  ;;  %v5504_v38 = vsel %vm5189_vm0, %v11252_v21, 0.0 }
 0x7fa   : > { %v11254_v2 = vpop.f32.mrf.mxu0 }
 0x7fb   : > { %v5538_v37 = vmul.f32 %v11254_v2, %v11254_v2  ;;  %v5501_v12 = vsel %vm5189_vm0, %v11254_v2, 0.0  ;;  %v5557_v50 = vsel %vm5189_vm0, %v5540_v33, 0.0 }
 0x7fc   : > { %v11256_v14 = vpop.f32.mrf.mxu0 }
 0x7fd   : > { %v5554_v44 = vsel %vm5189_vm0, %v5538_v37, 0.0  ;;  %v5541_v36 = vmul.f32 %v11256_v14, %v11256_v14  ;;  %v5506_v54 = vsel %vm5189_vm0, %v11256_v14, 0.0 }
 0x7fe   : > { %v11260_v43 = vpop.f32.mrf.mxu0 }
 0x7ff   : > { %v5502_v49 = vsel %vm5189_vm0, %v11260_v43, 0.0  ;;  %v5539_v6 = vmul.f32 %v11260_v43, %v11260_v43  ;;  %v5559_v15 = vsel %vm5189_vm0, %v5541_v36, 0.0 }
 0x800   : > { %v5503_v42 = vadd.f32 %v5502_v49, %v5501_v12  ;;  %v11270_v11 = vpop.f32.mrf.mxu0 }
 0x801   : > { %v5555_v17 = vsel %vm5189_vm0, %v5539_v6, 0.0  ;;  %v5544_v63 = vmul.f32 %v11270_v11, %v11270_v11  ;;  %v5512_v61 = vsel %vm5189_vm0, %v11270_v11, 0.0 }
 0x802   : > { %v5505_v28 = vadd.f32 %v5504_v38, %v5503_v42  ;;  %v5556_v53 = vadd.f32 %v5555_v17, %v5554_v44  ;;  %v11278_v56 = vpop.f32.mrf.mxu0 }
 0x803   : > { %v5542_v51 = vmul.f32 %v11278_v56, %v11278_v56  ;;  %v5508_v57 = vsel %vm5189_vm0, %v11278_v56, 0.0  ;;  %v5565_v48 = vsel %vm5189_vm0, %v5544_v63, 0.0 }
 0x804   : > { %v5558_v24 = vadd.f32 %v5557_v50, %v5556_v53  ;;  %v5507_v60 = vadd.f32 %v5506_v54, %v5505_v28  ;;  %v11285_v20 = vpop.f32.mrf.mxu0 }
 0x805   : > { %v5561_v22 = vsel %vm5189_vm0, %v5542_v51, 0.0  ;;  %v5545_v62 = vmul.f32 %v11285_v20, %v11285_v20  ;;  %v5514_v23 = vsel %vm5189_vm0, %v11285_v20, 0.0 }
 0x806   : > { %v5509_v27 = vadd.f32 %v5508_v57, %v5507_v60  ;;  %v5560_v19 = vadd.f32 %v5559_v15, %v5558_v24  ;;  %v11290_v8 = vpop.f32.mrf.mxu0 }
 0x807   : > { %v5510_v40 = vsel %vm5189_vm0, %v11290_v8, 0.0  ;;  %v5543_v26 = vmul.f32 %v11290_v8, %v11290_v8  ;;  %v5567_v4 = vsel %vm5189_vm0, %v5545_v62, 0.0 }
 0x808   : > { %v5562_v0 = vadd.f32 %v5561_v22, %v5560_v19  ;;  %v5511_v16 = vadd.f32 %v5510_v40, %v5509_v27  ;;  %v11299_v46 = vpop.f32.mrf.mxu0 }
 0x809   : > { %v5563_v5 = vsel %vm5189_vm0, %v5543_v26, 0.0  ;;  %v5548_v9 = vmul.f32 %v11299_v46, %v11299_v46  ;;  %v5520_v41 = vsel %vm5189_vm0, %v11299_v46, 0.0 }
 0x80a   : > { %v5513_v13 = vadd.f32 %v5512_v61, %v5511_v16  ;;  %v5564_v18 = vadd.f32 %v5563_v5, %v5562_v0  ;;  %v11306_v52 = vpop.f32.mrf.mxu0 }
 0x80b   : > { %v5546_v1 = vmul.f32 %v11306_v52, %v11306_v52  ;;  %v5516_v35 = vsel %vm5189_vm0, %v11306_v52, 0.0  ;;  %v5573_v12 = vsel %vm5189_vm0, %v5548_v9, 0.0 }
 0x80c   : > { %v5566_v39 = vadd.f32 %v5565_v48, %v5564_v18  ;;  %v5515_v3 = vadd.f32 %v5514_v23, %v5513_v13  ;;  %v11313_v30 = vpop.f32.mrf.mxu0 }
 0x80d   : > { %v5569_v7 = vsel %vm5189_vm0, %v5546_v1, 0.0  ;;  %v5549_v31 = vmul.f32 %v11313_v30, %v11313_v30  ;;  %v5522_v49 = vsel %vm5189_vm0, %v11313_v30, 0.0 }
 0x80e   : > { %v5517_v59 = vadd.f32 %v5516_v35, %v5515_v3  ;;  %v5568_v58 = vadd.f32 %v5567_v4, %v5566_v39  ;;  %v11318_v10 = vpop.f32.mrf.mxu0 }
 0x80f   : > { %v5518_v34 = vsel %vm5189_vm0, %v11318_v10, 0.0  ;;  %v5547_v25 = vmul.f32 %v11318_v10, %v11318_v10  ;;  %v5575_v36 = vsel %vm5189_vm0, %v5549_v31, 0.0  ;;  %v5596_v31 = vld [vmem:[#allocation4 + $0x5] ss:$0 sm:$0xff] }
 0x810   : > { %v5570_v29 = vadd.f32 %v5569_v7, %v5568_v58  ;;  %v5519_v32 = vadd.f32 %v5518_v34, %v5517_v59  ;;  %v11327_v45 = vpop.f32.mrf.mxu0 }
 0x811   : > { %v5571_v55 = vsel %vm5189_vm0, %v5547_v25, 0.0  ;;  %v5552_v54 = vmul.f32 %v11327_v45, %v11327_v45  ;;  %v5528_v27 = vsel %vm5189_vm0, %v11327_v45, 0.0 }
 0x812   : > { %v5521_v47 = vadd.f32 %v5520_v41, %v5519_v32  ;;  %v5572_v37 = vadd.f32 %v5571_v55, %v5570_v29  ;;  %v11334_v33 = vpop.f32.mrf.mxu0 }
 0x813   : > { %v5550_v6 = vmul.f32 %v11334_v33, %v11334_v33  ;;  %v5524_v17 = vsel %vm5189_vm0, %v11334_v33, 0.0  ;;  %v5581_v26 = vsel %vm5189_vm0, %v5552_v54, 0.0 }
 0x814   : > { %v5574_v42 = vadd.f32 %v5573_v12, %v5572_v37  ;;  %v5523_v38 = vadd.f32 %v5522_v49, %v5521_v47  ;;  %v11341_v44 = vpop.f32.mrf.mxu0  ;;  %v5597_v37 = vld [vmem:[#allocation4 + $0x40] ss:$0 sm:$0xff] }
 0x815   : > { %v5577_v51 = vsel %vm5189_vm0, %v5550_v6, 0.0  ;;  %v5553_v19 = vmul.f32 %v11341_v44, %v11341_v44  ;;  %v5530_v0 = vsel %vm5189_vm0, %v11341_v44, 0.0 }
 0x816   : > { %v5525_v28 = vadd.f32 %v5524_v17, %v5523_v38  ;;  %v5576_v53 = vadd.f32 %v5575_v36, %v5574_v42  ;;  %v11346_v50 = vpop.f32.mrf.mxu0 }
 0x817   : > { %v5526_v24 = vsel %vm5189_vm0, %v11346_v50, 0.0  ;;  %v5551_v60 = vmul.f32 %v11346_v50, %v11346_v50  ;;  %v5583_v62 = vsel %vm5189_vm0, %v5553_v19, 0.0 }
 0x818   : > { %v5578_v15 = vadd.f32 %v5577_v51, %v5576_v53  ;;  %v5527_v57 = vadd.f32 %v5526_v24, %v5525_v28 }
 0x819   : > { %v5579_v63 = vsel %vm5189_vm0, %v5551_v60, 0.0 }
 0x81a   : > { %v5529_v22 = vadd.f32 %v5528_v27, %v5527_v57  ;;  %v5580_v40 = vadd.f32 %v5579_v63, %v5578_v15 }
 0x81c   : > { %v5531_v16 = vadd.f32 %v5530_v0, %v5529_v22  ;;  %v5582_v61 = vadd.f32 %v5581_v26, %v5580_v40 }
 0x81e   : > { %v5532_v5 = vrot.slane %v5531_v16, 4  ;;  %v5584_v13 = vadd.f32 %v5583_v62, %v5582_v61 }
 0x820   : > { %v5533_v18 = vadd.f32 %v5532_v5, %v5531_v16  ;;  %v5585_v48 = vrot.slane %v5584_v13, 4 }
 0x822   : > { %v5534_v23 = vrot.slane %v5533_v18, 2  ;;  %v5586_v1 = vadd.f32 %v5585_v48, %v5584_v13 }
 0x824   : > { %v5535_v39 = vadd.f32 %v5534_v23, %v5533_v18  ;;  %v5587_v3 = vrot.slane %v5586_v1, 2 }
 0x826   : > { %v5536_v4 = vrot.slane %v5535_v39, 1  ;;  %v5588_v35 = vadd.f32 %v5587_v3, %v5586_v1 }
 0x828   : > { %v5537_v59 = vadd.f32 %v5536_v4, %v5535_v39  ;;  %v5589_v58 = vrot.slane %v5588_v35, 1 }
 0x82a   : > { %v5590_v9 = vadd.f32 %v5589_v58, %v5588_v35  ;;  %v5591_v7 = vmul.f32 0.0078125, %v5537_v59 }
 0x82c   : > { %v5592_v34 = vmul.f32 0.0078125, %v5590_v9  ;;  %v5593_v25 = vmul.f32 %v5591_v7, %v5591_v7 }
 0x82e   : > { %v5594_v29 = vsub.f32 %v5592_v34, %v5593_v25 }
 0x830   : > { %v5595_v32 = vmax.f32 %v5594_v29, 0.0 }
 0x832   : > { %v5598_v41 = vadd.f32 1e-05, %v5595_v32 }
 0x834   : > { %8788 = vrsqrt.f32 %v5598_v41 }
 0x841   : > { %v8789_v55 = vpop.eup %8788 }
 0x842   : > { %v5600_v47 = vmul.f32 %v8789_v55, %v5596_v31  ;;  %v8761_v31 = vld [vmem:[#allocation10 + $0xc0] sm:$0xff]  }
 0x844   : > { %v5601_v12 = vmul.f32 %v5600_v47, %v5591_v7  ;;  %v5603_v6 = vmul.f32 %v5600_v47, %v11254_v2  ;;  %v5604_v42 = vmul.f32 %v5600_v47, %v11260_v43  ;;  %v5605_v38 = vmul.f32 %v11252_v21, %v5600_v47 }
 0x845   : > { %v5606_v36 = vmul.f32 %v11256_v14, %v5600_v47  ;;  %v5607_v17 = vmul.f32 %v5600_v47, %v11278_v56  ;;  %v5608_v28 = vmul.f32 %v5600_v47, %v11290_v8  ;;  %v5609_v53 = vmul.f32 %v11270_v11, %v5600_v47 }
 0x846   : > { %v5602_v49 = vsub.f32 %v5597_v37, %v5601_v12  ;;  %v5610_v60 = vmul.f32 %v11285_v20, %v5600_v47  ;;  %v5611_v43 = vmul.f32 %v5600_v47, %v11306_v52  ;;  %v5612_v14 = vmul.f32 %v5600_v47, %v11318_v10 }
 0x847   : > { %v5613_v11 = vmul.f32 %v11299_v46, %v5600_v47  ;;  %v5614_v20 = vmul.f32 %v11313_v30, %v5600_v47  ;;  %v5617_v46 = vmul.f32 %v11327_v45, %v5600_v47  ;;  %v5618_v48 = vmul.f32 %v11341_v44, %v5600_v47 }
 0x848   : > { %v5619_v54 = vadd.f32 %v5603_v6, %v5602_v49  ;;  %v5620_v51 = vadd.f32 %v5604_v42, %v5602_v49  ;;  %v5621_v24 = vadd.f32 %v5605_v38, %v5602_v49  ;;  %v5622_v15 = vadd.f32 %v5606_v36, %v5602_v49 }
 0x849   : > { %v5623_v57 = vadd.f32 %v5607_v17, %v5602_v49  ;;  %v5624_v2 = vadd.f32 %v5608_v28, %v5602_v49  ;;  %v5627_v40 = vadd.f32 %v5611_v43, %v5602_v49  ;;  %v5628_v26 = vadd.f32 %v5612_v14, %v5602_v49 }
 0x84a   : > { %v5635_v27 = vmax.f32 %v5619_v54, 0.0  ;;  %v5636_v21 = vmax.f32 %v5620_v51, 0.0  ;;  %v5637_v19 = vmax.f32 %v5621_v24, 0.0  ;;  %v5638_v56 = vmax.f32 %v5622_v15, 0.0 }
 0x84b   : > { %v5639_v63 = vmax.f32 %v5623_v57, 0.0  ;;  %v5640_v8 = vmax.f32 %v5624_v2, 0.0  ;;  %v5625_v16 = vadd.f32 %v5609_v53, %v5602_v49  ;;  %v5626_v61 = vadd.f32 %v5610_v60, %v5602_v49 }
 0x84c   : > { %v5651_v22 = vpack.c.bf16 %v5636_v21, %v5635_v27  ;;  %v5652_v0 = vpack.c.bf16 %v5638_v56, %v5637_v19  ;;  %v5629_v62 = vadd.f32 %v5613_v11, %v5602_v49  ;;  %v5643_v5 = vmax.f32 %v5627_v40, 0.0 }
 0x84d   : > { %v5653_v52 = vpack.c.bf16 %v5640_v8, %v5639_v63  ;;  %v5644_v13 = vmax.f32 %v5628_v26, 0.0  ;;  %v5630_v10 = vadd.f32 %v5614_v20, %v5602_v49  ;;  %v5641_v1 = vmax.f32 %v5625_v16, 0.0 }
 0x84e   : > { %8083 = vmatprep.mubr.msk.bf16.mxu1 %vm5189_vm0, %v5651_v22  ;;  %v5645_v18 = vmax.f32 %v5629_v62, 0.0  ;;  %v5642_v39 = vmax.f32 %v5626_v61, 0.0  ;;  %v5633_v3 = vadd.f32 %v5617_v46, %v5602_v49  ;;  %v5634_v4 = vadd.f32 %v5618_v48, %v5602_v49 }
 0x84f   : > { %8084 = vmatmul.mubr.msk.bf16.vlgmr.msra.gmra.mxu1 %vm5189_vm0, %v5652_v0  ;;  %v5655_v30 = vpack.c.bf16 %v5644_v13, %v5643_v5  ;;  %v5646_v23 = vmax.f32 %v5630_v10, 0.0  ;;  %v5616_v9 = vmul.f32 %v5600_v47, %v11346_v50  ;;  %v5615_v7 = vmul.f32 %v5600_v47, %v11334_v33  ;;  %v8760_v50 = vld [vmem:[#allocation10 + $0xc8] sm:$0xff]  }
 0x850   : > { %8087 = vmatprep.mubr.msk.bf16.mxu1 %vm5189_vm0, %v5653_v52  ;;  %v5649_v59 = vmax.f32 %v5633_v3, 0.0  ;;  %v5650_v58 = vmax.f32 %v5634_v4, 0.0  ;;  %v5654_v34 = vpack.c.bf16 %v5642_v39, %v5641_v1  ;;  %8099 = vmatprep.subr.bf16.mxu0 %v8760_v50 }
 0x851   : > { %v5656_v35 = vpack.c.bf16 %v5646_v23, %v5645_v18  ;;  %v5632_v45 = vadd.f32 %v5616_v9, %v5602_v49  ;;  %v5631_v29 = vadd.f32 %v5615_v7, %v5602_v49  ;;  %8100 = vmatpush3.bf16.msra.mxu0 %v8760_v50 }
 0x852   : > { %v5658_v25 = vpack.c.bf16 %v5650_v58, %v5649_v59  ;;  %8101 = vmatprep.subr.bf16.mxu0 %v8761_v31 }
 0x853   : > { %v5648_v44 = vmax.f32 %v5632_v45, 0.0  ;;  %v5647_v32 = vmax.f32 %v5631_v29, 0.0 }
 0x855   : > { %v5657_v41 = vpack.c.bf16 %v5648_v44, %v5647_v32  ;;  %8102 = vmatpush3.bf16.msra.mxu0 %v8761_v31 }
 0x857   : > { %8088 = vmatmul.mubr.msk.bf16.gmra.mxu1 %vm5189_vm0, %v5654_v34 }
 0x858   : > { %8091 = vmatprep.mubr.msk.bf16.mxu1 %vm5189_vm0, %v5655_v30 }
 0x85f   : > { %8092 = vmatmul.mubr.msk.bf16.gmra.mxu1 %vm5189_vm0, %v5656_v35 }
 0x860   : > { %8095 = vmatprep.mubr.msk.bf16.mxu1 %vm5189_vm0, %v5657_v41 }
 0x867   : > { %8096 = vmatmul.mubr.msk.bf16.gmra.mxu1 %vm5189_vm0, %v5658_v25 }
 0x90f   : > { %v11388_v33 = vpop.f32.mrf.mxu1 }
 0x910   : > { %v5852_v49 = vmul.f32 %v11388_v33, %v11388_v33  ;;  %v5816_v28 = vsel %vm5812_vm1, %v11388_v33, 0.0 }
 0x911   : > { %v11390_v55 = vpop.f32.mrf.mxu1 }
 0x912   : > { %v5850_v37 = vmul.f32 %v11390_v55, %v11390_v55  ;;  %v5813_v6 = vsel %vm5812_vm1, %v11390_v55, 0.0  ;;  %v5869_v57 = vsel %vm5812_vm1, %v5852_v49, 0.0 }
 0x913   : > { %v11392_v47 = vpop.f32.mrf.mxu1 }
 0x914   : > { %v5866_v53 = vsel %vm5812_vm1, %v5850_v37, 0.0  ;;  %v5853_v54 = vmul.f32 %v11392_v47, %v11392_v47  ;;  %v5818_v2 = vsel %vm5812_vm1, %v11392_v47, 0.0 }
 0x915   : > { %v11396_v12 = vpop.f32.mrf.mxu1 }
 0x916   : > { %v5814_v42 = vsel %vm5812_vm1, %v11396_v12, 0.0  ;;  %v5851_v38 = vmul.f32 %v11396_v12, %v11396_v12  ;;  %v5871_v14 = vsel %vm5812_vm1, %v5853_v54, 0.0 }
 0x917   : > { %v5815_v36 = vadd.f32 %v5814_v42, %v5813_v6  ;;  %v11406_v17 = vpop.f32.mrf.mxu1 }
 0x918   : > { %v5867_v51 = vsel %vm5812_vm1, %v5851_v38, 0.0  ;;  %v5856_v22 = vmul.f32 %v11406_v17, %v11406_v17  ;;  %v5824_v62 = vsel %vm5812_vm1, %v11406_v17, 0.0 }
 0x919   : > { %v5817_v24 = vadd.f32 %v5816_v28, %v5815_v36  ;;  %v5868_v60 = vadd.f32 %v5867_v51, %v5866_v53  ;;  %v11414_v15 = vpop.f32.mrf.mxu1 }
 0x91a   : > { %v5854_v43 = vmul.f32 %v11414_v15, %v11414_v15  ;;  %v5820_v56 = vsel %vm5812_vm1, %v11414_v15, 0.0  ;;  %v5877_v46 = vsel %vm5812_vm1, %v5856_v22, 0.0 }
 0x91b   : > { %v5870_v27 = vadd.f32 %v5869_v57, %v5868_v60  ;;  %v5819_v21 = vadd.f32 %v5818_v2, %v5817_v24  ;;  %v11421_v19 = vpop.f32.mrf.mxu1 }
 0x91c   : > { %v5873_v40 = vsel %vm5812_vm1, %v5854_v43, 0.0  ;;  %v5857_v52 = vmul.f32 %v11421_v19, %v11421_v19  ;;  %v5826_v48 = vsel %vm5812_vm1, %v11421_v19, 0.0 }
 0x91d   : > { %v5821_v63 = vadd.f32 %v5820_v56, %v5819_v21  ;;  %v5872_v8 = vadd.f32 %v5871_v14, %v5870_v27  ;;  %v11426_v11 = vpop.f32.mrf.mxu1 }
 0x91e   : > { %v5822_v26 = vsel %vm5812_vm1, %v11426_v11, 0.0  ;;  %v5855_v20 = vmul.f32 %v11426_v11, %v11426_v11  ;;  %v5879_v3 = vsel %vm5812_vm1, %v5857_v52, 0.0 }
 0x91f   : > { %v5874_v0 = vadd.f32 %v5873_v40, %v5872_v8  ;;  %v5823_v16 = vadd.f32 %v5822_v26, %v5821_v63  ;;  %v11435_v61 = vpop.f32.mrf.mxu1 }
 0x920   : > { %v5875_v5 = vsel %vm5812_vm1, %v5855_v20, 0.0  ;;  %v5860_v9 = vmul.f32 %v11435_v61, %v11435_v61  ;;  %v5832_v32 = vsel %vm5812_vm1, %v11435_v61, 0.0 }
 0x921   : > { %v5825_v13 = vadd.f32 %v5824_v62, %v5823_v16  ;;  %v5876_v10 = vadd.f32 %v5875_v5, %v5874_v0  ;;  %v11442_v18 = vpop.f32.mrf.mxu1 }
 0x922   : > { %v5858_v30 = vmul.f32 %v11442_v18, %v11442_v18  ;;  %v5828_v4 = vsel %vm5812_vm1, %v11442_v18, 0.0  ;;  %v5885_v6 = vsel %vm5812_vm1, %v5860_v9, 0.0 }
 0x923   : > { %v5878_v23 = vadd.f32 %v5877_v46, %v5876_v10  ;;  %v5827_v1 = vadd.f32 %v5826_v48, %v5825_v13  ;;  %v11449_v39 = vpop.f32.mrf.mxu1 }
 0x924   : > { %v5881_v7 = vsel %vm5812_vm1, %v5858_v30, 0.0  ;;  %v5861_v41 = vmul.f32 %v11449_v39, %v11449_v39  ;;  %v5834_v42 = vsel %vm5812_vm1, %v11449_v39, 0.0 }
 0x925   : > { %v5829_v35 = vadd.f32 %v5828_v4, %v5827_v1  ;;  %v5880_v59 = vadd.f32 %v5879_v3, %v5878_v23  ;;  %v11454_v58 = vpop.f32.mrf.mxu1 }
 0x926   : > { %v5830_v34 = vsel %vm5812_vm1, %v11454_v58, 0.0  ;;  %v5859_v25 = vmul.f32 %v11454_v58, %v11454_v58  ;;  %v5887_v54 = vsel %vm5812_vm1, %v5861_v41, 0.0  ;;  %v5908_v41 = vld [vmem:[#allocation4 + $0x6] ss:$0 sm:$0xff] }
 0x927   : > { %v5882_v45 = vadd.f32 %v5881_v7, %v5880_v59  ;;  %v5831_v29 = vadd.f32 %v5830_v34, %v5829_v35  ;;  %v11463_v44 = vpop.f32.mrf.mxu1 }
 0x928   : > { %v5883_v50 = vsel %vm5812_vm1, %v5859_v25, 0.0  ;;  %v5864_v2 = vmul.f32 %v11463_v44, %v11463_v44  ;;  %v5840_v63 = vsel %vm5812_vm1, %v11463_v44, 0.0 }
 0x929   : > { %v5833_v31 = vadd.f32 %v5832_v32, %v5831_v29  ;;  %v5884_v37 = vadd.f32 %v5883_v50, %v5882_v45  ;;  %v11470_v49 = vpop.f32.mrf.mxu1 }
 0x92a   : > { %v5862_v38 = vmul.f32 %v11470_v49, %v11470_v49  ;;  %v5836_v51 = vsel %vm5812_vm1, %v11470_v49, 0.0  ;;  %v5893_v20 = vsel %vm5812_vm1, %v5864_v2, 0.0 }
 0x92b   : > { %v5886_v36 = vadd.f32 %v5885_v6, %v5884_v37  ;;  %v5835_v28 = vadd.f32 %v5834_v42, %v5833_v31  ;;  %v11477_v53 = vpop.f32.mrf.mxu1  ;;  %v5909_v37 = vld [vmem:[#allocation4 + $0x41] ss:$0 sm:$0xff] }
 0x92c   : > { %v5889_v43 = vsel %vm5812_vm1, %v5862_v38, 0.0  ;;  %v5865_v8 = vmul.f32 %v11477_v53, %v11477_v53  ;;  %v5842_v0 = vsel %vm5812_vm1, %v11477_v53, 0.0 }
 0x92d   : > { %v5837_v24 = vadd.f32 %v5836_v51, %v5835_v28  ;;  %v5888_v60 = vadd.f32 %v5887_v54, %v5886_v36  ;;  %v11482_v57 = vpop.f32.mrf.mxu1 }
 0x92e   : > { %v5838_v27 = vsel %vm5812_vm1, %v11482_v57, 0.0  ;;  %v5863_v21 = vmul.f32 %v11482_v57, %v11482_v57  ;;  %v5895_v52 = vsel %vm5812_vm1, %v5865_v8, 0.0 }
 0x92f   : > { %v5890_v14 = vadd.f32 %v5889_v43, %v5888_v60  ;;  %v5839_v56 = vadd.f32 %v5838_v27, %v5837_v24 }
 0x930   : > { %v5891_v22 = vsel %vm5812_vm1, %v5863_v21, 0.0 }
 0x931   : > { %v5841_v40 = vadd.f32 %v5840_v63, %v5839_v56  ;;  %v5892_v26 = vadd.f32 %v5891_v22, %v5890_v14 }
 0x933   : > { %v5843_v16 = vadd.f32 %v5842_v0, %v5841_v40  ;;  %v5894_v62 = vadd.f32 %v5893_v20, %v5892_v26 }
 0x935   : > { %v5844_v5 = vrot.slane %v5843_v16, 4  ;;  %v5896_v13 = vadd.f32 %v5895_v52, %v5894_v62 }
 0x937   : > { %v5845_v10 = vadd.f32 %v5844_v5, %v5843_v16  ;;  %v5897_v46 = vrot.slane %v5896_v13, 4 }
 0x939   : > { %v5846_v48 = vrot.slane %v5845_v10, 2  ;;  %v5898_v30 = vadd.f32 %v5897_v46, %v5896_v13 }
 0x93b   : > { %v5847_v23 = vadd.f32 %v5846_v48, %v5845_v10  ;;  %v5899_v1 = vrot.slane %v5898_v30, 2 }
 0x93d   : > { %v5848_v3 = vrot.slane %v5847_v23, 1  ;;  %v5900_v4 = vadd.f32 %v5899_v1, %v5898_v30 }
 0x93f   : > { %v5849_v35 = vadd.f32 %v5848_v3, %v5847_v23  ;;  %v5901_v59 = vrot.slane %v5900_v4, 1 }
 0x941   : > { %v5902_v9 = vadd.f32 %v5901_v59, %v5900_v4  ;;  %v5903_v7 = vmul.f32 0.0078125, %v5849_v35 }
 0x943   : > { %v5904_v34 = vmul.f32 0.0078125, %v5902_v9  ;;  %v5905_v25 = vmul.f32 %v5903_v7, %v5903_v7 }
 0x945   : > { %v5906_v45 = vsub.f32 %v5904_v34, %v5905_v25 }
 0x947   : > { %v5907_v29 = vmax.f32 %v5906_v45, 0.0 }
 0x949   : > { %v5910_v32 = vadd.f32 1e-05, %v5907_v29 }
 0x94b   : > { %8790 = vrsqrt.f32 %v5910_v32 }
 0x958   : > { %v8791_v50 = vpop.eup %8790 }
 0x959   : > { %v5912_v31 = vmul.f32 %v8791_v50, %v5908_v41  ;;  %v8763_v41 = vld [vmem:[#allocation10 + $0xd0] sm:$0xff]  }
 0x95b   : > { %v5913_v6 = vmul.f32 %v5912_v31, %v5903_v7  ;;  %v5915_v38 = vmul.f32 %v5912_v31, %v11390_v55  ;;  %v5916_v36 = vmul.f32 %v5912_v31, %v11396_v12  ;;  %v5917_v28 = vmul.f32 %v11388_v33, %v5912_v31 }
 0x95c   : > { %v5918_v54 = vmul.f32 %v11392_v47, %v5912_v31  ;;  %v5919_v51 = vmul.f32 %v5912_v31, %v11414_v15  ;;  %v5920_v24 = vmul.f32 %v5912_v31, %v11426_v11  ;;  %v5921_v60 = vmul.f32 %v11406_v17, %v5912_v31 }
 0x95d   : > { %v5914_v42 = vsub.f32 %v5909_v37, %v5913_v6  ;;  %v5922_v21 = vmul.f32 %v11421_v19, %v5912_v31  ;;  %v5923_v12 = vmul.f32 %v5912_v31, %v11442_v18  ;;  %v5924_v47 = vmul.f32 %v5912_v31, %v11454_v58 }
 0x95e   : > { %v5925_v17 = vmul.f32 %v11435_v61, %v5912_v31  ;;  %v5926_v19 = vmul.f32 %v11449_v39, %v5912_v31  ;;  %v5929_v61 = vmul.f32 %v11463_v44, %v5912_v31  ;;  %v5930_v46 = vmul.f32 %v11477_v53, %v5912_v31 }
 0x95f   : > { %v5931_v2 = vadd.f32 %v5915_v38, %v5914_v42  ;;  %v5932_v43 = vadd.f32 %v5916_v36, %v5914_v42  ;;  %v5933_v27 = vadd.f32 %v5917_v28, %v5914_v42  ;;  %v5934_v14 = vadd.f32 %v5918_v54, %v5914_v42 }
 0x960   : > { %v5935_v56 = vadd.f32 %v5919_v51, %v5914_v42  ;;  %v5936_v55 = vadd.f32 %v5920_v24, %v5914_v42  ;;  %v5939_v26 = vadd.f32 %v5923_v12, %v5914_v42  ;;  %v5940_v20 = vadd.f32 %v5924_v47, %v5914_v42 }
 0x961   : > { %v5947_v63 = vmax.f32 %v5931_v2, 0.0  ;;  %v5948_v33 = vmax.f32 %v5932_v43, 0.0  ;;  %v5949_v8 = vmax.f32 %v5933_v27, 0.0  ;;  %v5950_v15 = vmax.f32 %v5934_v14, 0.0 }
 0x962   : > { %v5951_v22 = vmax.f32 %v5935_v56, 0.0  ;;  %v5952_v11 = vmax.f32 %v5936_v55, 0.0  ;;  %v5937_v16 = vadd.f32 %v5921_v60, %v5914_v42  ;;  %v5938_v62 = vadd.f32 %v5922_v21, %v5914_v42 }
 0x963   : > { %v5963_v40 = vpack.c.bf16 %v5948_v33, %v5947_v63  ;;  %v5964_v0 = vpack.c.bf16 %v5950_v15, %v5949_v8  ;;  %v5941_v52 = vadd.f32 %v5925_v17, %v5914_v42  ;;  %v5955_v5 = vmax.f32 %v5939_v26, 0.0 }
 0x964   : > { %v5965_v18 = vpack.c.bf16 %v5952_v11, %v5951_v22  ;;  %v5956_v13 = vmax.f32 %v5940_v20, 0.0  ;;  %v5942_v58 = vadd.f32 %v5926_v19, %v5914_v42  ;;  %v5953_v30 = vmax.f32 %v5937_v16, 0.0 }
 0x965   : > { %8103 = vmatprep.mubr.msk.bf16.mxu0 %vm5812_vm1, %v5963_v40  ;;  %v5957_v10 = vmax.f32 %v5941_v52, 0.0  ;;  %v5954_v23 = vmax.f32 %v5938_v62, 0.0  ;;  %v5945_v1 = vadd.f32 %v5929_v61, %v5914_v42  ;;  %v5946_v3 = vadd.f32 %v5930_v46, %v5914_v42 }
 0x966   : > { %8104 = vmatmul.mubr.msk.bf16.vlgmr.msra.gmra.mxu0 %vm5812_vm1, %v5964_v0  ;;  %v5967_v39 = vpack.c.bf16 %v5956_v13, %v5955_v5  ;;  %v5958_v48 = vmax.f32 %v5942_v58, 0.0  ;;  %v5928_v9 = vmul.f32 %v5912_v31, %v11482_v57  ;;  %v5927_v7 = vmul.f32 %v5912_v31, %v11470_v49  ;;  %v8762_v57 = vld [vmem:[#allocation10 + $0xd8] sm:$0xff]  }
 0x967   : > { %8107 = vmatprep.mubr.msk.bf16.mxu0 %vm5812_vm1, %v5965_v18  ;;  %v5961_v35 = vmax.f32 %v5945_v1, 0.0  ;;  %v5962_v59 = vmax.f32 %v5946_v3, 0.0  ;;  %v5966_v34 = vpack.c.bf16 %v5954_v23, %v5953_v30  ;;  %8119 = vmatprep.subr.bf16.mxu1 %v8762_v57 }
 0x968   : > { %v5968_v4 = vpack.c.bf16 %v5958_v48, %v5957_v10  ;;  %v5944_v44 = vadd.f32 %v5928_v9, %v5914_v42  ;;  %v5943_v45 = vadd.f32 %v5927_v7, %v5914_v42  ;;  %8120 = vmatpush3.bf16.msra.mxu1 %v8762_v57 }
 0x969   : > { %v5970_v25 = vpack.c.bf16 %v5962_v59, %v5961_v35  ;;  %8121 = vmatprep.subr.bf16.mxu1 %v8763_v41 }
 0x96a   : > { %v5960_v53 = vmax.f32 %v5944_v44, 0.0  ;;  %v5959_v29 = vmax.f32 %v5943_v45, 0.0 }
 0x96c   : > { %v5969_v32 = vpack.c.bf16 %v5960_v53, %v5959_v29  ;;  %8122 = vmatpush3.bf16.msra.mxu1 %v8763_v41 }
 0x96e   : > { %8108 = vmatmul.mubr.msk.bf16.gmra.mxu0 %vm5812_vm1, %v5966_v34 }
 0x96f   : > { %8111 = vmatprep.mubr.msk.bf16.mxu0 %vm5812_vm1, %v5967_v39 }
 0x976   : > { %8112 = vmatmul.mubr.msk.bf16.gmra.mxu0 %vm5812_vm1, %v5968_v4 }
 0x977   : > { %8115 = vmatprep.mubr.msk.bf16.mxu0 %vm5812_vm1, %v5969_v32 }
 0x97e   : > { %8116 = vmatmul.mubr.msk.bf16.gmra.mxu0 %vm5812_vm1, %v5970_v25 }
 0xa26   : > { %v11524_v49 = vpop.f32.mrf.mxu0 }
 0xa27   : > { %v6147_v42 = vmul.f32 %v11524_v49, %v11524_v49  ;;  %v6111_v24 = vsel %vm5812_vm1, %v11524_v49, 0.0 }
 0xa28   : > { %v11526_v50 = vpop.f32.mrf.mxu0 }
 0xa29   : > { %v6145_v37 = vmul.f32 %v11526_v50, %v11526_v50  ;;  %v6108_v38 = vsel %vm5812_vm1, %v11526_v50, 0.0  ;;  %v6164_v56 = vsel %vm5812_vm1, %v6147_v42, 0.0 }
 0xa2a   : > { %v11528_v31 = vpop.f32.mrf.mxu0 }
 0xa2b   : > { %v6161_v60 = vsel %vm5812_vm1, %v6145_v37, 0.0  ;;  %v6148_v2 = vmul.f32 %v11528_v31, %v11528_v31  ;;  %v6113_v55 = vsel %vm5812_vm1, %v11528_v31, 0.0 }
 0xa2c   : > { %v11532_v6 = vpop.f32.mrf.mxu0 }
 0xa2d   : > { %v6109_v36 = vsel %vm5812_vm1, %v11532_v6, 0.0  ;;  %v6146_v28 = vmul.f32 %v11532_v6, %v11532_v6  ;;  %v6166_v47 = vsel %vm5812_vm1, %v6148_v2, 0.0 }
 0xa2e   : > { %v6110_v54 = vadd.f32 %v6109_v36, %v6108_v38  ;;  %v11542_v51 = vpop.f32.mrf.mxu0 }
 0xa2f   : > { %v6162_v43 = vsel %vm5812_vm1, %v6146_v28, 0.0  ;;  %v6151_v40 = vmul.f32 %v11542_v51, %v11542_v51  ;;  %v6119_v52 = vsel %vm5812_vm1, %v11542_v51, 0.0 }
 0xa30   : > { %v6112_v27 = vadd.f32 %v6111_v24, %v6110_v54  ;;  %v6163_v21 = vadd.f32 %v6162_v43, %v6161_v60  ;;  %v11550_v14 = vpop.f32.mrf.mxu0 }
 0xa31   : > { %v6149_v12 = vmul.f32 %v11550_v14, %v11550_v14  ;;  %v6115_v15 = vsel %vm5812_vm1, %v11550_v14, 0.0  ;;  %v6172_v61 = vsel %vm5812_vm1, %v6151_v40, 0.0 }
 0xa32   : > { %v6165_v63 = vadd.f32 %v6164_v56, %v6163_v21  ;;  %v6114_v33 = vadd.f32 %v6113_v55, %v6112_v27  ;;  %v11557_v8 = vpop.f32.mrf.mxu0 }
 0xa33   : > { %v6168_v26 = vsel %vm5812_vm1, %v6149_v12, 0.0  ;;  %v6152_v18 = vmul.f32 %v11557_v8, %v11557_v8  ;;  %v6121_v46 = vsel %vm5812_vm1, %v11557_v8, 0.0 }
 0xa34   : > { %v6116_v22 = vadd.f32 %v6115_v15, %v6114_v33  ;;  %v6167_v11 = vadd.f32 %v6166_v47, %v6165_v63  ;;  %v11562_v17 = vpop.f32.mrf.mxu0 }
 0xa35   : > { %v6117_v20 = vsel %vm5812_vm1, %v11562_v17, 0.0  ;;  %v6150_v19 = vmul.f32 %v11562_v17, %v11562_v17  ;;  %v6174_v1 = vsel %vm5812_vm1, %v6152_v18, 0.0 }
 0xa36   : > { %v6169_v0 = vadd.f32 %v6168_v26, %v6167_v11  ;;  %v6118_v16 = vadd.f32 %v6117_v20, %v6116_v22  ;;  %v11571_v62 = vpop.f32.mrf.mxu0 }
 0xa37   : > { %v6170_v5 = vsel %vm5812_vm1, %v6150_v19, 0.0  ;;  %v6155_v9 = vmul.f32 %v11571_v62, %v11571_v62  ;;  %v6127_v29 = vsel %vm5812_vm1, %v11571_v62, 0.0 }
 0xa38   : > { %v6120_v13 = vadd.f32 %v6119_v52, %v6118_v16  ;;  %v6171_v58 = vadd.f32 %v6170_v5, %v6169_v0  ;;  %v11578_v10 = vpop.f32.mrf.mxu0 }
 0xa39   : > { %v6153_v39 = vmul.f32 %v11578_v10, %v11578_v10  ;;  %v6123_v3 = vsel %vm5812_vm1, %v11578_v10, 0.0  ;;  %v6180_v38 = vsel %vm5812_vm1, %v6155_v9, 0.0 }
 0xa3a   : > { %v6173_v48 = vadd.f32 %v6172_v61, %v6171_v58  ;;  %v6122_v30 = vadd.f32 %v6121_v46, %v6120_v13  ;;  %v11585_v23 = vpop.f32.mrf.mxu0 }
 0xa3b   : > { %v6176_v7 = vsel %vm5812_vm1, %v6153_v39, 0.0  ;;  %v6156_v32 = vmul.f32 %v11585_v23, %v11585_v23  ;;  %v6129_v36 = vsel %vm5812_vm1, %v11585_v23, 0.0 }
 0xa3c   : > { %v6124_v4 = vadd.f32 %v6123_v3, %v6122_v30  ;;  %v6175_v35 = vadd.f32 %v6174_v1, %v6173_v48  ;;  %v11590_v59 = vpop.f32.mrf.mxu0 }
 0xa3d   : > { %v6125_v34 = vsel %vm5812_vm1, %v11590_v59, 0.0  ;;  %v6154_v25 = vmul.f32 %v11590_v59, %v11590_v59  ;;  %v6182_v2 = vsel %vm5812_vm1, %v6156_v32, 0.0  ;;  %v6203_v32 = vld [vmem:[#allocation4 + $0x7] ss:$0 sm:$0xff] }
 0xa3e   : > { %v6177_v44 = vadd.f32 %v6176_v7, %v6175_v35  ;;  %v6126_v45 = vadd.f32 %v6125_v34, %v6124_v4  ;;  %v11599_v53 = vpop.f32.mrf.mxu0 }
 0xa3f   : > { %v6178_v57 = vsel %vm5812_vm1, %v6154_v25, 0.0  ;;  %v6159_v55 = vmul.f32 %v11599_v53, %v11599_v53  ;;  %v6135_v22 = vsel %vm5812_vm1, %v11599_v53, 0.0 }
 0xa40   : > { %v6128_v41 = vadd.f32 %v6127_v29, %v6126_v45  ;;  %v6179_v37 = vadd.f32 %v6178_v57, %v6177_v44  ;;  %v11606_v42 = vpop.f32.mrf.mxu0 }
 0xa41   : > { %v6157_v28 = vmul.f32 %v11606_v42, %v11606_v42  ;;  %v6131_v43 = vsel %vm5812_vm1, %v11606_v42, 0.0  ;;  %v6188_v19 = vsel %vm5812_vm1, %v6159_v55, 0.0 }
 0xa42   : > { %v6181_v54 = vadd.f32 %v6180_v38, %v6179_v37  ;;  %v6130_v24 = vadd.f32 %v6129_v36, %v6128_v41  ;;  %v11613_v60 = vpop.f32.mrf.mxu0  ;;  %v6204_v37 = vld [vmem:[#allocation4 + $0x42] ss:$0 sm:$0xff] }
 0xa43   : > { %v6184_v12 = vsel %vm5812_vm1, %v6157_v28, 0.0  ;;  %v6160_v11 = vmul.f32 %v11613_v60, %v11613_v60  ;;  %v6137_v0 = vsel %vm5812_vm1, %v11613_v60, 0.0 }
 0xa44   : > { %v6132_v27 = vadd.f32 %v6131_v43, %v6130_v24  ;;  %v6183_v21 = vadd.f32 %v6182_v2, %v6181_v54  ;;  %v11618_v56 = vpop.f32.mrf.mxu0 }
 0xa45   : > { %v6133_v63 = vsel %vm5812_vm1, %v11618_v56, 0.0  ;;  %v6158_v33 = vmul.f32 %v11618_v56, %v11618_v56  ;;  %v6190_v18 = vsel %vm5812_vm1, %v6160_v11, 0.0 }
 0xa46   : > { %v6185_v47 = vadd.f32 %v6184_v12, %v6183_v21  ;;  %v6134_v15 = vadd.f32 %v6133_v63, %v6132_v27 }
 0xa47   : > { %v6186_v40 = vsel %vm5812_vm1, %v6158_v33, 0.0 }
 0xa48   : > { %v6136_v26 = vadd.f32 %v6135_v22, %v6134_v15  ;;  %v6187_v20 = vadd.f32 %v6186_v40, %v6185_v47 }
 0xa4a   : > { %v6138_v16 = vadd.f32 %v6137_v0, %v6136_v26  ;;  %v6189_v52 = vadd.f32 %v6188_v19, %v6187_v20 }
 0xa4c   : > { %v6139_v5 = vrot.slane %v6138_v16, 4  ;;  %v6191_v13 = vadd.f32 %v6190_v18, %v6189_v52 }
 0xa4e   : > { %v6140_v58 = vadd.f32 %v6139_v5, %v6138_v16  ;;  %v6192_v61 = vrot.slane %v6191_v13, 4 }
 0xa50   : > { %v6141_v46 = vrot.slane %v6140_v58, 2  ;;  %v6193_v39 = vadd.f32 %v6192_v61, %v6191_v13 }
 0xa52   : > { %v6142_v48 = vadd.f32 %v6141_v46, %v6140_v58  ;;  %v6194_v30 = vrot.slane %v6193_v39, 2 }
 0xa54   : > { %v6143_v1 = vrot.slane %v6142_v48, 1  ;;  %v6195_v3 = vadd.f32 %v6194_v30, %v6193_v39 }
 0xa56   : > { %v6144_v4 = vadd.f32 %v6143_v1, %v6142_v48  ;;  %v6196_v35 = vrot.slane %v6195_v3, 1 }
 0xa58   : > { %v6197_v9 = vadd.f32 %v6196_v35, %v6195_v3  ;;  %v6198_v7 = vmul.f32 0.0078125, %v6144_v4 }
 0xa5a   : > { %v6199_v34 = vmul.f32 0.0078125, %v6197_v9  ;;  %v6200_v25 = vmul.f32 %v6198_v7, %v6198_v7 }
 0xa5c   : > { %v6201_v44 = vsub.f32 %v6199_v34, %v6200_v25 }
 0xa5e   : > { %v6202_v45 = vmax.f32 %v6201_v44, 0.0 }
 0xa60   : > { %v6205_v29 = vadd.f32 1e-05, %v6202_v45 }
 0xa62   : > { %8792 = vrsqrt.f32 %v6205_v29 }
 0xa6f   : > { %v8793_v57 = vpop.eup %8792 }
 0xa70   : > { %v6207_v41 = vmul.f32 %v8793_v57, %v6203_v32 }
 0xa72   : > { %v6208_v38 = vmul.f32 %v6207_v41, %v6198_v7  ;;  %v6210_v28 = vmul.f32 %v6207_v41, %v11526_v50  ;;  %v6211_v54 = vmul.f32 %v6207_v41, %v11532_v6  ;;  %v6212_v24 = vmul.f32 %v11524_v49, %v6207_v41 }
 0xa73   : > { %v6213_v2 = vmul.f32 %v11528_v31, %v6207_v41  ;;  %v6214_v43 = vmul.f32 %v6207_v41, %v11550_v14  ;;  %v6215_v27 = vmul.f32 %v6207_v41, %v11562_v17  ;;  %v6216_v21 = vmul.f32 %v11542_v51, %v6207_v41 }
 0xa74   : > { %v6209_v36 = vsub.f32 %v6204_v37, %v6208_v38  ;;  %v6217_v33 = vmul.f32 %v11557_v8, %v6207_v41  ;;  %v6218_v6 = vmul.f32 %v6207_v41, %v11578_v10  ;;  %v6219_v31 = vmul.f32 %v6207_v41, %v11590_v59 }
 0xa75   : > { %v6220_v51 = vmul.f32 %v11571_v62, %v6207_v41  ;;  %v6221_v8 = vmul.f32 %v11585_v23, %v6207_v41  ;;  %v6224_v62 = vmul.f32 %v11599_v53, %v6207_v41  ;;  %v6225_v61 = vmul.f32 %v11613_v60, %v6207_v41 }
 0xa76   : > { %v6226_v55 = vadd.f32 %v6210_v28, %v6209_v36  ;;  %v6227_v12 = vadd.f32 %v6211_v54, %v6209_v36  ;;  %v6228_v63 = vadd.f32 %v6212_v24, %v6209_v36  ;;  %v6229_v47 = vadd.f32 %v6213_v2, %v6209_v36 }
 0xa77   : > { %v6230_v15 = vadd.f32 %v6214_v43, %v6209_v36  ;;  %v6231_v50 = vadd.f32 %v6215_v27, %v6209_v36  ;;  %v6234_v20 = vadd.f32 %v6218_v6, %v6209_v36  ;;  %v6235_v19 = vadd.f32 %v6219_v31, %v6209_v36 }
 0xa78   : > { %v6242_v22 = vmax.f32 %v6226_v55, 0.0  ;;  %v6243_v49 = vmax.f32 %v6227_v12, 0.0  ;;  %v6244_v11 = vmax.f32 %v6228_v63, 0.0  ;;  %v6245_v14 = vmax.f32 %v6229_v47, 0.0 }
 0xa79   : > { %v6246_v40 = vmax.f32 %v6230_v15, 0.0  ;;  %v6247_v17 = vmax.f32 %v6231_v50, 0.0  ;;  %v6232_v16 = vadd.f32 %v6216_v21, %v6209_v36  ;;  %v6233_v52 = vadd.f32 %v6217_v33, %v6209_v36 }
 0xa7a   : > { %v6258_v26 = vpack.c.bf16 %v6243_v49, %v6242_v22  ;;  %v6259_v0 = vpack.c.bf16 %v6245_v14, %v6244_v11  ;;  %v6236_v18 = vadd.f32 %v6220_v51, %v6209_v36  ;;  %v6250_v5 = vmax.f32 %v6234_v20, 0.0 }
 0xa7b   : > { %v6260_v10 = vpack.c.bf16 %v6247_v17, %v6246_v40  ;;  %v6251_v13 = vmax.f32 %v6235_v19, 0.0  ;;  %v6237_v59 = vadd.f32 %v6221_v8, %v6209_v36  ;;  %v6248_v39 = vmax.f32 %v6232_v16, 0.0 }
 0xa7c   : > { %8123 = vmatprep.mubr.msk.bf16.mxu1 %vm5812_vm1, %v6258_v26  ;;  %v6252_v58 = vmax.f32 %v6236_v18, 0.0  ;;  %v6249_v48 = vmax.f32 %v6233_v52, 0.0  ;;  %v6240_v30 = vadd.f32 %v6224_v62, %v6209_v36  ;;  %v6241_v1 = vadd.f32 %v6225_v61, %v6209_v36 }
 0xa7d   : > { %8124 = vmatmul.mubr.msk.bf16.vlgmr.msra.gmra.mxu1 %vm5812_vm1, %v6259_v0  ;;  %v6262_v23 = vpack.c.bf16 %v6251_v13, %v6250_v5  ;;  %v6253_v46 = vmax.f32 %v6237_v59, 0.0  ;;  %v6223_v9 = vmul.f32 %v6207_v41, %v11618_v56  ;;  %v6222_v7 = vmul.f32 %v6207_v41, %v11606_v42  ;;  %v8764_v56 = vld [vmem:[#allocation10 + $0xe0] sm:$0xff]  }
 0xa7e   : > { %8127 = vmatprep.mubr.msk.bf16.mxu1 %vm5812_vm1, %v6260_v10  ;;  %v6256_v4 = vmax.f32 %v6240_v30, 0.0  ;;  %v6257_v35 = vmax.f32 %v6241_v1, 0.0  ;;  %v6261_v34 = vpack.c.bf16 %v6249_v48, %v6248_v39  ;;  %8139 = vmatprep.subr.bf16.mxu0 %v8764_v56 }
 0xa7f   : > { %v6263_v3 = vpack.c.bf16 %v6253_v46, %v6252_v58  ;;  %v6239_v53 = vadd.f32 %v6223_v9, %v6209_v36  ;;  %v6238_v44 = vadd.f32 %v6222_v7, %v6209_v36  ;;  %8140 = vmatpush3.bf16.msra.mxu0 %v8764_v56 }
 0xa80   : > { %v6265_v25 = vpack.c.bf16 %v6257_v35, %v6256_v4 }
 0xa81   : > { %v6255_v60 = vmax.f32 %v6239_v53, 0.0  ;;  %v6254_v45 = vmax.f32 %v6238_v44, 0.0 }
 0xa83   : > { %v6264_v29 = vpack.c.bf16 %v6255_v60, %v6254_v45 }
 0xa85   : > { %8128 = vmatmul.mubr.msk.bf16.gmra.mxu1 %vm5812_vm1, %v6261_v34 }
 0xa86   : > { %8131 = vmatprep.mubr.msk.bf16.mxu1 %vm5812_vm1, %v6262_v23 }
 0xa8d   : > { %8132 = vmatmul.mubr.msk.bf16.gmra.mxu1 %vm5812_vm1, %v6263_v3 }
 0xa8e   : > { %8135 = vmatprep.mubr.msk.bf16.mxu1 %vm5812_vm1, %v6264_v29 }
 0xa95   : > { %8136 = vmatmul.mubr.msk.bf16.gmra.mxu1 %vm5812_vm1, %v6265_v25 }
 0xb3d   : > { %v11660_v42 = vpop.f32.mrf.mxu1 }
 0xb3e   : > { %v6443_v38 = vmul.f32 %v11660_v42, %v11660_v42  ;;  %v6407_v43 = vsel %vm6403_vm2, %v11660_v42, 0.0 }
 0xb3f   : > { %v11662_v32 = vpop.f32.mrf.mxu1 }
 0xb40   : > { %v6441_v41 = vmul.f32 %v11662_v32, %v11662_v32  ;;  %v6404_v36 = vsel %vm6403_vm2, %v11662_v32, 0.0  ;;  %v6460_v47 = vsel %vm6403_vm2, %v6443_v38, 0.0 }
 0xb41   : > { %v11664_v57 = vpop.f32.mrf.mxu1 }
 0xb42   : > { %v6457_v27 = vsel %vm6403_vm2, %v6441_v41, 0.0  ;;  %v6444_v21 = vmul.f32 %v11664_v57, %v11664_v57  ;;  %v6409_v15 = vsel %vm6403_vm2, %v11664_v57, 0.0 }
 0xb43   : > { %v11668_v37 = vpop.f32.mrf.mxu1 }
 0xb44   : > { %v6405_v28 = vsel %vm6403_vm2, %v11668_v37, 0.0  ;;  %v6442_v54 = vmul.f32 %v11668_v37, %v11668_v37  ;;  %v6462_v11 = vsel %vm6403_vm2, %v6444_v21, 0.0 }
 0xb45   : > { %v6406_v24 = vadd.f32 %v6405_v28, %v6404_v36  ;;  %v11678_v2 = vpop.f32.mrf.mxu1 }
 0xb46   : > { %v6458_v55 = vsel %vm6403_vm2, %v6442_v54, 0.0  ;;  %v6447_v51 = vmul.f32 %v11678_v2, %v11678_v2  ;;  %v6415_v52 = vsel %vm6403_vm2, %v11678_v2, 0.0 }
 0xb47   : > { %v6408_v12 = vadd.f32 %v6407_v43, %v6406_v24  ;;  %v6459_v63 = vadd.f32 %v6458_v55, %v6457_v27  ;;  %v11686_v33 = vpop.f32.mrf.mxu1 }
 0xb48   : > { %v6445_v50 = vmul.f32 %v11686_v33, %v11686_v33  ;;  %v6411_v31 = vsel %vm6403_vm2, %v11686_v33, 0.0  ;;  %v6468_v58 = vsel %vm6403_vm2, %v6447_v51, 0.0 }
 0xb49   : > { %v6461_v6 = vadd.f32 %v6460_v47, %v6459_v63  ;;  %v6410_v22 = vadd.f32 %v6409_v15, %v6408_v12  ;;  %v11693_v49 = vpop.f32.mrf.mxu1 }
 0xb4a   : > { %v6464_v26 = vsel %vm6403_vm2, %v6445_v50, 0.0  ;;  %v6448_v18 = vmul.f32 %v11693_v49, %v11693_v49  ;;  %v6417_v62 = vsel %vm6403_vm2, %v11693_v49, 0.0 }
 0xb4b   : > { %v6412_v14 = vadd.f32 %v6411_v31, %v6410_v22  ;;  %v6463_v40 = vadd.f32 %v6462_v11, %v6461_v6  ;;  %v11698_v17 = vpop.f32.mrf.mxu1 }
 0xb4c   : > { %v6413_v20 = vsel %vm6403_vm2, %v11698_v17, 0.0  ;;  %v6446_v19 = vmul.f32 %v11698_v17, %v11698_v17  ;;  %v6470_v48 = vsel %vm6403_vm2, %v6448_v18, 0.0 }
 0xb4d   : > { %v6465_v8 = vadd.f32 %v6464_v26, %v6463_v40  ;;  %v6414_v0 = vadd.f32 %v6413_v20, %v6412_v14  ;;  %v11707_v16 = vpop.f32.mrf.mxu1 }
 0xb4e   : > { %v6466_v10 = vsel %vm6403_vm2, %v6446_v19, 0.0  ;;  %v6451_v35 = vmul.f32 %v11707_v16, %v11707_v16  ;;  %v6423_v60 = vsel %vm6403_vm2, %v11707_v16, 0.0 }
 0xb4f   : > { %v6416_v5 = vadd.f32 %v6415_v52, %v6414_v0  ;;  %v6467_v13 = vadd.f32 %v6466_v10, %v6465_v8  ;;  %v11714_v59 = vpop.f32.mrf.mxu1 }
 0xb50   : > { %v6449_v61 = vmul.f32 %v11714_v59, %v11714_v59  ;;  %v6419_v30 = vsel %vm6403_vm2, %v11714_v59, 0.0  ;;  %v6476_v36 = vsel %vm6403_vm2, %v6451_v35, 0.0 }
 0xb51   : > { %v6469_v23 = vadd.f32 %v6468_v58, %v6467_v13  ;;  %v6418_v46 = vadd.f32 %v6417_v62, %v6416_v5  ;;  %v11721_v39 = vpop.f32.mrf.mxu1 }
 0xb52   : > { %v6472_v9 = vsel %vm6403_vm2, %v6449_v61, 0.0  ;;  %v6452_v45 = vmul.f32 %v11721_v39, %v11721_v39  ;;  %v6425_v28 = vsel %vm6403_vm2, %v11721_v39, 0.0 }
 0xb53   : > { %v6420_v1 = vadd.f32 %v6419_v30, %v6418_v46  ;;  %v6471_v3 = vadd.f32 %v6470_v48, %v6469_v23  ;;  %v11726_v4 = vpop.f32.mrf.mxu1 }
 0xb54   : > { %v6421_v7 = vsel %vm6403_vm2, %v11726_v4, 0.0  ;;  %v6450_v34 = vmul.f32 %v11726_v4, %v11726_v4  ;;  %v6478_v21 = vsel %vm6403_vm2, %v6452_v45, 0.0  ;;  %v6499_v45 = vld [vmem:[#allocation4 + $0x20] ss:$0 sm:$0xff] }
 0xb55   : > { %v6473_v25 = vadd.f32 %v6472_v9, %v6471_v3  ;;  %v6422_v53 = vadd.f32 %v6421_v7, %v6420_v1  ;;  %v11735_v44 = vpop.f32.mrf.mxu1 }
 0xb56   : > { %v6474_v29 = vsel %vm6403_vm2, %v6450_v34, 0.0  ;;  %v6455_v15 = vmul.f32 %v11735_v44, %v11735_v44  ;;  %v6431_v14 = vsel %vm6403_vm2, %v11735_v44, 0.0 }
 0xb57   : > { %v6424_v56 = vadd.f32 %v6423_v60, %v6422_v53  ;;  %v6475_v41 = vadd.f32 %v6474_v29, %v6473_v25  ;;  %v11742_v38 = vpop.f32.mrf.mxu1 }
 0xb58   : > { %v6453_v54 = vmul.f32 %v11742_v38, %v11742_v38  ;;  %v6427_v55 = vsel %vm6403_vm2, %v11742_v38, 0.0  ;;  %v6484_v19 = vsel %vm6403_vm2, %v6455_v15, 0.0 }
 0xb59   : > { %v6477_v24 = vadd.f32 %v6476_v36, %v6475_v41  ;;  %v6426_v43 = vadd.f32 %v6425_v28, %v6424_v56  ;;  %v11749_v27 = vpop.f32.mrf.mxu1  ;;  %v6500_v41 = vld [vmem:[#allocation4 + $0x43] ss:$0 sm:$0xff] }
 0xb5a   : > { %v6480_v50 = vsel %vm6403_vm2, %v6453_v54, 0.0  ;;  %v6456_v40 = vmul.f32 %v11749_v27, %v11749_v27  ;;  %v6433_v8 = vsel %vm6403_vm2, %v11749_v27, 0.0 }
 0xb5b   : > { %v6428_v12 = vadd.f32 %v6427_v55, %v6426_v43  ;;  %v6479_v63 = vadd.f32 %v6478_v21, %v6477_v24  ;;  %v11754_v47 = vpop.f32.mrf.mxu1 }
 0xb5c   : > { %v6429_v6 = vsel %vm6403_vm2, %v11754_v47, 0.0  ;;  %v6454_v22 = vmul.f32 %v11754_v47, %v11754_v47  ;;  %v6486_v18 = vsel %vm6403_vm2, %v6456_v40, 0.0 }
 0xb5d   : > { %v6481_v11 = vadd.f32 %v6480_v50, %v6479_v63  ;;  %v6430_v31 = vadd.f32 %v6429_v6, %v6428_v12 }
 0xb5e   : > { %v6482_v51 = vsel %vm6403_vm2, %v6454_v22, 0.0 }
 0xb5f   : > { %v6432_v26 = vadd.f32 %v6431_v14, %v6430_v31  ;;  %v6483_v20 = vadd.f32 %v6482_v51, %v6481_v11 }
 0xb61   : > { %v6434_v0 = vadd.f32 %v6433_v8, %v6432_v26  ;;  %v6485_v52 = vadd.f32 %v6484_v19, %v6483_v20 }
 0xb63   : > { %v6435_v10 = vrot.slane %v6434_v0, 4  ;;  %v6487_v5 = vadd.f32 %v6486_v18, %v6485_v52 }
 0xb65   : > { %v6436_v13 = vadd.f32 %v6435_v10, %v6434_v0  ;;  %v6488_v58 = vrot.slane %v6487_v5, 4 }
 0xb67   : > { %v6437_v62 = vrot.slane %v6436_v13, 2  ;;  %v6489_v61 = vadd.f32 %v6488_v58, %v6487_v5 }
 0xb69   : > { %v6438_v23 = vadd.f32 %v6437_v62, %v6436_v13  ;;  %v6490_v46 = vrot.slane %v6489_v61, 2 }
 0xb6b   : > { %v6439_v48 = vrot.slane %v6438_v23, 1  ;;  %v6491_v30 = vadd.f32 %v6490_v46, %v6489_v61 }
 0xb6d   : > { %v6440_v1 = vadd.f32 %v6439_v48, %v6438_v23  ;;  %v6492_v3 = vrot.slane %v6491_v30, 1 }
 0xb6f   : > { %v6493_v35 = vadd.f32 %v6492_v3, %v6491_v30  ;;  %v6494_v9 = vmul.f32 0.0078125, %v6440_v1 }
 0xb71   : > { %v6495_v7 = vmul.f32 0.0078125, %v6493_v35  ;;  %v6496_v34 = vmul.f32 %v6494_v9, %v6494_v9 }
 0xb73   : > { %v6497_v25 = vsub.f32 %v6495_v7, %v6496_v34 }
 0xb75   : > { %v6498_v53 = vmax.f32 %v6497_v25, 0.0 }
 0xb77   : > { %v6501_v60 = vadd.f32 1e-05, %v6498_v53 }
 0xb79   : > { %8794 = vrsqrt.f32 %v6501_v60 }
 0xb86   : > { %v8795_v29 = vpop.eup %8794 }
 0xb87   : > { %v6503_v56 = vmul.f32 %v8795_v29, %v6499_v45 }
 0xb89   : > { %v6504_v36 = vmul.f32 %v6503_v56, %v6494_v9  ;;  %v6506_v54 = vmul.f32 %v6503_v56, %v11662_v32  ;;  %v6507_v24 = vmul.f32 %v6503_v56, %v11668_v37  ;;  %v6508_v43 = vmul.f32 %v11660_v42, %v6503_v56 }
 0xb8a   : > { %v6509_v21 = vmul.f32 %v11664_v57, %v6503_v56  ;;  %v6510_v55 = vmul.f32 %v6503_v56, %v11686_v33  ;;  %v6511_v12 = vmul.f32 %v6503_v56, %v11698_v17  ;;  %v6512_v63 = vmul.f32 %v11678_v2, %v6503_v56 }
 0xb8b   : > { %v6505_v28 = vsub.f32 %v6500_v41, %v6504_v36  ;;  %v6513_v22 = vmul.f32 %v11693_v49, %v6503_v56  ;;  %v6514_v37 = vmul.f32 %v6503_v56, %v11714_v59  ;;  %v6515_v57 = vmul.f32 %v6503_v56, %v11726_v4 }
 0xb8c   : > { %v6516_v2 = vmul.f32 %v11707_v16, %v6503_v56  ;;  %v6517_v49 = vmul.f32 %v11721_v39, %v6503_v56  ;;  %v6520_v16 = vmul.f32 %v11735_v44, %v6503_v56  ;;  %v6521_v58 = vmul.f32 %v11749_v27, %v6503_v56 }
 0xb8d   : > { %v6522_v15 = vadd.f32 %v6506_v54, %v6505_v28  ;;  %v6523_v50 = vadd.f32 %v6507_v24, %v6505_v28  ;;  %v6524_v6 = vadd.f32 %v6508_v43, %v6505_v28  ;;  %v6525_v11 = vadd.f32 %v6509_v21, %v6505_v28 }
 0xb8e   : > { %v6526_v31 = vadd.f32 %v6510_v55, %v6505_v28  ;;  %v6527_v32 = vadd.f32 %v6511_v12, %v6505_v28  ;;  %v6530_v20 = vadd.f32 %v6514_v37, %v6505_v28  ;;  %v6531_v19 = vadd.f32 %v6515_v57, %v6505_v28 }
 0xb8f   : > { %v6538_v14 = vmax.f32 %v6522_v15, 0.0  ;;  %v6539_v42 = vmax.f32 %v6523_v50, 0.0  ;;  %v6540_v40 = vmax.f32 %v6524_v6, 0.0  ;;  %v6541_v33 = vmax.f32 %v6525_v11, 0.0 }
 0xb90   : > { %v6542_v51 = vmax.f32 %v6526_v31, 0.0  ;;  %v6543_v17 = vmax.f32 %v6527_v32, 0.0  ;;  %v6528_v0 = vadd.f32 %v6512_v63, %v6505_v28  ;;  %v6529_v52 = vadd.f32 %v6513_v22, %v6505_v28 }
 0xb91   : > { %v6554_v26 = vpack.c.bf16 %v6539_v42, %v6538_v14  ;;  %v6555_v8 = vpack.c.bf16 %v6541_v33, %v6540_v40  ;;  %v6532_v18 = vadd.f32 %v6516_v2, %v6505_v28  ;;  %v6546_v10 = vmax.f32 %v6530_v20, 0.0 }
 0xb92   : > { %v6556_v59 = vpack.c.bf16 %v6543_v17, %v6542_v51  ;;  %v6547_v5 = vmax.f32 %v6531_v19, 0.0  ;;  %v6533_v4 = vadd.f32 %v6517_v49, %v6505_v28  ;;  %v6544_v61 = vmax.f32 %v6528_v0, 0.0 }
 0xb93   : > { %8141 = vmatprep.mubr.msk.bf16.mxu0 %vm6403_vm2, %v6554_v26  ;;  %v6548_v13 = vmax.f32 %v6532_v18, 0.0  ;;  %v6545_v23 = vmax.f32 %v6529_v52, 0.0  ;;  %v6536_v46 = vadd.f32 %v6520_v16, %v6505_v28  ;;  %v6537_v48 = vadd.f32 %v6521_v58, %v6505_v28 }
 0xb94   : > { %8142 = vmatmul.mubr.msk.bf16.vlgmr.msra.gmra.mxu0 %vm6403_vm2, %v6555_v8  ;;  %v6558_v39 = vpack.c.bf16 %v6547_v5, %v6546_v10  ;;  %v6549_v62 = vmax.f32 %v6533_v4, 0.0  ;;  %v6519_v35 = vmul.f32 %v6503_v56, %v11754_v47  ;;  %v6518_v9 = vmul.f32 %v6503_v56, %v11742_v38  ;;  %v8765_v47 = vld [vmem:[#allocation10 + $0xe8] sm:$0xff]  }
 0xb95   : > { %8145 = vmatprep.mubr.msk.bf16.mxu0 %vm6403_vm2, %v6556_v59  ;;  %v6552_v1 = vmax.f32 %v6536_v46, 0.0  ;;  %v6553_v3 = vmax.f32 %v6537_v48, 0.0  ;;  %v6557_v7 = vpack.c.bf16 %v6545_v23, %v6544_v61  ;;  %8157 = vmatprep.subr.bf16.mxu1 %v8765_v47 }
 0xb96   : > { %v6559_v30 = vpack.c.bf16 %v6549_v62, %v6548_v13  ;;  %v6535_v44 = vadd.f32 %v6519_v35, %v6505_v28  ;;  %v6534_v25 = vadd.f32 %v6518_v9, %v6505_v28  ;;  %8158 = vmatpush3.bf16.msra.mxu1 %v8765_v47 }
 0xb97   : > { %v6561_v34 = vpack.c.bf16 %v6553_v3, %v6552_v1 }
 0xb98   : > { %v6551_v27 = vmax.f32 %v6535_v44, 0.0  ;;  %v6550_v53 = vmax.f32 %v6534_v25, 0.0 }
 0xb9a   : > { %v6560_v60 = vpack.c.bf16 %v6551_v27, %v6550_v53 }
 0xb9c   : > { %8146 = vmatmul.mubr.msk.bf16.gmra.mxu0 %vm6403_vm2, %v6557_v7 }
 0xb9d   : > { %8149 = vmatprep.mubr.msk.bf16.mxu0 %vm6403_vm2, %v6558_v39 }
 0xba4   : > { %8150 = vmatmul.mubr.msk.bf16.gmra.mxu0 %vm6403_vm2, %v6559_v30 }
 0xba5   : > { %8153 = vmatprep.mubr.msk.bf16.mxu0 %vm6403_vm2, %v6560_v60 }
 0xbac   : > { %8154 = vmatmul.mubr.msk.bf16.gmra.mxu0 %vm6403_vm2, %v6561_v34 }
 0xc54   : > { %v11796_v38 = vpop.f32.mrf.mxu0 }
 0xc55   : > { %v6730_v36 = vmul.f32 %v11796_v38, %v11796_v38  ;;  %v6694_v55 = vsel %vm6403_vm2, %v11796_v38, 0.0 }
 0xc56   : > { %v11798_v45 = vpop.f32.mrf.mxu0 }
 0xc57   : > { %v6728_v56 = vmul.f32 %v11798_v45, %v11798_v45  ;;  %v6691_v28 = vsel %vm6403_vm2, %v11798_v45, 0.0  ;;  %v6747_v11 = vsel %vm6403_vm2, %v6730_v36, 0.0 }
 0xc58   : > { %v11800_v29 = vpop.f32.mrf.mxu0 }
 0xc59   : > { %v6744_v12 = vsel %vm6403_vm2, %v6728_v56, 0.0  ;;  %v6731_v63 = vmul.f32 %v11800_v29, %v11800_v29  ;;  %v6696_v31 = vsel %vm6403_vm2, %v11800_v29, 0.0 }
 0xc5a   : > { %v11804_v41 = vpop.f32.mrf.mxu0 }
 0xc5b   : > { %v6692_v54 = vsel %vm6403_vm2, %v11804_v41, 0.0  ;;  %v6729_v24 = vmul.f32 %v11804_v41, %v11804_v41  ;;  %v6749_v40 = vsel %vm6403_vm2, %v6731_v63, 0.0 }
 0xc5c   : > { %v6693_v43 = vadd.f32 %v6692_v54, %v6691_v28  ;;  %v11814_v21 = vpop.f32.mrf.mxu0 }
 0xc5d   : > { %v6745_v15 = vsel %vm6403_vm2, %v6729_v24, 0.0  ;;  %v6734_v2 = vmul.f32 %v11814_v21, %v11814_v21  ;;  %v6702_v52 = vsel %vm6403_vm2, %v11814_v21, 0.0 }
 0xc5e   : > { %v6695_v50 = vadd.f32 %v6694_v55, %v6693_v43  ;;  %v6746_v6 = vadd.f32 %v6745_v15, %v6744_v12  ;;  %v11822_v22 = vpop.f32.mrf.mxu0 }
 0xc5f   : > { %v6732_v32 = vmul.f32 %v11822_v22, %v11822_v22  ;;  %v6698_v57 = vsel %vm6403_vm2, %v11822_v22, 0.0  ;;  %v6755_v13 = vsel %vm6403_vm2, %v6734_v2, 0.0 }
 0xc60   : > { %v6748_v37 = vadd.f32 %v6747_v11, %v6746_v6  ;;  %v6697_v14 = vadd.f32 %v6696_v31, %v6695_v50  ;;  %v11829_v42 = vpop.f32.mrf.mxu0 }
 0xc61   : > { %v6751_v26 = vsel %vm6403_vm2, %v6732_v32, 0.0  ;;  %v6735_v18 = vmul.f32 %v11829_v42, %v11829_v42  ;;  %v6704_v16 = vsel %vm6403_vm2, %v11829_v42, 0.0 }
 0xc62   : > { %v6699_v33 = vadd.f32 %v6698_v57, %v6697_v14  ;;  %v6750_v51 = vadd.f32 %v6749_v40, %v6748_v37  ;;  %v11834_v17 = vpop.f32.mrf.mxu0 }
 0xc63   : > { %v6700_v20 = vsel %vm6403_vm2, %v11834_v17, 0.0  ;;  %v6733_v19 = vmul.f32 %v11834_v17, %v11834_v17  ;;  %v6757_v23 = vsel %vm6403_vm2, %v6735_v18, 0.0 }
 0xc64   : > { %v6752_v49 = vadd.f32 %v6751_v26, %v6750_v51  ;;  %v6701_v8 = vadd.f32 %v6700_v20, %v6699_v33  ;;  %v11843_v0 = vpop.f32.mrf.mxu0 }
 0xc65   : > { %v6753_v59 = vsel %vm6403_vm2, %v6733_v19, 0.0  ;;  %v6738_v3 = vmul.f32 %v11843_v0, %v11843_v0  ;;  %v6710_v27 = vsel %vm6403_vm2, %v11843_v0, 0.0 }
 0xc66   : > { %v6703_v10 = vadd.f32 %v6702_v52, %v6701_v8  ;;  %v6754_v5 = vadd.f32 %v6753_v59, %v6752_v49  ;;  %v11850_v4 = vpop.f32.mrf.mxu0 }
 0xc67   : > { %v6736_v58 = vmul.f32 %v11850_v4, %v11850_v4  ;;  %v6706_v46 = vsel %vm6403_vm2, %v11850_v4, 0.0  ;;  %v6763_v28 = vsel %vm6403_vm2, %v6738_v3, 0.0 }
 0xc68   : > { %v6756_v39 = vadd.f32 %v6755_v13, %v6754_v5  ;;  %v6705_v62 = vadd.f32 %v6704_v16, %v6703_v10  ;;  %v11857_v61 = vpop.f32.mrf.mxu0 }
 0xc69   : > { %v6759_v35 = vsel %vm6403_vm2, %v6736_v58, 0.0  ;;  %v6739_v53 = vmul.f32 %v11857_v61, %v11857_v61  ;;  %v6712_v54 = vsel %vm6403_vm2, %v11857_v61, 0.0 }
 0xc6a   : > { %v6707_v48 = vadd.f32 %v6706_v46, %v6705_v62  ;;  %v6758_v30 = vadd.f32 %v6757_v23, %v6756_v39  ;;  %v11862_v1 = vpop.f32.mrf.mxu0 }
 0xc6b   : > { %v6708_v9 = vsel %vm6403_vm2, %v11862_v1, 0.0  ;;  %v6737_v7 = vmul.f32 %v11862_v1, %v11862_v1  ;;  %v6765_v63 = vsel %vm6403_vm2, %v6739_v53, 0.0  ;;  %v6786_v53 = vld [vmem:[#allocation4 + $0x21] ss:$0 sm:$0xff] }
 0xc6c   : > { %v6760_v34 = vadd.f32 %v6759_v35, %v6758_v30  ;;  %v6709_v44 = vadd.f32 %v6708_v9, %v6707_v48  ;;  %v11871_v25 = vpop.f32.mrf.mxu0 }
 0xc6d   : > { %v6761_v60 = vsel %vm6403_vm2, %v6737_v7, 0.0  ;;  %v6742_v31 = vmul.f32 %v11871_v25, %v11871_v25  ;;  %v6718_v33 = vsel %vm6403_vm2, %v11871_v25, 0.0 }
 0xc6e   : > { %v6711_v47 = vadd.f32 %v6710_v27, %v6709_v44  ;;  %v6762_v56 = vadd.f32 %v6761_v60, %v6760_v34  ;;  %v6676_v36 = vpop.f32.mrf.mxu0 }
 0xc6f   : > { %v6740_v24 = vmul.f32 %v6676_v36, %v6676_v36  ;;  %v6714_v15 = vsel %vm6403_vm2, %v6676_v36, 0.0  ;;  %v6771_v19 = vsel %vm6403_vm2, %v6742_v31, 0.0 }
 0xc70   : > { %v6764_v43 = vadd.f32 %v6763_v28, %v6762_v56  ;;  %v6713_v55 = vadd.f32 %v6712_v54, %v6711_v47  ;;  %v11881_v12 = vpop.f32.mrf.mxu0  ;;  %v6787_v56 = vld [vmem:[#allocation4 + $0x44] ss:$0 sm:$0xff] }
 0xc71   : > { %v6767_v32 = vsel %vm6403_vm2, %v6740_v24, 0.0  ;;  %v6743_v51 = vmul.f32 %v11881_v12, %v11881_v12  ;;  %v6720_v49 = vsel %vm6403_vm2, %v11881_v12, 0.0 }
 0xc72   : > { %v6715_v50 = vadd.f32 %v6714_v15, %v6713_v55  ;;  %v6766_v6 = vadd.f32 %v6765_v63, %v6764_v43  ;;  %v6679_v11 = vpop.f32.mrf.mxu0 }
 0xc73   : > { %v6716_v37 = vsel %vm6403_vm2, %v6679_v11, 0.0  ;;  %v6741_v14 = vmul.f32 %v6679_v11, %v6679_v11  ;;  %v6773_v18 = vsel %vm6403_vm2, %v6743_v51, 0.0 }
 0xc74   : > { %v6768_v40 = vadd.f32 %v6767_v32, %v6766_v6  ;;  %v6717_v57 = vadd.f32 %v6716_v37, %v6715_v50 }
 0xc75   : > { %v6769_v2 = vsel %vm6403_vm2, %v6741_v14, 0.0 }
 0xc76   : > { %v6719_v26 = vadd.f32 %v6718_v33, %v6717_v57  ;;  %v6770_v20 = vadd.f32 %v6769_v2, %v6768_v40 }
 0xc78   : > { %v6721_v8 = vadd.f32 %v6720_v49, %v6719_v26  ;;  %v6772_v52 = vadd.f32 %v6771_v19, %v6770_v20 }
 0xc7a   : > { %v6722_v59 = vrot.slane %v6721_v8, 4  ;;  %v6774_v10 = vadd.f32 %v6773_v18, %v6772_v52 }
 0xc7c   : > { %v6723_v5 = vadd.f32 %v6722_v59, %v6721_v8  ;;  %v6775_v13 = vrot.slane %v6774_v10, 4 }
 0xc7e   : > { %v6724_v16 = vrot.slane %v6723_v5, 2  ;;  %v6776_v58 = vadd.f32 %v6775_v13, %v6774_v10 }
 0xc80   : > { %v6725_v39 = vadd.f32 %v6724_v16, %v6723_v5  ;;  %v6777_v62 = vrot.slane %v6776_v58, 2 }
 0xc82   : > { %v6726_v23 = vrot.slane %v6725_v39, 1  ;;  %v6778_v46 = vadd.f32 %v6777_v62, %v6776_v58 }
 0xc84   : > { %v6727_v48 = vadd.f32 %v6726_v23, %v6725_v39  ;;  %v6779_v30 = vrot.slane %v6778_v46, 1 }
 0xc86   : > { %v6780_v3 = vadd.f32 %v6779_v30, %v6778_v46  ;;  %v6781_v35 = vmul.f32 0.0078125, %v6727_v48 }
 0xc88   : > { %v6782_v9 = vmul.f32 0.0078125, %v6780_v3  ;;  %v6783_v7 = vmul.f32 %v6781_v35, %v6781_v35 }
 0xc8a   : > { %v6784_v34 = vsub.f32 %v6782_v9, %v6783_v7 }
 0xc8c   : > { %v6785_v44 = vmax.f32 %v6784_v34, 0.0 }
 0xc8e   : > { %v6788_v27 = vadd.f32 1e-05, %v6785_v44 }
 0xc90   : > { %8796 = vrsqrt.f32 %v6788_v27 }
 0xc9d   : > { %v8797_v60 = vpop.eup %8796 }
 0xc9e   : > { %v6790_v47 = vmul.f32 %v8797_v60, %v6786_v53 }
 0xca0   : > { %v6791_v28 = vmul.f32 %v6790_v47, %v6781_v35  ;;  %v6805_v54 = vmul.f32 %v6790_v47, %v6676_v36  ;;  %v6806_v24 = vmul.f32 %v6790_v47, %v6679_v11  ;;  %v6793_v43 = vmul.f32 %v6790_v47, %v11798_v45 }
 0xca1   : > { %v6794_v55 = vmul.f32 %v6790_v47, %v11804_v41  ;;  %v6795_v63 = vmul.f32 %v11796_v38, %v6790_v47  ;;  %v6796_v15 = vmul.f32 %v11800_v29, %v6790_v47  ;;  %v6797_v6 = vmul.f32 %v6790_v47, %v11822_v22 }
 0xca2   : > { %v6792_v50 = vsub.f32 %v6787_v56, %v6791_v28  ;;  %v6798_v31 = vmul.f32 %v6790_v47, %v11834_v17  ;;  %v6799_v32 = vmul.f32 %v11814_v21, %v6790_v47  ;;  %v6800_v37 = vmul.f32 %v11829_v42, %v6790_v47 }
 0xca3   : > { %v6801_v36 = vmul.f32 %v6790_v47, %v11850_v4  ;;  %v6802_v11 = vmul.f32 %v6790_v47, %v11862_v1  ;;  %v6803_v45 = vmul.f32 %v11843_v0, %v6790_v47  ;;  %v6804_v0 = vmul.f32 %v11857_v61, %v6790_v47 }
 0xca4   : > { %v6821_v41 = vadd.f32 %v6805_v54, %v6792_v50  ;;  %v6822_v14 = vadd.f32 %v6806_v24, %v6792_v50  ;;  %v6809_v38 = vadd.f32 %v6793_v43, %v6792_v50  ;;  %v6810_v40 = vadd.f32 %v6794_v55, %v6792_v50 }
 0xca5   : > { %v6811_v29 = vadd.f32 %v6795_v63, %v6792_v50  ;;  %v6812_v57 = vadd.f32 %v6796_v15, %v6792_v50  ;;  %v6813_v33 = vadd.f32 %v6797_v6, %v6792_v50  ;;  %v6814_v22 = vadd.f32 %v6798_v31, %v6792_v50 }
 0xca6   : > { %v6837_v51 = vmax.f32 %v6821_v41, 0.0  ;;  %v6838_v17 = vmax.f32 %v6822_v14, 0.0  ;;  %v6825_v2 = vmax.f32 %v6809_v38, 0.0  ;;  %v6826_v21 = vmax.f32 %v6810_v40, 0.0 }
 0xca7   : > { %v6827_v26 = vmax.f32 %v6811_v29, 0.0  ;;  %v6828_v42 = vmax.f32 %v6812_v57, 0.0  ;;  %v6829_v20 = vmax.f32 %v6813_v33, 0.0  ;;  %v6830_v4 = vmax.f32 %v6814_v22, 0.0 }
 0xca8   : > { %v6847_v19 = vpack.c.bf16 %v6838_v17, %v6837_v51  ;;  %v6841_v1 = vpack.c.bf16 %v6826_v21, %v6825_v2  ;;  %v6815_v49 = vadd.f32 %v6799_v32, %v6792_v50  ;;  %v6816_v52 = vadd.f32 %v6800_v37, %v6792_v50 }
 0xca9   : > { %v6842_v8 = vpack.c.bf16 %v6828_v42, %v6827_v26  ;;  %v6817_v18 = vadd.f32 %v6801_v36, %v6792_v50  ;;  %v6818_v59 = vadd.f32 %v6802_v11, %v6792_v50  ;;  %v6843_v10 = vpack.c.bf16 %v6830_v4, %v6829_v20 }
 0xcaa   : > { %8159 = vmatprep.mubr.msk.bf16.mxu1 %vm6403_vm2, %v6841_v1  ;;  %v6819_v5 = vadd.f32 %v6803_v45, %v6792_v50  ;;  %v6820_v13 = vadd.f32 %v6804_v0, %v6792_v50  ;;  %v6807_v39 = vmul.f32 %v11871_v25, %v6790_v47  ;;  %v6808_v62 = vmul.f32 %v11881_v12, %v6790_v47 }
 0xcab   : > { %8160 = vmatmul.mubr.msk.bf16.vlgmr.msra.gmra.mxu1 %vm6403_vm2, %v6842_v8  ;;  %v6833_v16 = vmax.f32 %v6817_v18, 0.0  ;;  %v6834_v58 = vmax.f32 %v6818_v59, 0.0  ;;  %v6831_v61 = vmax.f32 %v6815_v49, 0.0  ;;  %v6832_v48 = vmax.f32 %v6816_v52, 0.0 }
 0xcac   : > { %8163 = vmatprep.mubr.msk.bf16.mxu1 %vm6403_vm2, %v6843_v10  ;;  %v6835_v23 = vmax.f32 %v6819_v5, 0.0  ;;  %v6836_v46 = vmax.f32 %v6820_v13, 0.0  ;;  %v6823_v3 = vadd.f32 %v6807_v39, %v6792_v50  ;;  %v6824_v35 = vadd.f32 %v6808_v62, %v6792_v50 }
 0xcad   : > { %v6845_v30 = vpack.c.bf16 %v6834_v58, %v6833_v16  ;;  %v6844_v44 = vpack.c.bf16 %v6832_v48, %v6831_v61 }
 0xcae   : > { %v6846_v9 = vpack.c.bf16 %v6836_v46, %v6835_v23  ;;  %v6839_v7 = vmax.f32 %v6823_v3, 0.0  ;;  %v6840_v34 = vmax.f32 %v6824_v35, 0.0 }
 0xcb0   : > { %v6848_v27 = vpack.c.bf16 %v6840_v34, %v6839_v7 }
 0xcb3   : > { %8164 = vmatmul.mubr.msk.bf16.gmra.mxu1 %vm6403_vm2, %v6844_v44 }
 0xcb4   : > { %8167 = vmatprep.mubr.msk.bf16.mxu1 %vm6403_vm2, %v6845_v30 }
 0xcbb   : > { %8168 = vmatmul.mubr.msk.bf16.gmra.mxu1 %vm6403_vm2, %v6846_v9 }
 0xcbc   : > { %8171 = vmatprep.mubr.msk.bf16.mxu1 %vm6403_vm2, %v6847_v19 }
 0xcc3   : > { %8172 = vmatmul.mubr.msk.bf16.gmra.mxu1 %vm6403_vm2, %v6848_v27 }
 0xd6b   : > { %v11920_v25 = vpop.f32.mrf.mxu1 }
 0xd6c   : > { %v7018_v56 = vmul.f32 %v11920_v25, %v11920_v25  ;;  %v6982_v63 = vsel %vm6978_vm3, %v11920_v25, 0.0 }
 0xd6d   : > { %v11922_v12 = vpop.f32.mrf.mxu1 }
 0xd6e   : > { %v7016_v60 = vmul.f32 %v11922_v12, %v11922_v12  ;;  %v6979_v28 = vsel %vm6978_vm3, %v11922_v12, 0.0  ;;  %v7035_v36 = vsel %vm6978_vm3, %v7018_v56, 0.0 }
 0xd6f   : > { %v11924_v53 = vpop.f32.mrf.mxu1 }
 0xd70   : > { %v7032_v15 = vsel %vm6978_vm3, %v7016_v60, 0.0  ;;  %v7019_v50 = vmul.f32 %v11924_v53, %v11924_v53  ;;  %v6984_v11 = vsel %vm6978_vm3, %v11924_v53, 0.0 }
 0xd71   : > { %v11928_v47 = vpop.f32.mrf.mxu1 }
 0xd72   : > { %v6980_v54 = vsel %vm6978_vm3, %v11928_v47, 0.0  ;;  %v7017_v24 = vmul.f32 %v11928_v47, %v11928_v47  ;;  %v7037_v40 = vsel %vm6978_vm3, %v7019_v50, 0.0 }
 0xd73   : > { %v6981_v43 = vadd.f32 %v6980_v54, %v6979_v28  ;;  %v11938_v55 = vpop.f32.mrf.mxu1 }
 0xd74   : > { %v7033_v6 = vsel %vm6978_vm3, %v7017_v24, 0.0  ;;  %v7022_v51 = vmul.f32 %v11938_v55, %v11938_v55  ;;  %v6990_v4 = vsel %vm6978_vm3, %v11938_v55, 0.0 }
 0xd75   : > { %v6983_v31 = vadd.f32 %v6982_v63, %v6981_v43  ;;  %v7034_v32 = vadd.f32 %v7033_v6, %v7032_v15  ;;  %v11946_v37 = vpop.f32.mrf.mxu1 }
 0xd76   : > { %v7020_v45 = vmul.f32 %v11946_v37, %v11946_v37  ;;  %v6986_v29 = vsel %vm6978_vm3, %v11946_v37, 0.0  ;;  %v7043_v52 = vsel %vm6978_vm3, %v7022_v51, 0.0 }
 0xd77   : > { %v7036_v41 = vadd.f32 %v7035_v36, %v7034_v32  ;;  %v6985_v14 = vadd.f32 %v6984_v11, %v6983_v31  ;;  %v11953_v38 = vpop.f32.mrf.mxu1 }
 0xd78   : > { %v7039_v17 = vsel %vm6978_vm3, %v7020_v45, 0.0  ;;  %v7023_v19 = vmul.f32 %v11953_v38, %v11953_v38  ;;  %v6992_v18 = vsel %vm6978_vm3, %v11953_v38, 0.0 }
 0xd79   : > { %v6987_v57 = vadd.f32 %v6986_v29, %v6985_v14  ;;  %v7038_v33 = vadd.f32 %v7037_v40, %v7036_v41  ;;  %v11958_v22 = vpop.f32.mrf.mxu1 }
 0xd7a   : > { %v6988_v2 = vsel %vm6978_vm3, %v11958_v22, 0.0  ;;  %v7021_v21 = vmul.f32 %v11958_v22, %v11958_v22  ;;  %v7045_v16 = vsel %vm6978_vm3, %v7023_v19, 0.0 }
 0xd7b   : > { %v7040_v26 = vadd.f32 %v7039_v17, %v7038_v33  ;;  %v6989_v42 = vadd.f32 %v6988_v2, %v6987_v57  ;;  %v11967_v20 = vpop.f32.mrf.mxu1 }
 0xd7c   : > { %v7041_v1 = vsel %vm6978_vm3, %v7021_v21, 0.0  ;;  %v7026_v23 = vmul.f32 %v11967_v20, %v11967_v20  ;;  %v6998_v7 = vsel %vm6978_vm3, %v11967_v20, 0.0 }
 0xd7d   : > { %v6991_v49 = vadd.f32 %v6990_v4, %v6989_v42  ;;  %v7042_v0 = vadd.f32 %v7041_v1, %v7040_v26  ;;  %v11974_v8 = vpop.f32.mrf.mxu1 }
 0xd7e   : > { %v7024_v59 = vmul.f32 %v11974_v8, %v11974_v8  ;;  %v6994_v58 = vsel %vm6978_vm3, %v11974_v8, 0.0  ;;  %v7051_v28 = vsel %vm6978_vm3, %v7026_v23, 0.0 }
 0xd7f   : > { %v7044_v10 = vadd.f32 %v7043_v52, %v7042_v0  ;;  %v6993_v5 = vadd.f32 %v6992_v18, %v6991_v49  ;;  %v11981_v13 = vpop.f32.mrf.mxu1 }
 0xd80   : > { %v7047_v46 = vsel %vm6978_vm3, %v7024_v59, 0.0  ;;  %v7027_v34 = vmul.f32 %v11981_v13, %v11981_v13  ;;  %v7000_v54 = vsel %vm6978_vm3, %v11981_v13, 0.0 }
 0xd81   : > { %v6995_v39 = vadd.f32 %v6994_v58, %v6993_v5  ;;  %v7046_v62 = vadd.f32 %v7045_v16, %v7044_v10  ;;  %v11986_v61 = vpop.f32.mrf.mxu1 }
 0xd82   : > { %v6996_v48 = vsel %vm6978_vm3, %v11986_v61, 0.0  ;;  %v7025_v30 = vmul.f32 %v11986_v61, %v11986_v61  ;;  %v7053_v50 = vsel %vm6978_vm3, %v7027_v34, 0.0  ;;  %v7074_v34 = vld [vmem:[#allocation4 + $0x22] ss:$0 sm:$0xff] }
 0xd83   : > { %v7048_v3 = vadd.f32 %v7047_v46, %v7046_v62  ;;  %v6997_v35 = vadd.f32 %v6996_v48, %v6995_v39  ;;  %v11995_v9 = vpop.f32.mrf.mxu1 }
 0xd84   : > { %v7049_v44 = vsel %vm6978_vm3, %v7025_v30, 0.0  ;;  %v7030_v11 = vmul.f32 %v11995_v9, %v11995_v9  ;;  %v7006_v57 = vsel %vm6978_vm3, %v11995_v9, 0.0 }
 0xd85   : > { %v6999_v27 = vadd.f32 %v6998_v7, %v6997_v35  ;;  %v7050_v60 = vadd.f32 %v7049_v44, %v7048_v3  ;;  %v12002_v56 = vpop.f32.mrf.mxu1 }
 0xd86   : > { %v7028_v24 = vmul.f32 %v12002_v56, %v12002_v56  ;;  %v7002_v6 = vsel %vm6978_vm3, %v12002_v56, 0.0  ;;  %v7059_v21 = vsel %vm6978_vm3, %v7030_v11, 0.0 }
 0xd87   : > { %v7052_v43 = vadd.f32 %v7051_v28, %v7050_v60  ;;  %v7001_v63 = vadd.f32 %v7000_v54, %v6999_v27  ;;  %v12009_v15 = vpop.f32.mrf.mxu1  ;;  %v7075_v60 = vld [vmem:[#allocation4 + $0x45] ss:$0 sm:$0xff] }
 0xd88   : > { %v7055_v45 = vsel %vm6978_vm3, %v7028_v24, 0.0  ;;  %v7031_v33 = vmul.f32 %v12009_v15, %v12009_v15  ;;  %v7008_v26 = vsel %vm6978_vm3, %v12009_v15, 0.0 }
 0xd89   : > { %v7003_v31 = vadd.f32 %v7002_v6, %v7001_v63  ;;  %v7054_v32 = vadd.f32 %v7053_v50, %v7052_v43  ;;  %v12014_v36 = vpop.f32.mrf.mxu1 }
 0xd8a   : > { %v7004_v41 = vsel %vm6978_vm3, %v12014_v36, 0.0  ;;  %v7029_v14 = vmul.f32 %v12014_v36, %v12014_v36  ;;  %v7061_v19 = vsel %vm6978_vm3, %v7031_v33, 0.0 }
 0xd8b   : > { %v7056_v40 = vadd.f32 %v7055_v45, %v7054_v32  ;;  %v7005_v29 = vadd.f32 %v7004_v41, %v7003_v31  ;;  %v12052_v45 = vld [vmem:[#allocation4 + $0x46] ss:$0 sm:$0xff] }
 0xd8c   : > { %v7057_v51 = vsel %vm6978_vm3, %v7029_v14, 0.0 }
 0xd8d   : > { %v7007_v17 = vadd.f32 %v7006_v57, %v7005_v29  ;;  %v7058_v2 = vadd.f32 %v7057_v51, %v7056_v40 }
 0xd8f   : > { %v7009_v42 = vadd.f32 %v7008_v26, %v7007_v17  ;;  %v7060_v4 = vadd.f32 %v7059_v21, %v7058_v2 }
 0xd91   : > { %v7010_v1 = vrot.slane %v7009_v42, 4  ;;  %v7062_v49 = vadd.f32 %v7061_v19, %v7060_v4 }
 0xd93   : > { %v7011_v0 = vadd.f32 %v7010_v1, %v7009_v42  ;;  %v7063_v52 = vrot.slane %v7062_v49, 4 }
 0xd95   : > { %v7012_v18 = vrot.slane %v7011_v0, 2  ;;  %v7064_v59 = vadd.f32 %v7063_v52, %v7062_v49 }
 0xd97   : > { %v7013_v10 = vadd.f32 %v7012_v18, %v7011_v0  ;;  %v7065_v5 = vrot.slane %v7064_v59, 2 }
 0xd99   : > { %v7014_v16 = vrot.slane %v7013_v10, 1  ;;  %v7066_v58 = vadd.f32 %v7065_v5, %v7064_v59 }
 0xd9b   : > { %v7015_v39 = vadd.f32 %v7014_v16, %v7013_v10  ;;  %v7067_v62 = vrot.slane %v7066_v58, 1 }
 0xd9d   : > { %v7068_v23 = vadd.f32 %v7067_v62, %v7066_v58  ;;  %v7069_v46 = vmul.f32 0.0078125, %v7015_v39 }
 0xd9f   : > { %v7070_v48 = vmul.f32 0.0078125, %v7068_v23  ;;  %v7071_v30 = vmul.f32 %v7069_v46, %v7069_v46 }
 0xda1   : > { %v7072_v3 = vsub.f32 %v7070_v48, %v7071_v30 }
 0xda3   : > { %v7073_v35 = vmax.f32 %v7072_v3, 0.0 }
 0xda5   : > { %v7076_v7 = vadd.f32 1e-05, %v7073_v35 }
 0xda7   : > { %8798 = vrsqrt.f32 %v7076_v7 }
 0xdb4   : > { %v8799_v44 = vpop.eup %8798 }
 0xdb5   : > { %v12032_v27 = vmul.f32 %v8799_v44, %v7074_v34 }
 0xdb7   : > { %v7079_v28 = vmul.f32 %v12032_v27, %v7069_v46  ;;  %v7083_v24 = vmul.f32 %v11920_v25, %v12032_v27  ;;  %v7081_v43 = vmul.f32 %v12032_v27, %v11922_v12  ;;  %v7084_v63 = vmul.f32 %v11924_v53, %v12032_v27 }
 0xdb8   : > { %v7082_v50 = vmul.f32 %v12032_v27, %v11928_v47  ;;  %v7086_v6 = vmul.f32 %v12032_v27, %v11958_v22  ;;  %v7085_v31 = vmul.f32 %v12032_v27, %v11946_v37  ;;  %v7088_v37 = vmul.f32 %v11953_v38, %v12032_v27 }
 0xdb9   : > { %v12035_v54 = vsub.f32 %v7075_v60, %v7079_v28  ;;  %v7087_v33 = vmul.f32 %v11938_v55, %v12032_v27  ;;  %v7090_v19 = vmul.f32 %v12032_v27, %v11986_v61  ;;  %v7089_v55 = vmul.f32 %v12032_v27, %v11974_v8 }
 0xdba   : > { %v7092_v61 = vmul.f32 %v11981_v13, %v12032_v27  ;;  %v7091_v8 = vmul.f32 %v11967_v20, %v12032_v27  ;;  %v7094_v13 = vmul.f32 %v12032_v27, %v12014_v36  ;;  %v7093_v20 = vmul.f32 %v12032_v27, %v12002_v56 }
 0xdbb   : > { %v7099_v32 = vadd.f32 %v7083_v24, %v12035_v54  ;;  %v7097_v11 = vadd.f32 %v7081_v43, %v12035_v54  ;;  %v7100_v25 = vadd.f32 %v7084_v63, %v12035_v54  ;;  %v7098_v12 = vadd.f32 %v7082_v50, %v12035_v54 }
 0xdbc   : > { %v7102_v53 = vadd.f32 %v7086_v6, %v12035_v54  ;;  %v7101_v47 = vadd.f32 %v7085_v31, %v12035_v54  ;;  %v7104_v21 = vadd.f32 %v7088_v37, %v12035_v54  ;;  %v7103_v38 = vadd.f32 %v7087_v33, %v12035_v54 }
 0xdbd   : > { %v7115_v41 = vmax.f32 %v7099_v32, 0.0  ;;  %v7113_v14 = vmax.f32 %v7097_v11, 0.0  ;;  %v7116_v22 = vmax.f32 %v7100_v25, 0.0  ;;  %v7114_v40 = vmax.f32 %v7098_v12, 0.0 }
 0xdbe   : > { %v7118_v17 = vmax.f32 %v7102_v53, 0.0  ;;  %v7117_v2 = vmax.f32 %v7101_v47, 0.0  ;;  %v7120_v52 = vmax.f32 %v7104_v21, 0.0  ;;  %v7119_v59 = vmax.f32 %v7103_v38, 0.0 }
 0xdbf   : > { %v7133_v29 = vmul.f32 %v12052_v45, %v7115_v41  ;;  %v7131_v57 = vmul.f32 %v12052_v45, %v7113_v14  ;;  %v7134_v51 = vmul.f32 %v12052_v45, %v7116_v22  ;;  %v7132_v4 = vmul.f32 %v12052_v45, %v7114_v40 }
 0xdc0   : > { %v7136_v49 = vmul.f32 %v12052_v45, %v7118_v17  ;;  %v7135_v0 = vmul.f32 %v12052_v45, %v7117_v2  ;;  %v7106_v10 = vadd.f32 %v7090_v19, %v12035_v54  ;;  %v7105_v5 = vadd.f32 %v7089_v55, %v12035_v54 }
 0xdc1   : > { %v7153_v26 = vsel %vm6978_vm3, %v7133_v29, 0.0  ;;  %v7147_v42 = vsel %vm6978_vm3, %v7131_v57, 0.0  ;;  %v7156_v1 = vsel %vm6978_vm3, %v7134_v51, 0.0  ;;  %v7150_v18 = vsel %vm6978_vm3, %v7132_v4, 0.0  ;;  %v7130_v29 = vld [vmem:[#allocation4 + $0x47] ss:$0 sm:$0xff] }
 0xdc2   : > { %7154 = vadd.xlane.f32.xlu1 %v7153_v26  ;;  %7148 = vadd.xlane.f32.xlu0 %v7147_v42  ;;  %v7162_v16 = vsel %vm6978_vm3, %v7136_v49, 0.0  ;;  %v7159_v58 = vsel %vm6978_vm3, %v7135_v0, 0.0  ;;  %v7138_v39 = vmul.f32 %v12052_v45, %v7120_v52  ;;  %v7108_v62 = vadd.f32 %v7092_v61, %v12035_v54 }
 0xdc3   : > { %v7137_v23 = vmul.f32 %v12052_v45, %v7119_v59  ;;  %v7122_v46 = vmax.f32 %v7106_v10, 0.0  ;;  %v7121_v48 = vmax.f32 %v7105_v5, 0.0  ;;  %v7107_v30 = vadd.f32 %v7091_v8, %v12035_v54 }
 0xdc4   : > { %v7110_v3 = vadd.f32 %v7094_v13, %v12035_v54  ;;  %v7168_v35 = vsel %vm6978_vm3, %v7138_v39, 0.0  ;;  %v7124_v7 = vmax.f32 %v7108_v62, 0.0  ;;  %v7109_v34 = vadd.f32 %v7093_v20, %v12035_v54 }
 0xdc5   : > { %v7165_v44 = vsel %vm6978_vm3, %v7137_v23, 0.0  ;;  %v7140_v60 = vmul.f32 %v12052_v45, %v7122_v46  ;;  %v7139_v28 = vmul.f32 %v12052_v45, %v7121_v48  ;;  %v7123_v24 = vmax.f32 %v7107_v30, 0.0 }
 0xdc6   : > { %7157 = vadd.xlane.f32.xlu1 %v7156_v1  ;;  %7151 = vadd.xlane.f32.xlu0 %v7150_v18  ;;  %v7096_v36 = vmul.f32 %v12009_v15, %v12032_v27  ;;  %v7095_v56 = vmul.f32 %v11995_v9, %v12032_v27  ;;  %v7126_v43 = vmax.f32 %v7110_v3, 0.0  ;;  %v7142_v63 = vmul.f32 %v12052_v45, %v7124_v7 }
 0xdc7   : > { %v7125_v50 = vmax.f32 %v7109_v34, 0.0  ;;  %v7174_v31 = vsel %vm6978_vm3, %v7140_v60, 0.0  ;;  %v7171_v32 = vsel %vm6978_vm3, %v7139_v28, 0.0  ;;  %v7141_v11 = vmul.f32 %v12052_v45, %v7123_v24 }
 0xdc8   : > { %v7112_v6 = vadd.f32 %v7096_v36, %v12035_v54  ;;  %v7111_v25 = vadd.f32 %v7095_v56, %v12035_v54  ;;  %v7144_v15 = vmul.f32 %v12052_v45, %v7126_v43  ;;  %v7180_v27 = vsel %vm6978_vm3, %v7142_v63, 0.0 }
 0xdc9   : > { %v7143_v9 = vmul.f32 %v12052_v45, %v7125_v50  ;;  %v7177_v12 = vsel %vm6978_vm3, %v7141_v11, 0.0 }
 0xdca   : > { %7163 = vadd.xlane.f32.xlu1 %v7162_v16  ;;  %7160 = vadd.xlane.f32.xlu0 %v7159_v58  ;;  %v7128_v53 = vmax.f32 %v7112_v6, 0.0  ;;  %v7127_v47 = vmax.f32 %v7111_v25, 0.0  ;;  %v7186_v41 = vsel %vm6978_vm3, %v7144_v15, 0.0 }
 0xdcb   : > { %v7183_v54 = vsel %vm6978_vm3, %v7143_v9, 0.0 }
 0xdcc   : > { %v7146_v14 = vmul.f32 %v12052_v45, %v7128_v53  ;;  %v7145_v22 = vmul.f32 %v12052_v45, %v7127_v47 }
 0xdce   : > { %7169 = vadd.xlane.f32.xlu1 %v7168_v35  ;;  %7166 = vadd.xlane.f32.xlu0 %v7165_v44  ;;  %v7192_v40 = vsel %vm6978_vm3, %v7146_v14, 0.0  ;;  %v7189_v37 = vsel %vm6978_vm3, %v7145_v22, 0.0 }
 0xdd2   : > { %7175 = vadd.xlane.f32.xlu1 %v7174_v31  ;;  %7172 = vadd.xlane.f32.xlu0 %v7171_v32 }
 0xdd6   : > { %7181 = vadd.xlane.f32.xlu1 %v7180_v27  ;;  %7178 = vadd.xlane.f32.xlu0 %v7177_v12 }
 0xdda   : > { %7187 = vadd.xlane.f32.xlu1 %v7186_v41  ;;  %7184 = vadd.xlane.f32.xlu0 %v7183_v54 }
 0xdde   : > { %7193 = vadd.xlane.f32.xlu1 %v7192_v40  ;;  %7190 = vadd.xlane.f32.xlu0 %v7189_v37 }
 0xe4b   : > { %v7155_v45 = vpop.xlane.xlu1 %7154  ;;  %v7149_v57 = vpop.xlane.xlu0 %7148 }
 0xe4c   : > { %v7197_v33 = vadd.f32 %v7155_v45, %v7130_v29  ;;  %v7195_v51 = vadd.f32 %v7149_v57, %v7130_v29 }
 0xe4e   : > { %7214 = vst.msk [vmem:[%s12124_s7 + $0x10] sm:$0xff] %vm7211_vm4, %v7197_v33  ;;  %7212 = vst.msk [vmem:[%s12124_s7] sm:$0xff] %vm7211_vm4, %v7195_v51 }
 0xe4f   : > { %v7158_v17 = vpop.xlane.xlu1 %7157  ;;  %v7152_v2 = vpop.xlane.xlu0 %7151 }
 0xe50   : > { %v7198_v21 = vadd.f32 %v7158_v17, %v7130_v29  ;;  %v7196_v26 = vadd.f32 %v7152_v2, %v7130_v29 }
 0xe52   : > { %7215 = vst.msk [vmem:[%s12124_s7 + $0x18] sm:$0xff] %vm7211_vm4, %v7198_v21  ;;  %7213 = vst.msk [vmem:[%s12124_s7 + $0x8] sm:$0xff] %vm7211_vm4, %v7196_v26 }
 0xe53   : > { %v7164_v42 = vpop.xlane.xlu1 %7163  ;;  %v7161_v4 = vpop.xlane.xlu0 %7160 }
 0xe54   : > { %v7200_v38 = vadd.f32 %v7164_v42, %v7130_v29  ;;  %v7199_v19 = vadd.f32 %v7161_v4, %v7130_v29 }
 0xe56   : > { %7217 = vst.msk [vmem:[%s12124_s7 + $0x28] sm:$0xff] %vm7211_vm4, %v7200_v38  ;;  %7216 = vst.msk [vmem:[%s12124_s7 + $0x20] sm:$0xff] %vm7211_vm4, %v7199_v19 }
 0xe57   : > { %v7170_v55 = vpop.xlane.xlu1 %7169  ;;  %v7167_v1 = vpop.xlane.xlu0 %7166 }
 0xe58   : > { %v7202_v49 = vadd.f32 %v7170_v55, %v7130_v29  ;;  %v7201_v0 = vadd.f32 %v7167_v1, %v7130_v29 }
 0xe5a   : > { %7219 = vst.msk [vmem:[%s12124_s7 + $0x38] sm:$0xff] %vm7211_vm4, %v7202_v49  ;;  %7218 = vst.msk [vmem:[%s12124_s7 + $0x30] sm:$0xff] %vm7211_vm4, %v7201_v0 }
 0xe5b   : > { %v7176_v52 = vpop.xlane.xlu1 %7175  ;;  %v7173_v18 = vpop.xlane.xlu0 %7172 }
 0xe5c   : > { %v7204_v59 = vadd.f32 %v7176_v52, %v7130_v29  ;;  %v7203_v10 = vadd.f32 %v7173_v18, %v7130_v29 }
 0xe5e   : > { %7221 = vst.msk [vmem:[%s12124_s7 + $0x48] sm:$0xff] %vm7211_vm4, %v7204_v59  ;;  %7220 = vst.msk [vmem:[%s12124_s7 + $0x40] sm:$0xff] %vm7211_vm4, %v7203_v10 }
 0xe5f   : > { %v7182_v5 = vpop.xlane.xlu1 %7181  ;;  %v7179_v61 = vpop.xlane.xlu0 %7178 }
 0xe60   : > { %v7206_v8 = vadd.f32 %v7182_v5, %v7130_v29  ;;  %v7205_v16 = vadd.f32 %v7179_v61, %v7130_v29 }
 0xe62   : > { %7223 = vst.msk [vmem:[%s12124_s7 + $0x58] sm:$0xff] %vm7211_vm4, %v7206_v8  ;;  %7222 = vst.msk [vmem:[%s12124_s7 + $0x50] sm:$0xff] %vm7211_vm4, %v7205_v16 }
 0xe63   : > { %v7188_v58 = vpop.xlane.xlu1 %7187  ;;  %v7185_v39 = vpop.xlane.xlu0 %7184 }
 0xe64   : > { %v7208_v62 = vadd.f32 %v7188_v58, %v7130_v29  ;;  %v7207_v23 = vadd.f32 %v7185_v39, %v7130_v29 }
 0xe66   : > { %7225 = vst.msk [vmem:[%s12124_s7 + $0x68] sm:$0xff] %vm7211_vm4, %v7208_v62  ;;  %7224 = vst.msk [vmem:[%s12124_s7 + $0x60] sm:$0xff] %vm7211_vm4, %v7207_v23 }
 0xe67   : > { %v7194_v46 = vpop.xlane.xlu1 %7193  ;;  %v7191_v48 = vpop.xlane.xlu0 %7190 }
 0xe68   : > { %v7210_v30 = vadd.f32 %v7194_v46, %v7130_v29  ;;  %v7209_v13 = vadd.f32 %v7191_v48, %v7130_v29 }
 0xe6a   : > { %7227 = vst.msk [vmem:[%s12124_s7 + $0x78] sm:$0xff] %vm7211_vm4, %v7210_v30  ;;  %7226 = vst.msk [vmem:[%s12124_s7 + $0x70] sm:$0xff] %vm7211_vm4, %v7209_v13 }
 0xe6b PF: > { %p19_p0 = scmp.ge.s32.totalorder %s9150_s10, 4   ;;  %s12410_s21 = smov %s8996_s22 }
 0xe6c   : > { %s12411_s22 = smov %s9000_s23  ;;  %s12412_s23 = smov %s9161_s30 }
 0xe6d   : > { %s12413_s24 = smov %s9150_s10  ;;  %21 = sbr.rel (!%p19_p0) target bundleno = 6 (0x6), region = 107 }
 0xe72   :  { %7249 = vsyncpa [#allocation3], 1 }
 0xe73   :  { %7251 = vsyncpa [#allocation3 + $0x1], 1 }
 0xe74   :  { %7252 = vsyncpa [#allocation5], 1 }
 0xe75   :  { %7253 = vsyncpa [#allocation8], 1 }
 0xe76   :  { %7254 = vsyncpa [#allocation11], 1 }

</bundles_post_ra>
